<compile_context>
chip_gen: v6e
topology: v6e:2x2x1
jax: 0.10.0
libtpu: 0.0.40
codegen_flags: <defaults>
</compile_context>

<pallas_src>
import math
import jax
import jax.numpy as jnp
from jax import lax
from jax.experimental import pallas as pl
from jax.experimental.pallas import tpu as pltpu

# ---------------- problem sizes (small, consistent with the module) ----------------
T = 8          # sequence length
B = 2          # batch
D = 16         # input_dim
H = 32         # hidden_dim
R = 4          # mod_rank  (kWTA(0.25) -> k = round(0.25*4) = 1)
OUT = 8        # out_dim
POS_PROP = 0.8
N_POS = round(H * POS_PROP)   # bipolar split point / excitatory units
G4 = 4 * H                    # 128 (gate width = lane width)

# ---- lane offsets inside vec_pack row 6 (packed small vectors) ----
_OFF_ALPHA = 0                      # alpha_ei   [0:32)
_OFF_BM = H                         # h2mod bias [32:36)
_OFF_BMH = H + R                    # mod2h bias [36:68)
_OFF_STAU = H + R + H               # sigmoid(tau_U) [68:100)
_OFF_DECB = H + R + H + H           # decoder bias [100:108)

# ---- row / lane offsets inside mat_pack ----
_ROW_WX = 0        # rows [0:16)   : x2h weight  (D, 4H)
_ROW_WH = 16       # rows [16:48)  : h2h weight  (H, 4H)
_ROW_AUX = 48      # rows [48:80)  : aux slab
_LANE_WM = 0       # aux lanes [0:4)    : h2mod weight (H, R)
_LANE_DECW = 8     # aux lanes [8:16)   : decoder weight (H, OUT)
_LANE_WMH = 64     # aux rows [48:52), lanes [64:96) : mod2h weight (R, H)


def _ln_stable(y, g, b):
    # two-pass LayerNorm (numerically stable) -- used only on the hoisted x2h path
    mu = jnp.mean(y, axis=-1, keepdims=True)
    var = jnp.mean((y - mu) ** 2, axis=-1, keepdims=True)
    return (y - mu) * lax.rsqrt(var + 1e-5) * g + b


def _ln_fast(y, g, b):
    # E[y^2] - E[y]^2 form: the two cross-lane reduces are independent, removing one
    # serialized XLU reduce from the per-step critical path of the recurrence.
    mu = jnp.mean(y, axis=-1, keepdims=True)
    ms = jnp.mean(y * y, axis=-1, keepdims=True)
    var = jnp.maximum(ms - mu * mu, 0.0)
    return (y - mu) * lax.rsqrt(var + 1e-5) * g + b


# ---------------- Pallas kernel: full SGRUCell sequence + decoder in one invocation ----------
def sgru_kernel(
    # inputs
    x_ref,                                            # (T*B, D)
    h0_ref, v0_ref, dU0_ref, e0_ref, E0_ref,          # initial states
    mat_ref,                                          # (80, 4H) packed matrices
    vec_ref,                                          # (8, 4H)  packed vectors
    # outputs
    out_seq_ref,                                      # (T*B, H)   per-timestep hidden output
    dec_ref,                                          # (T*B, OUT) decoded output
    h_ref, v_ref, dU_ref, e_ref, E_ref,               # final states (aliased onto inputs)
):
    # ---- unpack parameters (hoisted; static slices of tile-aligned loads) ----
    vp = vec_ref[...]                                  # (8, 128) = 1 vreg
    bx, bh = vp[0:1, :], vp[1:2, :]
    lnxg, lnxb = vp[2:3, :], vp[3:4, :]
    lnhg, lnhb = vp[4:5, :], vp[5:6, :]
    alpha_ei = vp[6:7, _OFF_ALPHA:_OFF_ALPHA + H]      # (1, H)
    bm = vp[6:7, _OFF_BM:_OFF_BM + R]                  # (1, R)
    bmh = vp[6:7, _OFF_BMH:_OFF_BMH + H]               # (1, H)
    stau3 = vp[6:7, _OFF_STAU:_OFF_STAU + H][:, :, None]   # (1, H, 1)
    dec_b = vp[6:7, _OFF_DECB:_OFF_DECB + OUT]         # (1, OUT)

    wx = mat_ref[_ROW_WX:_ROW_WX + D, :]               # (D, 4H)
    # bf16 h2h weights: single-pass MXU matmul on the latency-bound recurrence path
    wh_bf = mat_ref[_ROW_WH:_ROW_WH + H, :].astype(jnp.bfloat16)   # (H, 4H)
    aux = mat_ref[_ROW_AUX:_ROW_AUX + H, :]            # (H, 4H) aux slab
    wm = aux[:, _LANE_WM:_LANE_WM + R]                 # (H, R)
    dec_w = aux[:, _LANE_DECW:_LANE_DECW + OUT]        # (H, OUT)
    wmh = aux[0:R, _LANE_WMH:_LANE_WMH + H]            # (R, H)

    # ---- hoisted input-to-hidden path: one batched matmul + stable LayerNorm ----
    x_all = x_ref[...]                                 # (T*B, D)
    Wx_all = _ln_stable(
        jnp.dot(x_all, wx, preferred_element_type=jnp.float32) + bx, lnxg, lnxb)   # (T*B, 4H)

    pos_mask = lax.broadcasted_iota(jnp.int32, (B, H), 1) < N_POS   # hoisted bipolar mask

    h = h0_ref[...]
    v = v0_ref[...]
    dU = dU0_ref[...]
    e = e0_ref[...]
    E = E0_ref[...]

    # Fully unrolled recurrence (T = 8): one basic block, LLO can overlap across timesteps.
    h_steps = []
    for t in range(T):
        Wx = Wx_all[t * B:(t + 1) * B]                 # (B, 4H)
        Wh = _ln_fast(
            jnp.dot(h.astype(jnp.bfloat16), wh_bf, preferred_element_type=jnp.float32) + bh,
            lnhg, lnhb)

        g = Wx + Wh                                    # fused gate preactivations (B, 4H)
        sig = jax.nn.sigmoid(g)                        # single EUP pass over the lane-dense tile
        f = sig[:, 0 * H:1 * H]
        i_g = sig[:, 1 * H:2 * H]
        s = sig[:, 2 * H:3 * H]

        # plastic term: (EI_mask * |alpha| * dU) @ h == alpha_ei[i] * sum_j dU[b,i,j] h[b,j]
        plast = jnp.sum(dU * h[:, None, :], axis=-1) * alpha_ei      # (B, H)
        dv = g[:, 3 * H:4 * H] + plast
        v = f * v + i_g * dv

        # BipolarWrapper(Swish): -swish(-v) == v - swish(v)  -> one sigmoid instead of two
        sw = v * jax.nn.sigmoid(v)
        new_h = jnp.where(pos_mask, sw, v - sw)

        # modulation path: h2mod -> kWTA(k = round(0.25*R) = 1) -> mod2h
        h2m = jnp.dot(new_h, wm, preferred_element_type=jnp.float32) + bm     # (B, R)
        thr = jnp.max(h2m, axis=-1, keepdims=True)
        # TODO(synk): kWTA via >= max keeps tied maxima; exact top-k needed to generalize to k > 1.
        mwta = jnp.where(h2m >= thr, h2m, 0.0)
        # mod2h as an unrolled VPU broadcast-FMA (R = 4) instead of a tiny serialized MXU matmul
        m2h = bmh + mwta[:, 0:1] * wmh[0:1, :]
        for r in range(1, R):
            m2h = m2h + mwta[:, r:r + 1] * wmh[r:r + 1, :]           # (B, H)

        # eligibility traces
        new_e = f * e + i_g * new_h

        # plastic-weight update uses the OLD trace_E (as in the reference); compute it first
        # to keep fewer (B,H,H) temporaries live at once.
        new_dU = jnp.clip(stau3 * dU + m2h[:, :, None] * E, -5.0, 5.0)

        s3 = s[:, :, None]
        E = (1.0 - s3) * E + s3 * (new_h[:, :, None] * e[:, None, :]
                                   - new_e[:, :, None] * h[:, None, :])

        h_steps.append(new_h)                          # kept in registers, stored once below
        h, e, dU = new_h, new_e, new_dU

    # final states (outputs aliased onto the input state buffers)
    h_ref[...] = h
    v_ref[...] = v
    dU_ref[...] = dU
    e_ref[...] = e
    E_ref[...] = E

    # single lane-dense sequence store + fused decoder fed directly from register values
    seq = jnp.concatenate(h_steps, axis=0)             # (T*B, H)
    out_seq_ref[...] = seq
    dec_ref[...] = jnp.dot(seq, dec_w, preferred_element_type=jnp.float32) + dec_b


def _sgru_forward_impl(x, h0, v0, dU0, e0, E0, mat_pack, vec_pack):
    """Runs the single SGRUCell over the sequence + fused decoder in one pallas_call."""
    x2 = x.reshape(T * B, D)                           # free (contiguous) reshape in the wrapper
    inputs = (x2, h0, v0, dU0, e0, E0, mat_pack, vec_pack)

    def full(shape):
        n = len(shape)
        return pl.BlockSpec(shape, lambda i, _n=n: (0,) * _n)

    in_specs = [full(a.shape) for a in inputs]

    out_shapes = [
        jax.ShapeDtypeStruct((T * B, H), jnp.float32),    # per-step hidden output (lane-dense 2D)
        jax.ShapeDtypeStruct((T * B, OUT), jnp.float32),  # decoded output (lane-dense 2D)
        jax.ShapeDtypeStruct((B, H), jnp.float32),        # h
        jax.ShapeDtypeStruct((B, H), jnp.float32),        # v
        jax.ShapeDtypeStruct((B, H, H), jnp.float32),     # dU
        jax.ShapeDtypeStruct((B, H), jnp.float32),        # trace_e
        jax.ShapeDtypeStruct((B, H, H), jnp.float32),     # trace_E
    ]
    out_specs = [full(s.shape) for s in out_shapes]

    out_seq, decoded, h_f, v_f, dU_f, e_f, E_f = pl.pallas_call(
        sgru_kernel,
        grid=(1,),
        in_specs=in_specs,
        out_specs=out_specs,
        out_shape=out_shapes,
        # recurrent state outputs reuse the (donated) input state buffers
        input_output_aliases={1: 2, 2: 3, 3: 4, 4: 5, 5: 6},
        compiler_params=pltpu.CompilerParams(dimension_semantics=("arbitrary",)),
    )(*inputs)

    return (v_f, h_f, dU_f, (e_f, E_f),
            (out_seq.reshape(T, B, H), decoded.reshape(T, B, OUT)))


# jit + donated state args so input_output_aliases is effective (no extra HBM copies)
sgru_forward = jax.jit(_sgru_forward_impl, donate_argnums=(1, 2, 3, 4, 5))


def make_params(key):
    ks = jax.random.split(key, 10)

    # x2h: xavier_uniform, zero bias
    lim = math.sqrt(6.0 / (D + 4 * H))
    x2h_w = jax.random.uniform(ks[0], (4 * H, D), minval=-lim, maxval=lim, dtype=jnp.float32)
    x2h_b = jnp.zeros((4 * H,), jnp.float32)

    # h2h: per-gate orthogonal blocks, special bias init
    blocks = []
    for j in range(4):
        a = jax.random.normal(jax.random.fold_in(ks[1], j), (H, H), dtype=jnp.float32)
        q, r = jnp.linalg.qr(a)
        q = q * jnp.sign(jnp.diagonal(r))[None, :]
        blocks.append(q)
    h2h_w = jnp.concatenate(blocks, axis=0)                # (4H, H)
    h2h_b = jnp.zeros((4 * H,), jnp.float32)
    h2h_b = h2h_b.at[0 * H:1 * H].set(jnp.log(1.0 + jax.random.uniform(ks[2], (H,)) * 20.0))
    h2h_b = h2h_b.at[1 * H:2 * H].set(-jnp.log(1.0 + jax.random.uniform(ks[3], (H,)) * 20.0))
    h2h_b = h2h_b.at[2 * H:3 * H].set(-jnp.log(10.0 + jax.random.uniform(ks[4], (H,)) * 30.0))

    # layernorm params (default ones / zeros)
    lnxg = jnp.ones((4 * H,), jnp.float32); lnxb = jnp.zeros((4 * H,), jnp.float32)
    lnhg = jnp.ones((4 * H,), jnp.float32); lnhb = jnp.zeros((4 * H,), jnp.float32)

    # alpha, tau_U, EI mask
    alpha = 0.1 * jax.random.uniform(ks[5], (H,)) * math.sqrt(1.0 / H)
    tau_U = jnp.log(20.0 + jax.random.uniform(ks[6], (H,)) * 40.0)
    ei = jnp.concatenate([jnp.ones((N_POS,)), -jnp.ones((H - N_POS,))], axis=0)
    alpha_ei = (ei * jnp.abs(alpha)).astype(jnp.float32)
    stau = jax.nn.sigmoid(tau_U).astype(jnp.float32)

    # h2mod / mod2h: xavier_normal, zero bias
    h2mod_w = math.sqrt(2.0 / (H + R)) * jax.random.normal(ks[7], (R, H), dtype=jnp.float32)
    h2mod_b = jnp.zeros((R,), jnp.float32)
    mod2h_w = math.sqrt(2.0 / (R + H)) * jax.random.normal(ks[8], (H, R), dtype=jnp.float32)
    mod2h_b = jnp.zeros((H,), jnp.float32)

    # decoder (continuous output): xavier_normal weight, zero bias
    dec_w = math.sqrt(2.0 / (H + OUT)) * jax.random.normal(ks[9], (OUT, H), dtype=jnp.float32)
    dec_b = jnp.zeros((OUT,), jnp.float32)

    # ---- pack all small parameters into two DMA-friendly arrays ----
    vec_pack = jnp.zeros((8, G4), jnp.float32)
    vec_pack = vec_pack.at[0].set(x2h_b)
    vec_pack = vec_pack.at[1].set(h2h_b)
    vec_pack = vec_pack.at[2].set(lnxg)
    vec_pack = vec_pack.at[3].set(lnxb)
    vec_pack = vec_pack.at[4].set(lnhg)
    vec_pack = vec_pack.at[5].set(lnhb)
    vec_pack = vec_pack.at[6, _OFF_ALPHA:_OFF_ALPHA + H].set(alpha_ei)
    vec_pack = vec_pack.at[6, _OFF_BM:_OFF_BM + R].set(h2mod_b)
    vec_pack = vec_pack.at[6, _OFF_BMH:_OFF_BMH + H].set(mod2h_b)
    vec_pack = vec_pack.at[6, _OFF_STAU:_OFF_STAU + H].set(stau)
    vec_pack = vec_pack.at[6, _OFF_DECB:_OFF_DECB + OUT].set(dec_b)

    mat_pack = jnp.zeros((80, G4), jnp.float32)
    mat_pack = mat_pack.at[_ROW_WX:_ROW_WX + D, :].set(x2h_w.T)                          # (D, 4H)
    mat_pack = mat_pack.at[_ROW_WH:_ROW_WH + H, :].set(h2h_w.T)                          # (H, 4H)
    mat_pack = mat_pack.at[_ROW_AUX:_ROW_AUX + H, _LANE_WM:_LANE_WM + R].set(h2mod_w.T)  # (H, R)
    mat_pack = mat_pack.at[_ROW_AUX:_ROW_AUX + H, _LANE_DECW:_LANE_DECW + OUT].set(dec_w.T)  # (H, OUT)
    mat_pack = mat_pack.at[_ROW_AUX:_ROW_AUX + R, _LANE_WMH:_LANE_WMH + H].set(mod2h_w.T)    # (R, H)

    return mat_pack, vec_pack


if __name__ == "__main__":
    key = jax.random.PRNGKey(0)
    pkey, xkey = jax.random.split(key)
    mat_pack, vec_pack = make_params(pkey)

    # inputs + zero initial states (as in SGRU.get_init_states)
    x = jax.random.normal(xkey, (T, B, D), dtype=jnp.float32)
    h0 = jnp.zeros((B, H), jnp.float32)
    v0 = jnp.zeros((B, H), jnp.float32)
    dU0 = jnp.zeros((B, H, H), jnp.float32)
    e0 = jnp.zeros((B, H), jnp.float32)
    E0 = jnp.zeros((B, H, H), jnp.float32)

    v_f, h_f, dU_f, trace_f, (seq_h, decoded) = sgru_forward(
        x, h0, v0, dU0, e0, E0, mat_pack, vec_pack)
    jax.block_until_ready((v_f, h_f, dU_f, trace_f, seq_h, decoded))

    assert seq_h.shape == (T, B, H) and decoded.shape == (T, B, OUT)
    assert dU_f.shape == (B, H, H) and trace_f[1].shape == (B, H, H)
    assert bool(jnp.all(jnp.isfinite(decoded)))
    print("KERNEL_OK")
</pallas_src>

<mosaic_0001>
module attributes {stable_mosaic.version = 11 : i64} {
  func.func @sgru_kernel(%arg0: i32, %arg1: memref<16x16xf32, #tpu.memory_space<vmem>>, %arg2: memref<2x32xf32, #tpu.memory_space<vmem>>, %arg3: memref<2x32xf32, #tpu.memory_space<vmem>>, %arg4: memref<2x32x32xf32, #tpu.memory_space<vmem>>, %arg5: memref<2x32xf32, #tpu.memory_space<vmem>>, %arg6: memref<2x32x32xf32, #tpu.memory_space<vmem>>, %arg7: memref<80x128xf32, #tpu.memory_space<vmem>>, %arg8: memref<8x128xf32, #tpu.memory_space<vmem>>, %arg9: memref<16x32xf32, #tpu.memory_space<vmem>>, %arg10: memref<16x8xf32, #tpu.memory_space<vmem>>, %arg11: memref<2x32xf32, #tpu.memory_space<vmem>>, %arg12: memref<2x32xf32, #tpu.memory_space<vmem>>, %arg13: memref<2x32x32xf32, #tpu.memory_space<vmem>>, %arg14: memref<2x32xf32, #tpu.memory_space<vmem>>, %arg15: memref<2x32x32xf32, #tpu.memory_space<vmem>>) attributes {dimension_semantics = [#tpu.dimension_semantics<arbitrary>], iteration_bounds = array<i64: 1>, scalar_prefetch = 0 : i64, scratch_operands = 0 : i64, tpu.core_type = #tpu.core_type<tc>, window_params = [{pipeline_mode = #tpu.pipeline_mode<synchronous>, transform_indices = @transform_0, window_bounds = array<i64: 16, 16>}, {pipeline_mode = #tpu.pipeline_mode<synchronous>, transform_indices = @transform_1, window_bounds = array<i64: 2, 32>}, {pipeline_mode = #tpu.pipeline_mode<synchronous>, transform_indices = @transform_2, window_bounds = array<i64: 2, 32>}, {pipeline_mode = #tpu.pipeline_mode<synchronous>, transform_indices = @transform_3, window_bounds = array<i64: 2, 32, 32>}, {pipeline_mode = #tpu.pipeline_mode<synchronous>, transform_indices = @transform_4, window_bounds = array<i64: 2, 32>}, {pipeline_mode = #tpu.pipeline_mode<synchronous>, transform_indices = @transform_5, window_bounds = array<i64: 2, 32, 32>}, {pipeline_mode = #tpu.pipeline_mode<synchronous>, transform_indices = @transform_6, window_bounds = array<i64: 80, 128>}, {pipeline_mode = #tpu.pipeline_mode<synchronous>, transform_indices = @transform_7, window_bounds = array<i64: 8, 128>}, {pipeline_mode = #tpu.pipeline_mode<synchronous>, transform_indices = @transform_8, window_bounds = array<i64: 16, 32>}, {pipeline_mode = #tpu.pipeline_mode<synchronous>, transform_indices = @transform_9, window_bounds = array<i64: 16, 8>}, {pipeline_mode = #tpu.pipeline_mode<synchronous>, transform_indices = @transform_10, window_bounds = array<i64: 2, 32>}, {pipeline_mode = #tpu.pipeline_mode<synchronous>, transform_indices = @transform_11, window_bounds = array<i64: 2, 32>}, {pipeline_mode = #tpu.pipeline_mode<synchronous>, transform_indices = @transform_12, window_bounds = array<i64: 2, 32, 32>}, {pipeline_mode = #tpu.pipeline_mode<synchronous>, transform_indices = @transform_13, window_bounds = array<i64: 2, 32>}, {pipeline_mode = #tpu.pipeline_mode<synchronous>, transform_indices = @transform_14, window_bounds = array<i64: 2, 32, 32>}]} {
    %c0 = arith.constant 0 : index
    %c0_0 = arith.constant 0 : index
    %0 = vector.load %arg8[%c0, %c0_0] : memref<8x128xf32, #tpu.memory_space<vmem>>, vector<8x128xf32>
    %1 = vector.extract_strided_slice %0 {offsets = [0, 0], sizes = [1, 128], strides = [1, 1]} : vector<8x128xf32> to vector<1x128xf32>
    %2 = vector.extract_strided_slice %0 {offsets = [1, 0], sizes = [1, 128], strides = [1, 1]} : vector<8x128xf32> to vector<1x128xf32>
    %3 = vector.extract_strided_slice %0 {offsets = [2, 0], sizes = [1, 128], strides = [1, 1]} : vector<8x128xf32> to vector<1x128xf32>
    %4 = vector.extract_strided_slice %0 {offsets = [3, 0], sizes = [1, 128], strides = [1, 1]} : vector<8x128xf32> to vector<1x128xf32>
    %5 = vector.extract_strided_slice %0 {offsets = [4, 0], sizes = [1, 128], strides = [1, 1]} : vector<8x128xf32> to vector<1x128xf32>
    %6 = vector.extract_strided_slice %0 {offsets = [5, 0], sizes = [1, 128], strides = [1, 1]} : vector<8x128xf32> to vector<1x128xf32>
    %7 = vector.extract_strided_slice %0 {offsets = [6, 0], sizes = [1, 32], strides = [1, 1]} : vector<8x128xf32> to vector<1x32xf32>
    %8 = vector.extract_strided_slice %0 {offsets = [6, 32], sizes = [1, 4], strides = [1, 1]} : vector<8x128xf32> to vector<1x4xf32>
    %9 = vector.extract_strided_slice %0 {offsets = [6, 36], sizes = [1, 32], strides = [1, 1]} : vector<8x128xf32> to vector<1x32xf32>
    %10 = vector.extract_strided_slice %0 {offsets = [6, 68], sizes = [1, 32], strides = [1, 1]} : vector<8x128xf32> to vector<1x32xf32>
    %11 = vector.shape_cast %10 : vector<1x32xf32> to vector<1x32x1xf32>
    %12 = vector.extract_strided_slice %0 {offsets = [6, 100], sizes = [1, 8], strides = [1, 1]} : vector<8x128xf32> to vector<1x8xf32>
    %c0_1 = arith.constant 0 : index
    %c0_2 = arith.constant 0 : index
    %13 = vector.load %arg7[%c0_1, %c0_2] : memref<80x128xf32, #tpu.memory_space<vmem>>, vector<16x128xf32>
    %c16 = arith.constant 16 : index
    %c0_3 = arith.constant 0 : index
    %14 = vector.load %arg7[%c16, %c0_3] : memref<80x128xf32, #tpu.memory_space<vmem>>, vector<32x128xf32>
    %15 = arith.truncf %14 : vector<32x128xf32> to vector<32x128xbf16>
    %c48 = arith.constant 48 : index
    %c0_4 = arith.constant 0 : index
    %16 = vector.load %arg7[%c48, %c0_4] : memref<80x128xf32, #tpu.memory_space<vmem>>, vector<32x128xf32>
    %17 = vector.extract_strided_slice %16 {offsets = [0, 0], sizes = [32, 4], strides = [1, 1]} : vector<32x128xf32> to vector<32x4xf32>
    %18 = vector.extract_strided_slice %16 {offsets = [0, 8], sizes = [32, 8], strides = [1, 1]} : vector<32x128xf32> to vector<32x8xf32>
    %19 = vector.extract_strided_slice %16 {offsets = [0, 64], sizes = [4, 32], strides = [1, 1]} : vector<32x128xf32> to vector<4x32xf32>
    %c0_5 = arith.constant 0 : index
    %c0_6 = arith.constant 0 : index
    %20 = vector.load %arg1[%c0_5, %c0_6] : memref<16x16xf32, #tpu.memory_space<vmem>>, vector<16x16xf32>
    %cst = arith.constant dense<0.000000e+00> : vector<16x128xf32>
    %21 = tpu.matmul %20, %13, %cst {dimension_numbers = #tpu.dot_dimension_numbers<[1], [0], [0], [1], [0, 0, 1, 1], [], []>} : vector<16x16xf32>, vector<16x128xf32>, vector<16x128xf32> -> vector<16x128xf32>
    %22 = vector.broadcast %1 : vector<1x128xf32> to vector<16x128xf32>
    %23 = arith.addf %21, %22 : vector<16x128xf32>
    %cst_7 = arith.constant dense<0.000000e+00> : vector<16xf32>
    %24 = vector.multi_reduction <add>, %23, %cst_7 [1] : vector<16x128xf32> to vector<16xf32>
    %25 = vector.shape_cast %24 : vector<16xf32> to vector<16x1xf32>
    %cst_8 = arith.constant 1.280000e+02 : f32
    %26 = vector.broadcast %cst_8 : f32 to vector<16x1xf32>
    %27 = arith.divf %25, %26 : vector<16x1xf32>
    %28 = vector.broadcast %27 : vector<16x1xf32> to vector<16x128xf32>
    %29 = arith.subf %23, %28 : vector<16x128xf32>
    %30 = arith.mulf %29, %29 : vector<16x128xf32>
    %cst_9 = arith.constant dense<0.000000e+00> : vector<16xf32>
    %31 = vector.multi_reduction <add>, %30, %cst_9 [1] : vector<16x128xf32> to vector<16xf32>
    %32 = vector.shape_cast %31 : vector<16xf32> to vector<16x1xf32>
    %cst_10 = arith.constant 1.280000e+02 : f32
    %33 = vector.broadcast %cst_10 : f32 to vector<16x1xf32>
    %34 = arith.divf %32, %33 : vector<16x1xf32>
    %35 = vector.broadcast %27 : vector<16x1xf32> to vector<16x128xf32>
    %36 = arith.subf %23, %35 : vector<16x128xf32>
    %cst_11 = arith.constant 9.99999974E-6 : f32
    %37 = vector.broadcast %cst_11 : f32 to vector<16x1xf32>
    %38 = arith.addf %34, %37 : vector<16x1xf32>
    %39 = math.rsqrt %38 : vector<16x1xf32>
    %40 = vector.broadcast %39 : vector<16x1xf32> to vector<16x128xf32>
    %41 = arith.mulf %36, %40 : vector<16x128xf32>
    %42 = vector.broadcast %3 : vector<1x128xf32> to vector<16x128xf32>
    %43 = arith.mulf %41, %42 : vector<16x128xf32>
    %44 = vector.broadcast %4 : vector<1x128xf32> to vector<16x128xf32>
    %45 = arith.addf %43, %44 : vector<16x128xf32>
    %46 = tpu.iota {dimensions = array<i32: 1>} : vector<2x32xi32>
    %c26_i32 = arith.constant 26 : i32
    %47 = vector.broadcast %c26_i32 : i32 to vector<2x32xi32>
    %48 = arith.cmpi slt, %46, %47 : vector<2x32xi32>
    %c0_12 = arith.constant 0 : index
    %c0_13 = arith.constant 0 : index
    %49 = vector.load %arg2[%c0_12, %c0_13] : memref<2x32xf32, #tpu.memory_space<vmem>>, vector<2x32xf32>
    %c0_14 = arith.constant 0 : index
    %c0_15 = arith.constant 0 : index
    %50 = vector.load %arg3[%c0_14, %c0_15] : memref<2x32xf32, #tpu.memory_space<vmem>>, vector<2x32xf32>
    %c0_16 = arith.constant 0 : index
    %c0_17 = arith.constant 0 : index
    %c0_18 = arith.constant 0 : index
    %51 = vector.load %arg4[%c0_16, %c0_17, %c0_18] : memref<2x32x32xf32, #tpu.memory_space<vmem>>, vector<2x32x32xf32>
    %c0_19 = arith.constant 0 : index
    %c0_20 = arith.constant 0 : index
    %52 = vector.load %arg5[%c0_19, %c0_20] : memref<2x32xf32, #tpu.memory_space<vmem>>, vector<2x32xf32>
    %c0_21 = arith.constant 0 : index
    %c0_22 = arith.constant 0 : index
    %c0_23 = arith.constant 0 : index
    %53 = vector.load %arg6[%c0_21, %c0_22, %c0_23] : memref<2x32x32xf32, #tpu.memory_space<vmem>>, vector<2x32x32xf32>
    %54 = vector.extract_strided_slice %45 {offsets = [0, 0], sizes = [2, 128], strides = [1, 1]} : vector<16x128xf32> to vector<2x128xf32>
    %55 = arith.truncf %49 : vector<2x32xf32> to vector<2x32xbf16>
    %cst_24 = arith.constant dense<0.000000e+00> : vector<2x128xf32>
    %56 = tpu.matmul %55, %15, %cst_24 {dimension_numbers = #tpu.dot_dimension_numbers<[1], [0], [0], [1], [0, 0, 1, 1], [], []>} : vector<2x32xbf16>, vector<32x128xbf16>, vector<2x128xf32> -> vector<2x128xf32>
    %57 = vector.broadcast %2 : vector<1x128xf32> to vector<2x128xf32>
    %58 = arith.addf %56, %57 : vector<2x128xf32>
    %cst_25 = arith.constant dense<0.000000e+00> : vector<2xf32>
    %59 = vector.multi_reduction <add>, %58, %cst_25 [1] : vector<2x128xf32> to vector<2xf32>
    %60 = vector.shape_cast %59 : vector<2xf32> to vector<2x1xf32>
    %cst_26 = arith.constant 1.280000e+02 : f32
    %61 = vector.broadcast %cst_26 : f32 to vector<2x1xf32>
    %62 = arith.divf %60, %61 : vector<2x1xf32>
    %63 = arith.mulf %58, %58 : vector<2x128xf32>
    %cst_27 = arith.constant dense<0.000000e+00> : vector<2xf32>
    %64 = vector.multi_reduction <add>, %63, %cst_27 [1] : vector<2x128xf32> to vector<2xf32>
    %65 = vector.shape_cast %64 : vector<2xf32> to vector<2x1xf32>
    %cst_28 = arith.constant 1.280000e+02 : f32
    %66 = vector.broadcast %cst_28 : f32 to vector<2x1xf32>
    %67 = arith.divf %65, %66 : vector<2x1xf32>
    %68 = arith.mulf %62, %62 : vector<2x1xf32>
    %69 = arith.subf %67, %68 : vector<2x1xf32>
    %cst_29 = arith.constant 0.000000e+00 : f32
    %70 = vector.broadcast %cst_29 : f32 to vector<2x1xf32>
    %71 = arith.maximumf %69, %70 : vector<2x1xf32>
    %72 = vector.broadcast %62 : vector<2x1xf32> to vector<2x128xf32>
    %73 = arith.subf %58, %72 : vector<2x128xf32>
    %cst_30 = arith.constant 9.99999974E-6 : f32
    %74 = vector.broadcast %cst_30 : f32 to vector<2x1xf32>
    %75 = arith.addf %71, %74 : vector<2x1xf32>
    %76 = math.rsqrt %75 : vector<2x1xf32>
    %77 = vector.broadcast %76 : vector<2x1xf32> to vector<2x128xf32>
    %78 = arith.mulf %73, %77 : vector<2x128xf32>
    %79 = vector.broadcast %5 : vector<1x128xf32> to vector<2x128xf32>
    %80 = arith.mulf %78, %79 : vector<2x128xf32>
    %81 = vector.broadcast %6 : vector<1x128xf32> to vector<2x128xf32>
    %82 = arith.addf %80, %81 : vector<2x128xf32>
    %83 = arith.addf %54, %82 : vector<2x128xf32>
    %84 = arith.negf %83 : vector<2x128xf32>
    %85 = math.exp %84 : vector<2x128xf32>
    %cst_31 = arith.constant 1.000000e+00 : f32
    %86 = vector.broadcast %cst_31 : f32 to vector<2x128xf32>
    %87 = arith.addf %86, %85 : vector<2x128xf32>
    %88 = arith.divf %86, %87 : vector<2x128xf32>
    %89 = vector.extract_strided_slice %88 {offsets = [0, 0], sizes = [2, 32], strides = [1, 1]} : vector<2x128xf32> to vector<2x32xf32>
    %90 = vector.extract_strided_slice %88 {offsets = [0, 32], sizes = [2, 32], strides = [1, 1]} : vector<2x128xf32> to vector<2x32xf32>
    %91 = vector.extract_strided_slice %88 {offsets = [0, 64], sizes = [2, 32], strides = [1, 1]} : vector<2x128xf32> to vector<2x32xf32>
    %92 = vector.shape_cast %49 : vector<2x32xf32> to vector<2x1x32xf32>
    %93 = vector.broadcast %92 : vector<2x1x32xf32> to vector<2x32x32xf32>
    %94 = arith.mulf %51, %93 : vector<2x32x32xf32>
    %cst_32 = arith.constant dense<0.000000e+00> : vector<2x32xf32>
    %95 = vector.multi_reduction <add>, %94, %cst_32 [2] : vector<2x32x32xf32> to vector<2x32xf32>
    %96 = vector.broadcast %7 : vector<1x32xf32> to vector<2x32xf32>
    %97 = arith.mulf %95, %96 : vector<2x32xf32>
    %98 = vector.extract_strided_slice %83 {offsets = [0, 96], sizes = [2, 32], strides = [1, 1]} : vector<2x128xf32> to vector<2x32xf32>
    %99 = arith.addf %98, %97 : vector<2x32xf32>
    %100 = arith.mulf %89, %50 : vector<2x32xf32>
    %101 = arith.mulf %90, %99 : vector<2x32xf32>
    %102 = arith.addf %100, %101 : vector<2x32xf32>
    %103 = arith.negf %102 : vector<2x32xf32>
    %104 = math.exp %103 : vector<2x32xf32>
    %cst_33 = arith.constant 1.000000e+00 : f32
    %105 = vector.broadcast %cst_33 : f32 to vector<2x32xf32>
    %106 = arith.addf %105, %104 : vector<2x32xf32>
    %107 = arith.divf %105, %106 : vector<2x32xf32>
    %108 = arith.mulf %102, %107 : vector<2x32xf32>
    %109 = arith.subf %102, %108 : vector<2x32xf32>
    %110 = arith.select %48, %108, %109 : vector<2x32xi1>, vector<2x32xf32>
    %cst_34 = arith.constant dense<0.000000e+00> : vector<2x4xf32>
    %111 = tpu.matmul %110, %17, %cst_34 {dimension_numbers = #tpu.dot_dimension_numbers<[1], [0], [0], [1], [0, 0, 1, 1], [], []>} : vector<2x32xf32>, vector<32x4xf32>, vector<2x4xf32> -> vector<2x4xf32>
    %112 = vector.broadcast %8 : vector<1x4xf32> to vector<2x4xf32>
    %113 = arith.addf %111, %112 : vector<2x4xf32>
    %cst_35 = arith.constant dense<0xFF800000> : vector<2xf32>
    %114 = vector.multi_reduction <maximumf>, %113, %cst_35 [1] : vector<2x4xf32> to vector<2xf32>
    %115 = vector.shape_cast %114 : vector<2xf32> to vector<2x1xf32>
    %116 = vector.broadcast %115 : vector<2x1xf32> to vector<2x4xf32>
    %117 = arith.cmpf oge, %113, %116 : vector<2x4xf32>
    %cst_36 = arith.constant 0.000000e+00 : f32
    %118 = vector.broadcast %cst_36 : f32 to vector<2x4xf32>
    %119 = arith.select %117, %113, %118 : vector<2x4xi1>, vector<2x4xf32>
    %120 = vector.extract_strided_slice %119 {offsets = [0, 0], sizes = [2, 1], strides = [1, 1]} : vector<2x4xf32> to vector<2x1xf32>
    %121 = vector.extract_strided_slice %19 {offsets = [0, 0], sizes = [1, 32], strides = [1, 1]} : vector<4x32xf32> to vector<1x32xf32>
    %122 = vector.broadcast %120 : vector<2x1xf32> to vector<2x32xf32>
    %123 = vector.broadcast %121 : vector<1x32xf32> to vector<2x32xf32>
    %124 = arith.mulf %122, %123 : vector<2x32xf32>
    %125 = vector.broadcast %9 : vector<1x32xf32> to vector<2x32xf32>
    %126 = arith.addf %125, %124 : vector<2x32xf32>
    %127 = vector.extract_strided_slice %119 {offsets = [0, 1], sizes = [2, 1], strides = [1, 1]} : vector<2x4xf32> to vector<2x1xf32>
    %128 = vector.extract_strided_slice %19 {offsets = [1, 0], sizes = [1, 32], strides = [1, 1]} : vector<4x32xf32> to vector<1x32xf32>
    %129 = vector.broadcast %127 : vector<2x1xf32> to vector<2x32xf32>
    %130 = vector.broadcast %128 : vector<1x32xf32> to vector<2x32xf32>
    %131 = arith.mulf %129, %130 : vector<2x32xf32>
    %132 = arith.addf %126, %131 : vector<2x32xf32>
    %133 = vector.extract_strided_slice %119 {offsets = [0, 2], sizes = [2, 1], strides = [1, 1]} : vector<2x4xf32> to vector<2x1xf32>
    %134 = vector.extract_strided_slice %19 {offsets = [2, 0], sizes = [1, 32], strides = [1, 1]} : vector<4x32xf32> to vector<1x32xf32>
    %135 = vector.broadcast %133 : vector<2x1xf32> to vector<2x32xf32>
    %136 = vector.broadcast %134 : vector<1x32xf32> to vector<2x32xf32>
    %137 = arith.mulf %135, %136 : vector<2x32xf32>
    %138 = arith.addf %132, %137 : vector<2x32xf32>
    %139 = vector.extract_strided_slice %119 {offsets = [0, 3], sizes = [2, 1], strides = [1, 1]} : vector<2x4xf32> to vector<2x1xf32>
    %140 = vector.extract_strided_slice %19 {offsets = [3, 0], sizes = [1, 32], strides = [1, 1]} : vector<4x32xf32> to vector<1x32xf32>
    %141 = vector.broadcast %139 : vector<2x1xf32> to vector<2x32xf32>
    %142 = vector.broadcast %140 : vector<1x32xf32> to vector<2x32xf32>
    %143 = arith.mulf %141, %142 : vector<2x32xf32>
    %144 = arith.addf %138, %143 : vector<2x32xf32>
    %145 = arith.mulf %89, %52 : vector<2x32xf32>
    %146 = arith.mulf %90, %110 : vector<2x32xf32>
    %147 = arith.addf %145, %146 : vector<2x32xf32>
    %148 = vector.broadcast %11 : vector<1x32x1xf32> to vector<2x32x32xf32>
    %149 = arith.mulf %148, %51 : vector<2x32x32xf32>
    %150 = vector.shape_cast %144 : vector<2x32xf32> to vector<2x32x1xf32>
    %151 = vector.broadcast %150 : vector<2x32x1xf32> to vector<2x32x32xf32>
    %152 = arith.mulf %151, %53 : vector<2x32x32xf32>
    %153 = arith.addf %149, %152 : vector<2x32x32xf32>
    %cst_37 = arith.constant -5.000000e+00 : f32
    %cst_38 = arith.constant 5.000000e+00 : f32
    %154 = vector.broadcast %cst_37 : f32 to vector<2x32x32xf32>
    %155 = arith.maximumf %154, %153 : vector<2x32x32xf32>
    %156 = vector.broadcast %cst_38 : f32 to vector<2x32x32xf32>
    %157 = arith.minimumf %156, %155 : vector<2x32x32xf32>
    %158 = vector.shape_cast %91 : vector<2x32xf32> to vector<2x32x1xf32>
    %cst_39 = arith.constant 1.000000e+00 : f32
    %159 = vector.broadcast %cst_39 : f32 to vector<2x32x1xf32>
    %160 = arith.subf %159, %158 : vector<2x32x1xf32>
    %161 = vector.broadcast %160 : vector<2x32x1xf32> to vector<2x32x32xf32>
    %162 = arith.mulf %161, %53 : vector<2x32x32xf32>
    %163 = vector.shape_cast %110 : vector<2x32xf32> to vector<2x32x1xf32>
    %164 = vector.shape_cast %52 : vector<2x32xf32> to vector<2x1x32xf32>
    %165 = vector.broadcast %163 : vector<2x32x1xf32> to vector<2x32x32xf32>
    %166 = vector.broadcast %164 : vector<2x1x32xf32> to vector<2x32x32xf32>
    %167 = arith.mulf %165, %166 : vector<2x32x32xf32>
    %168 = vector.shape_cast %147 : vector<2x32xf32> to vector<2x32x1xf32>
    %169 = vector.shape_cast %49 : vector<2x32xf32> to vector<2x1x32xf32>
    %170 = vector.broadcast %168 : vector<2x32x1xf32> to vector<2x32x32xf32>
    %171 = vector.broadcast %169 : vector<2x1x32xf32> to vector<2x32x32xf32>
    %172 = arith.mulf %170, %171 : vector<2x32x32xf32>
    %173 = arith.subf %167, %172 : vector<2x32x32xf32>
    %174 = vector.broadcast %158 : vector<2x32x1xf32> to vector<2x32x32xf32>
    %175 = arith.mulf %174, %173 : vector<2x32x32xf32>
    %176 = arith.addf %162, %175 : vector<2x32x32xf32>
    %177 = vector.extract_strided_slice %45 {offsets = [2, 0], sizes = [2, 128], strides = [1, 1]} : vector<16x128xf32> to vector<2x128xf32>
    %178 = arith.truncf %110 : vector<2x32xf32> to vector<2x32xbf16>
    %cst_40 = arith.constant dense<0.000000e+00> : vector<2x128xf32>
    %179 = tpu.matmul %178, %15, %cst_40 {dimension_numbers = #tpu.dot_dimension_numbers<[1], [0], [0], [1], [0, 0, 1, 1], [], []>} : vector<2x32xbf16>, vector<32x128xbf16>, vector<2x128xf32> -> vector<2x128xf32>
    %180 = vector.broadcast %2 : vector<1x128xf32> to vector<2x128xf32>
    %181 = arith.addf %179, %180 : vector<2x128xf32>
    %cst_41 = arith.constant dense<0.000000e+00> : vector<2xf32>
    %182 = vector.multi_reduction <add>, %181, %cst_41 [1] : vector<2x128xf32> to vector<2xf32>
    %183 = vector.shape_cast %182 : vector<2xf32> to vector<2x1xf32>
    %cst_42 = arith.constant 1.280000e+02 : f32
    %184 = vector.broadcast %cst_42 : f32 to vector<2x1xf32>
    %185 = arith.divf %183, %184 : vector<2x1xf32>
    %186 = arith.mulf %181, %181 : vector<2x128xf32>
    %cst_43 = arith.constant dense<0.000000e+00> : vector<2xf32>
    %187 = vector.multi_reduction <add>, %186, %cst_43 [1] : vector<2x128xf32> to vector<2xf32>
    %188 = vector.shape_cast %187 : vector<2xf32> to vector<2x1xf32>
    %cst_44 = arith.constant 1.280000e+02 : f32
    %189 = vector.broadcast %cst_44 : f32 to vector<2x1xf32>
    %190 = arith.divf %188, %189 : vector<2x1xf32>
    %191 = arith.mulf %185, %185 : vector<2x1xf32>
    %192 = arith.subf %190, %191 : vector<2x1xf32>
    %cst_45 = arith.constant 0.000000e+00 : f32
    %193 = vector.broadcast %cst_45 : f32 to vector<2x1xf32>
    %194 = arith.maximumf %192, %193 : vector<2x1xf32>
    %195 = vector.broadcast %185 : vector<2x1xf32> to vector<2x128xf32>
    %196 = arith.subf %181, %195 : vector<2x128xf32>
    %cst_46 = arith.constant 9.99999974E-6 : f32
    %197 = vector.broadcast %cst_46 : f32 to vector<2x1xf32>
    %198 = arith.addf %194, %197 : vector<2x1xf32>
    %199 = math.rsqrt %198 : vector<2x1xf32>
    %200 = vector.broadcast %199 : vector<2x1xf32> to vector<2x128xf32>
    %201 = arith.mulf %196, %200 : vector<2x128xf32>
    %202 = vector.broadcast %5 : vector<1x128xf32> to vector<2x128xf32>
    %203 = arith.mulf %201, %202 : vector<2x128xf32>
    %204 = vector.broadcast %6 : vector<1x128xf32> to vector<2x128xf32>
    %205 = arith.addf %203, %204 : vector<2x128xf32>
    %206 = arith.addf %177, %205 : vector<2x128xf32>
    %207 = arith.negf %206 : vector<2x128xf32>
    %208 = math.exp %207 : vector<2x128xf32>
    %cst_47 = arith.constant 1.000000e+00 : f32
    %209 = vector.broadcast %cst_47 : f32 to vector<2x128xf32>
    %210 = arith.addf %209, %208 : vector<2x128xf32>
    %211 = arith.divf %209, %210 : vector<2x128xf32>
    %212 = vector.extract_strided_slice %211 {offsets = [0, 0], sizes = [2, 32], strides = [1, 1]} : vector<2x128xf32> to vector<2x32xf32>
    %213 = vector.extract_strided_slice %211 {offsets = [0, 32], sizes = [2, 32], strides = [1, 1]} : vector<2x128xf32> to vector<2x32xf32>
    %214 = vector.extract_strided_slice %211 {offsets = [0, 64], sizes = [2, 32], strides = [1, 1]} : vector<2x128xf32> to vector<2x32xf32>
    %215 = vector.shape_cast %110 : vector<2x32xf32> to vector<2x1x32xf32>
    %216 = vector.broadcast %215 : vector<2x1x32xf32> to vector<2x32x32xf32>
    %217 = arith.mulf %157, %216 : vector<2x32x32xf32>
    %cst_48 = arith.constant dense<0.000000e+00> : vector<2x32xf32>
    %218 = vector.multi_reduction <add>, %217, %cst_48 [2] : vector<2x32x32xf32> to vector<2x32xf32>
    %219 = vector.broadcast %7 : vector<1x32xf32> to vector<2x32xf32>
    %220 = arith.mulf %218, %219 : vector<2x32xf32>
    %221 = vector.extract_strided_slice %206 {offsets = [0, 96], sizes = [2, 32], strides = [1, 1]} : vector<2x128xf32> to vector<2x32xf32>
    %222 = arith.addf %221, %220 : vector<2x32xf32>
    %223 = arith.mulf %212, %102 : vector<2x32xf32>
    %224 = arith.mulf %213, %222 : vector<2x32xf32>
    %225 = arith.addf %223, %224 : vector<2x32xf32>
    %226 = arith.negf %225 : vector<2x32xf32>
    %227 = math.exp %226 : vector<2x32xf32>
    %cst_49 = arith.constant 1.000000e+00 : f32
    %228 = vector.broadcast %cst_49 : f32 to vector<2x32xf32>
    %229 = arith.addf %228, %227 : vector<2x32xf32>
    %230 = arith.divf %228, %229 : vector<2x32xf32>
    %231 = arith.mulf %225, %230 : vector<2x32xf32>
    %232 = arith.subf %225, %231 : vector<2x32xf32>
    %233 = arith.select %48, %231, %232 : vector<2x32xi1>, vector<2x32xf32>
    %cst_50 = arith.constant dense<0.000000e+00> : vector<2x4xf32>
    %234 = tpu.matmul %233, %17, %cst_50 {dimension_numbers = #tpu.dot_dimension_numbers<[1], [0], [0], [1], [0, 0, 1, 1], [], []>} : vector<2x32xf32>, vector<32x4xf32>, vector<2x4xf32> -> vector<2x4xf32>
    %235 = vector.broadcast %8 : vector<1x4xf32> to vector<2x4xf32>
    %236 = arith.addf %234, %235 : vector<2x4xf32>
    %cst_51 = arith.constant dense<0xFF800000> : vector<2xf32>
    %237 = vector.multi_reduction <maximumf>, %236, %cst_51 [1] : vector<2x4xf32> to vector<2xf32>
    %238 = vector.shape_cast %237 : vector<2xf32> to vector<2x1xf32>
    %239 = vector.broadcast %238 : vector<2x1xf32> to vector<2x4xf32>
    %240 = arith.cmpf oge, %236, %239 : vector<2x4xf32>
    %cst_52 = arith.constant 0.000000e+00 : f32
    %241 = vector.broadcast %cst_52 : f32 to vector<2x4xf32>
    %242 = arith.select %240, %236, %241 : vector<2x4xi1>, vector<2x4xf32>
    %243 = vector.extract_strided_slice %242 {offsets = [0, 0], sizes = [2, 1], strides = [1, 1]} : vector<2x4xf32> to vector<2x1xf32>
    %244 = vector.extract_strided_slice %19 {offsets = [0, 0], sizes = [1, 32], strides = [1, 1]} : vector<4x32xf32> to vector<1x32xf32>
    %245 = vector.broadcast %243 : vector<2x1xf32> to vector<2x32xf32>
    %246 = vector.broadcast %244 : vector<1x32xf32> to vector<2x32xf32>
    %247 = arith.mulf %245, %246 : vector<2x32xf32>
    %248 = vector.broadcast %9 : vector<1x32xf32> to vector<2x32xf32>
    %249 = arith.addf %248, %247 : vector<2x32xf32>
    %250 = vector.extract_strided_slice %242 {offsets = [0, 1], sizes = [2, 1], strides = [1, 1]} : vector<2x4xf32> to vector<2x1xf32>
    %251 = vector.extract_strided_slice %19 {offsets = [1, 0], sizes = [1, 32], strides = [1, 1]} : vector<4x32xf32> to vector<1x32xf32>
    %252 = vector.broadcast %250 : vector<2x1xf32> to vector<2x32xf32>
    %253 = vector.broadcast %251 : vector<1x32xf32> to vector<2x32xf32>
    %254 = arith.mulf %252, %253 : vector<2x32xf32>
    %255 = arith.addf %249, %254 : vector<2x32xf32>
    %256 = vector.extract_strided_slice %242 {offsets = [0, 2], sizes = [2, 1], strides = [1, 1]} : vector<2x4xf32> to vector<2x1xf32>
    %257 = vector.extract_strided_slice %19 {offsets = [2, 0], sizes = [1, 32], strides = [1, 1]} : vector<4x32xf32> to vector<1x32xf32>
    %258 = vector.broadcast %256 : vector<2x1xf32> to vector<2x32xf32>
    %259 = vector.broadcast %257 : vector<1x32xf32> to vector<2x32xf32>
    %260 = arith.mulf %258, %259 : vector<2x32xf32>
    %261 = arith.addf %255, %260 : vector<2x32xf32>
    %262 = vector.extract_strided_slice %242 {offsets = [0, 3], sizes = [2, 1], strides = [1, 1]} : vector<2x4xf32> to vector<2x1xf32>
    %263 = vector.extract_strided_slice %19 {offsets = [3, 0], sizes = [1, 32], strides = [1, 1]} : vector<4x32xf32> to vector<1x32xf32>
    %264 = vector.broadcast %262 : vector<2x1xf32> to vector<2x32xf32>
    %265 = vector.broadcast %263 : vector<1x32xf32> to vector<2x32xf32>
    %266 = arith.mulf %264, %265 : vector<2x32xf32>
    %267 = arith.addf %261, %266 : vector<2x32xf32>
    %268 = arith.mulf %212, %147 : vector<2x32xf32>
    %269 = arith.mulf %213, %233 : vector<2x32xf32>
    %270 = arith.addf %268, %269 : vector<2x32xf32>
    %271 = vector.broadcast %11 : vector<1x32x1xf32> to vector<2x32x32xf32>
    %272 = arith.mulf %271, %157 : vector<2x32x32xf32>
    %273 = vector.shape_cast %267 : vector<2x32xf32> to vector<2x32x1xf32>
    %274 = vector.broadcast %273 : vector<2x32x1xf32> to vector<2x32x32xf32>
    %275 = arith.mulf %274, %176 : vector<2x32x32xf32>
    %276 = arith.addf %272, %275 : vector<2x32x32xf32>
    %cst_53 = arith.constant -5.000000e+00 : f32
    %cst_54 = arith.constant 5.000000e+00 : f32
    %277 = vector.broadcast %cst_53 : f32 to vector<2x32x32xf32>
    %278 = arith.maximumf %277, %276 : vector<2x32x32xf32>
    %279 = vector.broadcast %cst_54 : f32 to vector<2x32x32xf32>
    %280 = arith.minimumf %279, %278 : vector<2x32x32xf32>
    %281 = vector.shape_cast %214 : vector<2x32xf32> to vector<2x32x1xf32>
    %cst_55 = arith.constant 1.000000e+00 : f32
    %282 = vector.broadcast %cst_55 : f32 to vector<2x32x1xf32>
    %283 = arith.subf %282, %281 : vector<2x32x1xf32>
    %284 = vector.broadcast %283 : vector<2x32x1xf32> to vector<2x32x32xf32>
    %285 = arith.mulf %284, %176 : vector<2x32x32xf32>
    %286 = vector.shape_cast %233 : vector<2x32xf32> to vector<2x32x1xf32>
    %287 = vector.shape_cast %147 : vector<2x32xf32> to vector<2x1x32xf32>
    %288 = vector.broadcast %286 : vector<2x32x1xf32> to vector<2x32x32xf32>
    %289 = vector.broadcast %287 : vector<2x1x32xf32> to vector<2x32x32xf32>
    %290 = arith.mulf %288, %289 : vector<2x32x32xf32>
    %291 = vector.shape_cast %270 : vector<2x32xf32> to vector<2x32x1xf32>
    %292 = vector.shape_cast %110 : vector<2x32xf32> to vector<2x1x32xf32>
    %293 = vector.broadcast %291 : vector<2x32x1xf32> to vector<2x32x32xf32>
    %294 = vector.broadcast %292 : vector<2x1x32xf32> to vector<2x32x32xf32>
    %295 = arith.mulf %293, %294 : vector<2x32x32xf32>
    %296 = arith.subf %290, %295 : vector<2x32x32xf32>
    %297 = vector.broadcast %281 : vector<2x32x1xf32> to vector<2x32x32xf32>
    %298 = arith.mulf %297, %296 : vector<2x32x32xf32>
    %299 = arith.addf %285, %298 : vector<2x32x32xf32>
    %300 = vector.extract_strided_slice %45 {offsets = [4, 0], sizes = [2, 128], strides = [1, 1]} : vector<16x128xf32> to vector<2x128xf32>
    %301 = arith.truncf %233 : vector<2x32xf32> to vector<2x32xbf16>
    %cst_56 = arith.constant dense<0.000000e+00> : vector<2x128xf32>
    %302 = tpu.matmul %301, %15, %cst_56 {dimension_numbers = #tpu.dot_dimension_numbers<[1], [0], [0], [1], [0, 0, 1, 1], [], []>} : vector<2x32xbf16>, vector<32x128xbf16>, vector<2x128xf32> -> vector<2x128xf32>
    %303 = vector.broadcast %2 : vector<1x128xf32> to vector<2x128xf32>
    %304 = arith.addf %302, %303 : vector<2x128xf32>
    %cst_57 = arith.constant dense<0.000000e+00> : vector<2xf32>
    %305 = vector.multi_reduction <add>, %304, %cst_57 [1] : vector<2x128xf32> to vector<2xf32>
    %306 = vector.shape_cast %305 : vector<2xf32> to vector<2x1xf32>
    %cst_58 = arith.constant 1.280000e+02 : f32
    %307 = vector.broadcast %cst_58 : f32 to vector<2x1xf32>
    %308 = arith.divf %306, %307 : vector<2x1xf32>
    %309 = arith.mulf %304, %304 : vector<2x128xf32>
    %cst_59 = arith.constant dense<0.000000e+00> : vector<2xf32>
    %310 = vector.multi_reduction <add>, %309, %cst_59 [1] : vector<2x128xf32> to vector<2xf32>
    %311 = vector.shape_cast %310 : vector<2xf32> to vector<2x1xf32>
    %cst_60 = arith.constant 1.280000e+02 : f32
    %312 = vector.broadcast %cst_60 : f32 to vector<2x1xf32>
    %313 = arith.divf %311, %312 : vector<2x1xf32>
    %314 = arith.mulf %308, %308 : vector<2x1xf32>
    %315 = arith.subf %313, %314 : vector<2x1xf32>
    %cst_61 = arith.constant 0.000000e+00 : f32
    %316 = vector.broadcast %cst_61 : f32 to vector<2x1xf32>
    %317 = arith.maximumf %315, %316 : vector<2x1xf32>
    %318 = vector.broadcast %308 : vector<2x1xf32> to vector<2x128xf32>
    %319 = arith.subf %304, %318 : vector<2x128xf32>
    %cst_62 = arith.constant 9.99999974E-6 : f32
    %320 = vector.broadcast %cst_62 : f32 to vector<2x1xf32>
    %321 = arith.addf %317, %320 : vector<2x1xf32>
    %322 = math.rsqrt %321 : vector<2x1xf32>
    %323 = vector.broadcast %322 : vector<2x1xf32> to vector<2x128xf32>
    %324 = arith.mulf %319, %323 : vector<2x128xf32>
    %325 = vector.broadcast %5 : vector<1x128xf32> to vector<2x128xf32>
    %326 = arith.mulf %324, %325 : vector<2x128xf32>
    %327 = vector.broadcast %6 : vector<1x128xf32> to vector<2x128xf32>
    %328 = arith.addf %326, %327 : vector<2x128xf32>
    %329 = arith.addf %300, %328 : vector<2x128xf32>
    %330 = arith.negf %329 : vector<2x128xf32>
    %331 = math.exp %330 : vector<2x128xf32>
    %cst_63 = arith.constant 1.000000e+00 : f32
    %332 = vector.broadcast %cst_63 : f32 to vector<2x128xf32>
    %333 = arith.addf %332, %331 : vector<2x128xf32>
    %334 = arith.divf %332, %333 : vector<2x128xf32>
    %335 = vector.extract_strided_slice %334 {offsets = [0, 0], sizes = [2, 32], strides = [1, 1]} : vector<2x128xf32> to vector<2x32xf32>
    %336 = vector.extract_strided_slice %334 {offsets = [0, 32], sizes = [2, 32], strides = [1, 1]} : vector<2x128xf32> to vector<2x32xf32>
    %337 = vector.extract_strided_slice %334 {offsets = [0, 64], sizes = [2, 32], strides = [1, 1]} : vector<2x128xf32> to vector<2x32xf32>
    %338 = vector.shape_cast %233 : vector<2x32xf32> to vector<2x1x32xf32>
    %339 = vector.broadcast %338 : vector<2x1x32xf32> to vector<2x32x32xf32>
    %340 = arith.mulf %280, %339 : vector<2x32x32xf32>
    %cst_64 = arith.constant dense<0.000000e+00> : vector<2x32xf32>
    %341 = vector.multi_reduction <add>, %340, %cst_64 [2] : vector<2x32x32xf32> to vector<2x32xf32>
    %342 = vector.broadcast %7 : vector<1x32xf32> to vector<2x32xf32>
    %343 = arith.mulf %341, %342 : vector<2x32xf32>
    %344 = vector.extract_strided_slice %329 {offsets = [0, 96], sizes = [2, 32], strides = [1, 1]} : vector<2x128xf32> to vector<2x32xf32>
    %345 = arith.addf %344, %343 : vector<2x32xf32>
    %346 = arith.mulf %335, %225 : vector<2x32xf32>
    %347 = arith.mulf %336, %345 : vector<2x32xf32>
    %348 = arith.addf %346, %347 : vector<2x32xf32>
    %349 = arith.negf %348 : vector<2x32xf32>
    %350 = math.exp %349 : vector<2x32xf32>
    %cst_65 = arith.constant 1.000000e+00 : f32
    %351 = vector.broadcast %cst_65 : f32 to vector<2x32xf32>
    %352 = arith.addf %351, %350 : vector<2x32xf32>
    %353 = arith.divf %351, %352 : vector<2x32xf32>
    %354 = arith.mulf %348, %353 : vector<2x32xf32>
    %355 = arith.subf %348, %354 : vector<2x32xf32>
    %356 = arith.select %48, %354, %355 : vector<2x32xi1>, vector<2x32xf32>
    %cst_66 = arith.constant dense<0.000000e+00> : vector<2x4xf32>
    %357 = tpu.matmul %356, %17, %cst_66 {dimension_numbers = #tpu.dot_dimension_numbers<[1], [0], [0], [1], [0, 0, 1, 1], [], []>} : vector<2x32xf32>, vector<32x4xf32>, vector<2x4xf32> -> vector<2x4xf32>
    %358 = vector.broadcast %8 : vector<1x4xf32> to vector<2x4xf32>
    %359 = arith.addf %357, %358 : vector<2x4xf32>
    %cst_67 = arith.constant dense<0xFF800000> : vector<2xf32>
    %360 = vector.multi_reduction <maximumf>, %359, %cst_67 [1] : vector<2x4xf32> to vector<2xf32>
    %361 = vector.shape_cast %360 : vector<2xf32> to vector<2x1xf32>
    %362 = vector.broadcast %361 : vector<2x1xf32> to vector<2x4xf32>
    %363 = arith.cmpf oge, %359, %362 : vector<2x4xf32>
    %cst_68 = arith.constant 0.000000e+00 : f32
    %364 = vector.broadcast %cst_68 : f32 to vector<2x4xf32>
    %365 = arith.select %363, %359, %364 : vector<2x4xi1>, vector<2x4xf32>
    %366 = vector.extract_strided_slice %365 {offsets = [0, 0], sizes = [2, 1], strides = [1, 1]} : vector<2x4xf32> to vector<2x1xf32>
    %367 = vector.extract_strided_slice %19 {offsets = [0, 0], sizes = [1, 32], strides = [1, 1]} : vector<4x32xf32> to vector<1x32xf32>
    %368 = vector.broadcast %366 : vector<2x1xf32> to vector<2x32xf32>
    %369 = vector.broadcast %367 : vector<1x32xf32> to vector<2x32xf32>
    %370 = arith.mulf %368, %369 : vector<2x32xf32>
    %371 = vector.broadcast %9 : vector<1x32xf32> to vector<2x32xf32>
    %372 = arith.addf %371, %370 : vector<2x32xf32>
    %373 = vector.extract_strided_slice %365 {offsets = [0, 1], sizes = [2, 1], strides = [1, 1]} : vector<2x4xf32> to vector<2x1xf32>
    %374 = vector.extract_strided_slice %19 {offsets = [1, 0], sizes = [1, 32], strides = [1, 1]} : vector<4x32xf32> to vector<1x32xf32>
    %375 = vector.broadcast %373 : vector<2x1xf32> to vector<2x32xf32>
    %376 = vector.broadcast %374 : vector<1x32xf32> to vector<2x32xf32>
    %377 = arith.mulf %375, %376 : vector<2x32xf32>
    %378 = arith.addf %372, %377 : vector<2x32xf32>
    %379 = vector.extract_strided_slice %365 {offsets = [0, 2], sizes = [2, 1], strides = [1, 1]} : vector<2x4xf32> to vector<2x1xf32>
    %380 = vector.extract_strided_slice %19 {offsets = [2, 0], sizes = [1, 32], strides = [1, 1]} : vector<4x32xf32> to vector<1x32xf32>
    %381 = vector.broadcast %379 : vector<2x1xf32> to vector<2x32xf32>
    %382 = vector.broadcast %380 : vector<1x32xf32> to vector<2x32xf32>
    %383 = arith.mulf %381, %382 : vector<2x32xf32>
    %384 = arith.addf %378, %383 : vector<2x32xf32>
    %385 = vector.extract_strided_slice %365 {offsets = [0, 3], sizes = [2, 1], strides = [1, 1]} : vector<2x4xf32> to vector<2x1xf32>
    %386 = vector.extract_strided_slice %19 {offsets = [3, 0], sizes = [1, 32], strides = [1, 1]} : vector<4x32xf32> to vector<1x32xf32>
    %387 = vector.broadcast %385 : vector<2x1xf32> to vector<2x32xf32>
    %388 = vector.broadcast %386 : vector<1x32xf32> to vector<2x32xf32>
    %389 = arith.mulf %387, %388 : vector<2x32xf32>
    %390 = arith.addf %384, %389 : vector<2x32xf32>
    %391 = arith.mulf %335, %270 : vector<2x32xf32>
    %392 = arith.mulf %336, %356 : vector<2x32xf32>
    %393 = arith.addf %391, %392 : vector<2x32xf32>
    %394 = vector.broadcast %11 : vector<1x32x1xf32> to vector<2x32x32xf32>
    %395 = arith.mulf %394, %280 : vector<2x32x32xf32>
    %396 = vector.shape_cast %390 : vector<2x32xf32> to vector<2x32x1xf32>
    %397 = vector.broadcast %396 : vector<2x32x1xf32> to vector<2x32x32xf32>
    %398 = arith.mulf %397, %299 : vector<2x32x32xf32>
    %399 = arith.addf %395, %398 : vector<2x32x32xf32>
    %cst_69 = arith.constant -5.000000e+00 : f32
    %cst_70 = arith.constant 5.000000e+00 : f32
    %400 = vector.broadcast %cst_69 : f32 to vector<2x32x32xf32>
    %401 = arith.maximumf %400, %399 : vector<2x32x32xf32>
    %402 = vector.broadcast %cst_70 : f32 to vector<2x32x32xf32>
    %403 = arith.minimumf %402, %401 : vector<2x32x32xf32>
    %404 = vector.shape_cast %337 : vector<2x32xf32> to vector<2x32x1xf32>
    %cst_71 = arith.constant 1.000000e+00 : f32
    %405 = vector.broadcast %cst_71 : f32 to vector<2x32x1xf32>
    %406 = arith.subf %405, %404 : vector<2x32x1xf32>
    %407 = vector.broadcast %406 : vector<2x32x1xf32> to vector<2x32x32xf32>
    %408 = arith.mulf %407, %299 : vector<2x32x32xf32>
    %409 = vector.shape_cast %356 : vector<2x32xf32> to vector<2x32x1xf32>
    %410 = vector.shape_cast %270 : vector<2x32xf32> to vector<2x1x32xf32>
    %411 = vector.broadcast %409 : vector<2x32x1xf32> to vector<2x32x32xf32>
    %412 = vector.broadcast %410 : vector<2x1x32xf32> to vector<2x32x32xf32>
    %413 = arith.mulf %411, %412 : vector<2x32x32xf32>
    %414 = vector.shape_cast %393 : vector<2x32xf32> to vector<2x32x1xf32>
    %415 = vector.shape_cast %233 : vector<2x32xf32> to vector<2x1x32xf32>
    %416 = vector.broadcast %414 : vector<2x32x1xf32> to vector<2x32x32xf32>
    %417 = vector.broadcast %415 : vector<2x1x32xf32> to vector<2x32x32xf32>
    %418 = arith.mulf %416, %417 : vector<2x32x32xf32>
    %419 = arith.subf %413, %418 : vector<2x32x32xf32>
    %420 = vector.broadcast %404 : vector<2x32x1xf32> to vector<2x32x32xf32>
    %421 = arith.mulf %420, %419 : vector<2x32x32xf32>
    %422 = arith.addf %408, %421 : vector<2x32x32xf32>
    %423 = vector.extract_strided_slice %45 {offsets = [6, 0], sizes = [2, 128], strides = [1, 1]} : vector<16x128xf32> to vector<2x128xf32>
    %424 = arith.truncf %356 : vector<2x32xf32> to vector<2x32xbf16>
    %cst_72 = arith.constant dense<0.000000e+00> : vector<2x128xf32>
    %425 = tpu.matmul %424, %15, %cst_72 {dimension_numbers = #tpu.dot_dimension_numbers<[1], [0], [0], [1], [0, 0, 1, 1], [], []>} : vector<2x32xbf16>, vector<32x128xbf16>, vector<2x128xf32> -> vector<2x128xf32>
    %426 = vector.broadcast %2 : vector<1x128xf32> to vector<2x128xf32>
    %427 = arith.addf %425, %426 : vector<2x128xf32>
    %cst_73 = arith.constant dense<0.000000e+00> : vector<2xf32>
    %428 = vector.multi_reduction <add>, %427, %cst_73 [1] : vector<2x128xf32> to vector<2xf32>
    %429 = vector.shape_cast %428 : vector<2xf32> to vector<2x1xf32>
    %cst_74 = arith.constant 1.280000e+02 : f32
    %430 = vector.broadcast %cst_74 : f32 to vector<2x1xf32>
    %431 = arith.divf %429, %430 : vector<2x1xf32>
    %432 = arith.mulf %427, %427 : vector<2x128xf32>
    %cst_75 = arith.constant dense<0.000000e+00> : vector<2xf32>
    %433 = vector.multi_reduction <add>, %432, %cst_75 [1] : vector<2x128xf32> to vector<2xf32>
    %434 = vector.shape_cast %433 : vector<2xf32> to vector<2x1xf32>
    %cst_76 = arith.constant 1.280000e+02 : f32
    %435 = vector.broadcast %cst_76 : f32 to vector<2x1xf32>
    %436 = arith.divf %434, %435 : vector<2x1xf32>
    %437 = arith.mulf %431, %431 : vector<2x1xf32>
    %438 = arith.subf %436, %437 : vector<2x1xf32>
    %cst_77 = arith.constant 0.000000e+00 : f32
    %439 = vector.broadcast %cst_77 : f32 to vector<2x1xf32>
    %440 = arith.maximumf %438, %439 : vector<2x1xf32>
    %441 = vector.broadcast %431 : vector<2x1xf32> to vector<2x128xf32>
    %442 = arith.subf %427, %441 : vector<2x128xf32>
    %cst_78 = arith.constant 9.99999974E-6 : f32
    %443 = vector.broadcast %cst_78 : f32 to vector<2x1xf32>
    %444 = arith.addf %440, %443 : vector<2x1xf32>
    %445 = math.rsqrt %444 : vector<2x1xf32>
    %446 = vector.broadcast %445 : vector<2x1xf32> to vector<2x128xf32>
    %447 = arith.mulf %442, %446 : vector<2x128xf32>
    %448 = vector.broadcast %5 : vector<1x128xf32> to vector<2x128xf32>
    %449 = arith.mulf %447, %448 : vector<2x128xf32>
    %450 = vector.broadcast %6 : vector<1x128xf32> to vector<2x128xf32>
    %451 = arith.addf %449, %450 : vector<2x128xf32>
    %452 = arith.addf %423, %451 : vector<2x128xf32>
    %453 = arith.negf %452 : vector<2x128xf32>
    %454 = math.exp %453 : vector<2x128xf32>
    %cst_79 = arith.constant 1.000000e+00 : f32
    %455 = vector.broadcast %cst_79 : f32 to vector<2x128xf32>
    %456 = arith.addf %455, %454 : vector<2x128xf32>
    %457 = arith.divf %455, %456 : vector<2x128xf32>
    %458 = vector.extract_strided_slice %457 {offsets = [0, 0], sizes = [2, 32], strides = [1, 1]} : vector<2x128xf32> to vector<2x32xf32>
    %459 = vector.extract_strided_slice %457 {offsets = [0, 32], sizes = [2, 32], strides = [1, 1]} : vector<2x128xf32> to vector<2x32xf32>
    %460 = vector.extract_strided_slice %457 {offsets = [0, 64], sizes = [2, 32], strides = [1, 1]} : vector<2x128xf32> to vector<2x32xf32>
    %461 = vector.shape_cast %356 : vector<2x32xf32> to vector<2x1x32xf32>
    %462 = vector.broadcast %461 : vector<2x1x32xf32> to vector<2x32x32xf32>
    %463 = arith.mulf %403, %462 : vector<2x32x32xf32>
    %cst_80 = arith.constant dense<0.000000e+00> : vector<2x32xf32>
    %464 = vector.multi_reduction <add>, %463, %cst_80 [2] : vector<2x32x32xf32> to vector<2x32xf32>
    %465 = vector.broadcast %7 : vector<1x32xf32> to vector<2x32xf32>
    %466 = arith.mulf %464, %465 : vector<2x32xf32>
    %467 = vector.extract_strided_slice %452 {offsets = [0, 96], sizes = [2, 32], strides = [1, 1]} : vector<2x128xf32> to vector<2x32xf32>
    %468 = arith.addf %467, %466 : vector<2x32xf32>
    %469 = arith.mulf %458, %348 : vector<2x32xf32>
    %470 = arith.mulf %459, %468 : vector<2x32xf32>
    %471 = arith.addf %469, %470 : vector<2x32xf32>
    %472 = arith.negf %471 : vector<2x32xf32>
    %473 = math.exp %472 : vector<2x32xf32>
    %cst_81 = arith.constant 1.000000e+00 : f32
    %474 = vector.broadcast %cst_81 : f32 to vector<2x32xf32>
    %475 = arith.addf %474, %473 : vector<2x32xf32>
    %476 = arith.divf %474, %475 : vector<2x32xf32>
    %477 = arith.mulf %471, %476 : vector<2x32xf32>
    %478 = arith.subf %471, %477 : vector<2x32xf32>
    %479 = arith.select %48, %477, %478 : vector<2x32xi1>, vector<2x32xf32>
    %cst_82 = arith.constant dense<0.000000e+00> : vector<2x4xf32>
    %480 = tpu.matmul %479, %17, %cst_82 {dimension_numbers = #tpu.dot_dimension_numbers<[1], [0], [0], [1], [0, 0, 1, 1], [], []>} : vector<2x32xf32>, vector<32x4xf32>, vector<2x4xf32> -> vector<2x4xf32>
    %481 = vector.broadcast %8 : vector<1x4xf32> to vector<2x4xf32>
    %482 = arith.addf %480, %481 : vector<2x4xf32>
    %cst_83 = arith.constant dense<0xFF800000> : vector<2xf32>
    %483 = vector.multi_reduction <maximumf>, %482, %cst_83 [1] : vector<2x4xf32> to vector<2xf32>
    %484 = vector.shape_cast %483 : vector<2xf32> to vector<2x1xf32>
    %485 = vector.broadcast %484 : vector<2x1xf32> to vector<2x4xf32>
    %486 = arith.cmpf oge, %482, %485 : vector<2x4xf32>
    %cst_84 = arith.constant 0.000000e+00 : f32
    %487 = vector.broadcast %cst_84 : f32 to vector<2x4xf32>
    %488 = arith.select %486, %482, %487 : vector<2x4xi1>, vector<2x4xf32>
    %489 = vector.extract_strided_slice %488 {offsets = [0, 0], sizes = [2, 1], strides = [1, 1]} : vector<2x4xf32> to vector<2x1xf32>
    %490 = vector.extract_strided_slice %19 {offsets = [0, 0], sizes = [1, 32], strides = [1, 1]} : vector<4x32xf32> to vector<1x32xf32>
    %491 = vector.broadcast %489 : vector<2x1xf32> to vector<2x32xf32>
    %492 = vector.broadcast %490 : vector<1x32xf32> to vector<2x32xf32>
    %493 = arith.mulf %491, %492 : vector<2x32xf32>
    %494 = vector.broadcast %9 : vector<1x32xf32> to vector<2x32xf32>
    %495 = arith.addf %494, %493 : vector<2x32xf32>
    %496 = vector.extract_strided_slice %488 {offsets = [0, 1], sizes = [2, 1], strides = [1, 1]} : vector<2x4xf32> to vector<2x1xf32>
    %497 = vector.extract_strided_slice %19 {offsets = [1, 0], sizes = [1, 32], strides = [1, 1]} : vector<4x32xf32> to vector<1x32xf32>
    %498 = vector.broadcast %496 : vector<2x1xf32> to vector<2x32xf32>
    %499 = vector.broadcast %497 : vector<1x32xf32> to vector<2x32xf32>
    %500 = arith.mulf %498, %499 : vector<2x32xf32>
    %501 = arith.addf %495, %500 : vector<2x32xf32>
    %502 = vector.extract_strided_slice %488 {offsets = [0, 2], sizes = [2, 1], strides = [1, 1]} : vector<2x4xf32> to vector<2x1xf32>
    %503 = vector.extract_strided_slice %19 {offsets = [2, 0], sizes = [1, 32], strides = [1, 1]} : vector<4x32xf32> to vector<1x32xf32>
    %504 = vector.broadcast %502 : vector<2x1xf32> to vector<2x32xf32>
    %505 = vector.broadcast %503 : vector<1x32xf32> to vector<2x32xf32>
    %506 = arith.mulf %504, %505 : vector<2x32xf32>
    %507 = arith.addf %501, %506 : vector<2x32xf32>
    %508 = vector.extract_strided_slice %488 {offsets = [0, 3], sizes = [2, 1], strides = [1, 1]} : vector<2x4xf32> to vector<2x1xf32>
    %509 = vector.extract_strided_slice %19 {offsets = [3, 0], sizes = [1, 32], strides = [1, 1]} : vector<4x32xf32> to vector<1x32xf32>
    %510 = vector.broadcast %508 : vector<2x1xf32> to vector<2x32xf32>
    %511 = vector.broadcast %509 : vector<1x32xf32> to vector<2x32xf32>
    %512 = arith.mulf %510, %511 : vector<2x32xf32>
    %513 = arith.addf %507, %512 : vector<2x32xf32>
    %514 = arith.mulf %458, %393 : vector<2x32xf32>
    %515 = arith.mulf %459, %479 : vector<2x32xf32>
    %516 = arith.addf %514, %515 : vector<2x32xf32>
    %517 = vector.broadcast %11 : vector<1x32x1xf32> to vector<2x32x32xf32>
    %518 = arith.mulf %517, %403 : vector<2x32x32xf32>
    %519 = vector.shape_cast %513 : vector<2x32xf32> to vector<2x32x1xf32>
    %520 = vector.broadcast %519 : vector<2x32x1xf32> to vector<2x32x32xf32>
    %521 = arith.mulf %520, %422 : vector<2x32x32xf32>
    %522 = arith.addf %518, %521 : vector<2x32x32xf32>
    %cst_85 = arith.constant -5.000000e+00 : f32
    %cst_86 = arith.constant 5.000000e+00 : f32
    %523 = vector.broadcast %cst_85 : f32 to vector<2x32x32xf32>
    %524 = arith.maximumf %523, %522 : vector<2x32x32xf32>
    %525 = vector.broadcast %cst_86 : f32 to vector<2x32x32xf32>
    %526 = arith.minimumf %525, %524 : vector<2x32x32xf32>
    %527 = vector.shape_cast %460 : vector<2x32xf32> to vector<2x32x1xf32>
    %cst_87 = arith.constant 1.000000e+00 : f32
    %528 = vector.broadcast %cst_87 : f32 to vector<2x32x1xf32>
    %529 = arith.subf %528, %527 : vector<2x32x1xf32>
    %530 = vector.broadcast %529 : vector<2x32x1xf32> to vector<2x32x32xf32>
    %531 = arith.mulf %530, %422 : vector<2x32x32xf32>
    %532 = vector.shape_cast %479 : vector<2x32xf32> to vector<2x32x1xf32>
    %533 = vector.shape_cast %393 : vector<2x32xf32> to vector<2x1x32xf32>
    %534 = vector.broadcast %532 : vector<2x32x1xf32> to vector<2x32x32xf32>
    %535 = vector.broadcast %533 : vector<2x1x32xf32> to vector<2x32x32xf32>
    %536 = arith.mulf %534, %535 : vector<2x32x32xf32>
    %537 = vector.shape_cast %516 : vector<2x32xf32> to vector<2x32x1xf32>
    %538 = vector.shape_cast %356 : vector<2x32xf32> to vector<2x1x32xf32>
    %539 = vector.broadcast %537 : vector<2x32x1xf32> to vector<2x32x32xf32>
    %540 = vector.broadcast %538 : vector<2x1x32xf32> to vector<2x32x32xf32>
    %541 = arith.mulf %539, %540 : vector<2x32x32xf32>
    %542 = arith.subf %536, %541 : vector<2x32x32xf32>
    %543 = vector.broadcast %527 : vector<2x32x1xf32> to vector<2x32x32xf32>
    %544 = arith.mulf %543, %542 : vector<2x32x32xf32>
    %545 = arith.addf %531, %544 : vector<2x32x32xf32>
    %546 = vector.extract_strided_slice %45 {offsets = [8, 0], sizes = [2, 128], strides = [1, 1]} : vector<16x128xf32> to vector<2x128xf32>
    %547 = arith.truncf %479 : vector<2x32xf32> to vector<2x32xbf16>
    %cst_88 = arith.constant dense<0.000000e+00> : vector<2x128xf32>
    %548 = tpu.matmul %547, %15, %cst_88 {dimension_numbers = #tpu.dot_dimension_numbers<[1], [0], [0], [1], [0, 0, 1, 1], [], []>} : vector<2x32xbf16>, vector<32x128xbf16>, vector<2x128xf32> -> vector<2x128xf32>
    %549 = vector.broadcast %2 : vector<1x128xf32> to vector<2x128xf32>
    %550 = arith.addf %548, %549 : vector<2x128xf32>
    %cst_89 = arith.constant dense<0.000000e+00> : vector<2xf32>
    %551 = vector.multi_reduction <add>, %550, %cst_89 [1] : vector<2x128xf32> to vector<2xf32>
    %552 = vector.shape_cast %551 : vector<2xf32> to vector<2x1xf32>
    %cst_90 = arith.constant 1.280000e+02 : f32
    %553 = vector.broadcast %cst_90 : f32 to vector<2x1xf32>
    %554 = arith.divf %552, %553 : vector<2x1xf32>
    %555 = arith.mulf %550, %550 : vector<2x128xf32>
    %cst_91 = arith.constant dense<0.000000e+00> : vector<2xf32>
    %556 = vector.multi_reduction <add>, %555, %cst_91 [1] : vector<2x128xf32> to vector<2xf32>
    %557 = vector.shape_cast %556 : vector<2xf32> to vector<2x1xf32>
    %cst_92 = arith.constant 1.280000e+02 : f32
    %558 = vector.broadcast %cst_92 : f32 to vector<2x1xf32>
    %559 = arith.divf %557, %558 : vector<2x1xf32>
    %560 = arith.mulf %554, %554 : vector<2x1xf32>
    %561 = arith.subf %559, %560 : vector<2x1xf32>
    %cst_93 = arith.constant 0.000000e+00 : f32
    %562 = vector.broadcast %cst_93 : f32 to vector<2x1xf32>
    %563 = arith.maximumf %561, %562 : vector<2x1xf32>
    %564 = vector.broadcast %554 : vector<2x1xf32> to vector<2x128xf32>
    %565 = arith.subf %550, %564 : vector<2x128xf32>
    %cst_94 = arith.constant 9.99999974E-6 : f32
    %566 = vector.broadcast %cst_94 : f32 to vector<2x1xf32>
    %567 = arith.addf %563, %566 : vector<2x1xf32>
    %568 = math.rsqrt %567 : vector<2x1xf32>
    %569 = vector.broadcast %568 : vector<2x1xf32> to vector<2x128xf32>
    %570 = arith.mulf %565, %569 : vector<2x128xf32>
    %571 = vector.broadcast %5 : vector<1x128xf32> to vector<2x128xf32>
    %572 = arith.mulf %570, %571 : vector<2x128xf32>
    %573 = vector.broadcast %6 : vector<1x128xf32> to vector<2x128xf32>
    %574 = arith.addf %572, %573 : vector<2x128xf32>
    %575 = arith.addf %546, %574 : vector<2x128xf32>
    %576 = arith.negf %575 : vector<2x128xf32>
    %577 = math.exp %576 : vector<2x128xf32>
    %cst_95 = arith.constant 1.000000e+00 : f32
    %578 = vector.broadcast %cst_95 : f32 to vector<2x128xf32>
    %579 = arith.addf %578, %577 : vector<2x128xf32>
    %580 = arith.divf %578, %579 : vector<2x128xf32>
    %581 = vector.extract_strided_slice %580 {offsets = [0, 0], sizes = [2, 32], strides = [1, 1]} : vector<2x128xf32> to vector<2x32xf32>
    %582 = vector.extract_strided_slice %580 {offsets = [0, 32], sizes = [2, 32], strides = [1, 1]} : vector<2x128xf32> to vector<2x32xf32>
    %583 = vector.extract_strided_slice %580 {offsets = [0, 64], sizes = [2, 32], strides = [1, 1]} : vector<2x128xf32> to vector<2x32xf32>
    %584 = vector.shape_cast %479 : vector<2x32xf32> to vector<2x1x32xf32>
    %585 = vector.broadcast %584 : vector<2x1x32xf32> to vector<2x32x32xf32>
    %586 = arith.mulf %526, %585 : vector<2x32x32xf32>
    %cst_96 = arith.constant dense<0.000000e+00> : vector<2x32xf32>
    %587 = vector.multi_reduction <add>, %586, %cst_96 [2] : vector<2x32x32xf32> to vector<2x32xf32>
    %588 = vector.broadcast %7 : vector<1x32xf32> to vector<2x32xf32>
    %589 = arith.mulf %587, %588 : vector<2x32xf32>
    %590 = vector.extract_strided_slice %575 {offsets = [0, 96], sizes = [2, 32], strides = [1, 1]} : vector<2x128xf32> to vector<2x32xf32>
    %591 = arith.addf %590, %589 : vector<2x32xf32>
    %592 = arith.mulf %581, %471 : vector<2x32xf32>
    %593 = arith.mulf %582, %591 : vector<2x32xf32>
    %594 = arith.addf %592, %593 : vector<2x32xf32>
    %595 = arith.negf %594 : vector<2x32xf32>
    %596 = math.exp %595 : vector<2x32xf32>
    %cst_97 = arith.constant 1.000000e+00 : f32
    %597 = vector.broadcast %cst_97 : f32 to vector<2x32xf32>
    %598 = arith.addf %597, %596 : vector<2x32xf32>
    %599 = arith.divf %597, %598 : vector<2x32xf32>
    %600 = arith.mulf %594, %599 : vector<2x32xf32>
    %601 = arith.subf %594, %600 : vector<2x32xf32>
    %602 = arith.select %48, %600, %601 : vector<2x32xi1>, vector<2x32xf32>
    %cst_98 = arith.constant dense<0.000000e+00> : vector<2x4xf32>
    %603 = tpu.matmul %602, %17, %cst_98 {dimension_numbers = #tpu.dot_dimension_numbers<[1], [0], [0], [1], [0, 0, 1, 1], [], []>} : vector<2x32xf32>, vector<32x4xf32>, vector<2x4xf32> -> vector<2x4xf32>
    %604 = vector.broadcast %8 : vector<1x4xf32> to vector<2x4xf32>
    %605 = arith.addf %603, %604 : vector<2x4xf32>
    %cst_99 = arith.constant dense<0xFF800000> : vector<2xf32>
    %606 = vector.multi_reduction <maximumf>, %605, %cst_99 [1] : vector<2x4xf32> to vector<2xf32>
    %607 = vector.shape_cast %606 : vector<2xf32> to vector<2x1xf32>
    %608 = vector.broadcast %607 : vector<2x1xf32> to vector<2x4xf32>
    %609 = arith.cmpf oge, %605, %608 : vector<2x4xf32>
    %cst_100 = arith.constant 0.000000e+00 : f32
    %610 = vector.broadcast %cst_100 : f32 to vector<2x4xf32>
    %611 = arith.select %609, %605, %610 : vector<2x4xi1>, vector<2x4xf32>
    %612 = vector.extract_strided_slice %611 {offsets = [0, 0], sizes = [2, 1], strides = [1, 1]} : vector<2x4xf32> to vector<2x1xf32>
    %613 = vector.extract_strided_slice %19 {offsets = [0, 0], sizes = [1, 32], strides = [1, 1]} : vector<4x32xf32> to vector<1x32xf32>
    %614 = vector.broadcast %612 : vector<2x1xf32> to vector<2x32xf32>
    %615 = vector.broadcast %613 : vector<1x32xf32> to vector<2x32xf32>
    %616 = arith.mulf %614, %615 : vector<2x32xf32>
    %617 = vector.broadcast %9 : vector<1x32xf32> to vector<2x32xf32>
    %618 = arith.addf %617, %616 : vector<2x32xf32>
    %619 = vector.extract_strided_slice %611 {offsets = [0, 1], sizes = [2, 1], strides = [1, 1]} : vector<2x4xf32> to vector<2x1xf32>
    %620 = vector.extract_strided_slice %19 {offsets = [1, 0], sizes = [1, 32], strides = [1, 1]} : vector<4x32xf32> to vector<1x32xf32>
    %621 = vector.broadcast %619 : vector<2x1xf32> to vector<2x32xf32>
    %622 = vector.broadcast %620 : vector<1x32xf32> to vector<2x32xf32>
    %623 = arith.mulf %621, %622 : vector<2x32xf32>
    %624 = arith.addf %618, %623 : vector<2x32xf32>
    %625 = vector.extract_strided_slice %611 {offsets = [0, 2], sizes = [2, 1], strides = [1, 1]} : vector<2x4xf32> to vector<2x1xf32>
    %626 = vector.extract_strided_slice %19 {offsets = [2, 0], sizes = [1, 32], strides = [1, 1]} : vector<4x32xf32> to vector<1x32xf32>
    %627 = vector.broadcast %625 : vector<2x1xf32> to vector<2x32xf32>
    %628 = vector.broadcast %626 : vector<1x32xf32> to vector<2x32xf32>
    %629 = arith.mulf %627, %628 : vector<2x32xf32>
    %630 = arith.addf %624, %629 : vector<2x32xf32>
    %631 = vector.extract_strided_slice %611 {offsets = [0, 3], sizes = [2, 1], strides = [1, 1]} : vector<2x4xf32> to vector<2x1xf32>
    %632 = vector.extract_strided_slice %19 {offsets = [3, 0], sizes = [1, 32], strides = [1, 1]} : vector<4x32xf32> to vector<1x32xf32>
    %633 = vector.broadcast %631 : vector<2x1xf32> to vector<2x32xf32>
    %634 = vector.broadcast %632 : vector<1x32xf32> to vector<2x32xf32>
    %635 = arith.mulf %633, %634 : vector<2x32xf32>
    %636 = arith.addf %630, %635 : vector<2x32xf32>
    %637 = arith.mulf %581, %516 : vector<2x32xf32>
    %638 = arith.mulf %582, %602 : vector<2x32xf32>
    %639 = arith.addf %637, %638 : vector<2x32xf32>
    %640 = vector.broadcast %11 : vector<1x32x1xf32> to vector<2x32x32xf32>
    %641 = arith.mulf %640, %526 : vector<2x32x32xf32>
    %642 = vector.shape_cast %636 : vector<2x32xf32> to vector<2x32x1xf32>
    %643 = vector.broadcast %642 : vector<2x32x1xf32> to vector<2x32x32xf32>
    %644 = arith.mulf %643, %545 : vector<2x32x32xf32>
    %645 = arith.addf %641, %644 : vector<2x32x32xf32>
    %cst_101 = arith.constant -5.000000e+00 : f32
    %cst_102 = arith.constant 5.000000e+00 : f32
    %646 = vector.broadcast %cst_101 : f32 to vector<2x32x32xf32>
    %647 = arith.maximumf %646, %645 : vector<2x32x32xf32>
    %648 = vector.broadcast %cst_102 : f32 to vector<2x32x32xf32>
    %649 = arith.minimumf %648, %647 : vector<2x32x32xf32>
    %650 = vector.shape_cast %583 : vector<2x32xf32> to vector<2x32x1xf32>
    %cst_103 = arith.constant 1.000000e+00 : f32
    %651 = vector.broadcast %cst_103 : f32 to vector<2x32x1xf32>
    %652 = arith.subf %651, %650 : vector<2x32x1xf32>
    %653 = vector.broadcast %652 : vector<2x32x1xf32> to vector<2x32x32xf32>
    %654 = arith.mulf %653, %545 : vector<2x32x32xf32>
    %655 = vector.shape_cast %602 : vector<2x32xf32> to vector<2x32x1xf32>
    %656 = vector.shape_cast %516 : vector<2x32xf32> to vector<2x1x32xf32>
    %657 = vector.broadcast %655 : vector<2x32x1xf32> to vector<2x32x32xf32>
    %658 = vector.broadcast %656 : vector<2x1x32xf32> to vector<2x32x32xf32>
    %659 = arith.mulf %657, %658 : vector<2x32x32xf32>
    %660 = vector.shape_cast %639 : vector<2x32xf32> to vector<2x32x1xf32>
    %661 = vector.shape_cast %479 : vector<2x32xf32> to vector<2x1x32xf32>
    %662 = vector.broadcast %660 : vector<2x32x1xf32> to vector<2x32x32xf32>
    %663 = vector.broadcast %661 : vector<2x1x32xf32> to vector<2x32x32xf32>
    %664 = arith.mulf %662, %663 : vector<2x32x32xf32>
    %665 = arith.subf %659, %664 : vector<2x32x32xf32>
    %666 = vector.broadcast %650 : vector<2x32x1xf32> to vector<2x32x32xf32>
    %667 = arith.mulf %666, %665 : vector<2x32x32xf32>
    %668 = arith.addf %654, %667 : vector<2x32x32xf32>
    %669 = vector.extract_strided_slice %45 {offsets = [10, 0], sizes = [2, 128], strides = [1, 1]} : vector<16x128xf32> to vector<2x128xf32>
    %670 = arith.truncf %602 : vector<2x32xf32> to vector<2x32xbf16>
    %cst_104 = arith.constant dense<0.000000e+00> : vector<2x128xf32>
    %671 = tpu.matmul %670, %15, %cst_104 {dimension_numbers = #tpu.dot_dimension_numbers<[1], [0], [0], [1], [0, 0, 1, 1], [], []>} : vector<2x32xbf16>, vector<32x128xbf16>, vector<2x128xf32> -> vector<2x128xf32>
    %672 = vector.broadcast %2 : vector<1x128xf32> to vector<2x128xf32>
    %673 = arith.addf %671, %672 : vector<2x128xf32>
    %cst_105 = arith.constant dense<0.000000e+00> : vector<2xf32>
    %674 = vector.multi_reduction <add>, %673, %cst_105 [1] : vector<2x128xf32> to vector<2xf32>
    %675 = vector.shape_cast %674 : vector<2xf32> to vector<2x1xf32>
    %cst_106 = arith.constant 1.280000e+02 : f32
    %676 = vector.broadcast %cst_106 : f32 to vector<2x1xf32>
    %677 = arith.divf %675, %676 : vector<2x1xf32>
    %678 = arith.mulf %673, %673 : vector<2x128xf32>
    %cst_107 = arith.constant dense<0.000000e+00> : vector<2xf32>
    %679 = vector.multi_reduction <add>, %678, %cst_107 [1] : vector<2x128xf32> to vector<2xf32>
    %680 = vector.shape_cast %679 : vector<2xf32> to vector<2x1xf32>
    %cst_108 = arith.constant 1.280000e+02 : f32
    %681 = vector.broadcast %cst_108 : f32 to vector<2x1xf32>
    %682 = arith.divf %680, %681 : vector<2x1xf32>
    %683 = arith.mulf %677, %677 : vector<2x1xf32>
    %684 = arith.subf %682, %683 : vector<2x1xf32>
    %cst_109 = arith.constant 0.000000e+00 : f32
    %685 = vector.broadcast %cst_109 : f32 to vector<2x1xf32>
    %686 = arith.maximumf %684, %685 : vector<2x1xf32>
    %687 = vector.broadcast %677 : vector<2x1xf32> to vector<2x128xf32>
    %688 = arith.subf %673, %687 : vector<2x128xf32>
    %cst_110 = arith.constant 9.99999974E-6 : f32
    %689 = vector.broadcast %cst_110 : f32 to vector<2x1xf32>
    %690 = arith.addf %686, %689 : vector<2x1xf32>
    %691 = math.rsqrt %690 : vector<2x1xf32>
    %692 = vector.broadcast %691 : vector<2x1xf32> to vector<2x128xf32>
    %693 = arith.mulf %688, %692 : vector<2x128xf32>
    %694 = vector.broadcast %5 : vector<1x128xf32> to vector<2x128xf32>
    %695 = arith.mulf %693, %694 : vector<2x128xf32>
    %696 = vector.broadcast %6 : vector<1x128xf32> to vector<2x128xf32>
    %697 = arith.addf %695, %696 : vector<2x128xf32>
    %698 = arith.addf %669, %697 : vector<2x128xf32>
    %699 = arith.negf %698 : vector<2x128xf32>
    %700 = math.exp %699 : vector<2x128xf32>
    %cst_111 = arith.constant 1.000000e+00 : f32
    %701 = vector.broadcast %cst_111 : f32 to vector<2x128xf32>
    %702 = arith.addf %701, %700 : vector<2x128xf32>
    %703 = arith.divf %701, %702 : vector<2x128xf32>
    %704 = vector.extract_strided_slice %703 {offsets = [0, 0], sizes = [2, 32], strides = [1, 1]} : vector<2x128xf32> to vector<2x32xf32>
    %705 = vector.extract_strided_slice %703 {offsets = [0, 32], sizes = [2, 32], strides = [1, 1]} : vector<2x128xf32> to vector<2x32xf32>
    %706 = vector.extract_strided_slice %703 {offsets = [0, 64], sizes = [2, 32], strides = [1, 1]} : vector<2x128xf32> to vector<2x32xf32>
    %707 = vector.shape_cast %602 : vector<2x32xf32> to vector<2x1x32xf32>
    %708 = vector.broadcast %707 : vector<2x1x32xf32> to vector<2x32x32xf32>
    %709 = arith.mulf %649, %708 : vector<2x32x32xf32>
    %cst_112 = arith.constant dense<0.000000e+00> : vector<2x32xf32>
    %710 = vector.multi_reduction <add>, %709, %cst_112 [2] : vector<2x32x32xf32> to vector<2x32xf32>
    %711 = vector.broadcast %7 : vector<1x32xf32> to vector<2x32xf32>
    %712 = arith.mulf %710, %711 : vector<2x32xf32>
    %713 = vector.extract_strided_slice %698 {offsets = [0, 96], sizes = [2, 32], strides = [1, 1]} : vector<2x128xf32> to vector<2x32xf32>
    %714 = arith.addf %713, %712 : vector<2x32xf32>
    %715 = arith.mulf %704, %594 : vector<2x32xf32>
    %716 = arith.mulf %705, %714 : vector<2x32xf32>
    %717 = arith.addf %715, %716 : vector<2x32xf32>
    %718 = arith.negf %717 : vector<2x32xf32>
    %719 = math.exp %718 : vector<2x32xf32>
    %cst_113 = arith.constant 1.000000e+00 : f32
    %720 = vector.broadcast %cst_113 : f32 to vector<2x32xf32>
    %721 = arith.addf %720, %719 : vector<2x32xf32>
    %722 = arith.divf %720, %721 : vector<2x32xf32>
    %723 = arith.mulf %717, %722 : vector<2x32xf32>
    %724 = arith.subf %717, %723 : vector<2x32xf32>
    %725 = arith.select %48, %723, %724 : vector<2x32xi1>, vector<2x32xf32>
    %cst_114 = arith.constant dense<0.000000e+00> : vector<2x4xf32>
    %726 = tpu.matmul %725, %17, %cst_114 {dimension_numbers = #tpu.dot_dimension_numbers<[1], [0], [0], [1], [0, 0, 1, 1], [], []>} : vector<2x32xf32>, vector<32x4xf32>, vector<2x4xf32> -> vector<2x4xf32>
    %727 = vector.broadcast %8 : vector<1x4xf32> to vector<2x4xf32>
    %728 = arith.addf %726, %727 : vector<2x4xf32>
    %cst_115 = arith.constant dense<0xFF800000> : vector<2xf32>
    %729 = vector.multi_reduction <maximumf>, %728, %cst_115 [1] : vector<2x4xf32> to vector<2xf32>
    %730 = vector.shape_cast %729 : vector<2xf32> to vector<2x1xf32>
    %731 = vector.broadcast %730 : vector<2x1xf32> to vector<2x4xf32>
    %732 = arith.cmpf oge, %728, %731 : vector<2x4xf32>
    %cst_116 = arith.constant 0.000000e+00 : f32
    %733 = vector.broadcast %cst_116 : f32 to vector<2x4xf32>
    %734 = arith.select %732, %728, %733 : vector<2x4xi1>, vector<2x4xf32>
    %735 = vector.extract_strided_slice %734 {offsets = [0, 0], sizes = [2, 1], strides = [1, 1]} : vector<2x4xf32> to vector<2x1xf32>
    %736 = vector.extract_strided_slice %19 {offsets = [0, 0], sizes = [1, 32], strides = [1, 1]} : vector<4x32xf32> to vector<1x32xf32>
    %737 = vector.broadcast %735 : vector<2x1xf32> to vector<2x32xf32>
    %738 = vector.broadcast %736 : vector<1x32xf32> to vector<2x32xf32>
    %739 = arith.mulf %737, %738 : vector<2x32xf32>
    %740 = vector.broadcast %9 : vector<1x32xf32> to vector<2x32xf32>
    %741 = arith.addf %740, %739 : vector<2x32xf32>
    %742 = vector.extract_strided_slice %734 {offsets = [0, 1], sizes = [2, 1], strides = [1, 1]} : vector<2x4xf32> to vector<2x1xf32>
    %743 = vector.extract_strided_slice %19 {offsets = [1, 0], sizes = [1, 32], strides = [1, 1]} : vector<4x32xf32> to vector<1x32xf32>
    %744 = vector.broadcast %742 : vector<2x1xf32> to vector<2x32xf32>
    %745 = vector.broadcast %743 : vector<1x32xf32> to vector<2x32xf32>
    %746 = arith.mulf %744, %745 : vector<2x32xf32>
    %747 = arith.addf %741, %746 : vector<2x32xf32>
    %748 = vector.extract_strided_slice %734 {offsets = [0, 2], sizes = [2, 1], strides = [1, 1]} : vector<2x4xf32> to vector<2x1xf32>
    %749 = vector.extract_strided_slice %19 {offsets = [2, 0], sizes = [1, 32], strides = [1, 1]} : vector<4x32xf32> to vector<1x32xf32>
    %750 = vector.broadcast %748 : vector<2x1xf32> to vector<2x32xf32>
    %751 = vector.broadcast %749 : vector<1x32xf32> to vector<2x32xf32>
    %752 = arith.mulf %750, %751 : vector<2x32xf32>
    %753 = arith.addf %747, %752 : vector<2x32xf32>
    %754 = vector.extract_strided_slice %734 {offsets = [0, 3], sizes = [2, 1], strides = [1, 1]} : vector<2x4xf32> to vector<2x1xf32>
    %755 = vector.extract_strided_slice %19 {offsets = [3, 0], sizes = [1, 32], strides = [1, 1]} : vector<4x32xf32> to vector<1x32xf32>
    %756 = vector.broadcast %754 : vector<2x1xf32> to vector<2x32xf32>
    %757 = vector.broadcast %755 : vector<1x32xf32> to vector<2x32xf32>
    %758 = arith.mulf %756, %757 : vector<2x32xf32>
    %759 = arith.addf %753, %758 : vector<2x32xf32>
    %760 = arith.mulf %704, %639 : vector<2x32xf32>
    %761 = arith.mulf %705, %725 : vector<2x32xf32>
    %762 = arith.addf %760, %761 : vector<2x32xf32>
    %763 = vector.broadcast %11 : vector<1x32x1xf32> to vector<2x32x32xf32>
    %764 = arith.mulf %763, %649 : vector<2x32x32xf32>
    %765 = vector.shape_cast %759 : vector<2x32xf32> to vector<2x32x1xf32>
    %766 = vector.broadcast %765 : vector<2x32x1xf32> to vector<2x32x32xf32>
    %767 = arith.mulf %766, %668 : vector<2x32x32xf32>
    %768 = arith.addf %764, %767 : vector<2x32x32xf32>
    %cst_117 = arith.constant -5.000000e+00 : f32
    %cst_118 = arith.constant 5.000000e+00 : f32
    %769 = vector.broadcast %cst_117 : f32 to vector<2x32x32xf32>
    %770 = arith.maximumf %769, %768 : vector<2x32x32xf32>
    %771 = vector.broadcast %cst_118 : f32 to vector<2x32x32xf32>
    %772 = arith.minimumf %771, %770 : vector<2x32x32xf32>
    %773 = vector.shape_cast %706 : vector<2x32xf32> to vector<2x32x1xf32>
    %cst_119 = arith.constant 1.000000e+00 : f32
    %774 = vector.broadcast %cst_119 : f32 to vector<2x32x1xf32>
    %775 = arith.subf %774, %773 : vector<2x32x1xf32>
    %776 = vector.broadcast %775 : vector<2x32x1xf32> to vector<2x32x32xf32>
    %777 = arith.mulf %776, %668 : vector<2x32x32xf32>
    %778 = vector.shape_cast %725 : vector<2x32xf32> to vector<2x32x1xf32>
    %779 = vector.shape_cast %639 : vector<2x32xf32> to vector<2x1x32xf32>
    %780 = vector.broadcast %778 : vector<2x32x1xf32> to vector<2x32x32xf32>
    %781 = vector.broadcast %779 : vector<2x1x32xf32> to vector<2x32x32xf32>
    %782 = arith.mulf %780, %781 : vector<2x32x32xf32>
    %783 = vector.shape_cast %762 : vector<2x32xf32> to vector<2x32x1xf32>
    %784 = vector.shape_cast %602 : vector<2x32xf32> to vector<2x1x32xf32>
    %785 = vector.broadcast %783 : vector<2x32x1xf32> to vector<2x32x32xf32>
    %786 = vector.broadcast %784 : vector<2x1x32xf32> to vector<2x32x32xf32>
    %787 = arith.mulf %785, %786 : vector<2x32x32xf32>
    %788 = arith.subf %782, %787 : vector<2x32x32xf32>
    %789 = vector.broadcast %773 : vector<2x32x1xf32> to vector<2x32x32xf32>
    %790 = arith.mulf %789, %788 : vector<2x32x32xf32>
    %791 = arith.addf %777, %790 : vector<2x32x32xf32>
    %792 = vector.extract_strided_slice %45 {offsets = [12, 0], sizes = [2, 128], strides = [1, 1]} : vector<16x128xf32> to vector<2x128xf32>
    %793 = arith.truncf %725 : vector<2x32xf32> to vector<2x32xbf16>
    %cst_120 = arith.constant dense<0.000000e+00> : vector<2x128xf32>
    %794 = tpu.matmul %793, %15, %cst_120 {dimension_numbers = #tpu.dot_dimension_numbers<[1], [0], [0], [1], [0, 0, 1, 1], [], []>} : vector<2x32xbf16>, vector<32x128xbf16>, vector<2x128xf32> -> vector<2x128xf32>
    %795 = vector.broadcast %2 : vector<1x128xf32> to vector<2x128xf32>
    %796 = arith.addf %794, %795 : vector<2x128xf32>
    %cst_121 = arith.constant dense<0.000000e+00> : vector<2xf32>
    %797 = vector.multi_reduction <add>, %796, %cst_121 [1] : vector<2x128xf32> to vector<2xf32>
    %798 = vector.shape_cast %797 : vector<2xf32> to vector<2x1xf32>
    %cst_122 = arith.constant 1.280000e+02 : f32
    %799 = vector.broadcast %cst_122 : f32 to vector<2x1xf32>
    %800 = arith.divf %798, %799 : vector<2x1xf32>
    %801 = arith.mulf %796, %796 : vector<2x128xf32>
    %cst_123 = arith.constant dense<0.000000e+00> : vector<2xf32>
    %802 = vector.multi_reduction <add>, %801, %cst_123 [1] : vector<2x128xf32> to vector<2xf32>
    %803 = vector.shape_cast %802 : vector<2xf32> to vector<2x1xf32>
    %cst_124 = arith.constant 1.280000e+02 : f32
    %804 = vector.broadcast %cst_124 : f32 to vector<2x1xf32>
    %805 = arith.divf %803, %804 : vector<2x1xf32>
    %806 = arith.mulf %800, %800 : vector<2x1xf32>
    %807 = arith.subf %805, %806 : vector<2x1xf32>
    %cst_125 = arith.constant 0.000000e+00 : f32
    %808 = vector.broadcast %cst_125 : f32 to vector<2x1xf32>
    %809 = arith.maximumf %807, %808 : vector<2x1xf32>
    %810 = vector.broadcast %800 : vector<2x1xf32> to vector<2x128xf32>
    %811 = arith.subf %796, %810 : vector<2x128xf32>
    %cst_126 = arith.constant 9.99999974E-6 : f32
    %812 = vector.broadcast %cst_126 : f32 to vector<2x1xf32>
    %813 = arith.addf %809, %812 : vector<2x1xf32>
    %814 = math.rsqrt %813 : vector<2x1xf32>
    %815 = vector.broadcast %814 : vector<2x1xf32> to vector<2x128xf32>
    %816 = arith.mulf %811, %815 : vector<2x128xf32>
    %817 = vector.broadcast %5 : vector<1x128xf32> to vector<2x128xf32>
    %818 = arith.mulf %816, %817 : vector<2x128xf32>
    %819 = vector.broadcast %6 : vector<1x128xf32> to vector<2x128xf32>
    %820 = arith.addf %818, %819 : vector<2x128xf32>
    %821 = arith.addf %792, %820 : vector<2x128xf32>
    %822 = arith.negf %821 : vector<2x128xf32>
    %823 = math.exp %822 : vector<2x128xf32>
    %cst_127 = arith.constant 1.000000e+00 : f32
    %824 = vector.broadcast %cst_127 : f32 to vector<2x128xf32>
    %825 = arith.addf %824, %823 : vector<2x128xf32>
    %826 = arith.divf %824, %825 : vector<2x128xf32>
    %827 = vector.extract_strided_slice %826 {offsets = [0, 0], sizes = [2, 32], strides = [1, 1]} : vector<2x128xf32> to vector<2x32xf32>
    %828 = vector.extract_strided_slice %826 {offsets = [0, 32], sizes = [2, 32], strides = [1, 1]} : vector<2x128xf32> to vector<2x32xf32>
    %829 = vector.extract_strided_slice %826 {offsets = [0, 64], sizes = [2, 32], strides = [1, 1]} : vector<2x128xf32> to vector<2x32xf32>
    %830 = vector.shape_cast %725 : vector<2x32xf32> to vector<2x1x32xf32>
    %831 = vector.broadcast %830 : vector<2x1x32xf32> to vector<2x32x32xf32>
    %832 = arith.mulf %772, %831 : vector<2x32x32xf32>
    %cst_128 = arith.constant dense<0.000000e+00> : vector<2x32xf32>
    %833 = vector.multi_reduction <add>, %832, %cst_128 [2] : vector<2x32x32xf32> to vector<2x32xf32>
    %834 = vector.broadcast %7 : vector<1x32xf32> to vector<2x32xf32>
    %835 = arith.mulf %833, %834 : vector<2x32xf32>
    %836 = vector.extract_strided_slice %821 {offsets = [0, 96], sizes = [2, 32], strides = [1, 1]} : vector<2x128xf32> to vector<2x32xf32>
    %837 = arith.addf %836, %835 : vector<2x32xf32>
    %838 = arith.mulf %827, %717 : vector<2x32xf32>
    %839 = arith.mulf %828, %837 : vector<2x32xf32>
    %840 = arith.addf %838, %839 : vector<2x32xf32>
    %841 = arith.negf %840 : vector<2x32xf32>
    %842 = math.exp %841 : vector<2x32xf32>
    %cst_129 = arith.constant 1.000000e+00 : f32
    %843 = vector.broadcast %cst_129 : f32 to vector<2x32xf32>
    %844 = arith.addf %843, %842 : vector<2x32xf32>
    %845 = arith.divf %843, %844 : vector<2x32xf32>
    %846 = arith.mulf %840, %845 : vector<2x32xf32>
    %847 = arith.subf %840, %846 : vector<2x32xf32>
    %848 = arith.select %48, %846, %847 : vector<2x32xi1>, vector<2x32xf32>
    %cst_130 = arith.constant dense<0.000000e+00> : vector<2x4xf32>
    %849 = tpu.matmul %848, %17, %cst_130 {dimension_numbers = #tpu.dot_dimension_numbers<[1], [0], [0], [1], [0, 0, 1, 1], [], []>} : vector<2x32xf32>, vector<32x4xf32>, vector<2x4xf32> -> vector<2x4xf32>
    %850 = vector.broadcast %8 : vector<1x4xf32> to vector<2x4xf32>
    %851 = arith.addf %849, %850 : vector<2x4xf32>
    %cst_131 = arith.constant dense<0xFF800000> : vector<2xf32>
    %852 = vector.multi_reduction <maximumf>, %851, %cst_131 [1] : vector<2x4xf32> to vector<2xf32>
    %853 = vector.shape_cast %852 : vector<2xf32> to vector<2x1xf32>
    %854 = vector.broadcast %853 : vector<2x1xf32> to vector<2x4xf32>
    %855 = arith.cmpf oge, %851, %854 : vector<2x4xf32>
    %cst_132 = arith.constant 0.000000e+00 : f32
    %856 = vector.broadcast %cst_132 : f32 to vector<2x4xf32>
    %857 = arith.select %855, %851, %856 : vector<2x4xi1>, vector<2x4xf32>
    %858 = vector.extract_strided_slice %857 {offsets = [0, 0], sizes = [2, 1], strides = [1, 1]} : vector<2x4xf32> to vector<2x1xf32>
    %859 = vector.extract_strided_slice %19 {offsets = [0, 0], sizes = [1, 32], strides = [1, 1]} : vector<4x32xf32> to vector<1x32xf32>
    %860 = vector.broadcast %858 : vector<2x1xf32> to vector<2x32xf32>
    %861 = vector.broadcast %859 : vector<1x32xf32> to vector<2x32xf32>
    %862 = arith.mulf %860, %861 : vector<2x32xf32>
    %863 = vector.broadcast %9 : vector<1x32xf32> to vector<2x32xf32>
    %864 = arith.addf %863, %862 : vector<2x32xf32>
    %865 = vector.extract_strided_slice %857 {offsets = [0, 1], sizes = [2, 1], strides = [1, 1]} : vector<2x4xf32> to vector<2x1xf32>
    %866 = vector.extract_strided_slice %19 {offsets = [1, 0], sizes = [1, 32], strides = [1, 1]} : vector<4x32xf32> to vector<1x32xf32>
    %867 = vector.broadcast %865 : vector<2x1xf32> to vector<2x32xf32>
    %868 = vector.broadcast %866 : vector<1x32xf32> to vector<2x32xf32>
    %869 = arith.mulf %867, %868 : vector<2x32xf32>
    %870 = arith.addf %864, %869 : vector<2x32xf32>
    %871 = vector.extract_strided_slice %857 {offsets = [0, 2], sizes = [2, 1], strides = [1, 1]} : vector<2x4xf32> to vector<2x1xf32>
    %872 = vector.extract_strided_slice %19 {offsets = [2, 0], sizes = [1, 32], strides = [1, 1]} : vector<4x32xf32> to vector<1x32xf32>
    %873 = vector.broadcast %871 : vector<2x1xf32> to vector<2x32xf32>
    %874 = vector.broadcast %872 : vector<1x32xf32> to vector<2x32xf32>
    %875 = arith.mulf %873, %874 : vector<2x32xf32>
    %876 = arith.addf %870, %875 : vector<2x32xf32>
    %877 = vector.extract_strided_slice %857 {offsets = [0, 3], sizes = [2, 1], strides = [1, 1]} : vector<2x4xf32> to vector<2x1xf32>
    %878 = vector.extract_strided_slice %19 {offsets = [3, 0], sizes = [1, 32], strides = [1, 1]} : vector<4x32xf32> to vector<1x32xf32>
    %879 = vector.broadcast %877 : vector<2x1xf32> to vector<2x32xf32>
    %880 = vector.broadcast %878 : vector<1x32xf32> to vector<2x32xf32>
    %881 = arith.mulf %879, %880 : vector<2x32xf32>
    %882 = arith.addf %876, %881 : vector<2x32xf32>
    %883 = arith.mulf %827, %762 : vector<2x32xf32>
    %884 = arith.mulf %828, %848 : vector<2x32xf32>
    %885 = arith.addf %883, %884 : vector<2x32xf32>
    %886 = vector.broadcast %11 : vector<1x32x1xf32> to vector<2x32x32xf32>
    %887 = arith.mulf %886, %772 : vector<2x32x32xf32>
    %888 = vector.shape_cast %882 : vector<2x32xf32> to vector<2x32x1xf32>
    %889 = vector.broadcast %888 : vector<2x32x1xf32> to vector<2x32x32xf32>
    %890 = arith.mulf %889, %791 : vector<2x32x32xf32>
    %891 = arith.addf %887, %890 : vector<2x32x32xf32>
    %cst_133 = arith.constant -5.000000e+00 : f32
    %cst_134 = arith.constant 5.000000e+00 : f32
    %892 = vector.broadcast %cst_133 : f32 to vector<2x32x32xf32>
    %893 = arith.maximumf %892, %891 : vector<2x32x32xf32>
    %894 = vector.broadcast %cst_134 : f32 to vector<2x32x32xf32>
    %895 = arith.minimumf %894, %893 : vector<2x32x32xf32>
    %896 = vector.shape_cast %829 : vector<2x32xf32> to vector<2x32x1xf32>
    %cst_135 = arith.constant 1.000000e+00 : f32
    %897 = vector.broadcast %cst_135 : f32 to vector<2x32x1xf32>
    %898 = arith.subf %897, %896 : vector<2x32x1xf32>
    %899 = vector.broadcast %898 : vector<2x32x1xf32> to vector<2x32x32xf32>
    %900 = arith.mulf %899, %791 : vector<2x32x32xf32>
    %901 = vector.shape_cast %848 : vector<2x32xf32> to vector<2x32x1xf32>
    %902 = vector.shape_cast %762 : vector<2x32xf32> to vector<2x1x32xf32>
    %903 = vector.broadcast %901 : vector<2x32x1xf32> to vector<2x32x32xf32>
    %904 = vector.broadcast %902 : vector<2x1x32xf32> to vector<2x32x32xf32>
    %905 = arith.mulf %903, %904 : vector<2x32x32xf32>
    %906 = vector.shape_cast %885 : vector<2x32xf32> to vector<2x32x1xf32>
    %907 = vector.shape_cast %725 : vector<2x32xf32> to vector<2x1x32xf32>
    %908 = vector.broadcast %906 : vector<2x32x1xf32> to vector<2x32x32xf32>
    %909 = vector.broadcast %907 : vector<2x1x32xf32> to vector<2x32x32xf32>
    %910 = arith.mulf %908, %909 : vector<2x32x32xf32>
    %911 = arith.subf %905, %910 : vector<2x32x32xf32>
    %912 = vector.broadcast %896 : vector<2x32x1xf32> to vector<2x32x32xf32>
    %913 = arith.mulf %912, %911 : vector<2x32x32xf32>
    %914 = arith.addf %900, %913 : vector<2x32x32xf32>
    %915 = vector.extract_strided_slice %45 {offsets = [14, 0], sizes = [2, 128], strides = [1, 1]} : vector<16x128xf32> to vector<2x128xf32>
    %916 = arith.truncf %848 : vector<2x32xf32> to vector<2x32xbf16>
    %cst_136 = arith.constant dense<0.000000e+00> : vector<2x128xf32>
    %917 = tpu.matmul %916, %15, %cst_136 {dimension_numbers = #tpu.dot_dimension_numbers<[1], [0], [0], [1], [0, 0, 1, 1], [], []>} : vector<2x32xbf16>, vector<32x128xbf16>, vector<2x128xf32> -> vector<2x128xf32>
    %918 = vector.broadcast %2 : vector<1x128xf32> to vector<2x128xf32>
    %919 = arith.addf %917, %918 : vector<2x128xf32>
    %cst_137 = arith.constant dense<0.000000e+00> : vector<2xf32>
    %920 = vector.multi_reduction <add>, %919, %cst_137 [1] : vector<2x128xf32> to vector<2xf32>
    %921 = vector.shape_cast %920 : vector<2xf32> to vector<2x1xf32>
    %cst_138 = arith.constant 1.280000e+02 : f32
    %922 = vector.broadcast %cst_138 : f32 to vector<2x1xf32>
    %923 = arith.divf %921, %922 : vector<2x1xf32>
    %924 = arith.mulf %919, %919 : vector<2x128xf32>
    %cst_139 = arith.constant dense<0.000000e+00> : vector<2xf32>
    %925 = vector.multi_reduction <add>, %924, %cst_139 [1] : vector<2x128xf32> to vector<2xf32>
    %926 = vector.shape_cast %925 : vector<2xf32> to vector<2x1xf32>
    %cst_140 = arith.constant 1.280000e+02 : f32
    %927 = vector.broadcast %cst_140 : f32 to vector<2x1xf32>
    %928 = arith.divf %926, %927 : vector<2x1xf32>
    %929 = arith.mulf %923, %923 : vector<2x1xf32>
    %930 = arith.subf %928, %929 : vector<2x1xf32>
    %cst_141 = arith.constant 0.000000e+00 : f32
    %931 = vector.broadcast %cst_141 : f32 to vector<2x1xf32>
    %932 = arith.maximumf %930, %931 : vector<2x1xf32>
    %933 = vector.broadcast %923 : vector<2x1xf32> to vector<2x128xf32>
    %934 = arith.subf %919, %933 : vector<2x128xf32>
    %cst_142 = arith.constant 9.99999974E-6 : f32
    %935 = vector.broadcast %cst_142 : f32 to vector<2x1xf32>
    %936 = arith.addf %932, %935 : vector<2x1xf32>
    %937 = math.rsqrt %936 : vector<2x1xf32>
    %938 = vector.broadcast %937 : vector<2x1xf32> to vector<2x128xf32>
    %939 = arith.mulf %934, %938 : vector<2x128xf32>
    %940 = vector.broadcast %5 : vector<1x128xf32> to vector<2x128xf32>
    %941 = arith.mulf %939, %940 : vector<2x128xf32>
    %942 = vector.broadcast %6 : vector<1x128xf32> to vector<2x128xf32>
    %943 = arith.addf %941, %942 : vector<2x128xf32>
    %944 = arith.addf %915, %943 : vector<2x128xf32>
    %945 = arith.negf %944 : vector<2x128xf32>
    %946 = math.exp %945 : vector<2x128xf32>
    %cst_143 = arith.constant 1.000000e+00 : f32
    %947 = vector.broadcast %cst_143 : f32 to vector<2x128xf32>
    %948 = arith.addf %947, %946 : vector<2x128xf32>
    %949 = arith.divf %947, %948 : vector<2x128xf32>
    %950 = vector.extract_strided_slice %949 {offsets = [0, 0], sizes = [2, 32], strides = [1, 1]} : vector<2x128xf32> to vector<2x32xf32>
    %951 = vector.extract_strided_slice %949 {offsets = [0, 32], sizes = [2, 32], strides = [1, 1]} : vector<2x128xf32> to vector<2x32xf32>
    %952 = vector.extract_strided_slice %949 {offsets = [0, 64], sizes = [2, 32], strides = [1, 1]} : vector<2x128xf32> to vector<2x32xf32>
    %953 = vector.shape_cast %848 : vector<2x32xf32> to vector<2x1x32xf32>
    %954 = vector.broadcast %953 : vector<2x1x32xf32> to vector<2x32x32xf32>
    %955 = arith.mulf %895, %954 : vector<2x32x32xf32>
    %cst_144 = arith.constant dense<0.000000e+00> : vector<2x32xf32>
    %956 = vector.multi_reduction <add>, %955, %cst_144 [2] : vector<2x32x32xf32> to vector<2x32xf32>
    %957 = vector.broadcast %7 : vector<1x32xf32> to vector<2x32xf32>
    %958 = arith.mulf %956, %957 : vector<2x32xf32>
    %959 = vector.extract_strided_slice %944 {offsets = [0, 96], sizes = [2, 32], strides = [1, 1]} : vector<2x128xf32> to vector<2x32xf32>
    %960 = arith.addf %959, %958 : vector<2x32xf32>
    %961 = arith.mulf %950, %840 : vector<2x32xf32>
    %962 = arith.mulf %951, %960 : vector<2x32xf32>
    %963 = arith.addf %961, %962 : vector<2x32xf32>
    %964 = arith.negf %963 : vector<2x32xf32>
    %965 = math.exp %964 : vector<2x32xf32>
    %cst_145 = arith.constant 1.000000e+00 : f32
    %966 = vector.broadcast %cst_145 : f32 to vector<2x32xf32>
    %967 = arith.addf %966, %965 : vector<2x32xf32>
    %968 = arith.divf %966, %967 : vector<2x32xf32>
    %969 = arith.mulf %963, %968 : vector<2x32xf32>
    %970 = arith.subf %963, %969 : vector<2x32xf32>
    %971 = arith.select %48, %969, %970 : vector<2x32xi1>, vector<2x32xf32>
    %cst_146 = arith.constant dense<0.000000e+00> : vector<2x4xf32>
    %972 = tpu.matmul %971, %17, %cst_146 {dimension_numbers = #tpu.dot_dimension_numbers<[1], [0], [0], [1], [0, 0, 1, 1], [], []>} : vector<2x32xf32>, vector<32x4xf32>, vector<2x4xf32> -> vector<2x4xf32>
    %973 = vector.broadcast %8 : vector<1x4xf32> to vector<2x4xf32>
    %974 = arith.addf %972, %973 : vector<2x4xf32>
    %cst_147 = arith.constant dense<0xFF800000> : vector<2xf32>
    %975 = vector.multi_reduction <maximumf>, %974, %cst_147 [1] : vector<2x4xf32> to vector<2xf32>
    %976 = vector.shape_cast %975 : vector<2xf32> to vector<2x1xf32>
    %977 = vector.broadcast %976 : vector<2x1xf32> to vector<2x4xf32>
    %978 = arith.cmpf oge, %974, %977 : vector<2x4xf32>
    %cst_148 = arith.constant 0.000000e+00 : f32
    %979 = vector.broadcast %cst_148 : f32 to vector<2x4xf32>
    %980 = arith.select %978, %974, %979 : vector<2x4xi1>, vector<2x4xf32>
    %981 = vector.extract_strided_slice %980 {offsets = [0, 0], sizes = [2, 1], strides = [1, 1]} : vector<2x4xf32> to vector<2x1xf32>
    %982 = vector.extract_strided_slice %19 {offsets = [0, 0], sizes = [1, 32], strides = [1, 1]} : vector<4x32xf32> to vector<1x32xf32>
    %983 = vector.broadcast %981 : vector<2x1xf32> to vector<2x32xf32>
    %984 = vector.broadcast %982 : vector<1x32xf32> to vector<2x32xf32>
    %985 = arith.mulf %983, %984 : vector<2x32xf32>
    %986 = vector.broadcast %9 : vector<1x32xf32> to vector<2x32xf32>
    %987 = arith.addf %986, %985 : vector<2x32xf32>
    %988 = vector.extract_strided_slice %980 {offsets = [0, 1], sizes = [2, 1], strides = [1, 1]} : vector<2x4xf32> to vector<2x1xf32>
    %989 = vector.extract_strided_slice %19 {offsets = [1, 0], sizes = [1, 32], strides = [1, 1]} : vector<4x32xf32> to vector<1x32xf32>
    %990 = vector.broadcast %988 : vector<2x1xf32> to vector<2x32xf32>
    %991 = vector.broadcast %989 : vector<1x32xf32> to vector<2x32xf32>
    %992 = arith.mulf %990, %991 : vector<2x32xf32>
    %993 = arith.addf %987, %992 : vector<2x32xf32>
    %994 = vector.extract_strided_slice %980 {offsets = [0, 2], sizes = [2, 1], strides = [1, 1]} : vector<2x4xf32> to vector<2x1xf32>
    %995 = vector.extract_strided_slice %19 {offsets = [2, 0], sizes = [1, 32], strides = [1, 1]} : vector<4x32xf32> to vector<1x32xf32>
    %996 = vector.broadcast %994 : vector<2x1xf32> to vector<2x32xf32>
    %997 = vector.broadcast %995 : vector<1x32xf32> to vector<2x32xf32>
    %998 = arith.mulf %996, %997 : vector<2x32xf32>
    %999 = arith.addf %993, %998 : vector<2x32xf32>
    %1000 = vector.extract_strided_slice %980 {offsets = [0, 3], sizes = [2, 1], strides = [1, 1]} : vector<2x4xf32> to vector<2x1xf32>
    %1001 = vector.extract_strided_slice %19 {offsets = [3, 0], sizes = [1, 32], strides = [1, 1]} : vector<4x32xf32> to vector<1x32xf32>
    %1002 = vector.broadcast %1000 : vector<2x1xf32> to vector<2x32xf32>
    %1003 = vector.broadcast %1001 : vector<1x32xf32> to vector<2x32xf32>
    %1004 = arith.mulf %1002, %1003 : vector<2x32xf32>
    %1005 = arith.addf %999, %1004 : vector<2x32xf32>
    %1006 = arith.mulf %950, %885 : vector<2x32xf32>
    %1007 = arith.mulf %951, %971 : vector<2x32xf32>
    %1008 = arith.addf %1006, %1007 : vector<2x32xf32>
    %1009 = vector.broadcast %11 : vector<1x32x1xf32> to vector<2x32x32xf32>
    %1010 = arith.mulf %1009, %895 : vector<2x32x32xf32>
    %1011 = vector.shape_cast %1005 : vector<2x32xf32> to vector<2x32x1xf32>
    %1012 = vector.broadcast %1011 : vector<2x32x1xf32> to vector<2x32x32xf32>
    %1013 = arith.mulf %1012, %914 : vector<2x32x32xf32>
    %1014 = arith.addf %1010, %1013 : vector<2x32x32xf32>
    %cst_149 = arith.constant -5.000000e+00 : f32
    %cst_150 = arith.constant 5.000000e+00 : f32
    %1015 = vector.broadcast %cst_149 : f32 to vector<2x32x32xf32>
    %1016 = arith.maximumf %1015, %1014 : vector<2x32x32xf32>
    %1017 = vector.broadcast %cst_150 : f32 to vector<2x32x32xf32>
    %1018 = arith.minimumf %1017, %1016 : vector<2x32x32xf32>
    %1019 = vector.shape_cast %952 : vector<2x32xf32> to vector<2x32x1xf32>
    %cst_151 = arith.constant 1.000000e+00 : f32
    %1020 = vector.broadcast %cst_151 : f32 to vector<2x32x1xf32>
    %1021 = arith.subf %1020, %1019 : vector<2x32x1xf32>
    %1022 = vector.broadcast %1021 : vector<2x32x1xf32> to vector<2x32x32xf32>
    %1023 = arith.mulf %1022, %914 : vector<2x32x32xf32>
    %1024 = vector.shape_cast %971 : vector<2x32xf32> to vector<2x32x1xf32>
    %1025 = vector.shape_cast %885 : vector<2x32xf32> to vector<2x1x32xf32>
    %1026 = vector.broadcast %1024 : vector<2x32x1xf32> to vector<2x32x32xf32>
    %1027 = vector.broadcast %1025 : vector<2x1x32xf32> to vector<2x32x32xf32>
    %1028 = arith.mulf %1026, %1027 : vector<2x32x32xf32>
    %1029 = vector.shape_cast %1008 : vector<2x32xf32> to vector<2x32x1xf32>
    %1030 = vector.shape_cast %848 : vector<2x32xf32> to vector<2x1x32xf32>
    %1031 = vector.broadcast %1029 : vector<2x32x1xf32> to vector<2x32x32xf32>
    %1032 = vector.broadcast %1030 : vector<2x1x32xf32> to vector<2x32x32xf32>
    %1033 = arith.mulf %1031, %1032 : vector<2x32x32xf32>
    %1034 = arith.subf %1028, %1033 : vector<2x32x32xf32>
    %1035 = vector.broadcast %1019 : vector<2x32x1xf32> to vector<2x32x32xf32>
    %1036 = arith.mulf %1035, %1034 : vector<2x32x32xf32>
    %1037 = arith.addf %1023, %1036 : vector<2x32x32xf32>
    %c0_152 = arith.constant 0 : index
    %c0_153 = arith.constant 0 : index
    %1038 = vector.load %arg11[%c0_152, %c0_153] : memref<2x32xf32, #tpu.memory_space<vmem>>, vector<2x32xf32>
    tpu.vector_store %arg11[%c0_152, %c0_153], %971 {strides = array<i32>} : memref<2x32xf32, #tpu.memory_space<vmem>>, vector<2x32xf32>,
    %c0_154 = arith.constant 0 : index
    %c0_155 = arith.constant 0 : index
    %1039 = vector.load %arg12[%c0_154, %c0_155] : memref<2x32xf32, #tpu.memory_space<vmem>>, vector<2x32xf32>
    tpu.vector_store %arg12[%c0_154, %c0_155], %963 {strides = array<i32>} : memref<2x32xf32, #tpu.memory_space<vmem>>, vector<2x32xf32>,
    %c0_156 = arith.constant 0 : index
    %c0_157 = arith.constant 0 : index
    %c0_158 = arith.constant 0 : index
    %1040 = vector.load %arg13[%c0_156, %c0_157, %c0_158] : memref<2x32x32xf32, #tpu.memory_space<vmem>>, vector<2x32x32xf32>
    tpu.vector_store %arg13[%c0_156, %c0_157, %c0_158], %1018 {strides = array<i32>} : memref<2x32x32xf32, #tpu.memory_space<vmem>>, vector<2x32x32xf32>,
    %c0_159 = arith.constant 0 : index
    %c0_160 = arith.constant 0 : index
    %1041 = vector.load %arg14[%c0_159, %c0_160] : memref<2x32xf32, #tpu.memory_space<vmem>>, vector<2x32xf32>
    tpu.vector_store %arg14[%c0_159, %c0_160], %1008 {strides = array<i32>} : memref<2x32xf32, #tpu.memory_space<vmem>>, vector<2x32xf32>,
    %c0_161 = arith.constant 0 : index
    %c0_162 = arith.constant 0 : index
    %c0_163 = arith.constant 0 : index
    %1042 = vector.load %arg15[%c0_161, %c0_162, %c0_163] : memref<2x32x32xf32, #tpu.memory_space<vmem>>, vector<2x32x32xf32>
    tpu.vector_store %arg15[%c0_161, %c0_162, %c0_163], %1037 {strides = array<i32>} : memref<2x32x32xf32, #tpu.memory_space<vmem>>, vector<2x32x32xf32>,
    %1043 = tpu.concatenate %110, %233, %356, %479, %602, %725, %848, %971 in 0 : vector<2x32xf32>, vector<2x32xf32>, vector<2x32xf32>, vector<2x32xf32>, vector<2x32xf32>, vector<2x32xf32>, vector<2x32xf32>, vector<2x32xf32> -> vector<16x32xf32>
    %c0_164 = arith.constant 0 : index
    %c0_165 = arith.constant 0 : index
    %1044 = vector.load %arg9[%c0_164, %c0_165] : memref<16x32xf32, #tpu.memory_space<vmem>>, vector<16x32xf32>
    tpu.vector_store %arg9[%c0_164, %c0_165], %1043 {strides = array<i32>} : memref<16x32xf32, #tpu.memory_space<vmem>>, vector<16x32xf32>,
    %cst_166 = arith.constant dense<0.000000e+00> : vector<16x8xf32>
    %1045 = tpu.matmul %1043, %18, %cst_166 {dimension_numbers = #tpu.dot_dimension_numbers<[1], [0], [0], [1], [0, 0, 1, 1], [], []>} : vector<16x32xf32>, vector<32x8xf32>, vector<16x8xf32> -> vector<16x8xf32>
    %1046 = vector.broadcast %12 : vector<1x8xf32> to vector<16x8xf32>
    %1047 = arith.addf %1045, %1046 : vector<16x8xf32>
    %c0_167 = arith.constant 0 : index
    %c0_168 = arith.constant 0 : index
    %1048 = vector.load %arg10[%c0_167, %c0_168] : memref<16x8xf32, #tpu.memory_space<vmem>>, vector<16x8xf32>
    tpu.vector_store %arg10[%c0_167, %c0_168], %1047 {strides = array<i32>} : memref<16x8xf32, #tpu.memory_space<vmem>>, vector<16x8xf32>,
    return
  }
  func.func @transform_0(%arg0: i32) -> (i32, i32) {
    %c0_i32 = arith.constant 0 : i32
    %c0_i32_0 = arith.constant 0 : i32
    %c0_i32_1 = arith.constant 0 : i32
    return %c0_i32, %c0_i32_0 : i32, i32
  }
  func.func @transform_1(%arg0: i32) -> (i32, i32) {
    %c0_i32 = arith.constant 0 : i32
    %c0_i32_0 = arith.constant 0 : i32
    %c0_i32_1 = arith.constant 0 : i32
    return %c0_i32, %c0_i32_0 : i32, i32
  }
  func.func @transform_2(%arg0: i32) -> (i32, i32) {
    %c0_i32 = arith.constant 0 : i32
    %c0_i32_0 = arith.constant 0 : i32
    %c0_i32_1 = arith.constant 0 : i32
    return %c0_i32, %c0_i32_0 : i32, i32
  }
  func.func @transform_3(%arg0: i32) -> (i32, i32, i32) {
    %c0_i32 = arith.constant 0 : i32
    %c0_i32_0 = arith.constant 0 : i32
    %c0_i32_1 = arith.constant 0 : i32
    %c0_i32_2 = arith.constant 0 : i32
    return %c0_i32, %c0_i32_0, %c0_i32_1 : i32, i32, i32
  }
  func.func @transform_4(%arg0: i32) -> (i32, i32) {
    %c0_i32 = arith.constant 0 : i32
    %c0_i32_0 = arith.constant 0 : i32
    %c0_i32_1 = arith.constant 0 : i32
    return %c0_i32, %c0_i32_0 : i32, i32
  }
  func.func @transform_5(%arg0: i32) -> (i32, i32, i32) {
    %c0_i32 = arith.constant 0 : i32
    %c0_i32_0 = arith.constant 0 : i32
    %c0_i32_1 = arith.constant 0 : i32
    %c0_i32_2 = arith.constant 0 : i32
    return %c0_i32, %c0_i32_0, %c0_i32_1 : i32, i32, i32
  }
  func.func @transform_6(%arg0: i32) -> (i32, i32) {
    %c0_i32 = arith.constant 0 : i32
    %c0_i32_0 = arith.constant 0 : i32
    %c0_i32_1 = arith.constant 0 : i32
    return %c0_i32, %c0_i32_0 : i32, i32
  }
  func.func @transform_7(%arg0: i32) -> (i32, i32) {
    %c0_i32 = arith.constant 0 : i32
    %c0_i32_0 = arith.constant 0 : i32
    %c0_i32_1 = arith.constant 0 : i32
    return %c0_i32, %c0_i32_0 : i32, i32
  }
  func.func @transform_8(%arg0: i32) -> (i32, i32) {
    %c0_i32 = arith.constant 0 : i32
    %c0_i32_0 = arith.constant 0 : i32
    %c0_i32_1 = arith.constant 0 : i32
    return %c0_i32, %c0_i32_0 : i32, i32
  }
  func.func @transform_9(%arg0: i32) -> (i32, i32) {
    %c0_i32 = arith.constant 0 : i32
    %c0_i32_0 = arith.constant 0 : i32
    %c0_i32_1 = arith.constant 0 : i32
    return %c0_i32, %c0_i32_0 : i32, i32
  }
  func.func @transform_10(%arg0: i32) -> (i32, i32) {
    %c0_i32 = arith.constant 0 : i32
    %c0_i32_0 = arith.constant 0 : i32
    %c0_i32_1 = arith.constant 0 : i32
    return %c0_i32, %c0_i32_0 : i32, i32
  }
  func.func @transform_11(%arg0: i32) -> (i32, i32) {
    %c0_i32 = arith.constant 0 : i32
    %c0_i32_0 = arith.constant 0 : i32
    %c0_i32_1 = arith.constant 0 : i32
    return %c0_i32, %c0_i32_0 : i32, i32
  }
  func.func @transform_12(%arg0: i32) -> (i32, i32, i32) {
    %c0_i32 = arith.constant 0 : i32
    %c0_i32_0 = arith.constant 0 : i32
    %c0_i32_1 = arith.constant 0 : i32
    %c0_i32_2 = arith.constant 0 : i32
    return %c0_i32, %c0_i32_0, %c0_i32_1 : i32, i32, i32
  }
  func.func @transform_13(%arg0: i32) -> (i32, i32) {
    %c0_i32 = arith.constant 0 : i32
    %c0_i32_0 = arith.constant 0 : i32
    %c0_i32_1 = arith.constant 0 : i32
    return %c0_i32, %c0_i32_0 : i32, i32
  }
  func.func @transform_14(%arg0: i32) -> (i32, i32, i32) {
    %c0_i32 = arith.constant 0 : i32
    %c0_i32_0 = arith.constant 0 : i32
    %c0_i32_1 = arith.constant 0 : i32
    %c0_i32_2 = arith.constant 0 : i32
    return %c0_i32, %c0_i32_0, %c0_i32_1 : i32, i32, i32
  }
}

</mosaic_0001>

<bundles_post_ra>
// kernel: _sgru_forward_impl.1
= control target key start
LH: loop header
LB: loop body
LE: loop exit
PB: predicated region body
PF: predicated region fallthrough
CT: control target
= control target key end

     0   :  { %20 = vsyncpa [#allocation3], 0  ;;  %s8931_s0 = inlined_call_operand.hbm [shape: f32[16,16], index: 0, kind: input, shape index: {}]   ;;  %s8932_s1 = inlined_call_operand.vmem [shape: f32[2,32], index: 1, kind: input, shape index: {}, may-alias: {1,10}]   ;;  %s8933_s2 = inlined_call_operand.vmem [shape: f32[2,32], index: 2, kind: input, shape index: {}, may-alias: {2,11}]   ;;  %s8934_s3 = inlined_call_operand.hbm [shape: f32[2,32,32], index: 3, kind: input, shape index: {}, may-alias: {3,12}]   ;;  %s8935_s4 = inlined_call_operand.vmem [shape: f32[2,32], index: 4, kind: input, shape index: {}, may-alias: {4,13}]   ;;  %s8936_s5 = inlined_call_operand.hbm [shape: f32[2,32,32], index: 5, kind: input, shape index: {}, may-alias: {5,14}]   ;;  %s8937_s6 = inlined_call_operand.hbm [shape: f32[80,128], index: 6, kind: input, shape index: {}]   ;;  %s8938_s7 = inlined_call_operand.vmem [shape: f32[8,128], index: 7, kind: input, shape index: {}]   ;;  %s8939_s8 = inlined_call_operand.hbm [shape: f32[16,32], index: 8, kind: output, shape index: {0}]   ;;  %s8940_s9 = inlined_call_operand.hbm [shape: f32[16,8], index: 9, kind: output, shape index: {1}]   ;;  %s8941_s10 = inlined_call_operand.vmem [shape: f32[2,32], index: 10, kind: output, shape index: {2}, may-alias: {1,10}]   ;;  %s8942_s11 = inlined_call_operand.vmem [shape: f32[2,32], index: 11, kind: output, shape index: {3}, may-alias: {2,11}]   ;;  %s8943_s12 = inlined_call_operand.hbm [shape: f32[2,32,32], index: 12, kind: output, shape index: {4}, may-alias: {3,12}]   ;;  %s8944_s13 = inlined_call_operand.vmem [shape: f32[2,32], index: 13, kind: output, shape index: {5}, may-alias: {4,13}]   ;;  %s8945_s14 = inlined_call_operand.hbm [shape: f32[2,32,32], index: 14, kind: output, shape index: {6}, may-alias: {5,14}]  }
   0x1   :  { %21 = vsyncpa [#allocation6], 0 }
   0x2   :  { %22 = vsyncpa [#allocation9], 0 }
   0x3   :  { %23 = vsyncpa [#allocation4], 0 }
   0x4   :  { %24 = vsyncpa [#allocation12], 0 }
   0x5   :  { %25 = vsyncpa [#allocation15], 0  ;;  %s6489_s29 = smov [#allocation5]   ;;  %s6490_s15 = smov [#allocation2]  }
   0x6   :  { %s47_s30 = sshll.u32 %s6489_s29, 4  ;;  %s31_s16 = sshll.u32 %s6490_s15, 4  ;;  %s48_s30 = int_to_ptr.vmem [resolvable:$true] %s47_s30  ;;  %s32_s16 = int_to_ptr.vmem [resolvable:$true] %s31_s16 }
   0x7   :  { %s6325_s17 = scalar_lea.vmem %s48_s30, 1024  ;;  %p6330_p1 = scmp.lt.s32.totalorder %s48_s30, %s48_s30 }
   0x8   :  { %p6326_p0 = scmp.ne.s32.totalorder %s48_s30, %s6325_s17  ;;  %p6331_p2 = scmp.lt.s32.totalorder %s6325_s17, %s6325_s17 }
   0xa   :  { %p6332_p3 = por %p6331_p2, %p6330_p1 }
   0xc   :  { %p6333_p4 = pnand %p6332_p3, %p6326_p0 }
   0xe   :  { %6336 = shalt.err (!%p6333_p4)
}
   0xf   :  { %s6491_s18 = smov 128   ;;  %s6492_s19 = smov 8  }
  0x10   :  { %53 = dma.hbm_to_vmem [thread:$0]  %s8934_s3, 1024, %s48_s30, [#allocation6], %s6491_s18, %s6491_s18, %s6492_s19  }
  0x11   :  { %s6345_s22 = scalar_lea.vmem %s32_s16, 256  ;;  %p6350_p6 = scmp.lt.s32.totalorder %s32_s16, %s32_s16 }
  0x12   :  { %p6346_p5 = scmp.ne.s32.totalorder %s32_s16, %s6345_s22  ;;  %p6351_p7 = scmp.lt.s32.totalorder %s6345_s22, %s6345_s22 }
  0x14   :  { %p6352_p8 = por %p6351_p7, %p6350_p6 }
  0x16   :  { %p6353_p9 = pnand %p6352_p8, %p6346_p5 }
  0x18   :  { %6356 = shalt.err (!%p6353_p9)
}
  0x19   :  { %37 = dma.hbm_to_vmem [thread:$0]  %s8931_s0, 256, %s32_s16, [#allocation3], %s6491_s18, %s6491_s18, %s6492_s19  }
  0x1a   :  { %s6493_s25 = smov [#allocation7]   ;;  %s6494_s27 = smov [#allocation8]  }
  0x1b   :  { %s61_s26 = sshll.u32 %s6493_s25, 4  ;;  %s73_s28 = sshll.u32 %s6494_s27, 4  ;;  %s62_s26 = int_to_ptr.vmem [resolvable:$true] %s61_s26  ;;  %s74_s28 = int_to_ptr.vmem [resolvable:$true] %s73_s28 }
  0x1c   :  { %s6365_s3 = scalar_lea.vmem %s62_s26, 1024  ;;  %p6370_p11 = scmp.lt.s32.totalorder %s62_s26, %s62_s26 }
  0x1d   :  { %p6366_p10 = scmp.ne.s32.totalorder %s62_s26, %s6365_s3  ;;  %p6371_p12 = scmp.lt.s32.totalorder %s6365_s3, %s6365_s3 }
  0x1f   :  { %p6372_p13 = por %p6371_p12, %p6370_p11 }
  0x21   :  { %p6373_p0 = pnand %p6372_p13, %p6366_p10 }
  0x23   :  { %6376 = shalt.err (!%p6373_p0)
}
  0x24   :  { %67 = dma.hbm_to_vmem [thread:$0]  %s8936_s5, 1024, %s62_s26, [#allocation6], %s6491_s18, %s6491_s18, %s6492_s19  }
  0x25   :  { %s6385_s0 = scalar_lea.vmem %s74_s28, 1280  ;;  %p6390_p2 = scmp.lt.s32.totalorder %s74_s28, %s74_s28 }
  0x26   :  { %p6386_p1 = scmp.ne.s32.totalorder %s74_s28, %s6385_s0  ;;  %p6391_p3 = scmp.lt.s32.totalorder %s6385_s0, %s6385_s0 }
  0x28   :  { %p6392_p4 = por %p6391_p3, %p6390_p2 }
  0x2a   :  { %p6393_p5 = pnand %p6392_p4, %p6386_p1 }
  0x2c   :  { %6396 = shalt.err (!%p6393_p5)
}
  0x2d   :  { %79 = dma.hbm_to_vmem [thread:$0]  %s8937_s6, 1280, %s74_s28, [#allocation9], %s6491_s18, %s6491_s18, %s6492_s19  }
  0x2e   :  { %6477 = dma.done.wait [#allocation3], 256  }
  0x2f   :  { %6478 = vsyncadd [#allocation3], 4294967040 }
  0x30   :  { %6479 = dma.done.wait [#allocation6], 2048  }
  0x31   :  { %6480 = vsyncadd [#allocation6], 4294965248 }
  0x32   :  { %6481 = dma.done.wait [#allocation9], 1280  }
  0x33   :  { %6482 = vsyncadd [#allocation9], 4294966016  ;;  %v96_v0 = vlaneseq  ;;  %v8954_v1 = vmov 0.0   ;;  %vm6496_vm0 = vmmov 0   ;;  %v6497_v3 = vmov 1966171168  }
  0x34   :  { %6002 = vmatprep.subr.bf16.mxu1 %v8954_v1  ;;  %6006 = vmatprep.mubr.msk.bf16.mxu1 %vm6496_vm0, %v8954_v1  ;;  %v358_v4 = vunpack.c.l.s4 %v6497_v3  ;;  %vm134_vm1 = vcmask 130048   ;;  %v117_v7 = vld [vmem:[#allocation8 + $0x8] sm:$0xff]  ;;  %v116_v8 = vld [vmem:[#allocation8] sm:$0xff]  ;;  %v128_v11 = vld [vmem:[#allocation2] sm:$0xff]  ;;  %vm278_vm2 = vcmask 261120   ;;  %vm322_vm3 = vcmask 1041408  }
  0x35   :  { %v6615_v2 = vshrl.u32 %v96_v0, 7  ;;  %v120_v9 = vld [vmem:[#allocation8 + $0x20] sm:$0xff]  ;;  %5995 = vmatprep.subr.mxu0 %v117_v7  ;;  %v121_v10 = vld [vmem:[#allocation8 + $0x28] sm:$0xff]  ;;  %v129_v12 = vld [vmem:[#allocation2 + $0x8] sm:$0xff]  ;;  %5999 = vmatprep.mubr.msk.f32.mxu0 %vm134_vm1, %v128_v11  ;;  %vm491_vm4 = vcmask 917312   ;;  %vm498_vm5 = vcmask 982912  }
  0x36   :  { %v359_v5 = vunpack.c.0.s8 %v358_v4  ;;  %5996 = vmatpush3.msra.mxu0 %v117_v7  ;;  %v6620_v13 = vpack.c.bf16 %v121_v10, %v120_v9  ;;  %v118_v14 = vld [vmem:[#allocation8 + $0x10] sm:$0xff]  ;;  %v119_v15 = vld [vmem:[#allocation8 + $0x18] sm:$0xff]  ;;  %v6636_v22 = vld [vmem:[#allocation5 + $0x8] sm:$0xff]  ;;  %vm505_vm6 = vcmask 1048512   ;;  %vm526_vm7 = vcmask 1041409   ;;  %s6500_s20 = smov 96  }
  0x37   :  { %9232 = vst [vmem:[#allocation22_spill] sm:$0xff] %v6615_v2  ;;  %v254_v16 = vld [vmem:[%s8932_s1] sm:$0x3]  ;;  %5997 = vmatprep.subr.mxu0 %v116_v8  ;;  %v6627_v17 = vsub.s32 0, %v6615_v2  ;;  %v6631_v19 = vpack.c.bf16 %v119_v15, %v118_v14  ;;  %v6646_v26 = vld [vmem:[#allocation5 + $0x20] sm:$0xff]  ;;  %v6667_v34 = vld [vmem:[#allocation5 + $0x18] sm:$0xff] }
  0x38   :  { %v6618_v6 = vsub.s32 %v359_v5, %v6615_v2  ;;  %9234 = vst [vmem:[#allocation24_spill] sm:$0xff] %v6620_v13  ;;  %6003 = vmatpush3.bf16.msra.mxu1 %v6620_v13  ;;  %5998 = vmatpush3.msra.mxu0 %v116_v8  ;;  %v273_v23 = vpack.c.bf16 %v254_v16, %v254_v16  ;;  %v6654_v29 = vld [vmem:[#allocation5 + $0x10] sm:$0xff]  ;;  %v6676_v38 = vsub.s32 6, %v6615_v2  ;;  %v6690_v41 = vld [vmem:[#allocation5] sm:$0xff]  ;;  %v6698_v45 = vsub.s32 1, %v6615_v2  ;;  %v6700_v46 = vld [vmem:[#allocation5 + $0x28] sm:$0xff] }
  0x39   :  { %9235 = vst [vmem:[#allocation25_spill] sm:$0xff] %v6631_v19  ;;  %6000 = vmatmul.mubr.msk.f32.vlgmr.msra.gmra.mxu0 %vm134_vm1, %v129_v12  ;;  %6004 = vmatprep.subr.bf16.mxu1 %v8954_v1  ;;  %v6681_v39 = vld [vmem:[%s8938_s7] sm:$0xff]  ;;  %v6718_v58 = vld [vmem:[#allocation5 + $0x38] sm:$0xff]  ;;  %v8946_v5 = vmov 0   ;;  %s6499_s7 = smov 64   ;;  %vm626_vm9 = vcmask 25600  }
  0x3a   :  { %9233 = vst [vmem:[#allocation23_spill] sm:$0xff] %v6618_v6  ;;  %v363_v18 = vrot.slane %v254_v16, %v6618_v6  ;;  %6010 = vmatprep.subr.mxu0 %v8954_v1  ;;  %6018 = vmatprep.mubr.msk.f32.mxu0 %vm6496_vm0, %v8954_v1  ;;  %9236 = vst [vmem:[#allocation26_spill] sm:$0xff] %v6676_v38  ;;  %v6685_v40 = vrot.slane %v6681_v39, %v6676_v38  ;;  %v6710_v53 = vld [vmem:[#allocation5 + $0x30] sm:$0xff]  ;;  %vm1198_vm11 = vcmask 1043459   ;;  %s6505_s23 = smov 32   ;;  %vm1860_vm13 = vcmask 1045509  }
  0x3b   :  { %v133_v44 = vrot.slane %v6681_v39, %v6627_v17  ;;  %9238 = vst [vmem:[#allocation28_spill] sm:$0xff] %v6698_v45  ;;  %v6708_v52 = vrot.slane %v6681_v39, %v6698_v45  ;;  %6189 = vset.pattern.permute.xlu1 %v8946_v5  ;;  %6188 = vset.pattern.permute.xlu0 %v8946_v5  ;;  %vm2523_vm15 = vcmask 1047559   ;;  %vm5631_vm1 = vcmask 1043456  }
  0x3c   :  { %v364_v20 = vcombine.high %v363_v18, %v363_v18  ;;  %v371_v21 = vrot.slane %v363_v18, %v6618_v6  ;;  %6005 = vmatpush3.bf16.msra.mxu1 %v6631_v19  ;;  %9237 = vst [vmem:[#allocation27_spill] sm:$0xff] %v6685_v40 }
  0x3d   :  { %6021 = vmatprep.subr.bf16.mxu1 %v8954_v1  ;;  %9240 = vst [vmem:[#allocation30_spill] sm:$0xff] %v6708_v52 }
  0x3e   :  { %v378_v24 = vrot.slane %v364_v20, %v6618_v6  ;;  %v6643_v25 = vrot.slane %v371_v21, %v6627_v17 }
  0x3f   :  { %6007 = vmatmul.mubr.msk.bf16.vlgmr.msra.gmra.mxu1 %vm278_vm2, %v273_v23 }
  0x40   :  { %v6649_v27 = vrot.slane %v378_v24, %v6627_v17  ;;  %v390_v28 = vmul.f32 %v6643_v25, %v6636_v22  ;;  %6022 = vmatpush3.bf16.msra.mxu1 %v6620_v13  ;;  %v391_v33 = vmul.f32 %v6643_v25, %v6654_v29  ;;  %6025 = vmatprep.mubr.msk.bf16.mxu1 %vm6496_vm0, %v8954_v1 }
  0x41   :  { %6023 = vmatprep.subr.bf16.mxu1 %v8954_v1  ;;  %v392_v36 = vmul.f32 %v6643_v25, %v6667_v34  ;;  %v389_v42 = vmul.f32 %v6643_v25, %v6690_v41 }
  0x42   :  { %v400_v30 = vsel %vm278_vm2, %v390_v28, 0.0  ;;  %v393_v31 = vmul.f32 %v6649_v27, %v6646_v26  ;;  %v403_v35 = vsel %vm278_vm2, %v391_v33, 0.0  ;;  %v394_v50 = vmul.f32 %v6649_v27, %v6700_v46 }
  0x43   :  { %401 = vadd.xlane.f32.xlu1 %v400_v30  ;;  %v406_v37 = vsel %vm278_vm2, %v392_v36, 0.0  ;;  %v397_v43 = vsel %vm278_vm2, %v389_v42, 0.0  ;;  %v395_v56 = vmul.f32 %v6649_v27, %v6710_v53  ;;  %v396_v62 = vmul.f32 %v6649_v27, %v6718_v58 }
  0x44   :  { %v409_v32 = vsel %vm278_vm2, %v393_v31, 0.0  ;;  %6024 = vmatpush3.bf16.msra.mxu1 %v6631_v19  ;;  %398 = vadd.xlane.f32.xlu0 %v397_v43  ;;  %v412_v55 = vsel %vm278_vm2, %v394_v50, 0.0 }
  0x45   :  { %6040 = vmatprep.subr.bf16.mxu1 %v8954_v1  ;;  %v415_v61 = vsel %vm278_vm2, %v395_v56, 0.0  ;;  %v418_v4 = vsel %vm278_vm2, %v396_v62, 0.0 }
  0x47   :  { %410 = vadd.xlane.f32.xlu1 %v409_v32 }
  0x4b   :  { %404 = vadd.xlane.f32.xlu1 %v403_v35 }
  0x4f   :  { %407 = vadd.xlane.f32.xlu1 %v406_v37 }
  0x60   :  { %423 = vbcast.lane.b32.xlu1 %v6685_v40, 256 }
  0x64   :  { %431 = vbcast.lane.b32.xlu1 %v6685_v40, 272 }
  0x68   :  { %435 = vbcast.lane.b32.xlu1 %v6685_v40, 280 }
  0xcc   :  { %v402_v10 = vpop.xlane.xlu1 %401 }
  0xcd   :  { %v399_v9 = vpop.xlane.xlu0 %398 }
  0xd0   :  { %v411_v14 = vpop.xlane.xlu1 %410 }
  0xd4   :  { %v405_v20 = vpop.xlane.xlu1 %404 }
  0xd8   :  { %v408_v24 = vpop.xlane.xlu1 %407 }
  0xdc   :  { %v6739_v31 = vpop.permute.xlu1 %423 }
  0xdd   :  { %9242 = vst [vmem:[#allocation32_spill] sm:$0xff] %v6739_v31  ;;  %v445_v32 = vmul.f32 %v6739_v31, %v411_v14  ;;  %v441_v35 = vmul.f32 %v6739_v31, %v399_v9 }
  0xe0   :  { %v6744_v36 = vpop.permute.xlu1 %431 }
  0xe1   :  { %9243 = vst [vmem:[#allocation33_spill] sm:$0xff] %v6744_v36  ;;  %v443_v37 = vmul.f32 %v6744_v36, %v405_v20 }
  0xe4   :  { %v6748_v43 = vpop.permute.xlu1 %435 }
  0xe5   :  { %9244 = vst [vmem:[#allocation34_spill] sm:$0xff] %v6748_v43 }
  0xf9   :  { %v6001_v47 = vpop.f32.mrf.mxu0 }
  0xfa   :  { %v6702_v48 = vadd.f32 %v6001_v47, %v133_v44 }
  0xfb   :  { %v207_v49 = vpop.f32.mrf.mxu0 }
  0xfc   :  { %9239 = vst [vmem:[#allocation29_spill] sm:$0xff] %v6702_v48  ;;  %v208_v51 = vadd.f32 %v207_v49, %v133_v44  ;;  %v444_v44 = vmul.f32 %v6748_v43, %v408_v24  ;;  %v6767_v24 = vsub.s32 3, %v6615_v2  ;;  %v6946_v48 = vld [vmem:[#allocation7 + $0x30] sm:$0xff] }
  0xfd   :  { %9270 = vst [vmem:[#allocation60_spill] sm:$0xff] %v6946_v48 }
  0xfe   :  { %216 = vadd.xlane.f32.xlu0 %v208_v51  ;;  %9248 = vst [vmem:[#allocation38_spill] sm:$0xff] %v6767_v24 }
  0xff   :  { %v316_v54 = vpop.f32.mrf.mxu1 }
 0x100   :  { %v6716_v57 = vadd.f32 %v316_v54, %v6708_v52 }
 0x101   :  { %v6008_v59 = vpop.f32.mrf.mxu1 }
 0x102   :  { %413 = vadd.xlane.f32.xlu0 %v412_v55  ;;  %v323_v60 = vsel %vm322_vm3, %v6716_v57, 0.0  ;;  %v327_v7 = vmul.f32 %v6716_v57, %v6716_v57 }
 0x103   :  { %324 = vadd.xlane.f32.xlu1 %v323_v60  ;;  %v319_v63 = vpop.f32.mrf.mxu1 }
 0x104   :  { %v328_v8 = vsel %vm322_vm3, %v327_v7, 0.0 }
 0x105   :  { %v6009_v3 = vpop.f32.mrf.mxu1 }
 0x106   :  { %416 = vadd.xlane.f32.xlu0 %v415_v61 }
 0x10a   :  { %419 = vadd.xlane.f32.xlu0 %v418_v4 }
 0x120   :  { %427 = vbcast.lane.b32.xlu0 %v6685_v40, 264 }
 0x13f   :  { %329 = vadd.xlane.f32.xlu0 %v328_v8  ;;  %v6753_v8 = vand.u32 127, %v96_v0 }
 0x141   :  { %9245 = vst [vmem:[#allocation35_spill] sm:$0xff] %v6753_v8  ;;  %v500_v20 = vadd.s32 4294967176, %v6753_v8  ;;  %vm253_vm8 = vcmp.lt.s32.totalorder %v6753_v8, 26 }
 0x187   :  { %v217_v11 = vpop.xlane.xlu0 %216 }
 0x188   :  { %v221_v12 = vmul.f32 0.0078125, %v217_v11  ;;  %v481_v11 = vadd.s32 4294967200, %v6753_v8 }
 0x18a   :  { %v6732_v15 = vsub.f32 %v208_v51, %v221_v12  ;;  %v6758_v12 = vsub.s32 4, %v6615_v2 }
 0x18b   :  { %v414_v16 = vpop.xlane.xlu0 %413 }
 0x18c   :  { %v225_v18 = vmul.f32 %v6732_v15, %v6732_v15  ;;  %v325_v49 = vpop.xlane.xlu1 %324  ;;  %9246 = vst [vmem:[#allocation36_spill] sm:$0xff] %v6758_v12 }
 0x18d   :  { %v326_v51 = vmul.f32 0.0078125, %v325_v49 }
 0x18e   :  { %227 = vadd.xlane.f32.xlu0 %v225_v18 }
 0x18f   :  { %v417_v21 = vpop.xlane.xlu0 %416  ;;  %v332_v54 = vmul.f32 %v326_v51, %v326_v51  ;;  %v335_v18 = vsub.f32 %v6716_v57, %v326_v51  ;;  %v6795_v51 = vrot.slane %v6681_v39, %v6767_v24 }
 0x190   :  { %v447_v42 = vmul.f32 %v6744_v36, %v417_v21  ;;  %v6764_v21 = vsub.s32 2, %v6615_v2 }
 0x191   :  { %9256 = vst [vmem:[#allocation46_spill] sm:$0xff] %v6795_v51 }
 0x192   :  { %9247 = vst [vmem:[#allocation37_spill] sm:$0xff] %v6764_v21 }
 0x193   :  { %v420_v23 = vpop.xlane.xlu0 %419 }
 0x194   :  { %v448_v47 = vmul.f32 %v6748_v43, %v420_v23 }
 0x197   :  { %v6736_v28 = vpop.permute.xlu0 %427 }
 0x198   :  { %9241 = vst [vmem:[#allocation31_spill] sm:$0xff] %v6736_v28  ;;  %v442_v30 = vmul.f32 %v6736_v28, %v402_v10  ;;  %v446_v33 = vmul.f32 %v6736_v28, %v414_v16  ;;  %v486_v10 = vadd.s32 4294967192, %v6753_v8  ;;  %v493_v16 = vadd.s32 4294967184, %v6753_v8 }
 0x19a   :  { %461 = vperm.xlu1 %6189, %v442_v30   ;;  %v6770_v30 = vsub.s32 5, %v6615_v2 }
 0x19c   :  { %9249 = vst [vmem:[#allocation39_spill] sm:$0xff] %v6770_v30 }
 0x19e   :  { %470 = vperm.xlu1 %6189, %v445_v32   ;;  %v6773_v32 = vsub.s32 %v486_v10, %v6615_v2 }
 0x1a0   :  { %9250 = vst [vmem:[#allocation40_spill] sm:$0xff] %v6773_v32 }
 0x1a2   :  { %473 = vperm.xlu1 %6189, %v446_v33   ;;  %v6776_v33 = vsub.s32 %v481_v11, %v6615_v2 }
 0x1a4   :  { %458 = vperm.xlu0 %6188, %v441_v35   ;;  %9251 = vst [vmem:[#allocation41_spill] sm:$0xff] %v6776_v33  ;;  %v6780_v35 = vrot.slane %v6681_v39, %v6758_v12 }
 0x1a6   :  { %464 = vperm.xlu1 %6189, %v443_v37   ;;  %9252 = vst [vmem:[#allocation42_spill] sm:$0xff] %v6780_v35  ;;  %v6783_v37 = vsub.s32 %v493_v16, %v6615_v2 }
 0x1a8   :  { %9253 = vst [vmem:[#allocation43_spill] sm:$0xff] %v6783_v37 }
 0x1aa   :  { %476 = vperm.xlu1 %6189, %v447_v42  }
 0x1ae   :  { %467 = vperm.xlu1 %6189, %v444_v44   ;;  %v6787_v44 = vsub.s32 %v500_v20, %v6615_v2 }
 0x1b0   :  { %9254 = vst [vmem:[#allocation44_spill] sm:$0xff] %v6787_v44 }
 0x1b2   :  { %479 = vperm.xlu1 %6189, %v448_v47   ;;  %v6791_v47 = vrot.slane %v6681_v39, %v6764_v21 }
 0x1b4   :  { %9255 = vst [vmem:[#allocation45_spill] sm:$0xff] %v6791_v47 }
 0x1c8   :  { %v330_v50 = vpop.xlane.xlu0 %329 }
 0x1c9   :  { %v331_v55 = vmul.f32 0.0078125, %v330_v50 }
 0x1cb   :  { %v333_v56 = vsub.f32 %v331_v55, %v332_v54  ;;  %v6799_v54 = vrot.slane %v6681_v39, %v6770_v30 }
 0x1cd   :  { %v334_v59 = vmax.f32 %v333_v56, 0.0  ;;  %9257 = vst [vmem:[#allocation47_spill] sm:$0xff] %v6799_v54 }
 0x1cf   :  { %v336_v60 = vadd.f32 1e-05, %v334_v59 }
 0x1d1   :  { %6221 = vrsqrt.f32 %v336_v60 }
 0x1de   :  { %v6222_v14 = vpop.eup %6221 }
 0x1df   :  { %v338_v57 = vmul.f32 %v6222_v14, %v335_v18 }
 0x1e1   :  { %v343_v60 = vmul.f32 %v6780_v35, %v338_v57 }
 0x215   :  { %v462_v61 = vpop.permute.xlu1 %461 }
 0x216   :  { %v490_v55 = vrot.slane %v462_v61, %v6773_v32 }
 0x217   :  { %v228_v62 = vpop.xlane.xlu0 %227 }
 0x218   :  { %v231_v63 = vmul.f32 0.0078125, %v228_v62 }
 0x219   :  { %v471_v3 = vpop.permute.xlu1 %470 }
 0x21a   :  { %v233_v4 = vadd.f32 1e-05, %v231_v63 }
 0x21c   :  { %6223 = vrsqrt.f32 %v233_v4  ;;  %v510_v4 = vrot.slane %v471_v3, %v6776_v33 }
 0x21d   :  { %v474_v7 = vpop.permute.xlu1 %473 }
 0x21e   :  { %v514_v59 = vrot.slane %v474_v7, %v6773_v32 }
 0x21f   :  { %v459_v0 = vpop.permute.xlu0 %458 }
 0x220   :  { %v485_v42 = vrot.slane %v459_v0, %v6776_v33  ;;  %v515_v7 = vsel %vm491_vm4, %v514_v59, %v510_v4  ;;  %v6840_v4 = vld [vmem:[#allocation8 + $0x30] sm:$0xff] }
 0x221   :  { %v465_v9 = vpop.permute.xlu1 %464 }
 0x222   :  { %v497_v62 = vrot.slane %v465_v9, %v6783_v37  ;;  %v492_v10 = vsel %vm491_vm4, %v490_v55, %v485_v42  ;;  %v348_v9 = vadd.f32 %v6799_v54, %v343_v60  ;;  %v6830_v60 = vld [vmem:[#allocation8 + $0x48] sm:$0xff] }
 0x223   :  { %6011 = vmatpush3.msra.mxu0 %v6830_v60 }
 0x224   :  { %v499_v3 = vsel %vm498_vm5, %v497_v62, %v492_v10  ;;  %6012 = vmatprep.subr.mxu0 %v8954_v1  ;;  %v6834_v62 = vld [vmem:[#allocation8 + $0x40] sm:$0xff]  ;;  %v255_v10 = vld [vmem:[%s8933_s2] sm:$0x3]  ;;  %s6504_s2 = smov 100  }
 0x225   :  { %v477_v23 = vpop.permute.xlu1 %476  ;;  %6013 = vmatpush3.msra.mxu0 %v6834_v62 }
 0x226   :  { %v519_v63 = vrot.slane %v477_v23, %v6783_v37  ;;  %6014 = vmatprep.subr.mxu0 %v8954_v1 }
 0x228   :  { %v520_v16 = vsel %vm498_vm5, %v519_v63, %v515_v7  ;;  %v6838_v63 = vld [vmem:[#allocation8 + $0x38] sm:$0xff] }
 0x229   :  { %v6224_v49 = vpop.eup %6223  ;;  %v468_v50 = vpop.permute.xlu1 %467  ;;  %6015 = vmatpush3.msra.mxu0 %v6838_v63 }
 0x22a   :  { %v237_v56 = vmul.f32 %v6224_v49, %v6732_v15  ;;  %v504_v39 = vrot.slane %v468_v50, %v6787_v44  ;;  %6016 = vmatprep.subr.mxu0 %v8954_v1 }
 0x22b   :  { %6017 = vmatpush3.msra.mxu0 %v6840_v4 }
 0x22c   :  { %v243_v61 = vmul.f32 %v6791_v47, %v237_v56  ;;  %v506_v18 = vsel %vm505_vm6, %v504_v39, %v499_v3  ;;  %6029 = vmatprep.subr.mxu0 %v8954_v1 }
 0x22d   :  { %v480_v15 = vpop.permute.xlu1 %479 }
 0x22e   :  { %v524_v11 = vrot.slane %v480_v15, %v6787_v44  ;;  %v6814_v14 = vadd.f32 %v6795_v51, %v243_v61 }
 0x230   :  { %9258 = vst [vmem:[#allocation48_spill] sm:$0xff] %v6814_v14  ;;  %v525_v20 = vsel %vm505_vm6, %v524_v11, %v520_v16  ;;  %v349_v0 = vadd.f32 %v348_v9, %v6814_v14 }
 0x231   :  { %v527_v23 = vsel %vm526_vm7, %v525_v20, %v506_v18 }
 0x232   :  { %v529_v57 = vadd.f32 %v527_v23, %v349_v0  ;;  %v5824_v42 = vmul.f32 -1.442695, %v349_v0 }
 0x234   :  { %532 = vrot.lane.b32.xlu1 %v529_v57, %s6499_s7  ;;  %6225 = vpow2.f32 %v5824_v42 }
 0x238   :  { %550 = vrot.lane.b32.xlu1 %v6685_v40, %s6500_s20 }
 0x241   :  { %v6226_v49 = vpop.eup %6225 }
 0x242   :  { %v353_v50 = vadd.f32 1.0, %v6226_v49 }
 0x244   :  { %6227 = vrcp.f32 %v353_v50 }
 0x251   :  { %v6826_v55 = vpop.eup %6227 }
 0x252   :  { %v530_v39 = vmul.f32 %v6826_v55, %v255_v10 }
 0x2a6   :  { %v533_v56 = vpop.permute.xlu1 %532 }
 0x2a7   :  { %v535_v59 = vmul.f32 %v6826_v55, %v533_v56 }
 0x2a9   :  { %537 = vrot.lane.b32.xlu0 %v535_v59, %s6500_s20 }
 0x2aa   :  { %v6881_v23 = vpop.permute.xlu1 %550 }
 0x2ab   :  { %9260 = vst [vmem:[#allocation50_spill] sm:$0xff] %v6881_v23 }
 0x31b   :  { %v538_v61 = vpop.permute.xlu0 %537 }
 0x31c   :  { %v6850_v15 = vadd.f32 %v538_v61, %v530_v39 }
 0x31e   :  { %v5825_v7 = vmul.f32 -1.442695, %v6850_v15 }
 0x320   :  { %6229 = vpow2.f32 %v5825_v7 }
 0x32d   :  { %v6230_v11 = vpop.eup %6229 }
 0x32e   :  { %v544_v9 = vadd.f32 1.0, %v6230_v11  ;;  %v8952_v11 = vmov 1  }
 0x330   :  { %6231 = vrcp.f32 %v544_v9  ;;  %v8950_v9 = vmov 2  }
 0x33d   :  { %v6232_v3 = vpop.eup %6231 }
 0x33e   :  { %v547_v16 = vmul.f32 %v6232_v3, %v6850_v15  ;;  %v8948_v3 = vmov 3  }
 0x340   :  { %v548_v18 = vsub.f32 %v6850_v15, %v547_v16 }
 0x342   :  { %v6858_v20 = vsel %vm253_vm8, %v547_v16, %v548_v18  ;;  %v6895_v16 = vrot.slane %v6840_v4, %v6627_v17 }
 0x343   :  { %9259 = vst [vmem:[#allocation49_spill] sm:$0xff] %v6858_v20  ;;  %6019 = vmatmul.mubr.msk.f32.vlgmr.msra.gmra.mxu0 %vm278_vm2, %v6858_v20  ;;  %v984_v0 = vpack.c.bf16 %v6858_v20, %v6858_v20 }
 0x344   :  { %6030 = vmatpush3.msra.mxu0 %v6830_v60  ;;  %6037 = vmatprep.mubr.msk.f32.mxu0 %vm6496_vm0, %v8954_v1  ;;  %9261 = vst [vmem:[#allocation51_spill] sm:$0xff] %v6895_v16 }
 0x345   :  { %6026 = vmatmul.mubr.msk.bf16.vlgmr.msra.gmra.mxu1 %vm278_vm2, %v984_v0  ;;  %6031 = vmatprep.subr.mxu0 %v8954_v1 }
 0x346   :  { %6032 = vmatpush3.msra.mxu0 %v6834_v62  ;;  %6041 = vmatpush3.bf16.msra.mxu1 %v6620_v13 }
 0x347   :  { %6033 = vmatprep.subr.mxu0 %v8954_v1  ;;  %6042 = vmatprep.subr.bf16.mxu1 %v8954_v1 }
 0x348   :  { %6034 = vmatpush3.msra.mxu0 %v6838_v63  ;;  %6044 = vmatprep.mubr.msk.bf16.mxu1 %vm6496_vm0, %v8954_v1 }
 0x349   :  { %6035 = vmatprep.subr.mxu0 %v8954_v1 }
 0x34a   :  { %6036 = vmatpush3.msra.mxu0 %v6840_v4  ;;  %6043 = vmatpush3.bf16.msra.mxu1 %v6631_v19 }
 0x34b   :  { %6048 = vmatprep.subr.mxu0 %v8954_v1  ;;  %6059 = vmatprep.subr.bf16.mxu1 %v8954_v1 }
 0x403   :  { %v622_v57 = vpop.f32.mrf.mxu0 }
 0x404   :  { %v623_v42 = vadd.f32 %v622_v57, %v6881_v23  ;;  %v6900_v57 = vrot.slane %v6840_v4, %v6698_v45 }
 0x405   :  { %v6020_v49 = vpop.f32.mrf.mxu0  ;;  %v6884_v50 = vpop.f32.mrf.mxu1 }
 0x406   :  { %v627_v56 = vsel %vm626_vm9, %v623_v42, -inf  ;;  %9262 = vst [vmem:[#allocation52_spill] sm:$0xff] %v6900_v57 }
 0x407   :  { %v6027_v59 = vpop.f32.mrf.mxu1  ;;  %628 = vmax.xlane.f32.xlu0 %v627_v56  ;;  %v6906_v56 = vrot.slane %v6840_v4, %v6764_v21  ;;  %v6967_v21 = vld [vmem:[#allocation7 + $0x18] sm:$0xff] }
 0x409   :  { %v1025_v10 = vpop.f32.mrf.mxu1  ;;  %9263 = vst [vmem:[#allocation53_spill] sm:$0xff] %v6906_v56 }
 0x40b   :  { %v6028_v39 = vpop.f32.mrf.mxu1 }
 0x40c   :  { %v6912_v39 = vrot.slane %v6840_v4, %v6767_v24 }
 0x40e   :  { %9264 = vst [vmem:[#allocation54_spill] sm:$0xff] %v6912_v39 }
 0x41d   :  { %102 = vbcast.lane.b32.xlu0 %v6685_v40, 324 }
 0x421   :  { %110 = vbcast.lane.b32.xlu0 %v6685_v40, 340 }
 0x490   :  { %v629_v61 = vpop.xlane.xlu0 %628 }
 0x491   :  { %vm630_vm10 = vcmp.ge.f32.partialorder %v623_v42, %v629_v61 }
 0x492   :  { %v631_v7 = vsel %vm630_vm10, %v623_v42, 0.0  ;;  %vm5633_vm10 = vcmask 1045504  }
 0x493   :  { %634 = vperm.xlu1 %6189, %v631_v7  }
 0x497   :  { %6190 = vset.pattern.permute.xlu1 %v8952_v11 }
 0x498   :  { %648 = vperm.xlu1 %6190, %v631_v7  }
 0x49c   :  { %6191 = vset.pattern.permute.xlu1 %v8950_v9 }
 0x49d   :  { %662 = vperm.xlu1 %6191, %v631_v7  }
 0x4a1   :  { %6192 = vset.pattern.permute.xlu1 %v8948_v3 }
 0x4a2   :  { %676 = vperm.xlu1 %6192, %v631_v7  }
 0x4a6   :  { %6193 = vset.pattern.permute.xlu1 %v8946_v5 }
 0x50e   :  { %v635_v18 = vpop.permute.xlu1 %634 }
 0x50f   :  { %v641_v0 = vmul.f32 %v6895_v16, %v635_v18 }
 0x511   :  { %643 = vrot.lane.b32.xlu1 %v641_v0, %s6504_s2 }
 0x513   :  { %v649_v42 = vpop.permute.xlu1 %648 }
 0x514   :  { %v655_v49 = vmul.f32 %v6900_v57, %v649_v42 }
 0x516   :  { %657 = vrot.lane.b32.xlu1 %v655_v49, %s6504_s2 }
 0x518   :  { %v663_v59 = vpop.permute.xlu1 %662 }
 0x519   :  { %v669_v10 = vmul.f32 %v6906_v56, %v663_v59 }
 0x51b   :  { %671 = vrot.lane.b32.xlu1 %v669_v10, %s6504_s2 }
 0x51d   :  { %v677_v61 = vpop.permute.xlu1 %676 }
 0x51e   :  { %v683_v7 = vmul.f32 %v6912_v39, %v677_v61 }
 0x520   :  { %685 = vrot.lane.b32.xlu1 %v683_v7, %s6504_s2  ;;  %v6924_v7 = vpop.permute.xlu0 %102 }
 0x521   :  { %9266 = vst [vmem:[#allocation56_spill] sm:$0xff] %v6924_v7 }
 0x524   :  { %106 = vbcast.lane.b32.xlu1 %v6685_v40, 332 }
 0x528   :  { %114 = vbcast.lane.b32.xlu1 %v6685_v40, 348 }
 0x583   :  { %v644_v18 = vpop.permute.xlu1 %643 }
 0x584   :  { %v646_v42 = vadd.f32 %v644_v18, %v6685_v40 }
 0x588   :  { %v658_v0 = vpop.permute.xlu1 %657 }
 0x589   :  { %v660_v59 = vadd.f32 %v658_v0, %v646_v42  ;;  %v699_v0 = vmul.f32 %v6690_v41, %v6924_v7 }
 0x58d   :  { %v672_v49 = vpop.permute.xlu1 %671 }
 0x58e   :  { %v674_v5 = vadd.f32 %v672_v49, %v660_v59  ;;  %v6938_v59 = vld [vmem:[#allocation7 + $0x8] sm:$0xff] }
 0x592   :  { %v686_v3 = vpop.permute.xlu1 %685 }
 0x593   :  { %v688_v9 = vadd.f32 %v686_v3, %v674_v5  ;;  %v1062_v5 = vrot.slane %v6858_v20, %v6618_v6  ;;  %v6930_v3 = vpop.permute.xlu0 %110 }
 0x595   :  { %v710_v10 = vrot.slane %v688_v9, %v6627_v17  ;;  %v730_v11 = vrot.slane %v688_v9, %v6698_v45  ;;  %v6932_v9 = vld [vmem:[#allocation7] sm:$0xff]  ;;  %v1070_v49 = vrot.slane %v1062_v5, %v6618_v6  ;;  %v1063_v1 = vcombine.high %v1062_v5, %v1062_v5 }
 0x596   :  { %v6922_v61 = vpop.permute.xlu1 %106  ;;  %9268 = vst [vmem:[#allocation58_spill] sm:$0xff] %v6932_v9 }
 0x597   :  { %741 = vbcast.lane.b32.xlu0 %v730_v11, 308  ;;  %713 = vbcast.lane.b32.xlu1 %v710_v10, 292  ;;  %9265 = vst [vmem:[#allocation55_spill] sm:$0xff] %v6922_v61  ;;  %v6943_v51 = vrot.slane %v1070_v49, %v6627_v17  ;;  %v700_v41 = vmul.f32 %v6636_v22, %v6922_v61 }
 0x598   :  { %v705_v49 = vmul.f32 %v6710_v53, %v6930_v3 }
 0x599   :  { %9269 = vst [vmem:[#allocation59_spill] sm:$0xff] %v6943_v51 }
 0x59a   :  { %v6926_v18 = vpop.permute.xlu1 %114 }
 0x59b   :  { %725 = vbcast.lane.b32.xlu0 %v710_v10, 316  ;;  %717 = vbcast.lane.b32.xlu1 %v710_v10, 300  ;;  %9267 = vst [vmem:[#allocation57_spill] sm:$0xff] %v6926_v18 }
 0x59f   :  { %733 = vbcast.lane.b32.xlu1 %v730_v11, 292 }
 0x5a3   :  { %737 = vbcast.lane.b32.xlu1 %v730_v11, 300 }
 0x5a7   :  { %721 = vbcast.lane.b32.xlu1 %v710_v10, 308 }
 0x5ab   :  { %745 = vbcast.lane.b32.xlu1 %v730_v11, 316 }
 0x609   :  { %v714_v42 = vpop.permute.xlu1 %713  ;;  %v742_v2 = vpop.permute.xlu0 %741 }
 0x60a   :  { %v747_v11 = vmul.f32 %v714_v42, %v6932_v9  ;;  %v6951_v42 = vld [vmem:[#allocation7 + $0x20] sm:$0xff] }
 0x60b   :  { %9271 = vst [vmem:[#allocation61_spill] sm:$0xff] %v6951_v42 }
 0x60c   :  { %v6940_v10 = vadd.f32 %v747_v11, %v699_v0  ;;  %v1077_v0 = vrot.slane %v1063_v1, %v6618_v6  ;;  %v753_v11 = vmul.f32 %v742_v2, %v6946_v48  ;;  %v6969_v1 = vld [vmem:[#allocation7 + $0x28] sm:$0xff] }
 0x60d   :  { %v718_v38 = vpop.permute.xlu1 %717 }
 0x60e   :  { %v8970_v47 = vclamps-f32 %v6940_v10, 5.0  ;;  %v748_v30 = vmul.f32 %v718_v38, %v6938_v59  ;;  %v703_v38 = vmul.f32 %v6646_v26, %v6924_v7  ;;  %v6977_v53 = vrot.slane %v1077_v0, %v6627_v17 }
 0x60f   :  { %v6979_v26 = vadd.f32 %v753_v11, %v705_v49  ;;  %v702_v0 = vmul.f32 %v6667_v34, %v6926_v18 }
 0x610   :  { %v6953_v12 = vadd.f32 %v748_v30, %v700_v41  ;;  %v1088_v5 = vmul.f32 %v8970_v47, %v6943_v51  ;;  %v726_v47 = vpop.permute.xlu0 %725  ;;  %9272 = vst [vmem:[#allocation62_spill] sm:$0xff] %v6977_v53 }
 0x611   :  { %v734_v24 = vpop.permute.xlu1 %733  ;;  %v750_v48 = vmul.f32 %v726_v47, %v6967_v21  ;;  %v8977_v47 = vclamps-f32 %v6979_v26, 5.0 }
 0x612   :  { %v8974_v22 = vclamps-f32 %v6953_v12, 5.0  ;;  %v751_v30 = vmul.f32 %v734_v24, %v6951_v42  ;;  %v1096_v41 = vsel %vm278_vm2, %v1088_v5, 0.0  ;;  %v704_v24 = vmul.f32 %v6700_v46, %v6922_v61  ;;  %v6987_v42 = vld [vmem:[#allocation7 + $0x10] sm:$0xff] }
 0x613   :  { %1097 = vadd.xlane.f32.xlu0 %v1096_v41 }
 0x614   :  { %v6971_v9 = vadd.f32 %v751_v30, %v703_v38  ;;  %v1089_v2 = vmul.f32 %v8974_v22, %v6943_v51  ;;  %v6999_v22 = vadd.f32 %v750_v48, %v702_v0  ;;  %v1094_v0 = vmul.f32 %v8977_v47, %v6977_v53 }
 0x615   :  { %v738_v5 = vpop.permute.xlu1 %737 }
 0x616   :  { %v8975_v41 = vclamps-f32 %v6971_v9, 5.0  ;;  %v752_v38 = vmul.f32 %v738_v5, %v6969_v1  ;;  %v1099_v30 = vsel %vm278_vm2, %v1089_v2, 0.0  ;;  %v701_v5 = vmul.f32 %v6654_v29, %v6930_v3 }
 0x617   :  { %1100 = vadd.xlane.f32.xlu1 %v1099_v30  ;;  %v706_v29 = vmul.f32 %v6718_v58, %v6926_v18  ;;  %v1114_v18 = vsel %vm278_vm2, %v1094_v0, 0.0 }
 0x618   :  { %v6991_v49 = vadd.f32 %v752_v38, %v704_v24  ;;  %v1092_v46 = vmul.f32 %v8975_v41, %v6977_v53  ;;  %v7004_v24 = vld [vmem:[#allocation7 + $0x38] sm:$0xff] }
 0x619   :  { %v722_v11 = vpop.permute.xlu1 %721 }
 0x61a   :  { %v8976_v2 = vclamps-f32 %v6991_v49, 5.0  ;;  %v749_v30 = vmul.f32 %v722_v11, %v6987_v42  ;;  %v1108_v34 = vsel %vm278_vm2, %v1092_v46, 0.0 }
 0x61b   :  { %1109 = vadd.xlane.f32.xlu0 %v1108_v34 }
 0x61c   :  { %v7006_v38 = vadd.f32 %v749_v30, %v701_v5  ;;  %v1093_v41 = vmul.f32 %v8976_v2, %v6977_v53  ;;  %v1023_v2 = vadd.f32 %v6884_v50, %v6708_v52 }
 0x61d   :  { %v746_v48 = vpop.permute.xlu1 %745 }
 0x61e   :  { %v8981_v46 = vclamps-f32 %v7006_v38, 5.0  ;;  %v754_v34 = vmul.f32 %v746_v48, %v7004_v24  ;;  %v1111_v5 = vsel %vm278_vm2, %v1093_v41, 0.0  ;;  %v9273_v48 = vclamps-f32 %v6999_v22, 5.0 }
 0x61f   :  { %1112 = vadd.xlane.f32.xlu0 %v1111_v5  ;;  %v1032_v5 = vmul.f32 %v1023_v2, %v1023_v2  ;;  %v1028_v0 = vsel %vm322_vm3, %v1023_v2, 0.0 }
 0x620   :  { %v7020_v30 = vadd.f32 %v754_v34, %v706_v29  ;;  %v1090_v58 = vmul.f32 %v8981_v46, %v6943_v51  ;;  %v1091_v41 = vmul.f32 %v9273_v48, %v6943_v51 }
 0x622   :  { %v8980_v47 = vclamps-f32 %v7020_v30, 5.0  ;;  %v1102_v11 = vsel %vm278_vm2, %v1090_v58, 0.0  ;;  %v1105_v50 = vsel %vm278_vm2, %v1091_v41, 0.0  ;;  %v1033_v58 = vsel %vm322_vm3, %v1032_v5, 0.0 }
 0x623   :  { %1103 = vadd.xlane.f32.xlu1 %v1102_v11  ;;  %1115 = vadd.xlane.f32.xlu0 %v1114_v18 }
 0x624   :  { %v1095_v29 = vmul.f32 %v8980_v47, %v6977_v53 }
 0x626   :  { %v1117_v34 = vsel %vm278_vm2, %v1095_v29, 0.0 }
 0x627   :  { %1118 = vadd.xlane.f32.xlu0 %v1117_v34  ;;  %1106 = vadd.xlane.f32.xlu1 %v1105_v50 }
 0x62b   :  { %1034 = vadd.xlane.f32.xlu0 %v1033_v58  ;;  %1029 = vadd.xlane.f32.xlu1 %v1028_v0 }
 0x69c   :  { %v1098_v48 = vpop.xlane.xlu0 %1097 }
 0x69d   :  { %v1120_v18 = vmul.f32 %v1098_v48, %v6739_v31 }
 0x69f   :  { %1137 = vperm.xlu1 %6193, %v1120_v18  }
 0x6a0   :  { %v1101_v11 = vpop.xlane.xlu1 %1100 }
 0x6a1   :  { %v1121_v47 = vmul.f32 %v1101_v11, %v6736_v28 }
 0x6a3   :  { %1140 = vperm.xlu0 %6188, %v1121_v47  }
 0x6a4   :  { %v1110_v29 = vpop.xlane.xlu0 %1109 }
 0x6a5   :  { %v1124_v41 = vmul.f32 %v1110_v29, %v6739_v31 }
 0x6a7   :  { %1149 = vperm.xlu1 %6193, %v1124_v41  }
 0x6a8   :  { %v1113_v34 = vpop.xlane.xlu0 %1112 }
 0x6a9   :  { %v1125_v50 = vmul.f32 %v1113_v34, %v6736_v28 }
 0x6ab   :  { %1152 = vperm.xlu1 %6193, %v1125_v50  }
 0x6ac   :  { %v1104_v5 = vpop.xlane.xlu1 %1103  ;;  %v1116_v46 = vpop.xlane.xlu0 %1115 }
 0x6ad   :  { %v1122_v58 = vmul.f32 %v1104_v5, %v6744_v36  ;;  %v1126_v0 = vmul.f32 %v1116_v46, %v6744_v36 }
 0x6af   :  { %1143 = vperm.xlu0 %6188, %v1122_v58   ;;  %1155 = vperm.xlu1 %6193, %v1126_v0  }
 0x6b0   :  { %v1107_v48 = vpop.xlane.xlu1 %1106  ;;  %v1119_v18 = vpop.xlane.xlu0 %1118 }
 0x6b1   :  { %v1123_v47 = vmul.f32 %v1107_v48, %v6748_v43  ;;  %v1127_v11 = vmul.f32 %v1119_v18, %v6748_v43 }
 0x6b3   :  { %1146 = vperm.xlu0 %6188, %v1123_v47   ;;  %1158 = vperm.xlu1 %6193, %v1127_v11  }
 0x6b4   :  { %v1030_v29 = vpop.xlane.xlu1 %1029  ;;  %v1035_v34 = vpop.xlane.xlu0 %1034 }
 0x6b5   :  { %v1031_v41 = vmul.f32 0.0078125, %v1030_v29  ;;  %v1036_v53 = vmul.f32 0.0078125, %v1035_v34 }
 0x6b7   :  { %v1037_v50 = vmul.f32 %v1031_v41, %v1031_v41  ;;  %v1040_v0 = vsub.f32 %v1023_v2, %v1031_v41 }
 0x6b9   :  { %v1038_v51 = vsub.f32 %v1036_v53, %v1037_v50 }
 0x6bb   :  { %v1039_v31 = vmax.f32 %v1038_v51, 0.0 }
 0x6bd   :  { %v1041_v5 = vadd.f32 1e-05, %v1039_v31 }
 0x6bf   :  { %6233 = vrsqrt.f32 %v1041_v5 }
 0x6cc   :  { %v6234_v46 = vpop.eup %6233 }
 0x6cd   :  { %v1043_v36 = vmul.f32 %v6234_v46, %v1040_v0 }
 0x6cf   :  { %v1044_v48 = vmul.f32 %v1043_v36, %v6780_v35 }
 0x6d1   :  { %v1045_v47 = vadd.f32 %v1044_v48, %v6799_v54 }
 0x6d3   :  { %v1047_v34 = vrot.slane %v1045_v47, 6 }
 0x6d5   :  { %v1049_v47 = vadd.f32 %v1047_v34, %v6814_v14  ;;  %v1203_v34 = vrot.slane %v6850_v15, 6 }
 0x71a   :  { %v1138_v58 = vpop.permute.xlu1 %1137 }
 0x71b   :  { %v1163_v2 = vrot.slane %v1138_v58, %v6776_v33 }
 0x71e   :  { %v1141_v52 = vpop.permute.xlu0 %1140 }
 0x71f   :  { %v1167_v43 = vrot.slane %v1141_v52, %v6773_v32 }
 0x721   :  { %v1168_v5 = vsel %vm491_vm4, %v1167_v43, %v1163_v2  ;;  %v5836_v43 = vmul.f32 -1.442695, %v1049_v47 }
 0x722   :  { %v1150_v28 = vpop.permute.xlu1 %1149 }
 0x723   :  { %v1182_v41 = vrot.slane %v1150_v28, %v6776_v33  ;;  %6235 = vpow2.f32 %v5836_v43 }
 0x726   :  { %v1153_v18 = vpop.permute.xlu1 %1152 }
 0x727   :  { %v1186_v53 = vrot.slane %v1153_v18, %v6773_v32 }
 0x729   :  { %v1187_v46 = vsel %vm491_vm4, %v1186_v53, %v1182_v41 }
 0x72a   :  { %v1156_v11 = vpop.permute.xlu1 %1155  ;;  %v1144_v29 = vpop.permute.xlu0 %1143 }
 0x72b   :  { %v1191_v31 = vrot.slane %v1156_v11, %v6783_v37  ;;  %v1172_v51 = vrot.slane %v1144_v29, %v6783_v37 }
 0x72d   :  { %v1192_v48 = vsel %vm498_vm5, %v1191_v31, %v1187_v46  ;;  %v1173_v18 = vsel %vm498_vm5, %v1172_v51, %v1168_v5 }
 0x72e   :  { %v1159_v36 = vpop.permute.xlu1 %1158  ;;  %v1147_v50 = vpop.permute.xlu0 %1146 }
 0x72f   :  { %v1196_v52 = vrot.slane %v1159_v36, %v6787_v44  ;;  %v1177_v0 = vrot.slane %v1147_v50, %v6787_v44 }
 0x730   :  { %v6236_v53 = vpop.eup %6235 }
 0x731   :  { %v1197_v58 = vsel %vm505_vm6, %v1196_v52, %v1192_v48  ;;  %v1178_v28 = vsel %vm505_vm6, %v1177_v0, %v1173_v18  ;;  %v1053_v2 = vadd.f32 1.0, %v6236_v53 }
 0x732   :  { %v1199_v11 = vsel %vm1198_vm11, %v1197_v58, %v1178_v28 }
 0x733   :  { %v1201_v29 = vadd.f32 %v1199_v11, %v1049_v47  ;;  %6237 = vrcp.f32 %v1053_v2 }
 0x735   :  { %1207 = vrot.lane.b32.xlu0 %v1201_v29, %s6499_s7  ;;  %v9277_v29 = vmov 0.0  }
 0x740   :  { %v7067_v41 = vpop.eup %6237 }
 0x741   :  { %9274 = vst [vmem:[#allocation63_spill] sm:$0xff] %v7067_v41  ;;  %v1205_v36 = vmul.f32 %v7067_v41, %v1203_v34 }
 0x7a7   :  { %v1208_v31 = vpop.permute.xlu0 %1207 }
 0x7a8   :  { %v1210_v51 = vmul.f32 %v7067_v41, %v1208_v31 }
 0x7aa   :  { %1212 = vrot.lane.b32.xlu1 %v1210_v51, %s6500_s20 }
 0x7ae   :  { %690 = vrot.lane.b32.xlu1 %v6858_v20, %s6505_s23 }
 0x81c   :  { %v1213_v50 = vpop.permute.xlu1 %1212 }
 0x81d   :  { %v7075_v5 = vadd.f32 %v1213_v50, %v1205_v36  ;;  %v9278_v36 = vmov 1   ;;  %v9279_v50 = vmov 2  }
 0x81f   :  { %9275 = vst [vmem:[#allocation64_spill] sm:$0xff] %v7075_v5  ;;  %v5837_v46 = vmul.f32 -1.442695, %v7075_v5 }
 0x821   :  { %6239 = vpow2.f32 %v5837_v46  ;;  %v691_v46 = vpop.permute.xlu1 %690 }
 0x82e   :  { %v6240_v52 = vpop.eup %6239 }
 0x82f   :  { %v1219_v0 = vadd.f32 1.0, %v6240_v52  ;;  %v9280_v52 = vmov 3  }
 0x831   :  { %6241 = vrcp.f32 %v1219_v0  ;;  %v693_v0 = vmul.f32 %v6826_v55, %v691_v46 }
 0x83e   :  { %v6242_v48 = vpop.eup %6241 }
 0x83f   :  { %v1222_v18 = vmul.f32 %v6242_v48, %v7075_v5  ;;  %v9281_v48 = vmov 0  }
 0x841   :  { %v1223_v58 = vsub.f32 %v7075_v5, %v1222_v18 }
 0x843   :  { %v7082_v28 = vsel %vm253_vm8, %v1222_v18, %v1223_v58 }
 0x844   :  { %9276 = vst [vmem:[#allocation65_spill] sm:$0xff] %v7082_v28  ;;  %v1226_v15 = vrot.slane %v7082_v28, 2  ;;  %v1642_v47 = vpack.c.bf16 %v7082_v28, %v7082_v28 }
 0x846   :  { %6038 = vmatmul.mubr.msk.f32.vlgmr.msra.gmra.mxu0 %vm278_vm2, %v1226_v15  ;;  %v1644_v11 = vrot.slane %v1642_v47, 1 }
 0x847   :  { %6049 = vmatpush3.msra.mxu0 %v6830_v60  ;;  %6056 = vmatprep.mubr.msk.f32.mxu0 %vm6496_vm0, %v9277_v29 }
 0x848   :  { %6045 = vmatmul.mubr.msk.bf16.vlgmr.msra.gmra.mxu1 %vm278_vm2, %v1644_v11  ;;  %6050 = vmatprep.subr.mxu0 %v9277_v29 }
 0x849   :  { %6051 = vmatpush3.msra.mxu0 %v6834_v62  ;;  %6060 = vmatpush3.bf16.msra.mxu1 %v6620_v13 }
 0x84a   :  { %6052 = vmatprep.subr.mxu0 %v9277_v29  ;;  %6061 = vmatprep.subr.bf16.mxu1 %v9277_v29 }
 0x84b   :  { %6053 = vmatpush3.msra.mxu0 %v6838_v63  ;;  %6063 = vmatprep.mubr.msk.bf16.mxu1 %vm6496_vm0, %v9277_v29 }
 0x84c   :  { %6054 = vmatprep.subr.mxu0 %v9277_v29 }
 0x84d   :  { %6055 = vmatpush3.msra.mxu0 %v6840_v4  ;;  %6062 = vmatpush3.bf16.msra.mxu1 %v6631_v19 }
 0x84e   :  { %6067 = vmatprep.subr.mxu0 %v9277_v29  ;;  %6078 = vmatprep.subr.bf16.mxu1 %v9277_v29 }
 0x906   :  { %v1295_v60 = vpop.f32.mrf.mxu0 }
 0x907   :  { %v1296_v62 = vadd.f32 %v1295_v60, %v6881_v23  ;;  %v838_v60 = vrot.slane %v6858_v20, %v6627_v17 }
 0x908   :  { %v6039_v43 = vpop.f32.mrf.mxu0  ;;  %v7106_v53 = vpop.f32.mrf.mxu1 }
 0x909   :  { %v1299_v63 = vsel %vm626_vm9, %v1296_v62, -inf }
 0x90a   :  { %v6046_v2 = vpop.f32.mrf.mxu1  ;;  %1300 = vmax.xlane.f32.xlu0 %v1299_v63  ;;  %v7126_v63 = vld [vmem:[%s8935_s4] sm:$0x3]  ;;  %s6506_s4 = smov 120  }
 0x90c   :  { %v1685_v31 = vpop.f32.mrf.mxu1 }
 0x90d   :  { %v689_v31 = vmul.f32 %v6826_v55, %v7126_v63 }
 0x90e   :  { %v6047_v51 = vpop.f32.mrf.mxu1 }
 0x993   :  { %v1301_v34 = vpop.xlane.xlu0 %1300 }
 0x994   :  { %vm1302_vm12 = vcmp.ge.f32.partialorder %v1296_v62, %v1301_v34 }
 0x995   :  { %v1303_v4 = vsel %vm1302_vm12, %v1296_v62, 0.0 }
 0x996   :  { %1306 = vperm.xlu1 %6193, %v1303_v4  }
 0x99a   :  { %6194 = vset.pattern.permute.xlu1 %v9278_v36 }
 0x99b   :  { %1316 = vperm.xlu1 %6194, %v1303_v4  }
 0x99f   :  { %6195 = vset.pattern.permute.xlu1 %v9279_v50 }
 0x9a0   :  { %1326 = vperm.xlu1 %6195, %v1303_v4  }
 0x9a4   :  { %6196 = vset.pattern.permute.xlu1 %v9280_v52 }
 0x9a5   :  { %1336 = vperm.xlu1 %6196, %v1303_v4   ;;  %v857_v4 = vrot.slane %v6858_v20, %v6698_v45 }
 0x9a9   :  { %695 = vrot.lane.b32.xlu1 %v693_v0, %s6500_s20 }
 0x9aa   :  { %6197 = vset.pattern.permute.xlu1 %v9281_v48 }
 0xa11   :  { %v1307_v18 = vpop.permute.xlu1 %1306 }
 0xa12   :  { %v1309_v58 = vmul.f32 %v1307_v18, %v6895_v16  ;;  %v782_v18 = vrot.slane %v6826_v55, %v6627_v17 }
 0xa14   :  { %1311 = vrot.lane.b32.xlu1 %v1309_v58, %s6504_s2  ;;  %v802_v58 = vrot.slane %v6826_v55, %v6698_v45 }
 0xa16   :  { %v1317_v15 = vpop.permute.xlu1 %1316 }
 0xa17   :  { %v1319_v47 = vmul.f32 %v1317_v15, %v6900_v57 }
 0xa19   :  { %1321 = vrot.lane.b32.xlu1 %v1319_v47, %s6504_s2 }
 0xa1b   :  { %v1327_v11 = vpop.permute.xlu1 %1326 }
 0xa1c   :  { %v1329_v62 = vmul.f32 %v1327_v11, %v6906_v56  ;;  %v1722_v56 = vrot.slane %v7082_v28, %v6618_v6 }
 0xa1d   :  { %840 = vbcast.lane.b32.xlu1 %v838_v60, 256 }
 0xa1e   :  { %1331 = vrot.lane.b32.xlu0 %v1329_v62, %s6504_s2  ;;  %v1723_v41 = vcombine.high %v1722_v56, %v1722_v56  ;;  %v1730_v50 = vrot.slane %v1722_v56, %v6618_v6 }
 0xa20   :  { %v1337_v43 = vpop.permute.xlu1 %1336  ;;  %v1738_v19 = vcombine.high %v1730_v50, %v1730_v50  ;;  %v9284_v50 = vclamps-f32 %v6953_v12, 5.0 }
 0xa21   :  { %844 = vbcast.lane.b32.xlu1 %v838_v60, 264  ;;  %v1339_v2 = vmul.f32 %v1337_v43, %v6912_v39 }
 0xa22   :  { %v7188_v44 = vrot.slane %v1738_v19, %v6627_v17 }
 0xa24   :  { %v696_v51 = vpop.permute.xlu1 %695  ;;  %9287 = vst [vmem:[#allocation67_spill] sm:$0xff] %v7188_v44 }
 0xa25   :  { %v7131_v34 = vadd.f32 %v696_v51, %v689_v31  ;;  %1341 = vrot.lane.b32.xlu1 %v1339_v2, %s6504_s2 }
 0xa27   :  { %9282 = vst [vmem:[#allocation66_spill] sm:$0xff] %v7131_v34  ;;  %v917_v46 = vrot.slane %v7131_v34, %v6627_v17  ;;  %v936_v0 = vrot.slane %v7131_v34, %v6698_v45 }
 0xa29   :  { %859 = vbcast.lane.b32.xlu1 %v857_v4, 256  ;;  %923 = vbcast.lane.b32.xlu0 %v917_v46, 264 }
 0xa2d   :  { %863 = vbcast.lane.b32.xlu1 %v857_v4, 264  ;;  %942 = vbcast.lane.b32.xlu0 %v936_v0, 264 }
 0xa31   :  { %867 = vbcast.lane.b32.xlu0 %v857_v4, 272  ;;  %919 = vbcast.lane.b32.xlu1 %v917_v46, 256 }
 0xa35   :  { %946 = vbcast.lane.b32.xlu0 %v936_v0, 272  ;;  %938 = vbcast.lane.b32.xlu1 %v936_v0, 256 }
 0xa39   :  { %789 = vbcast.lane.b32.xlu0 %v782_v18, 328  ;;  %848 = vbcast.lane.b32.xlu1 %v838_v60, 272 }
 0xa3d   :  { %809 = vbcast.lane.b32.xlu0 %v802_v58, 328  ;;  %927 = vbcast.lane.b32.xlu1 %v917_v46, 272 }
 0xa41   :  { %871 = vbcast.lane.b32.xlu0 %v857_v4, 280  ;;  %785 = vbcast.lane.b32.xlu1 %v782_v18, 320 }
 0xa45   :  { %950 = vbcast.lane.b32.xlu0 %v936_v0, 280  ;;  %805 = vbcast.lane.b32.xlu1 %v802_v58, 320 }
 0xa49   :  { %813 = vbcast.lane.b32.xlu0 %v802_v58, 336  ;;  %852 = vbcast.lane.b32.xlu1 %v838_v60, 280 }
 0xa4d   :  { %817 = vbcast.lane.b32.xlu0 %v802_v58, 344  ;;  %931 = vbcast.lane.b32.xlu1 %v917_v46, 280 }
 0xa51   :  { %793 = vbcast.lane.b32.xlu1 %v782_v18, 336 }
 0xa55   :  { %797 = vbcast.lane.b32.xlu1 %v782_v18, 344 }
 0xa86   :  { %v1312_v15 = vpop.permute.xlu1 %1311 }
 0xa87   :  { %v1314_v62 = vadd.f32 %v1312_v15, %v6685_v40 }
 0xa8b   :  { %v1322_v47 = vpop.permute.xlu1 %1321 }
 0xa8c   :  { %v1324_v55 = vadd.f32 %v1322_v47, %v1314_v62 }
 0xa8f   :  { %v841_v11 = vpop.permute.xlu1 %840 }
 0xa90   :  { %v1332_v43 = vpop.permute.xlu0 %1331 }
 0xa91   :  { %v1334_v31 = vadd.f32 %v1332_v43, %v1324_v55 }
 0xa93   :  { %v845_v2 = vpop.permute.xlu1 %844 }
 0xa97   :  { %v1342_v51 = vpop.permute.xlu1 %1341 }
 0xa98   :  { %v1344_v4 = vadd.f32 %v1342_v51, %v1334_v31 }
 0xa9a   :  { %v1369_v0 = vrot.slane %v1344_v4, %v6627_v17  ;;  %v1389_v60 = vrot.slane %v1344_v4, %v6698_v45  ;;  %v880_v45 = vrot.slane %v7126_v63, %v6618_v6  ;;  %v7160_v63 = vrot.slane %v1723_v41, %v6618_v6 }
 0xa9b   :  { %v860_v46 = vpop.permute.xlu1 %859  ;;  %v924_v58 = vpop.permute.xlu0 %923 }
 0xa9c   :  { %1376 = vbcast.lane.b32.xlu0 %v1369_v0, 300  ;;  %1372 = vbcast.lane.b32.xlu1 %v1369_v0, 292  ;;  %v881_v34 = vcombine.high %v880_v45, %v880_v45  ;;  %v888_v52 = vrot.slane %v880_v45, %v6618_v6  ;;  %v953_v13 = vmul.f32 %v924_v58, %v6643_v25 }
 0xa9d   :  { %v1359_v58 = vmul.f32 %v9284_v50, %v6922_v61 }
 0xa9e   :  { %v895_v57 = vrot.slane %v881_v34, %v6618_v6  ;;  %v7163_v23 = vrot.slane %v888_v52, %v6627_v17 }
 0xa9f   :  { %v864_v18 = vpop.permute.xlu1 %863  ;;  %v943_v47 = vpop.permute.xlu0 %942 }
 0xaa0   :  { %1396 = vbcast.lane.b32.xlu0 %v1389_v60, 300  ;;  %1392 = vbcast.lane.b32.xlu1 %v1389_v60, 292  ;;  %v903_v36 = vrot.slane %v895_v57, %v6627_v17  ;;  %v957_v34 = vmul.f32 %v943_v47, %v6649_v27  ;;  %v9283_v57 = vclamps-f32 %v6940_v10, 5.0  ;;  %v907_v6 = vmul.f32 %v7163_v23, %v845_v2 }
 0xaa1   :  { %v906_v14 = vmul.f32 %v7163_v23, %v841_v11  ;;  %v9286_v2 = vclamps-f32 %v6991_v49, 5.0 }
 0xaa2   :  { %v911_v29 = vmul.f32 %v903_v36, %v864_v18  ;;  %v1358_v41 = vmul.f32 %v9283_v57, %v6924_v7  ;;  %v9285_v18 = vclamps-f32 %v6971_v9, 5.0  ;;  %v961_v12 = vsub.f32 %v907_v6, %v953_v13 }
 0xaa3   :  { %v920_v15 = vpop.permute.xlu1 %919  ;;  %v868_v43 = vpop.permute.xlu0 %867  ;;  %v1363_v57 = vmul.f32 %v9286_v2, %v6922_v61  ;;  %v910_v50 = vmul.f32 %v903_v36, %v860_v46 }
 0xaa4   :  { %1400 = vbcast.lane.b32.xlu0 %v1389_v60, 308  ;;  %1380 = vbcast.lane.b32.xlu1 %v1369_v0, 308  ;;  %v952_v45 = vmul.f32 %v920_v15, %v6643_v25  ;;  %v7178_v47 = vmul.f32 %v9285_v18, %v6924_v7  ;;  %v965_v37 = vsub.f32 %v911_v29, %v957_v34  ;;  %v9288_v7 = vld [vmem:[#allocation58_spill] sm:$0xff] }
 0xaa5   :  { %v912_v11 = vmul.f32 %v903_v36, %v868_v43  ;;  %v9289_v43 = vld [vmem:[#allocation61_spill] sm:$0xff] }
 0xaa6   :  { %v960_v9 = vsub.f32 %v906_v14, %v952_v45 }
 0xaa7   :  { %v939_v62 = vpop.permute.xlu1 %938  ;;  %v947_v31 = vpop.permute.xlu0 %946 }
 0xaa8   :  { %1404 = vbcast.lane.b32.xlu0 %v1389_v60, 316  ;;  %1384 = vbcast.lane.b32.xlu1 %v1369_v0, 316  ;;  %v956_v10 = vmul.f32 %v939_v62, %v6649_v27  ;;  %v958_v62 = vmul.f32 %v947_v31, %v6649_v27 }
 0xaaa   :  { %v964_v61 = vsub.f32 %v910_v50, %v956_v10 }
 0xaab   :  { %v849_v55 = vpop.permute.xlu1 %848  ;;  %v790_v20 = vpop.permute.xlu0 %789 }
 0xaac   :  { %v820_v28 = vsub.f32 1.0, %v790_v20  ;;  %v969_v6 = vmul.f32 %v961_v12, %v790_v20 }
 0xaae   :  { %v828_v18 = vmul.f32 %v820_v28, %v6938_v59  ;;  %v908_v59 = vmul.f32 %v7163_v23, %v849_v55 }
 0xaaf   :  { %v928_v51 = vpop.permute.xlu1 %927  ;;  %v810_v39 = vpop.permute.xlu0 %809 }
 0xab0   :  { %v824_v52 = vsub.f32 1.0, %v810_v39  ;;  %v954_v49 = vmul.f32 %v928_v51, %v6643_v25  ;;  %v973_v28 = vmul.f32 %v965_v37, %v810_v39  ;;  %v7199_v31 = vadd.f32 %v969_v6, %v828_v18 }
 0xab1   :  { %v966_v51 = vsub.f32 %v912_v11, %v958_v62 }
 0xab2   :  { %v832_v32 = vmul.f32 %v824_v52, %v6969_v1  ;;  %v962_v45 = vsub.f32 %v908_v59, %v954_v49  ;;  %v9294_v59 = vclamps-f32 %v7006_v38, 5.0 }
 0xab3   :  { %v786_v40 = vpop.permute.xlu1 %785  ;;  %v872_v60 = vpop.permute.xlu0 %871 }
 0xab4   :  { %v819_v56 = vsub.f32 1.0, %v786_v40  ;;  %v968_v13 = vmul.f32 %v960_v9, %v786_v40  ;;  %v913_v46 = vmul.f32 %v903_v36, %v872_v60  ;;  %v7203_v40 = vadd.f32 %v973_v28, %v832_v32  ;;  %v9290_v36 = vld [vmem:[#allocation60_spill] sm:$0xff] }
 0xab5   :  { %v1360_v28 = vmul.f32 %v9294_v59, %v6930_v3 }
 0xab6   :  { %v827_v33 = vmul.f32 %v819_v56, %v9288_v7 }
 0xab7   :  { %v7147_v4 = vpop.permute.xlu1 %805  ;;  %v951_v16 = vpop.permute.xlu0 %950 }
 0xab8   :  { %v823_v15 = vsub.f32 1.0, %v7147_v4  ;;  %v959_v14 = vmul.f32 %v951_v16, %v6649_v27  ;;  %v7201_v1 = vadd.f32 %v968_v13, %v827_v33  ;;  %v972_v16 = vmul.f32 %v964_v61, %v7147_v4 }
 0xaba   :  { %v831_v34 = vmul.f32 %v823_v15, %v9289_v43  ;;  %v967_v27 = vsub.f32 %v913_v46, %v959_v14 }
 0xabb   :  { %v7151_v0 = vpop.permute.xlu1 %852  ;;  %v814_v8 = vpop.permute.xlu0 %813 }
 0xabc   :  { %v825_v7 = vsub.f32 1.0, %v814_v8  ;;  %v974_v10 = vmul.f32 %v966_v51, %v814_v8  ;;  %v7215_v32 = vadd.f32 %v972_v16, %v831_v34  ;;  %v909_v61 = vmul.f32 %v7163_v23, %v7151_v0 }
 0xabe   :  { %v833_v55 = vmul.f32 %v825_v7, %v9290_v36  ;;  %v9297_v36 = vclamps-f32 %v7020_v30, 5.0 }
 0xabf   :  { %v932_v48 = vpop.permute.xlu1 %931  ;;  %v818_v2 = vpop.permute.xlu0 %817 }
 0xac0   :  { %v826_v56 = vsub.f32 1.0, %v818_v2  ;;  %v955_v60 = vmul.f32 %v932_v48, %v6643_v25  ;;  %v975_v9 = vmul.f32 %v967_v27, %v818_v2  ;;  %v7225_v49 = vadd.f32 %v974_v10, %v833_v55 }
 0xac1   :  { %v9296_v27 = vclamps-f32 %v6999_v22, 5.0 }
 0xac2   :  { %v834_v4 = vmul.f32 %v826_v56, %v7004_v24 }
 0xac3   :  { %v794_v5 = vpop.permute.xlu1 %793 }
 0xac4   :  { %v821_v29 = vsub.f32 1.0, %v794_v5  ;;  %v970_v18 = vmul.f32 %v962_v45, %v794_v5 }
 0xac6   :  { %v829_v33 = vmul.f32 %v821_v29, %v6987_v42 }
 0xac7   :  { %v798_v19 = vpop.permute.xlu1 %797 }
 0xac8   :  { %v822_v15 = vsub.f32 1.0, %v798_v19  ;;  %v7227_v23 = vadd.f32 %v970_v18, %v829_v33 }
 0xb0e   :  { %v1377_v52 = vpop.permute.xlu0 %1376  ;;  %v1373_v20 = vpop.permute.xlu1 %1372 }
 0xb0f   :  { %v1407_v37 = vmul.f32 %v1377_v52, %v7199_v31  ;;  %v1406_v39 = vmul.f32 %v1373_v20, %v7201_v1  ;;  %v9295_v20 = vld [vmem:[#allocation57_spill] sm:$0xff] }
 0xb10   :  { %v1361_v16 = vmul.f32 %v9296_v27, %v9295_v20  ;;  %v1365_v55 = vmul.f32 %v9297_v36, %v9295_v20 }
 0xb11   :  { %v7211_v12 = vadd.f32 %v1407_v37, %v1359_v58  ;;  %v7213_v50 = vadd.f32 %v1406_v39, %v1358_v41  ;;  %v963_v41 = vsub.f32 %v909_v61, %v955_v60  ;;  %v830_v58 = vmul.f32 %v822_v15, %v6967_v21 }
 0xb12   :  { %v1397_v11 = vpop.permute.xlu0 %1396  ;;  %v1393_v62 = vpop.permute.xlu1 %1392  ;;  %v9291_v21 = vcombine.high %v7160_v63, %v7160_v63  ;;  %v7255_v63 = vadd.f32 %v975_v9, %v834_v4 }
 0xb13   :  { %v9047_v25 = vclamps-f32 %v7211_v12, 5.0  ;;  %v9048_v42 = vclamps-f32 %v7213_v50, 5.0  ;;  %v1411_v8 = vmul.f32 %v1397_v11, %v7203_v40  ;;  %v1410_v48 = vmul.f32 %v1393_v62, %v7215_v32 }
 0xb14   :  { %v7244_v6 = vrot.slane %v9291_v21, %v6627_v17  ;;  %v971_v13 = vmul.f32 %v963_v41, %v798_v19  ;;  %v9298_v41 = vld [vmem:[#allocation30_spill] sm:$0xff] }
 0xb15   :  { %v7229_v24 = vadd.f32 %v1411_v8, %v1363_v57  ;;  %v7232_v5 = vadd.f32 %v1410_v48, %v7178_v47  ;;  %v1751_v0 = vmul.f32 %v9047_v25, %v7188_v44  ;;  %v1750_v2 = vmul.f32 %v9048_v42, %v7188_v44 }
 0xb16   :  { %9292 = vst [vmem:[#allocation58_spill] sm:$0xff] %v7244_v6  ;;  %v9293_v57 = vclamps-f32 %v6979_v26, 5.0  ;;  %v1401_v14 = vpop.permute.xlu0 %1400  ;;  %v1381_v7 = vpop.permute.xlu1 %1380  ;;  %v7260_v51 = vadd.f32 %v971_v13, %v830_v58  ;;  %v1683_v58 = vadd.f32 %v7106_v53, %v9298_v41 }
 0xb17   :  { %v9046_v29 = vclamps-f32 %v7232_v5, 5.0  ;;  %v1412_v46 = vmul.f32 %v1401_v14, %v7225_v49  ;;  %v1408_v43 = vmul.f32 %v1381_v7, %v7227_v23  ;;  %v9045_v19 = vclamps-f32 %v7229_v24, 5.0 }
 0xb18   :  { %v1364_v47 = vmul.f32 %v9293_v57, %v6930_v3  ;;  %v1761_v34 = vsel %vm278_vm2, %v1751_v0, 0.0  ;;  %v1758_v26 = vsel %vm278_vm2, %v1750_v2, 0.0  ;;  %v1688_v13 = vsel %vm322_vm3, %v1683_v58, 0.0 }
 0xb19   :  { %v7264_v38 = vadd.f32 %v1408_v43, %v1360_v28  ;;  %1762 = vadd.xlane.f32.xlu0 %v1761_v34  ;;  %1759 = vadd.xlane.f32.xlu1 %v1758_v26  ;;  %v1754_v56 = vmul.f32 %v9046_v29, %v7244_v6  ;;  %v1755_v22 = vmul.f32 %v9045_v19, %v7244_v6  ;;  %v9299_v28 = vld [vmem:[#allocation31_spill] sm:$0xff]  ;;  %v9330_v29 = vld [vmem:[#allocation38_spill] sm:$0xff] }
 0xb1a   :  { %v7262_v45 = vadd.f32 %v1412_v46, %v1364_v47  ;;  %v1405_v52 = vpop.permute.xlu0 %1404  ;;  %v1385_v37 = vpop.permute.xlu1 %1384  ;;  %v1692_v47 = vmul.f32 %v1683_v58, %v1683_v58  ;;  %v9300_v46 = vld [vmem:[#allocation32_spill] sm:$0xff] }
 0xb1b   :  { %v9044_v39 = vclamps-f32 %v7264_v38, 5.0  ;;  %v1413_v60 = vmul.f32 %v1405_v52, %v7255_v63  ;;  %v1409_v33 = vmul.f32 %v1385_v37, %v7260_v51  ;;  %v1770_v10 = vsel %vm278_vm2, %v1754_v56, 0.0  ;;  %v9301_v37 = vld [vmem:[#allocation33_spill] sm:$0xff] }
 0xb1c   :  { %v9043_v15 = vclamps-f32 %v7262_v45, 5.0  ;;  %v1773_v62 = vsel %vm278_vm2, %v1755_v22, 0.0  ;;  %v1693_v14 = vsel %vm322_vm3, %v1692_v47, 0.0 }
 0xb1d   :  { %v7283_v61 = vadd.f32 %v1413_v60, %v1365_v55  ;;  %v7285_v4 = vadd.f32 %v1409_v33, %v1361_v16  ;;  %1771 = vadd.xlane.f32.xlu0 %v1770_v10  ;;  %v1752_v30 = vmul.f32 %v9044_v39, %v7188_v44  ;;  %v9302_v10 = vld [vmem:[#allocation34_spill] sm:$0xff] }
 0xb1e   :  { %v1756_v8 = vmul.f32 %v9043_v15, %v7244_v6  ;;  %v9326_v15 = vld [vmem:[#allocation63_spill] sm:$0xff] }
 0xb1f   :  { %v9042_v9 = vclamps-f32 %v7285_v4, 5.0  ;;  %v1764_v18 = vsel %vm278_vm2, %v1752_v30, 0.0  ;;  %v9041_v11 = vclamps-f32 %v7283_v61, 5.0 }
 0xb20   :  { %1765 = vadd.xlane.f32.xlu1 %v1764_v18  ;;  %v1776_v2 = vsel %vm278_vm2, %v1756_v8, 0.0 }
 0xb21   :  { %1774 = vadd.xlane.f32.xlu0 %v1773_v62  ;;  %v1753_v48 = vmul.f32 %v9042_v9, %v7188_v44  ;;  %v1757_v21 = vmul.f32 %v9041_v11, %v7244_v6  ;;  %v9323_v11 = vmov 1   ;;  %v9324_v9 = vmov 2   ;;  %v9333_v44 = vld [vmem:[#allocation66_spill] sm:$0xff] }
 0xb23   :  { %v1767_v0 = vsel %vm278_vm2, %v1753_v48, 0.0  ;;  %v1779_v57 = vsel %vm278_vm2, %v1757_v21, 0.0 }
 0xb24   :  { %1768 = vadd.xlane.f32.xlu1 %v1767_v0 }
 0xb25   :  { %1777 = vadd.xlane.f32.xlu0 %v1776_v2 }
 0xb28   :  { %1689 = vadd.xlane.f32.xlu1 %v1688_v13 }
 0xb29   :  { %1780 = vadd.xlane.f32.xlu0 %v1779_v57 }
 0xb2d   :  { %1694 = vadd.xlane.f32.xlu0 %v1693_v14 }
 0xba2   :  { %v1763_v53 = vpop.xlane.xlu0 %1762  ;;  %v1760_v59 = vpop.xlane.xlu1 %1759 }
 0xba3   :  { %v1783_v7 = vmul.f32 %v1763_v53, %v9299_v28  ;;  %v1782_v43 = vmul.f32 %v1760_v59, %v9300_v46 }
 0xba5   :  { %1802 = vperm.xlu0 %6188, %v1783_v7   ;;  %1799 = vperm.xlu1 %6197, %v1782_v43  }
 0xba6   :  { %v1772_v34 = vpop.xlane.xlu0 %1771 }
 0xba7   :  { %v1786_v26 = vmul.f32 %v1772_v34, %v9300_v46 }
 0xba9   :  { %1811 = vperm.xlu1 %6197, %v1786_v26   ;;  %v1766_v52 = vpop.xlane.xlu1 %1765 }
 0xbaa   :  { %v1775_v56 = vpop.xlane.xlu0 %1774  ;;  %v1784_v36 = vmul.f32 %v1766_v52, %v9301_v37 }
 0xbab   :  { %v1787_v27 = vmul.f32 %v1775_v56, %v9299_v28 }
 0xbad   :  { %1814 = vperm.xlu1 %6197, %v1787_v27   ;;  %v1769_v60 = vpop.xlane.xlu1 %1768  ;;  %v9303_v27 = vld [vmem:[#allocation40_spill] sm:$0xff] }
 0xbae   :  { %v1778_v16 = vpop.xlane.xlu0 %1777  ;;  %v1785_v22 = vmul.f32 %v1769_v60, %v9302_v10 }
 0xbaf   :  { %v1788_v55 = vmul.f32 %v1778_v16, %v9301_v37 }
 0xbb1   :  { %1817 = vperm.xlu0 %6188, %v1788_v55   ;;  %1805 = vperm.xlu1 %6197, %v1784_v36   ;;  %v1690_v18 = vpop.xlane.xlu1 %1689  ;;  %v9304_v36 = vld [vmem:[#allocation41_spill] sm:$0xff] }
 0xbb2   :  { %v1781_v33 = vpop.xlane.xlu0 %1780  ;;  %v1691_v8 = vmul.f32 0.0078125, %v1690_v18 }
 0xbb3   :  { %v1789_v30 = vmul.f32 %v1781_v33, %v9302_v10  ;;  %v9305_v33 = vld [vmem:[#allocation43_spill] sm:$0xff] }
 0xbb4   :  { %v1697_v0 = vmul.f32 %v1691_v8, %v1691_v8  ;;  %v1700_v14 = vsub.f32 %v1683_v58, %v1691_v8 }
 0xbb5   :  { %1820 = vperm.xlu0 %6188, %v1789_v30   ;;  %1808 = vperm.xlu1 %6197, %v1785_v22  }
 0xbb6   :  { %v1695_v62 = vpop.xlane.xlu0 %1694 }
 0xbb7   :  { %v1696_v48 = vmul.f32 0.0078125, %v1695_v62 }
 0xbb9   :  { %v1698_v2 = vsub.f32 %v1696_v48, %v1697_v0 }
 0xbbb   :  { %v1699_v21 = vmax.f32 %v1698_v2, 0.0  ;;  %v9306_v2 = vld [vmem:[#allocation44_spill] sm:$0xff] }
 0xbbd   :  { %v1701_v13 = vadd.f32 1e-05, %v1699_v21 }
 0xbbf   :  { %6243 = vrsqrt.f32 %v1701_v13 }
 0xbcc   :  { %v6244_v57 = vpop.eup %6243 }
 0xbcd   :  { %v1703_v53 = vmul.f32 %v6244_v57, %v1700_v14 }
 0xbcf   :  { %v1704_v7 = vmul.f32 %v1703_v53, %v6780_v35 }
 0xbd1   :  { %v1705_v26 = vadd.f32 %v1704_v7, %v6799_v54 }
 0xbd3   :  { %v1707_v18 = vrot.slane %v1705_v26, 4 }
 0xc20   :  { %v1800_v47 = vpop.permute.xlu1 %1799  ;;  %v1803_v43 = vpop.permute.xlu0 %1802 }
 0xc21   :  { %v1829_v16 = vrot.slane %v1803_v43, %v9303_v27  ;;  %v1825_v55 = vrot.slane %v1800_v47, %v9304_v36 }
 0xc23   :  { %v1830_v48 = vsel %vm491_vm4, %v1829_v16, %v1825_v55 }
 0xc24   :  { %v1812_v59 = vpop.permute.xlu1 %1811 }
 0xc25   :  { %v1844_v30 = vrot.slane %v1812_v59, %v9304_v36  ;;  %v9307_v59 = vld [vmem:[#allocation48_spill] sm:$0xff]  ;;  %v9341_v36 = vclamps-f32 %v7213_v50, 5.0 }
 0xc26   :  { %v1709_v7 = vadd.f32 %v1707_v18, %v9307_v59 }
 0xc28   :  { %v1815_v34 = vpop.permute.xlu1 %1814  ;;  %v5848_v26 = vmul.f32 -1.442695, %v1709_v7 }
 0xc29   :  { %v1848_v60 = vrot.slane %v1815_v34, %v9303_v27 }
 0xc2a   :  { %6245 = vpow2.f32 %v5848_v26  ;;  %v7358_v26 = vld [vmem:[#allocation8 + $0x48] sm:$0xff] }
 0xc2b   :  { %v1849_v0 = vsel %vm491_vm4, %v1848_v60, %v1844_v30 }
 0xc2c   :  { %v1818_v56 = vpop.permute.xlu0 %1817  ;;  %v1806_v52 = vpop.permute.xlu1 %1805 }
 0xc2d   :  { %v1853_v22 = vrot.slane %v1818_v56, %v9305_v33  ;;  %v1834_v58 = vrot.slane %v1806_v52, %v9305_v33 }
 0xc2f   :  { %v1854_v57 = vsel %vm498_vm5, %v1853_v22, %v1849_v0  ;;  %v1835_v47 = vsel %vm498_vm5, %v1834_v58, %v1830_v48  ;;  %v9309_v22 = vld [vmem:[#allocation65_spill] sm:$0xff]  ;;  %v9310_v58 = vld [vmem:[#allocation64_spill] sm:$0xff] }
 0xc30   :  { %v1821_v62 = vpop.permute.xlu0 %1820  ;;  %v1809_v8 = vpop.permute.xlu1 %1808  ;;  %v1865_v30 = vrot.slane %v9310_v58, 6  ;;  %9314 = vst [vmem:[#allocation64_spill] sm:$0xff] %v7358_v26  ;;  %v7377_v58 = vld [vmem:[#allocation8 + $0x30] sm:$0xff]  ;;  %v1516_v25 = vrot.slane %v9309_v22, %v9330_v29 }
 0xc31   :  { %v1858_v21 = vrot.slane %v1821_v62, %v9306_v2  ;;  %v1839_v13 = vrot.slane %v1809_v8, %v9306_v2  ;;  %9319 = vst [vmem:[#allocation70_spill] sm:$0xff] %v7377_v58 }
 0xc33   :  { %v1859_v14 = vsel %vm505_vm6, %v1858_v21, %v1854_v57  ;;  %v1840_v53 = vsel %vm505_vm6, %v1839_v13, %v1835_v47 }
 0xc34   :  { %v1861_v43 = vsel %vm1860_vm13, %v1859_v14, %v1840_v53 }
 0xc35   :  { %v1863_v34 = vadd.f32 %v1861_v43, %v1709_v7 }
 0xc37   :  { %1869 = vrot.lane.b32.xlu1 %v1863_v34, %s6499_s7  ;;  %v6246_v56 = vpop.eup %6245 }
 0xc38   :  { %v1713_v52 = vadd.f32 1.0, %v6246_v56  ;;  %v9315_v56 = vmov 0.0  }
 0xc3a   :  { %6247 = vrcp.f32 %v1713_v52  ;;  %v7365_v52 = vld [vmem:[#allocation8 + $0x40] sm:$0xff] }
 0xc3b   :  { %9316 = vst [vmem:[#allocation68_spill] sm:$0xff] %v7365_v52 }
 0xc47   :  { %v7337_v16 = vpop.eup %6247 }
 0xc48   :  { %9308 = vst [vmem:[#allocation61_spill] sm:$0xff] %v7337_v16  ;;  %v1867_v18 = vmul.f32 %v7337_v16, %v1865_v30  ;;  %v9320_v30 = vld [vmem:[#allocation25_spill] sm:$0xff] }
 0xca9   :  { %v1870_v55 = vpop.permute.xlu1 %1869 }
 0xcaa   :  { %v1872_v60 = vmul.f32 %v7337_v16, %v1870_v55  ;;  %v9317_v55 = vld [vmem:[#allocation24_spill] sm:$0xff] }
 0xcac   :  { %1874 = vrot.lane.b32.xlu0 %v1872_v60, %s6500_s20  ;;  %v7371_v60 = vld [vmem:[#allocation8 + $0x38] sm:$0xff] }
 0xcad   :  { %9318 = vst [vmem:[#allocation69_spill] sm:$0xff] %v7371_v60 }
 0xcb0   :  { %1349 = vrot.lane.b32.xlu0 %v9309_v22, %s6505_s23 }
 0xd1e   :  { %v1875_v62 = vpop.permute.xlu0 %1874 }
 0xd1f   :  { %v7345_v8 = vadd.f32 %v1875_v62, %v1867_v18  ;;  %v9321_v62 = vld [vmem:[#allocation50_spill] sm:$0xff] }
 0xd21   :  { %9311 = vst [vmem:[#allocation60_spill] sm:$0xff] %v7345_v8  ;;  %v5849_v48 = vmul.f32 -1.442695, %v7345_v8 }
 0xd23   :  { %6249 = vpow2.f32 %v5849_v48 }
 0xd30   :  { %v6250_v0 = vpop.eup %6249 }
 0xd31   :  { %v1881_v21 = vadd.f32 1.0, %v6250_v0 }
 0xd33   :  { %6251 = vrcp.f32 %v1881_v21 }
 0xd40   :  { %v6252_v13 = vpop.eup %6251 }
 0xd41   :  { %v1884_v57 = vmul.f32 %v6252_v13, %v7345_v8 }
 0xd43   :  { %v1885_v47 = vsub.f32 %v7345_v8, %v1884_v57  ;;  %v9339_v8 = vld [vmem:[#allocation59_spill] sm:$0xff] }
 0xd45   :  { %v7352_v53 = vsel %vm253_vm8, %v1884_v57, %v1885_v47 }
 0xd46   :  { %9313 = vst [vmem:[#allocation57_spill] sm:$0xff] %v7352_v53  ;;  %v1888_v7 = vrot.slane %v7352_v53, 4  ;;  %v2306_v43 = vpack.c.bf16 %v7352_v53, %v7352_v53 }
 0xd48   :  { %6057 = vmatmul.mubr.msk.f32.vlgmr.msra.gmra.mxu0 %vm278_vm2, %v1888_v7  ;;  %v2308_v34 = vrot.slane %v2306_v43, 2 }
 0xd49   :  { %6068 = vmatpush3.msra.mxu0 %v7358_v26  ;;  %6075 = vmatprep.mubr.msk.f32.mxu0 %vm6496_vm0, %v9315_v56 }
 0xd4a   :  { %6064 = vmatmul.mubr.msk.bf16.vlgmr.msra.gmra.mxu1 %vm278_vm2, %v2308_v34  ;;  %6069 = vmatprep.subr.mxu0 %v9315_v56 }
 0xd4b   :  { %6070 = vmatpush3.msra.mxu0 %v7365_v52  ;;  %6079 = vmatpush3.bf16.msra.mxu1 %v9317_v55 }
 0xd4c   :  { %6071 = vmatprep.subr.mxu0 %v9315_v56  ;;  %6080 = vmatprep.subr.bf16.mxu1 %v9315_v56 }
 0xd4d   :  { %6072 = vmatpush3.msra.mxu0 %v7371_v60  ;;  %6082 = vmatprep.mubr.msk.bf16.mxu1 %vm6496_vm0, %v9315_v56 }
 0xd4e   :  { %6073 = vmatprep.subr.mxu0 %v9315_v56 }
 0xd4f   :  { %6074 = vmatpush3.msra.mxu0 %v7377_v58  ;;  %6081 = vmatpush3.bf16.msra.mxu1 %v9320_v30  ;;  %v2380_v58 = vcombine.high %v7352_v53, %v7352_v53  ;;  %v9340_v53 = vld [vmem:[#allocation56_spill] sm:$0xff] }
 0xd50   :  { %6086 = vmatprep.subr.mxu0 %v9315_v56  ;;  %6097 = vmatprep.subr.bf16.mxu1 %v9315_v56  ;;  %v2020_v27 = vmul.f32 %v9341_v36, %v9340_v53 }
 0xe08   :  { %v1957_v18 = vpop.f32.mrf.mxu0 }
 0xe09   :  { %v1958_v48 = vadd.f32 %v1957_v18, %v9321_v62  ;;  %v1350_v18 = vpop.permute.xlu0 %1349 }
 0xe0a   :  { %v6058_v0 = vpop.f32.mrf.mxu0  ;;  %v7384_v21 = vpop.f32.mrf.mxu1  ;;  %v1352_v39 = vmul.f32 %v9326_v15, %v1350_v18  ;;  %v9332_v18 = vld [vmem:[#allocation53_spill] sm:$0xff] }
 0xe0b   :  { %9322 = vst [vmem:[#allocation71_spill] sm:$0xff] %v7384_v21  ;;  %v1961_v13 = vsel %vm626_vm9, %v1958_v48, -inf  ;;  %v9325_v0 = vmov 3  }
 0xe0c   :  { %v6065_v57 = vpop.f32.mrf.mxu1  ;;  %1962 = vmax.xlane.f32.xlu1 %v1961_v13  ;;  %v9327_v13 = vmov 0  }
 0xe0d   :  { %v9328_v57 = vld [vmem:[#allocation37_spill] sm:$0xff] }
 0xe0e   :  { %v2349_v47 = vpop.f32.mrf.mxu1 }
 0xe10   :  { %v6066_v7 = vpop.f32.mrf.mxu1 }
 0xe11   :  { %v9329_v7 = vld [vmem:[#allocation51_spill] sm:$0xff] }
 0xe95   :  { %v1963_v43 = vpop.xlane.xlu1 %1962 }
 0xe96   :  { %vm1964_vm14 = vcmp.ge.f32.partialorder %v1958_v48, %v1963_v43 }
 0xe97   :  { %v1965_v34 = vsel %vm1964_vm14, %v1958_v48, 0.0  ;;  %v1497_v48 = vrot.slane %v9309_v22, %v9328_v57 }
 0xe98   :  { %1968 = vperm.xlu0 %6188, %v1965_v34  }
 0xe9c   :  { %6198 = vset.pattern.permute.xlu0 %v9323_v11  ;;  %v9338_v11 = vld [vmem:[#allocation23_spill] sm:$0xff] }
 0xe9d   :  { %1978 = vperm.xlu0 %6198, %v1965_v34   ;;  %v2387_v26 = vrot.slane %v2380_v58, %v9338_v11 }
 0xe9f   :  { %v2388_v37 = vcombine.high %v2387_v26, %v2387_v26  ;;  %v2395_v50 = vrot.slane %v2387_v26, %v9338_v11 }
 0xea1   :  { %6199 = vset.pattern.permute.xlu0 %v9324_v9 }
 0xea2   :  { %1988 = vperm.xlu0 %6199, %v1965_v34  }
 0xea6   :  { %6200 = vset.pattern.permute.xlu0 %v9325_v0 }
 0xea7   :  { %1998 = vperm.xlu0 %6200, %v1965_v34   ;;  %v9331_v34 = vld [vmem:[#allocation52_spill] sm:$0xff] }
 0xeab   :  { %1354 = vrot.lane.b32.xlu0 %v1352_v39, %s6500_s20 }
 0xeac   :  { %6201 = vset.pattern.permute.xlu0 %v9327_v13  ;;  %v1346_v13 = vrot.slane %v9333_v44, 6 }
 0xeaf   :  { %1499 = vbcast.lane.b32.xlu0 %v1497_v48, 256 }
 0xf13   :  { %v1969_v47 = vpop.permute.xlu0 %1968 }
 0xf14   :  { %v1971_v43 = vmul.f32 %v1969_v47, %v9329_v7  ;;  %v9334_v47 = vld [vmem:[#allocation54_spill] sm:$0xff] }
 0xf16   :  { %1973 = vrot.lane.b32.xlu1 %v1971_v43, %s6504_s2  ;;  %v1348_v43 = vmul.f32 %v9326_v15, %v1346_v13 }
 0xf18   :  { %v1979_v19 = vpop.permute.xlu0 %1978 }
 0xf19   :  { %v1981_v42 = vmul.f32 %v1979_v19, %v9331_v34  ;;  %v1441_v19 = vrot.slane %v9326_v15, %v9328_v57 }
 0xf1a   :  { %1518 = vbcast.lane.b32.xlu1 %v1516_v25, 256 }
 0xf1b   :  { %1983 = vrot.lane.b32.xlu0 %v1981_v42, %s6504_s2 }
 0xf1d   :  { %v1989_v39 = vpop.permute.xlu0 %1988 }
 0xf1e   :  { %v1991_v6 = vmul.f32 %v1989_v39, %v9332_v18  ;;  %v9336_v39 = vld [vmem:[#allocation27_spill] sm:$0xff] }
 0xf20   :  { %1993 = vrot.lane.b32.xlu0 %v1991_v6, %s6504_s2 }
 0xf22   :  { %v1999_v16 = vpop.permute.xlu0 %1998 }
 0xf23   :  { %v2001_v7 = vmul.f32 %v1999_v16, %v9334_v47  ;;  %v1461_v16 = vrot.slane %v9326_v15, %v9330_v29 }
 0xf25   :  { %2003 = vrot.lane.b32.xlu0 %v2001_v7, %s6504_s2 }
 0xf26   :  { %v1355_v0 = vpop.permute.xlu0 %1354 }
 0xf27   :  { %v7407_v9 = vadd.f32 %v1355_v0, %v1348_v43 }
 0xf29   :  { %9335 = vst [vmem:[#allocation63_spill] sm:$0xff] %v7407_v9  ;;  %1503 = vbcast.lane.b32.xlu0 %v1497_v48, 264  ;;  %v1575_v42 = vrot.slane %v7407_v9, %v9328_v57  ;;  %v1594_v6 = vrot.slane %v7407_v9, %v9330_v29 }
 0xf2a   :  { %v1500_v0 = vpop.permute.xlu0 %1499 }
 0xf2b   :  { %1577 = vbcast.lane.b32.xlu1 %v1575_v42, 256 }
 0xf2d   :  { %1522 = vbcast.lane.b32.xlu0 %v1516_v25, 264 }
 0xf2f   :  { %1596 = vbcast.lane.b32.xlu1 %v1594_v6, 256 }
 0xf31   :  { %1581 = vbcast.lane.b32.xlu0 %v1575_v42, 264 }
 0xf33   :  { %1507 = vbcast.lane.b32.xlu1 %v1497_v48, 272 }
 0xf35   :  { %1600 = vbcast.lane.b32.xlu0 %v1594_v6, 264 }
 0xf37   :  { %1585 = vbcast.lane.b32.xlu1 %v1575_v42, 272 }
 0xf39   :  { %1526 = vbcast.lane.b32.xlu0 %v1516_v25, 272 }
 0xf3b   :  { %1444 = vbcast.lane.b32.xlu1 %v1441_v19, 320 }
 0xf3d   :  { %1604 = vbcast.lane.b32.xlu0 %v1594_v6, 272 }
 0xf3f   :  { %1464 = vbcast.lane.b32.xlu1 %v1461_v16, 320 }
 0xf41   :  { %1448 = vbcast.lane.b32.xlu0 %v1441_v19, 328 }
 0xf43   :  { %1511 = vbcast.lane.b32.xlu1 %v1497_v48, 280 }
 0xf45   :  { %1468 = vbcast.lane.b32.xlu0 %v1461_v16, 328 }
 0xf47   :  { %1589 = vbcast.lane.b32.xlu1 %v1575_v42, 280 }
 0xf49   :  { %1530 = vbcast.lane.b32.xlu0 %v1516_v25, 280  ;;  %v9337_v25 = vld [vmem:[#allocation28_spill] sm:$0xff] }
 0xf4b   :  { %1452 = vbcast.lane.b32.xlu1 %v1441_v19, 336 }
 0xf4d   :  { %1608 = vbcast.lane.b32.xlu0 %v1594_v6, 280 }
 0xf4f   :  { %1456 = vbcast.lane.b32.xlu1 %v1441_v19, 344 }
 0xf51   :  { %1472 = vbcast.lane.b32.xlu0 %v1461_v16, 336 }
 0xf55   :  { %1476 = vbcast.lane.b32.xlu0 %v1461_v16, 344 }
 0xf88   :  { %v1974_v7 = vpop.permute.xlu1 %1973 }
 0xf89   :  { %v1976_v43 = vadd.f32 %v1974_v7, %v9336_v39 }
 0xf8c   :  { %v1519_v16 = vpop.permute.xlu1 %1518 }
 0xf8d   :  { %v1984_v13 = vpop.permute.xlu0 %1983 }
 0xf8e   :  { %v1986_v47 = vadd.f32 %v1984_v13, %v1976_v43 }
 0xf92   :  { %v1994_v57 = vpop.permute.xlu0 %1993 }
 0xf93   :  { %v1996_v9 = vadd.f32 %v1994_v57, %v1986_v47 }
 0xf97   :  { %v2004_v15 = vpop.permute.xlu0 %2003 }
 0xf98   :  { %v2006_v29 = vadd.f32 %v2004_v15, %v1996_v9 }
 0xf9a   :  { %v2031_v48 = vrot.slane %v2006_v29, %v6627_v17  ;;  %v2051_v42 = vrot.slane %v2006_v29, %v9337_v25 }
 0xf9b   :  { %v1504_v6 = vpop.permute.xlu0 %1503 }
 0xf9c   :  { %2038 = vbcast.lane.b32.xlu0 %v2031_v48, 300  ;;  %2034 = vbcast.lane.b32.xlu1 %v2031_v48, 292 }
 0xf9d   :  { %v1578_v7 = vpop.permute.xlu1 %1577 }
 0xf9f   :  { %v1523_v19 = vpop.permute.xlu0 %1522 }
 0xfa0   :  { %2058 = vbcast.lane.b32.xlu0 %v2051_v42, 300  ;;  %2054 = vbcast.lane.b32.xlu1 %v2051_v42, 292 }
 0xfa1   :  { %v1597_v57 = vpop.permute.xlu1 %1596 }
 0xfa3   :  { %v1582_v13 = vpop.permute.xlu0 %1581 }
 0xfa4   :  { %2062 = vbcast.lane.b32.xlu0 %v2051_v42, 308  ;;  %2042 = vbcast.lane.b32.xlu1 %v2031_v48, 308  ;;  %v1611_v59 = vmul.f32 %v1582_v13, %v9339_v8  ;;  %v9345_v13 = vclamps-f32 %v7229_v24, 5.0 }
 0xfa5   :  { %v1508_v9 = vpop.permute.xlu1 %1507 }
 0xfa7   :  { %v1601_v47 = vpop.permute.xlu0 %1600 }
 0xfa8   :  { %2066 = vbcast.lane.b32.xlu0 %v2051_v42, 316  ;;  %2046 = vbcast.lane.b32.xlu1 %v2031_v48, 316  ;;  %v1538_v42 = vrot.slane %v9333_v44, %v9338_v11  ;;  %v1610_v44 = vmul.f32 %v1578_v7, %v9339_v8 }
 0xfa9   :  { %v1586_v15 = vpop.permute.xlu1 %1585 }
 0xfaa   :  { %v1539_v30 = vcombine.high %v1538_v42, %v1538_v42  ;;  %v1546_v52 = vrot.slane %v1538_v42, %v9338_v11  ;;  %v9342_v42 = vld [vmem:[#allocation55_spill] sm:$0xff]  ;;  %v1612_v24 = vmul.f32 %v1586_v15, %v9339_v8 }
 0xfab   :  { %v1527_v43 = vpop.permute.xlu0 %1526  ;;  %v7449_v10 = vmul.f32 %v9345_v13, %v9342_v42 }
 0xfac   :  { %v1553_v56 = vrot.slane %v1539_v30, %v9338_v11  ;;  %v1557_v22 = vrot.slane %v1546_v52, %v6627_v17  ;;  %v9343_v30 = vclamps-f32 %v7211_v12, 5.0  ;;  %v9344_v52 = vclamps-f32 %v7232_v5, 5.0 }
 0xfad   :  { %v1445_v18 = vpop.permute.xlu1 %1444  ;;  %v9346_v12 = vclamps-f32 %v7264_v38, 5.0 }
 0xfae   :  { %v1561_v14 = vrot.slane %v1553_v56, %v6627_v17  ;;  %v2021_v54 = vmul.f32 %v9343_v30, %v9342_v42  ;;  %v7444_v58 = vmul.f32 %v9344_v52, %v9340_v53  ;;  %v1564_v56 = vmul.f32 %v1557_v22, %v1500_v0  ;;  %v9347_v53 = vld [vmem:[#allocation62_spill] sm:$0xff] }
 0xfaf   :  { %v1605_v39 = vpop.permute.xlu0 %1604  ;;  %v1478_v7 = vsub.f32 1.0, %v1445_v18  ;;  %v1565_v36 = vmul.f32 %v1557_v22, %v1504_v6  ;;  %v7455_v30 = vmul.f32 %v9346_v12, %v6930_v3  ;;  %v1614_v0 = vmul.f32 %v1597_v57, %v9347_v53 }
 0xfb0   :  { %v1568_v5 = vmul.f32 %v1561_v14, %v1519_v16  ;;  %v1618_v52 = vsub.f32 %v1564_v56, %v1610_v44  ;;  %v1615_v28 = vmul.f32 %v1601_v47, %v9347_v53  ;;  %v1569_v46 = vmul.f32 %v1561_v14, %v1523_v19 }
 0xfb1   :  { %v1465_v29 = vpop.permute.xlu1 %1464  ;;  %v1619_v21 = vsub.f32 %v1565_v36, %v1611_v59  ;;  %v1616_v13 = vmul.f32 %v1605_v39, %v9347_v53  ;;  %v1486_v26 = vmul.f32 %v1478_v7, %v7201_v1  ;;  %v2402_v16 = vrot.slane %v2388_v37, %v9338_v11 }
 0xfb2   :  { %v1482_v6 = vsub.f32 1.0, %v1465_v29  ;;  %v7466_v44 = vrot.slane %v2395_v50, %v6627_v17  ;;  %v1566_v57 = vmul.f32 %v1557_v22, %v1508_v9  ;;  %v1570_v47 = vmul.f32 %v1561_v14, %v1527_v43 }
 0xfb3   :  { %v1449_v34 = vpop.permute.xlu0 %1448  ;;  %v1622_v56 = vsub.f32 %v1568_v5, %v1614_v0  ;;  %v1623_v15 = vsub.f32 %v1569_v46, %v1615_v28  ;;  %v1626_v36 = vmul.f32 %v1618_v52, %v1445_v18 }
 0xfb4   :  { %v1479_v35 = vsub.f32 1.0, %v1449_v34  ;;  %9348 = vst [vmem:[#allocation66_spill] sm:$0xff] %v7466_v44  ;;  %v1627_v39 = vmul.f32 %v1619_v21, %v1449_v34  ;;  %v1620_v12 = vsub.f32 %v1566_v57, %v1612_v24  ;;  %v1624_v1 = vsub.f32 %v1570_v47, %v1616_v13 }
 0xfb5   :  { %v1512_v48 = vpop.permute.xlu1 %1511  ;;  %v7471_v11 = vadd.f32 %v1626_v36, %v1486_v26  ;;  %v1630_v9 = vmul.f32 %v1622_v56, %v1465_v29 }
 0xfb6   :  { %v1487_v42 = vmul.f32 %v1479_v35, %v7199_v31  ;;  %v1490_v31 = vmul.f32 %v1482_v6, %v7215_v32  ;;  %v1567_v43 = vmul.f32 %v1557_v22, %v1512_v48 }
 0xfb7   :  { %v7420_v25 = vpop.permute.xlu0 %1468 }
 0xfb8   :  { %v1483_v38 = vsub.f32 1.0, %v7420_v25  ;;  %v7473_v50 = vadd.f32 %v1627_v39, %v1487_v42  ;;  %v1631_v34 = vmul.f32 %v1623_v15, %v7420_v25 }
 0xfb9   :  { %v1590_v60 = vpop.permute.xlu1 %1589 }
 0xfba   :  { %v1491_v37 = vmul.f32 %v1483_v38, %v7203_v40  ;;  %v1613_v5 = vmul.f32 %v1590_v60, %v9339_v8 }
 0xfbb   :  { %v1531_v62 = vpop.permute.xlu0 %1530 }
 0xfbc   :  { %v1571_v18 = vmul.f32 %v1561_v14, %v1531_v62  ;;  %v1621_v60 = vsub.f32 %v1567_v43, %v1613_v5 }
 0xfbd   :  { %v1453_v2 = vpop.permute.xlu1 %1452 }
 0xfbe   :  { %v1480_v7 = vsub.f32 1.0, %v1453_v2  ;;  %v1628_v14 = vmul.f32 %v1620_v12, %v1453_v2 }
 0xfbf   :  { %v1609_v55 = vpop.permute.xlu0 %1608 }
 0xfc0   :  { %v1617_v28 = vmul.f32 %v1609_v55, %v9347_v53  ;;  %v1488_v40 = vmul.f32 %v1480_v7, %v7227_v23  ;;  %v7486_v53 = vadd.f32 %v1630_v9, %v1490_v31  ;;  %v7488_v55 = vadd.f32 %v1631_v34, %v1491_v37 }
 0xfc1   :  { %v1457_v19 = vpop.permute.xlu1 %1456  ;;  %v9351_v9 = vclamps-f32 %v7285_v4, 5.0 }
 0xfc2   :  { %v1481_v0 = vsub.f32 1.0, %v1457_v19  ;;  %v1625_v62 = vsub.f32 %v1571_v18, %v1617_v28  ;;  %v7497_v6 = vadd.f32 %v1628_v14, %v1488_v40  ;;  %v1629_v47 = vmul.f32 %v1621_v60, %v1457_v19 }
 0xfc3   :  { %v7433_v33 = vpop.permute.xlu0 %1472  ;;  %v2023_v43 = vmul.f32 %v9351_v9, %v9295_v20  ;;  %v9352_v28 = vclamps-f32 %v7283_v61, 5.0 }
 0xfc4   :  { %v1484_v35 = vsub.f32 1.0, %v7433_v33  ;;  %v1632_v25 = vmul.f32 %v1624_v1, %v7433_v33  ;;  %v1489_v13 = vmul.f32 %v1481_v0, %v7260_v51 }
 0xfc6   :  { %v1492_v42 = vmul.f32 %v1484_v35, %v7225_v49  ;;  %v7525_v19 = vadd.f32 %v1629_v47, %v1489_v13 }
 0xfc7   :  { %v1477_v59 = vpop.permute.xlu0 %1476 }
 0xfc8   :  { %v1485_v29 = vsub.f32 1.0, %v1477_v59  ;;  %v7499_v2 = vadd.f32 %v1632_v25, %v1492_v42  ;;  %v1633_v56 = vmul.f32 %v1625_v62, %v1477_v59  ;;  %v9354_v25 = vld [vmem:[#allocation71_spill] sm:$0xff] }
 0xfca   :  { %v1493_v26 = vmul.f32 %v1485_v29, %v7255_v63  ;;  %v7514_v63 = vrot.slane %v2402_v16, %v6627_v17 }
 0xfcc   :  { %9349 = vst [vmem:[#allocation59_spill] sm:$0xff] %v7514_v63  ;;  %v7527_v59 = vadd.f32 %v1633_v56, %v1493_v26 }
0x100e   :  { %v2035_v46 = vpop.permute.xlu1 %2034  ;;  %v2039_v21 = vpop.permute.xlu0 %2038 }
0x100f   :  { %v2068_v52 = vmul.f32 %v2035_v46, %v7471_v11  ;;  %v2069_v32 = vmul.f32 %v2039_v21, %v7473_v50  ;;  %v2027_v46 = vmul.f32 %v9352_v28, %v9295_v20 }
0x1011   :  { %v7482_v22 = vadd.f32 %v2068_v52, %v2020_v27  ;;  %v7484_v8 = vadd.f32 %v2069_v32, %v2021_v54 }
0x1012   :  { %v2055_v48 = vpop.permute.xlu1 %2054  ;;  %v2059_v24 = vpop.permute.xlu0 %2058 }
0x1013   :  { %v9089_v23 = vclamps-f32 %v7482_v22, 5.0  ;;  %v9090_v49 = vclamps-f32 %v7484_v8, 5.0  ;;  %v2072_v27 = vmul.f32 %v2055_v48, %v7486_v53  ;;  %v2073_v54 = vmul.f32 %v2059_v24, %v7488_v55 }
0x1014   :  { %v2347_v48 = vadd.f32 %v9354_v25, %v9298_v41 }
0x1015   :  { %v7502_v33 = vadd.f32 %v2072_v27, %v7444_v58  ;;  %v7505_v38 = vadd.f32 %v2073_v54, %v7449_v10  ;;  %v2413_v57 = vmul.f32 %v9089_v23, %v7466_v44  ;;  %v2414_v51 = vmul.f32 %v9090_v49, %v7466_v44  ;;  %v9395_v23 = vld [vmem:[#allocation54_spill] sm:$0xff] }
0x1016   :  { %v2043_v15 = vpop.permute.xlu1 %2042  ;;  %v9350_v58 = vclamps-f32 %v7262_v45, 5.0  ;;  %v2063_v10 = vpop.permute.xlu0 %2062 }
0x1017   :  { %v9087_v39 = vclamps-f32 %v7502_v33, 5.0  ;;  %v9088_v12 = vclamps-f32 %v7505_v38, 5.0  ;;  %v2070_v1 = vmul.f32 %v2043_v15, %v7497_v6  ;;  %v2074_v7 = vmul.f32 %v2063_v10, %v7499_v2  ;;  %v9356_v10 = vld [vmem:[#allocation31_spill] sm:$0xff] }
0x1018   :  { %v2026_v36 = vmul.f32 %v9350_v58, %v6930_v3  ;;  %v2421_v35 = vsel %vm278_vm2, %v2413_v57, 0.0  ;;  %v2424_v16 = vsel %vm278_vm2, %v2414_v51, 0.0  ;;  %v2356_v57 = vmul.f32 %v2347_v48, %v2347_v48  ;;  %v9355_v58 = vld [vmem:[#allocation32_spill] sm:$0xff] }
0x1019   :  { %v7530_v45 = vadd.f32 %v2070_v1, %v7455_v30  ;;  %2422 = vadd.xlane.f32.xlu1 %v2421_v35  ;;  %2425 = vadd.xlane.f32.xlu0 %v2424_v16  ;;  %v2417_v37 = vmul.f32 %v9087_v39, %v7514_v63  ;;  %v2418_v30 = vmul.f32 %v9088_v12, %v7514_v63  ;;  %v2352_v51 = vsel %vm322_vm3, %v2347_v48, 0.0 }
0x101a   :  { %v7532_v31 = vadd.f32 %v2074_v7, %v2026_v36  ;;  %v2047_v5 = vpop.permute.xlu1 %2046  ;;  %v2067_v21 = vpop.permute.xlu0 %2066  ;;  %v2357_v47 = vsel %vm322_vm3, %v2356_v57, 0.0 }
0x101b   :  { %v9085_v34 = vclamps-f32 %v7530_v45, 5.0  ;;  %v2071_v52 = vmul.f32 %v2047_v5, %v7525_v19  ;;  %v2075_v32 = vmul.f32 %v2067_v21, %v7527_v59  ;;  %v2433_v4 = vsel %vm278_vm2, %v2417_v37, 0.0 }
0x101c   :  { %v9086_v18 = vclamps-f32 %v7532_v31, 5.0  ;;  %v2436_v40 = vsel %vm278_vm2, %v2418_v30, 0.0  ;;  %v9358_v30 = vld [vmem:[#allocation34_spill] sm:$0xff] }
0x101d   :  { %v7552_v0 = vadd.f32 %v2071_v52, %v2023_v43  ;;  %v7554_v61 = vadd.f32 %v2075_v32, %v2027_v46  ;;  %2434 = vadd.xlane.f32.xlu0 %v2433_v4  ;;  %2437 = vadd.xlane.f32.xlu1 %v2436_v40  ;;  %v2415_v42 = vmul.f32 %v9085_v34, %v7466_v44  ;;  %v9357_v43 = vld [vmem:[#allocation33_spill] sm:$0xff] }
0x101e   :  { %v2419_v29 = vmul.f32 %v9086_v18, %v7514_v63  ;;  %v9393_v18 = vld [vmem:[#allocation53_spill] sm:$0xff] }
0x101f   :  { %9353 = vst [vmem:[#allocation62_spill] sm:$0xff] %v7552_v0  ;;  %v9083_v60 = vclamps-f32 %v7552_v0, 5.0  ;;  %v9084_v14 = vclamps-f32 %v7554_v61, 5.0  ;;  %v2427_v62 = vsel %vm278_vm2, %v2415_v42, 0.0 }
0x1020   :  { %v2439_v24 = vsel %vm278_vm2, %v2419_v29, 0.0 }
0x1021   :  { %2428 = vadd.xlane.f32.xlu0 %v2427_v62  ;;  %2440 = vadd.xlane.f32.xlu1 %v2439_v24  ;;  %v2416_v27 = vmul.f32 %v9083_v60, %v7466_v44  ;;  %v2420_v54 = vmul.f32 %v9084_v14, %v7514_v63  ;;  %v9391_v14 = vld [vmem:[#allocation52_spill] sm:$0xff] }
0x1023   :  { %v2430_v13 = vsel %vm278_vm2, %v2416_v27, 0.0  ;;  %v2442_v26 = vsel %vm278_vm2, %v2420_v54, 0.0 }
0x1025   :  { %2431 = vadd.xlane.f32.xlu0 %v2430_v13  ;;  %2443 = vadd.xlane.f32.xlu1 %v2442_v26 }
0x1029   :  { %2353 = vadd.xlane.f32.xlu0 %v2352_v51  ;;  %2358 = vadd.xlane.f32.xlu1 %v2357_v47 }
0x10a2   :  { %v2423_v56 = vpop.xlane.xlu1 %2422  ;;  %v2426_v15 = vpop.xlane.xlu0 %2425 }
0x10a3   :  { %v2445_v36 = vmul.f32 %v2423_v56, %v9355_v58  ;;  %v2446_v1 = vmul.f32 %v2426_v15, %v9356_v10 }
0x10a5   :  { %2462 = vperm.xlu0 %6201, %v2445_v36   ;;  %2465 = vperm.xlu1 %6197, %v2446_v1   ;;  %v9359_v36 = vld [vmem:[#allocation42_spill] sm:$0xff] }
0x10a6   :  { %v2435_v7 = vpop.xlane.xlu0 %2434  ;;  %v2438_v16 = vpop.xlane.xlu1 %2437 }
0x10a7   :  { %v2449_v35 = vmul.f32 %v2435_v7, %v9355_v58  ;;  %v2450_v37 = vmul.f32 %v2438_v16, %v9356_v10  ;;  %v9360_v16 = vld [vmem:[#allocation47_spill] sm:$0xff]  ;;  %v9407_v10 = vld [vmem:[#allocation58_spill] sm:$0xff] }
0x10a9   :  { %2474 = vperm.xlu1 %6197, %v2449_v35  }
0x10aa   :  { %v2429_v9 = vpop.xlane.xlu0 %2428  ;;  %v2441_v28 = vpop.xlane.xlu1 %2440 }
0x10ab   :  { %v2447_v5 = vmul.f32 %v2429_v9, %v9357_v43  ;;  %v2451_v46 = vmul.f32 %v2441_v28, %v9357_v43 }
0x10ad   :  { %2477 = vperm.xlu1 %6197, %v2450_v37  }
0x10ae   :  { %v2432_v21 = vpop.xlane.xlu0 %2431  ;;  %v2444_v32 = vpop.xlane.xlu1 %2443 }
0x10af   :  { %v2448_v52 = vmul.f32 %v2432_v21, %v9358_v30  ;;  %v2452_v4 = vmul.f32 %v2444_v32, %v9358_v30  ;;  %v9363_v32 = vld [vmem:[#allocation43_spill] sm:$0xff] }
0x10b1   :  { %2468 = vperm.xlu1 %6197, %v2447_v5   ;;  %v9361_v5 = vld [vmem:[#allocation40_spill] sm:$0xff] }
0x10b2   :  { %v2354_v40 = vpop.xlane.xlu0 %2353  ;;  %v2359_v29 = vpop.xlane.xlu1 %2358 }
0x10b3   :  { %v2355_v42 = vmul.f32 0.0078125, %v2354_v40  ;;  %v2360_v25 = vmul.f32 0.0078125, %v2359_v29  ;;  %v9364_v29 = vld [vmem:[#allocation44_spill] sm:$0xff] }
0x10b5   :  { %2480 = vperm.xlu1 %6197, %v2451_v46   ;;  %v2361_v62 = vmul.f32 %v2355_v42, %v2355_v42  ;;  %v2364_v47 = vsub.f32 %v2347_v48, %v2355_v42  ;;  %v9362_v46 = vld [vmem:[#allocation41_spill] sm:$0xff] }
0x10b7   :  { %v2362_v24 = vsub.f32 %v2360_v25, %v2361_v62 }
0x10b9   :  { %2471 = vperm.xlu1 %6197, %v2448_v52   ;;  %v2363_v27 = vmax.f32 %v2362_v24, 0.0 }
0x10bb   :  { %v2365_v54 = vadd.f32 1e-05, %v2363_v27 }
0x10bd   :  { %2483 = vperm.xlu1 %6197, %v2452_v4   ;;  %6253 = vrsqrt.f32 %v2365_v54 }
0x10ca   :  { %v6254_v57 = vpop.eup %6253 }
0x10cb   :  { %v2367_v56 = vmul.f32 %v6254_v57, %v2364_v47 }
0x10cd   :  { %v2368_v1 = vmul.f32 %v2367_v56, %v9359_v36  ;;  %v9365_v56 = vld [vmem:[#allocation48_spill] sm:$0xff] }
0x10cf   :  { %v2369_v37 = vadd.f32 %v2368_v1, %v9360_v16 }
0x10d1   :  { %v2371_v48 = vrot.slane %v2369_v37, 2 }
0x1120   :  { %v2466_v13 = vpop.permute.xlu1 %2465  ;;  %v2463_v35 = vpop.permute.xlu0 %2462 }
0x1121   :  { %v2492_v28 = vrot.slane %v2466_v13, %v9361_v5  ;;  %v2488_v21 = vrot.slane %v2463_v35, %v9362_v46 }
0x1123   :  { %v2493_v24 = vsel %vm491_vm4, %v2492_v28, %v2488_v21 }
0x1124   :  { %v2475_v26 = vpop.permute.xlu1 %2474 }
0x1125   :  { %v2507_v42 = vrot.slane %v2475_v26, %v9362_v46  ;;  %v2373_v26 = vadd.f32 %v2371_v48, %v9365_v56  ;;  %v9372_v56 = vld [vmem:[#allocation65_spill] sm:$0xff]  ;;  %v9402_v46 = vld [vmem:[#allocation55_spill] sm:$0xff] }
0x1128   :  { %v2478_v51 = vpop.permute.xlu1 %2477 }
0x1129   :  { %v2511_v52 = vrot.slane %v2478_v51, %v9361_v5  ;;  %v9403_v5 = vclamps-f32 %v7484_v8, 5.0 }
0x112b   :  { %v2512_v27 = vsel %vm491_vm4, %v2511_v52, %v2507_v42  ;;  %v9367_v52 = vld [vmem:[#allocation57_spill] sm:$0xff] }
0x112c   :  { %v2469_v15 = vpop.permute.xlu1 %2468 }
0x112d   :  { %v2497_v4 = vrot.slane %v2469_v15, %v9363_v32 }
0x112f   :  { %v2498_v13 = vsel %vm498_vm5, %v2497_v4, %v2493_v24  ;;  %v9368_v4 = vld [vmem:[#allocation60_spill] sm:$0xff] }
0x1130   :  { %v2481_v7 = vpop.permute.xlu1 %2480 }
0x1131   :  { %v2516_v40 = vrot.slane %v2481_v7, %v9363_v32  ;;  %v5860_v7 = vmul.f32 -1.442695, %v2373_v26  ;;  %v9401_v32 = vld [vmem:[#allocation67_spill] sm:$0xff] }
0x1133   :  { %v2517_v57 = vsel %vm498_vm5, %v2516_v40, %v2512_v27  ;;  %6255 = vpow2.f32 %v5860_v7  ;;  %v2528_v40 = vrot.slane %v9368_v4, 6  ;;  %v9376_v4 = vmov 0.0  }
0x1134   :  { %v2472_v9 = vpop.permute.xlu1 %2471 }
0x1135   :  { %v2502_v62 = vrot.slane %v2472_v9, %v9364_v29 }
0x1137   :  { %v2503_v51 = vsel %vm505_vm6, %v2502_v62, %v2498_v13 }
0x1138   :  { %v2484_v25 = vpop.permute.xlu1 %2483 }
0x1139   :  { %v2521_v54 = vrot.slane %v2484_v25, %v9364_v29 }
0x113b   :  { %v2522_v47 = vsel %vm505_vm6, %v2521_v54, %v2517_v57 }
0x113c   :  { %v2524_v15 = vsel %vm2523_vm15, %v2522_v47, %v2503_v51 }
0x113d   :  { %v2526_v1 = vadd.f32 %v2524_v15, %v2373_v26  ;;  %v9373_v26 = vld [vmem:[#allocation49_spill] sm:$0xff] }
0x113e   :  { %v5630_v15 = vsel %vm322_vm3, %v9373_v26, %v9372_v56 }
0x113f   :  { %2532 = vrot.lane.b32.xlu1 %v2526_v1, %s6499_s7 }
0x1140   :  { %v6256_v35 = vpop.eup %6255 }
0x1141   :  { %v2377_v37 = vadd.f32 1.0, %v6256_v35  ;;  %v5632_v35 = vsel %vm5631_vm1, %v5630_v15, %v9367_v52 }
0x1143   :  { %6257 = vrcp.f32 %v2377_v37 }
0x1150   :  { %v7605_v9 = vpop.eup %6257 }
0x1151   :  { %9366 = vst [vmem:[#allocation71_spill] sm:$0xff] %v7605_v9  ;;  %v2530_v48 = vmul.f32 %v7605_v9, %v2528_v40  ;;  %v9377_v40 = vld [vmem:[#allocation68_spill] sm:$0xff] }
0x11b1   :  { %v2533_v28 = vpop.permute.xlu1 %2532 }
0x11b2   :  { %v2535_v21 = vmul.f32 %v7605_v9, %v2533_v28 }
0x11b4   :  { %2537 = vrot.lane.b32.xlu0 %v2535_v21, %s6500_s20  ;;  %v9375_v21 = vld [vmem:[#allocation64_spill] sm:$0xff] }
0x11b8   :  { %2011 = vrot.lane.b32.xlu0 %v9367_v52, %s6505_s23 }
0x1226   :  { %v2538_v42 = vpop.permute.xlu0 %2537 }
0x1227   :  { %v7613_v62 = vadd.f32 %v2538_v42, %v2530_v48  ;;  %v9378_v48 = vld [vmem:[#allocation24_spill] sm:$0xff]  ;;  %v9379_v42 = vld [vmem:[#allocation69_spill] sm:$0xff] }
0x1229   :  { %9369 = vst [vmem:[#allocation48_spill] sm:$0xff] %v7613_v62  ;;  %v5861_v25 = vmul.f32 -1.442695, %v7613_v62 }
0x122b   :  { %6259 = vpow2.f32 %v5861_v25  ;;  %v9380_v25 = vld [vmem:[#allocation70_spill] sm:$0xff] }
0x1238   :  { %v6260_v24 = vpop.eup %6259 }
0x1239   :  { %v2544_v27 = vadd.f32 1.0, %v6260_v24  ;;  %v9381_v24 = vld [vmem:[#allocation25_spill] sm:$0xff] }
0x123b   :  { %6261 = vrcp.f32 %v2544_v27 }
0x1248   :  { %v6262_v54 = vpop.eup %6261 }
0x1249   :  { %v2547_v13 = vmul.f32 %v6262_v54, %v7613_v62  ;;  %v9382_v54 = vld [vmem:[#allocation50_spill] sm:$0xff] }
0x124b   :  { %v2548_v57 = vsub.f32 %v7613_v62, %v2547_v13 }
0x124d   :  { %v7620_v47 = vsel %vm253_vm8, %v2547_v13, %v2548_v57 }
0x124e   :  { %9371 = vst [vmem:[#allocation57_spill] sm:$0xff] %v7620_v47  ;;  %v2551_v1 = vrot.slane %v7620_v47, 6  ;;  %v2968_v7 = vpack.c.bf16 %v7620_v47, %v7620_v47  ;;  %v7632_v37 = vsel %vm5633_vm10, %v5632_v35, %v7620_v47 }
0x124f   :  { %9374 = vst [vmem:[#allocation60_spill] sm:$0xff] %v7632_v37  ;;  %5638 = vst.msk [vmem:[#allocation10] sm:$0xff] %vm278_vm2, %v7632_v37 }
0x1250   :  { %6076 = vmatmul.mubr.msk.f32.vlgmr.msra.gmra.mxu0 %vm278_vm2, %v2551_v1  ;;  %v2970_v28 = vrot.slane %v2968_v7, 3 }
0x1251   :  { %6087 = vmatpush3.msra.mxu0 %v9375_v21  ;;  %6094 = vmatprep.mubr.msk.f32.mxu0 %vm6496_vm0, %v9376_v4  ;;  %v9384_v21 = vmov 1  }
0x1252   :  { %6083 = vmatmul.mubr.msk.bf16.vlgmr.msra.gmra.mxu1 %vm278_vm2, %v2970_v28  ;;  %6088 = vmatprep.subr.mxu0 %v9376_v4 }
0x1253   :  { %6089 = vmatpush3.msra.mxu0 %v9377_v40  ;;  %6098 = vmatpush3.bf16.msra.mxu1 %v9378_v48  ;;  %v9385_v40 = vmov 2  }
0x1254   :  { %6090 = vmatprep.subr.mxu0 %v9376_v4  ;;  %6099 = vmatprep.subr.bf16.mxu1 %v9376_v4 }
0x1255   :  { %6091 = vmatpush3.msra.mxu0 %v9379_v42  ;;  %6101 = vmatprep.mubr.msk.bf16.mxu1 %vm6496_vm0, %v9376_v4  ;;  %v2012_v42 = vpop.permute.xlu0 %2011 }
0x1256   :  { %6092 = vmatprep.subr.mxu0 %v9376_v4 }
0x1257   :  { %6093 = vmatpush3.msra.mxu0 %v9380_v25  ;;  %6100 = vmatpush3.bf16.msra.mxu1 %v9381_v24  ;;  %v9386_v25 = vmov 3  }
0x1258   :  { %6105 = vmatprep.subr.mxu0 %v9376_v4  ;;  %6116 = vmatprep.subr.bf16.mxu1 %v9376_v4 }
0x1310   :  { %v2620_v27 = vpop.f32.mrf.mxu0 }
0x1311   :  { %v2621_v13 = vadd.f32 %v2620_v27, %v9382_v54  ;;  %v9387_v27 = vld [vmem:[#allocation61_spill] sm:$0xff] }
0x1312   :  { %v6077_v57 = vpop.f32.mrf.mxu0  ;;  %v7655_v56 = vpop.f32.mrf.mxu1 }
0x1313   :  { %9383 = vst [vmem:[#allocation65_spill] sm:$0xff] %v7655_v56  ;;  %v2624_v26 = vsel %vm626_vm9, %v2621_v13, -inf  ;;  %v2014_v57 = vmul.f32 %v9387_v27, %v2012_v42 }
0x1314   :  { %v6084_v15 = vpop.f32.mrf.mxu1  ;;  %2625 = vmax.xlane.f32.xlu1 %v2624_v26  ;;  %v9388_v26 = vmov 0  }
0x1316   :  { %v3011_v1 = vpop.f32.mrf.mxu1 }
0x1317   :  { %v9389_v1 = vld [vmem:[#allocation51_spill] sm:$0xff] }
0x1318   :  { %v6085_v7 = vpop.f32.mrf.mxu1 }
0x139d   :  { %v2626_v35 = vpop.xlane.xlu1 %2625 }
0x139e   :  { %vm2627_vm12 = vcmp.ge.f32.partialorder %v2621_v13, %v2626_v35  ;;  %v9390_v35 = vld [vmem:[#allocation36_spill] sm:$0xff] }
0x139f   :  { %v2628_v28 = vsel %vm2627_vm12, %v2621_v13, 0.0  ;;  %v2159_v60 = vrot.slane %v9367_v52, %v9390_v35 }
0x13a0   :  { %2631 = vperm.xlu0 %6201, %v2628_v28  }
0x13a4   :  { %6202 = vset.pattern.permute.xlu0 %v9384_v21 }
0x13a5   :  { %2641 = vperm.xlu0 %6202, %v2628_v28  }
0x13a9   :  { %6203 = vset.pattern.permute.xlu0 %v9385_v40 }
0x13aa   :  { %2651 = vperm.xlu0 %6203, %v2628_v28  }
0x13ae   :  { %6204 = vset.pattern.permute.xlu0 %v9386_v25 }
0x13af   :  { %2661 = vperm.xlu0 %6204, %v2628_v28   ;;  %v9392_v28 = vld [vmem:[#allocation39_spill] sm:$0xff] }
0x13b0   :  { %v2178_v42 = vrot.slane %v9367_v52, %v9392_v28 }
0x13b3   :  { %2016 = vrot.lane.b32.xlu0 %v2014_v57, %s6500_s20 }
0x13b4   :  { %6205 = vset.pattern.permute.xlu0 %v9388_v26  ;;  %v3039_v26 = vcombine.high %v7620_v47, %v7620_v47 }
0x141b   :  { %v2632_v15 = vpop.permute.xlu0 %2631 }
0x141c   :  { %v2634_v13 = vmul.f32 %v2632_v15, %v9389_v1  ;;  %v9394_v15 = vld [vmem:[#allocation63_spill] sm:$0xff] }
0x141e   :  { %2636 = vrot.lane.b32.xlu1 %v2634_v13, %s6504_s2  ;;  %v2008_v13 = vrot.slane %v9394_v15, 6 }
0x1420   :  { %v2642_v7 = vpop.permute.xlu0 %2641 }
0x1421   :  { %v2644_v34 = vmul.f32 %v2642_v7, %v9391_v14  ;;  %v2010_v7 = vmul.f32 %v9387_v27, %v2008_v13  ;;  %v9397_v13 = vld [vmem:[#allocation27_spill] sm:$0xff] }
0x1422   :  { %2165 = vbcast.lane.b32.xlu1 %v2159_v60, 264 }
0x1423   :  { %2646 = vrot.lane.b32.xlu0 %v2644_v34, %s6504_s2 }
0x1425   :  { %v2652_v57 = vpop.permute.xlu0 %2651 }
0x1426   :  { %v2654_v39 = vmul.f32 %v2652_v57, %v9393_v18  ;;  %2184 = vbcast.lane.b32.xlu1 %v2178_v42, 264 }
0x1428   :  { %2656 = vrot.lane.b32.xlu0 %v2654_v39, %s6504_s2 }
0x142a   :  { %v2662_v12 = vpop.permute.xlu0 %2661 }
0x142b   :  { %v2664_v49 = vmul.f32 %v2662_v12, %v9395_v23  ;;  %v2123_v12 = vrot.slane %v9387_v27, %v9392_v28 }
0x142d   :  { %2666 = vrot.lane.b32.xlu0 %v2664_v49, %s6504_s2  ;;  %v2103_v49 = vrot.slane %v9387_v27, %v9390_v35 }
0x142e   :  { %v2017_v37 = vpop.permute.xlu0 %2016 }
0x142f   :  { %v7678_v34 = vadd.f32 %v2017_v37, %v2010_v7 }
0x1431   :  { %9396 = vst [vmem:[#allocation49_spill] sm:$0xff] %v7678_v34  ;;  %2161 = vbcast.lane.b32.xlu0 %v2159_v60, 256  ;;  %v2239_v52 = vrot.slane %v7678_v34, %v9390_v35  ;;  %v2258_v39 = vrot.slane %v7678_v34, %v9392_v28 }
0x1433   :  { %2245 = vbcast.lane.b32.xlu1 %v2239_v52, 264 }
0x1435   :  { %2180 = vbcast.lane.b32.xlu0 %v2178_v42, 256 }
0x1437   :  { %2264 = vbcast.lane.b32.xlu1 %v2258_v39, 264 }
0x1439   :  { %2241 = vbcast.lane.b32.xlu0 %v2239_v52, 256 }
0x143b   :  { %2188 = vbcast.lane.b32.xlu1 %v2178_v42, 272 }
0x143d   :  { %2260 = vbcast.lane.b32.xlu0 %v2258_v39, 256 }
0x143f   :  { %2268 = vbcast.lane.b32.xlu1 %v2258_v39, 272 }
0x1441   :  { %2169 = vbcast.lane.b32.xlu0 %v2159_v60, 272 }
0x1443   :  { %2110 = vbcast.lane.b32.xlu1 %v2103_v49, 328 }
0x1445   :  { %2249 = vbcast.lane.b32.xlu0 %v2239_v52, 272 }
0x1447   :  { %2130 = vbcast.lane.b32.xlu1 %v2123_v12, 328 }
0x1449   :  { %2106 = vbcast.lane.b32.xlu0 %v2103_v49, 320 }
0x144b   :  { %2192 = vbcast.lane.b32.xlu1 %v2178_v42, 280  ;;  %v9398_v42 = vld [vmem:[#allocation28_spill] sm:$0xff] }
0x144d   :  { %2126 = vbcast.lane.b32.xlu0 %v2123_v12, 320 }
0x144f   :  { %2272 = vbcast.lane.b32.xlu1 %v2258_v39, 280 }
0x1451   :  { %2173 = vbcast.lane.b32.xlu0 %v2159_v60, 280 }
0x1453   :  { %2134 = vbcast.lane.b32.xlu1 %v2123_v12, 336 }
0x1455   :  { %2253 = vbcast.lane.b32.xlu0 %v2239_v52, 280  ;;  %v9399_v52 = vld [vmem:[#allocation29_spill] sm:$0xff] }
0x1457   :  { %2138 = vbcast.lane.b32.xlu1 %v2123_v12, 344 }
0x1459   :  { %2114 = vbcast.lane.b32.xlu0 %v2103_v49, 336 }
0x145d   :  { %2118 = vbcast.lane.b32.xlu0 %v2103_v49, 344 }
0x1490   :  { %v2637_v57 = vpop.permute.xlu1 %2636 }
0x1491   :  { %v2639_v7 = vadd.f32 %v2637_v57, %v9397_v13 }
0x1494   :  { %v2166_v49 = vpop.permute.xlu1 %2165 }
0x1495   :  { %v2647_v37 = vpop.permute.xlu0 %2646 }
0x1496   :  { %v2649_v63 = vadd.f32 %v2647_v37, %v2639_v7 }
0x149a   :  { %v2657_v35 = vpop.permute.xlu0 %2656 }
0x149b   :  { %v2659_v44 = vadd.f32 %v2657_v35, %v2649_v63  ;;  %v2185_v63 = vpop.permute.xlu1 %2184 }
0x149f   :  { %v2667_v23 = vpop.permute.xlu0 %2666 }
0x14a0   :  { %v2669_v27 = vadd.f32 %v2667_v23, %v2659_v44 }
0x14a2   :  { %v2694_v28 = vrot.slane %v2669_v27, %v6627_v17  ;;  %v2714_v60 = vrot.slane %v2669_v27, %v9398_v42 }
0x14a3   :  { %v2162_v39 = vpop.permute.xlu0 %2161 }
0x14a4   :  { %2701 = vbcast.lane.b32.xlu1 %v2694_v28, 300  ;;  %2697 = vbcast.lane.b32.xlu0 %v2694_v28, 292 }
0x14a5   :  { %v2246_v35 = vpop.permute.xlu1 %2245 }
0x14a7   :  { %v2181_v12 = vpop.permute.xlu0 %2180 }
0x14a8   :  { %2721 = vbcast.lane.b32.xlu1 %v2714_v60, 300  ;;  %2717 = vbcast.lane.b32.xlu0 %v2714_v60, 292 }
0x14a9   :  { %v2265_v23 = vpop.permute.xlu1 %2264 }
0x14aa   :  { %v2279_v58 = vmul.f32 %v2265_v23, %v9407_v10 }
0x14ab   :  { %v2242_v44 = vpop.permute.xlu0 %2241 }
0x14ac   :  { %2725 = vbcast.lane.b32.xlu1 %v2714_v60, 308  ;;  %2705 = vbcast.lane.b32.xlu0 %v2694_v28, 308 }
0x14ad   :  { %v2189_v57 = vpop.permute.xlu1 %2188 }
0x14af   :  { %v2261_v37 = vpop.permute.xlu0 %2260 }
0x14b0   :  { %2729 = vbcast.lane.b32.xlu1 %v2714_v60, 316  ;;  %2709 = vbcast.lane.b32.xlu0 %v2694_v28, 316  ;;  %v9400_v28 = vld [vmem:[#allocation23_spill] sm:$0xff] }
0x14b1   :  { %v2269_v13 = vpop.permute.xlu1 %2268  ;;  %v2200_v60 = vrot.slane %v9394_v15, %v9400_v28  ;;  %v3046_v21 = vrot.slane %v3039_v26, %v9400_v28  ;;  %v2274_v26 = vmul.f32 %v2242_v44, %v9401_v32 }
0x14b3   :  { %v2170_v7 = vpop.permute.xlu0 %2169  ;;  %v2201_v1 = vcombine.high %v2200_v60, %v2200_v60  ;;  %v2208_v40 = vrot.slane %v2200_v60, %v9400_v28  ;;  %v3047_v4 = vcombine.high %v3046_v21, %v3046_v21  ;;  %v3054_v15 = vrot.slane %v3046_v21, %v9400_v28 }
0x14b4   :  { %v2275_v60 = vmul.f32 %v2246_v35, %v9401_v32  ;;  %v9405_v21 = vclamps-f32 %v7482_v22, 5.0  ;;  %v2280_v22 = vmul.f32 %v2269_v13, %v9407_v10 }
0x14b5   :  { %v2111_v42 = vpop.permute.xlu1 %2110  ;;  %v2215_v54 = vrot.slane %v2201_v1, %v9400_v28  ;;  %v2216_v51 = vcombine.high %v2208_v40, %v2208_v40  ;;  %v7705_v16 = vrot.slane %v3047_v4, %v9400_v28  ;;  %v2684_v40 = vmul.f32 %v9403_v5, %v9402_v46 }
0x14b6   :  { %v3062_v4 = vcombine.high %v3054_v15, %v3054_v15  ;;  %v2141_v28 = vsub.f32 1.0, %v2111_v42  ;;  %v9408_v15 = vclamps-f32 %v7502_v33, 5.0 }
0x14b7   :  { %v2250_v27 = vpop.permute.xlu0 %2249  ;;  %v2217_v62 = vcombine.high %v2215_v54, %v2215_v54  ;;  %v2221_v47 = vrot.slane %v2216_v51, %v6627_v17  ;;  %v9404_v54 = vld [vmem:[#allocation56_spill] sm:$0xff] }
0x14b8   :  { %v2683_v30 = vmul.f32 %v9405_v21, %v9404_v54  ;;  %v2687_v21 = vmul.f32 %v9408_v15, %v9404_v54  ;;  %v7734_v8 = vrot.slane %v3062_v4, %v6627_v17  ;;  %v2276_v0 = vmul.f32 %v2250_v27, %v9401_v32 }
0x14b9   :  { %v2131_v18 = vpop.permute.xlu1 %2130  ;;  %v2225_v29 = vrot.slane %v2217_v62, %v6627_v17  ;;  %v9406_v62 = vclamps-f32 %v7505_v38, 5.0  ;;  %v2229_v35 = vmul.f32 %v2221_v47, %v2166_v49  ;;  %v2228_v44 = vmul.f32 %v2221_v47, %v2162_v39 }
0x14ba   :  { %v2145_v5 = vsub.f32 1.0, %v2131_v18  ;;  %v2149_v39 = vmul.f32 %v2141_v28, %v7473_v50  ;;  %9409 = vst [vmem:[#allocation64_spill] sm:$0xff] %v7734_v8 }
0x14bb   :  { %v2107_v34 = vpop.permute.xlu0 %2106  ;;  %v7720_v51 = vmul.f32 %v9406_v62, %v9402_v46  ;;  %v2233_v56 = vmul.f32 %v2225_v29, %v2185_v63  ;;  %v2283_v38 = vsub.f32 %v2229_v35, %v2275_v60  ;;  %v2232_v62 = vmul.f32 %v2225_v29, %v2181_v12 }
0x14bc   :  { %v2140_v43 = vsub.f32 1.0, %v2107_v34  ;;  %v2282_v46 = vsub.f32 %v2228_v44, %v2274_v26  ;;  %v2234_v49 = vmul.f32 %v2225_v29, %v2189_v57  ;;  %v2153_v12 = vmul.f32 %v2145_v5, %v7488_v55 }
0x14bd   :  { %v2193_v9 = vpop.permute.xlu1 %2192  ;;  %v2287_v13 = vsub.f32 %v2233_v56, %v2279_v58  ;;  %v2291_v60 = vmul.f32 %v2283_v38, %v2111_v42  ;;  %v2230_v26 = vmul.f32 %v2221_v47, %v2170_v7 }
0x14be   :  { %v2148_v23 = vmul.f32 %v2140_v43, %v7471_v11  ;;  %v2288_v63 = vsub.f32 %v2234_v49, %v2280_v22  ;;  %v2290_v57 = vmul.f32 %v2282_v46, %v2107_v34 }
0x14bf   :  { %v7692_v14 = vpop.permute.xlu0 %2126  ;;  %v2295_v50 = vmul.f32 %v2287_v13, %v2131_v18  ;;  %v7740_v35 = vadd.f32 %v2291_v60, %v2149_v39  ;;  %v2284_v56 = vsub.f32 %v2230_v26, %v2276_v0 }
0x14c0   :  { %v7742_v58 = vadd.f32 %v2290_v57, %v2148_v23 }
0x14c1   :  { %v2273_v24 = vpop.permute.xlu1 %2272 }
0x14c2   :  { %v2281_v4 = vmul.f32 %v2273_v24, %v9407_v10 }
0x14c3   :  { %v7698_v25 = vpop.permute.xlu0 %2173 }
0x14c5   :  { %v2135_v36 = vpop.permute.xlu1 %2134 }
0x14c6   :  { %v2146_v28 = vsub.f32 1.0, %v2135_v36 }
0x14c7   :  { %v2254_v48 = vpop.permute.xlu0 %2253 }
0x14c8   :  { %v2277_v27 = vmul.f32 %v2254_v48, %v9401_v32  ;;  %v2154_v24 = vmul.f32 %v2146_v28, %v7499_v2 }
0x14c9   :  { %v2139_v33 = vpop.permute.xlu1 %2138 }
0x14ca   :  { %v2147_v42 = vsub.f32 1.0, %v2139_v33 }
0x14cb   :  { %v2115_v1 = vpop.permute.xlu0 %2114 }
0x14cc   :  { %v2142_v11 = vsub.f32 1.0, %v2115_v1  ;;  %v2155_v22 = vmul.f32 %v2147_v42, %v7527_v59  ;;  %v2292_v5 = vmul.f32 %v2284_v56, %v2115_v1  ;;  %v9414_v56 = vclamps-f32 %v7554_v61, 5.0 }
0x14ce   :  { %v2150_v0 = vmul.f32 %v2142_v11, %v7497_v6 }
0x14cf   :  { %218 = vadd.xlane.f32.xlu0 %v9399_v52  ;;  %v2278_v52 = vmul.f32 %v2261_v37, %v9407_v10  ;;  %v2144_v37 = vsub.f32 1.0, %v7692_v14  ;;  %v2119_v15 = vpop.permute.xlu0 %2118  ;;  %v2231_v10 = vmul.f32 %v2221_v47, %v7698_v25 }
0x14d1   :  { %v2286_v41 = vsub.f32 %v2232_v62, %v2278_v52  ;;  %v2152_v43 = vmul.f32 %v2144_v37, %v7486_v53  ;;  %v2235_v52 = vmul.f32 %v2225_v29, %v2193_v9  ;;  %v7748_v53 = vadd.f32 %v2295_v50, %v2153_v12 }
0x14d2   :  { %v2143_v29 = vsub.f32 1.0, %v2119_v15 }
0x14d3   :  { %v2294_v46 = vmul.f32 %v2286_v41, %v7692_v14  ;;  %v2289_v9 = vsub.f32 %v2235_v52, %v2281_v4  ;;  %v2296_v41 = vmul.f32 %v2288_v63, %v2135_v36  ;;  %v2285_v14 = vsub.f32 %v2231_v10, %v2277_v27 }
0x14d4   :  { %v7767_v36 = vadd.f32 %v2292_v5, %v2150_v0  ;;  %v9413_v63 = vclamps-f32 %v7530_v45, 5.0  ;;  %v2690_v52 = vmul.f32 %v9414_v56, %v9295_v20 }
0x14d5   :  { %v7757_v7 = vadd.f32 %v2294_v46, %v2152_v43  ;;  %v7765_v49 = vadd.f32 %v2296_v41, %v2154_v24  ;;  %v2293_v13 = vmul.f32 %v2285_v14, %v2119_v15  ;;  %v9415_v46 = vld [vmem:[#allocation62_spill] sm:$0xff] }
0x14d6   :  { %v2685_v60 = vmul.f32 %v9413_v63, %v6930_v3 }
0x1516   :  { %v2702_v44 = vpop.permute.xlu1 %2701  ;;  %v2698_v55 = vpop.permute.xlu0 %2697 }
0x1517   :  { %v2732_v18 = vmul.f32 %v2702_v44, %v7740_v35  ;;  %v2731_v34 = vmul.f32 %v2698_v55, %v7742_v58 }
0x1519   :  { %v7753_v32 = vadd.f32 %v2732_v18, %v2684_v40  ;;  %v7755_v48 = vadd.f32 %v2731_v34, %v2683_v30  ;;  %v2297_v40 = vmul.f32 %v2289_v9, %v2139_v33  ;;  %v2151_v30 = vmul.f32 %v2143_v29, %v7525_v19 }
0x151a   :  { %v2722_v38 = vpop.permute.xlu1 %2721  ;;  %v2718_v62 = vpop.permute.xlu0 %2717  ;;  %v9410_v19 = vcombine.high %v7705_v16, %v7705_v16  ;;  %v9416_v18 = vclamps-f32 %v9415_v46, 5.0 }
0x151b   :  { %v9125_v47 = vclamps-f32 %v7753_v32, 5.0  ;;  %v9124_v2 = vclamps-f32 %v7755_v48, 5.0  ;;  %v2736_v6 = vmul.f32 %v2722_v38, %v7748_v53  ;;  %v2735_v25 = vmul.f32 %v2718_v62, %v7757_v7 }
0x151c   :  { %v7784_v37 = vrot.slane %v9410_v19, %v6627_v17  ;;  %v7795_v16 = vadd.f32 %v2297_v40, %v2155_v22  ;;  %v7800_v11 = vadd.f32 %v2293_v13, %v2151_v30  ;;  %v2686_v34 = vmul.f32 %v9416_v18, %v9295_v20  ;;  %v9419_v40 = vld [vmem:[#allocation65_spill] sm:$0xff] }
0x151d   :  { %v7770_v59 = vadd.f32 %v2736_v6, %v7720_v51  ;;  %v7772_v1 = vadd.f32 %v2735_v25, %v2687_v21  ;;  %v3075_v39 = vmul.f32 %v9125_v47, %v7734_v8  ;;  %v3074_v23 = vmul.f32 %v9124_v2, %v7734_v8  ;;  %v9418_v25 = vld [vmem:[#allocation30_spill] sm:$0xff]  ;;  %v9456_v2 = vld [vmem:[#allocation52_spill] sm:$0xff] }
0x151e   :  { %9411 = vst [vmem:[#allocation68_spill] sm:$0xff] %v7784_v37  ;;  %v9412_v51 = vclamps-f32 %v7532_v31, 5.0  ;;  %v2726_v33 = vpop.permute.xlu1 %2725  ;;  %v2706_v12 = vpop.permute.xlu0 %2705  ;;  %v7842_v30 = vadd.f32 %v9419_v40, %v9418_v25 }
0x151f   :  { %v9122_v57 = vclamps-f32 %v7772_v1, 5.0  ;;  %v2737_v26 = vmul.f32 %v2726_v33, %v7765_v49  ;;  %v2733_v50 = vmul.f32 %v2706_v12, %v7767_v36  ;;  %v9123_v15 = vclamps-f32 %v7770_v59, 5.0  ;;  %v9420_v12 = vld [vmem:[#allocation29_spill] sm:$0xff] }
0x1520   :  { %v2689_v21 = vmul.f32 %v9412_v51, %v6930_v3  ;;  %v3085_v28 = vsel %vm278_vm2, %v3075_v39, 0.0  ;;  %v3082_v31 = vsel %vm278_vm2, %v3074_v23, 0.0  ;;  %v3014_v13 = vsel %vm322_vm3, %v7842_v30, 0.0 }
0x1521   :  { %v7804_v45 = vadd.f32 %v2733_v50, %v2685_v60  ;;  %3086 = vadd.xlane.f32.xlu0 %v3085_v28  ;;  %3083 = vadd.xlane.f32.xlu1 %v3082_v31  ;;  %v3078_v4 = vmul.f32 %v9122_v57, %v7784_v37  ;;  %v3079_v61 = vmul.f32 %v9123_v15, %v7784_v37 }
0x1522   :  { %v7802_v43 = vadd.f32 %v2737_v26, %v2689_v21  ;;  %v2730_v27 = vpop.permute.xlu1 %2729  ;;  %v2710_v42 = vpop.permute.xlu0 %2709  ;;  %v3018_v21 = vmul.f32 %v7842_v30, %v7842_v30 }
0x1523   :  { %v9120_v44 = vclamps-f32 %v7804_v45, 5.0  ;;  %v2738_v55 = vmul.f32 %v2730_v27, %v7795_v16  ;;  %v2734_v10 = vmul.f32 %v2710_v42, %v7800_v11  ;;  %v3094_v0 = vsel %vm278_vm2, %v3078_v4, 0.0  ;;  %v9421_v4 = vld [vmem:[#allocation32_spill] sm:$0xff] }
0x1524   :  { %v9121_v24 = vclamps-f32 %v7802_v43, 5.0  ;;  %v3097_v38 = vsel %vm278_vm2, %v3079_v61, 0.0  ;;  %v3019_v33 = vsel %vm322_vm3, %v3018_v21, 0.0 }
0x1525   :  { %v7823_v29 = vadd.f32 %v2738_v55, %v2690_v52  ;;  %v7825_v9 = vadd.f32 %v2734_v10, %v2686_v34  ;;  %3095 = vadd.xlane.f32.xlu0 %v3094_v0  ;;  %v3076_v41 = vmul.f32 %v9120_v44, %v7734_v8  ;;  %v9422_v52 = vld [vmem:[#allocation31_spill] sm:$0xff]  ;;  %v9423_v10 = vld [vmem:[#allocation33_spill] sm:$0xff]  ;;  %v9450_v44 = vmov 2  }
0x1526   :  { %v3080_v62 = vmul.f32 %v9121_v24, %v7784_v37  ;;  %v9452_v24 = vld [vmem:[#allocation71_spill] sm:$0xff] }
0x1527   :  { %9417 = vst [vmem:[#allocation69_spill] sm:$0xff] %v7825_v9  ;;  %v9118_v14 = vclamps-f32 %v7825_v9, 5.0  ;;  %v3088_v22 = vsel %vm278_vm2, %v3076_v41, 0.0  ;;  %v9119_v5 = vclamps-f32 %v7823_v29, 5.0 }
0x1528   :  { %3089 = vadd.xlane.f32.xlu1 %v3088_v22  ;;  %v3100_v23 = vsel %vm278_vm2, %v3080_v62, 0.0 }
0x1529   :  { %3098 = vadd.xlane.f32.xlu0 %v3097_v38  ;;  %v3077_v6 = vmul.f32 %v9118_v14, %v7734_v8  ;;  %v3081_v19 = vmul.f32 %v9119_v5, %v7784_v37  ;;  %v9424_v38 = vld [vmem:[#allocation34_spill] sm:$0xff]  ;;  %v9449_v5 = vmov 1   ;;  %v9459_v8 = vld [vmem:[#allocation53_spill] sm:$0xff] }
0x152a   :  { %v9457_v37 = vld [vmem:[#allocation22_spill] sm:$0xff] }
0x152b   :  { %v3091_v39 = vsel %vm278_vm2, %v3077_v6, 0.0  ;;  %v3103_v51 = vsel %vm278_vm2, %v3081_v19, 0.0 }
0x152c   :  { %3092 = vadd.xlane.f32.xlu1 %v3091_v39 }
0x152d   :  { %3101 = vadd.xlane.f32.xlu0 %v3100_v23 }
0x1530   :  { %3015 = vadd.xlane.f32.xlu1 %v3014_v13 }
0x1531   :  { %3104 = vadd.xlane.f32.xlu0 %v3103_v51 }
0x1535   :  { %3020 = vadd.xlane.f32.xlu0 %v3019_v33 }
0x1558   :  { %v219_v63 = vpop.xlane.xlu0 %218 }
0x1559   :  { %v222_v60 = vmul.f32 0.0078125, %v219_v63 }
0x155b   :  { %v224_v26 = vsub.f32 %v9420_v12, %v222_v60 }
0x155d   :  { %v226_v50 = vmul.f32 %v224_v26, %v224_v26 }
0x155f   :  { %229 = vadd.xlane.f32.xlu1 %v226_v50 }
0x15aa   :  { %v3084_v28 = vpop.xlane.xlu1 %3083  ;;  %v3087_v31 = vpop.xlane.xlu0 %3086 }
0x15ab   :  { %v3106_v56 = vmul.f32 %v3084_v28, %v9421_v4  ;;  %v3107_v27 = vmul.f32 %v3087_v31, %v9422_v52 }
0x15ad   :  { %3123 = vperm.xlu0 %6205, %v3106_v56   ;;  %3126 = vperm.xlu1 %6197, %v3107_v27  }
0x15ae   :  { %v3096_v42 = vpop.xlane.xlu0 %3095 }
0x15af   :  { %v3110_v55 = vmul.f32 %v3096_v42, %v9421_v4  ;;  %v9471_v4 = vld [vmem:[#allocation59_spill] sm:$0xff] }
0x15b1   :  { %3135 = vperm.xlu1 %6197, %v3110_v55   ;;  %v3090_v34 = vpop.xlane.xlu1 %3089 }
0x15b2   :  { %v3099_v46 = vpop.xlane.xlu0 %3098  ;;  %v3108_v0 = vmul.f32 %v3090_v34, %v9423_v10 }
0x15b3   :  { %v3111_v18 = vmul.f32 %v3099_v46, %v9422_v52 }
0x15b5   :  { %3138 = vperm.xlu1 %6197, %v3111_v18   ;;  %v3093_v22 = vpop.xlane.xlu1 %3092 }
0x15b6   :  { %v3102_v61 = vpop.xlane.xlu0 %3101  ;;  %v3109_v62 = vmul.f32 %v3093_v22, %v9424_v38 }
0x15b7   :  { %v3112_v41 = vmul.f32 %v3102_v61, %v9423_v10 }
0x15b9   :  { %3129 = vperm.xlu1 %6197, %v3108_v0   ;;  %v3016_v39 = vpop.xlane.xlu1 %3015 }
0x15ba   :  { %v3105_v6 = vpop.xlane.xlu0 %3104  ;;  %v3017_v19 = vmul.f32 0.0078125, %v3016_v39  ;;  %v9427_v39 = vld [vmem:[#allocation41_spill] sm:$0xff] }
0x15bb   :  { %v3113_v40 = vmul.f32 %v3105_v6, %v9424_v38  ;;  %v9426_v6 = vld [vmem:[#allocation40_spill] sm:$0xff] }
0x15bc   :  { %v3023_v51 = vmul.f32 %v3017_v19, %v3017_v19  ;;  %v3026_v46 = vsub.f32 %v7842_v30, %v3017_v19 }
0x15bd   :  { %3141 = vperm.xlu1 %6197, %v3112_v41   ;;  %v9425_v41 = vld [vmem:[#allocation45_spill] sm:$0xff] }
0x15be   :  { %v3021_v23 = vpop.xlane.xlu0 %3020 }
0x15bf   :  { %v3022_v13 = vmul.f32 0.0078125, %v3021_v23 }
0x15c1   :  { %3132 = vperm.xlu1 %6197, %v3109_v62   ;;  %v3024_v33 = vsub.f32 %v3022_v13, %v3023_v51  ;;  %v9428_v51 = vld [vmem:[#allocation42_spill] sm:$0xff] }
0x15c3   :  { %v3025_v60 = vmax.f32 %v3024_v33, 0.0  ;;  %v9429_v33 = vld [vmem:[#allocation43_spill] sm:$0xff] }
0x15c5   :  { %3144 = vperm.xlu1 %6197, %v3113_v40   ;;  %v3027_v50 = vadd.f32 1e-05, %v3025_v60 }
0x15e8   :  { %v230_v21 = vpop.xlane.xlu1 %229 }
0x15e9   :  { %v232_v63 = vmul.f32 0.0078125, %v230_v21 }
0x15eb   :  { %v234_v12 = vadd.f32 1e-05, %v232_v63 }
0x15ed   :  { %6263 = vrsqrt.f32 %v234_v12  ;;  %v9431_v12 = vld [vmem:[#allocation46_spill] sm:$0xff] }
0x15ee   :  { %6265 = vrsqrt.f32 %v3027_v50 }
0x15fa   :  { %v6264_v27 = vpop.eup %6263 }
0x15fb   :  { %v6266_v55 = vpop.eup %6265  ;;  %v238_v18 = vmul.f32 %v6264_v27, %v224_v26  ;;  %v9430_v26 = vld [vmem:[#allocation44_spill] sm:$0xff] }
0x15fc   :  { %v3029_v0 = vmul.f32 %v6266_v55, %v3026_v46  ;;  %v9433_v46 = vld [vmem:[#allocation47_spill] sm:$0xff] }
0x15fd   :  { %v244_v22 = vmul.f32 %v9425_v41, %v238_v18 }
0x15fe   :  { %v3030_v21 = vmul.f32 %v3029_v0, %v9428_v51 }
0x15ff   :  { %v7875_v50 = vadd.f32 %v9431_v12, %v244_v22 }
0x1600   :  { %v3031_v18 = vadd.f32 %v3030_v21, %v9433_v46  ;;  %v9468_v46 = vclamps-f32 %v7753_v32, 5.0 }
0x1601   :  { %9432 = vst [vmem:[#allocation70_spill] sm:$0xff] %v7875_v50 }
0x1628   :  { %v3127_v28 = vpop.permute.xlu1 %3126  ;;  %v3124_v61 = vpop.permute.xlu0 %3123 }
0x1629   :  { %v3153_v40 = vrot.slane %v3127_v28, %v9426_v6  ;;  %v3149_v23 = vrot.slane %v3124_v61, %v9427_v39  ;;  %v3032_v61 = vadd.f32 %v3031_v18, %v7875_v50  ;;  %v9466_v50 = vld [vmem:[#allocation66_spill] sm:$0xff] }
0x162b   :  { %v3154_v28 = vsel %vm491_vm4, %v3153_v40, %v3149_v23 }
0x162c   :  { %v3136_v31 = vpop.permute.xlu1 %3135 }
0x162d   :  { %v3168_v30 = vrot.slane %v3136_v31, %v9427_v39  ;;  %v9467_v39 = vld [vmem:[#allocation55_spill] sm:$0xff] }
0x162e   :  { %v3343_v51 = vmul.f32 %v9468_v46, %v9467_v39 }
0x1630   :  { %v3139_v56 = vpop.permute.xlu1 %3138 }
0x1631   :  { %v3172_v13 = vrot.slane %v3139_v56, %v9426_v6 }
0x1633   :  { %v3173_v55 = vsel %vm491_vm4, %v3172_v13, %v3168_v30  ;;  %v9436_v30 = vld [vmem:[#allocation48_spill] sm:$0xff] }
0x1634   :  { %v3130_v42 = vpop.permute.xlu1 %3129 }
0x1635   :  { %v3158_v63 = vrot.slane %v3130_v42, %v9429_v33 }
0x1637   :  { %v3159_v42 = vsel %vm498_vm5, %v3158_v63, %v3154_v28 }
0x1638   :  { %v3142_v34 = vpop.permute.xlu1 %3141 }
0x1639   :  { %v3177_v60 = vrot.slane %v3142_v34, %v9429_v33 }
0x163b   :  { %v3178_v34 = vsel %vm498_vm5, %v3177_v60, %v3173_v55  ;;  %v9435_v60 = vld [vmem:[#allocation57_spill] sm:$0xff] }
0x163c   :  { %v3133_v62 = vpop.permute.xlu1 %3132 }
0x163d   :  { %v3163_v19 = vrot.slane %v3133_v62, %v9430_v26  ;;  %v5872_v62 = vmul.f32 -1.442695, %v3032_v61 }
0x163f   :  { %v3164_v31 = vsel %vm505_vm6, %v3163_v19, %v3159_v42  ;;  %6267 = vpow2.f32 %v5872_v62  ;;  %v3188_v19 = vrot.slane %v9436_v30, 6  ;;  %v9441_v62 = vmov 0.0   ;;  %v9446_v30 = vld [vmem:[#allocation25_spill] sm:$0xff] }
0x1640   :  { %v3145_v27 = vpop.permute.xlu1 %3144 }
0x1641   :  { %v3182_v56 = vrot.slane %v3145_v27, %v9430_v26 }
0x1643   :  { %v3183_v0 = vsel %vm505_vm6, %v3182_v56, %v3178_v34 }
0x1644   :  { %v3184_v41 = vsel %vm526_vm7, %v3183_v0, %v3164_v31 }
0x1645   :  { %v3186_v22 = vadd.f32 %v3184_v41, %v3032_v61 }
0x1647   :  { %3192 = vrot.lane.b32.xlu1 %v3186_v22, %s6499_s7  ;;  %v7909_v22 = vld [vmem:[#allocation8 + $0x48] sm:$0xff] }
0x1648   :  { %9440 = vst [vmem:[#allocation58_spill] sm:$0xff] %v7909_v22 }
0x164c   :  { %v6268_v40 = vpop.eup %6267 }
0x164d   :  { %v3036_v23 = vadd.f32 1.0, %v6268_v40  ;;  %v7916_v40 = vld [vmem:[#allocation8 + $0x40] sm:$0xff] }
0x164e   :  { %9442 = vst [vmem:[#allocation62_spill] sm:$0xff] %v7916_v40 }
0x164f   :  { %6269 = vrcp.f32 %v3036_v23  ;;  %v9443_v23 = vld [vmem:[#allocation24_spill] sm:$0xff] }
0x165c   :  { %v7888_v13 = vpop.eup %6269 }
0x165d   :  { %9434 = vst [vmem:[#allocation61_spill] sm:$0xff] %v7888_v13  ;;  %v3190_v12 = vmul.f32 %v7888_v13, %v3188_v19 }
0x16b9   :  { %v3193_v21 = vpop.permute.xlu1 %3192 }
0x16ba   :  { %v3195_v63 = vmul.f32 %v7888_v13, %v3193_v21  ;;  %v7922_v21 = vld [vmem:[#allocation8 + $0x38] sm:$0xff]  ;;  %v9461_v13 = vld [vmem:[#allocation54_spill] sm:$0xff] }
0x16bb   :  { %9444 = vst [vmem:[#allocation65_spill] sm:$0xff] %v7922_v21 }
0x16bc   :  { %3197 = vrot.lane.b32.xlu0 %v3195_v63, %s6500_s20  ;;  %v7928_v63 = vld [vmem:[#allocation8 + $0x30] sm:$0xff] }
0x16bd   :  { %9445 = vst [vmem:[#allocation29_spill] sm:$0xff] %v7928_v63 }
0x16c0   :  { %2674 = vrot.lane.b32.xlu0 %v9435_v60, %s6505_s23 }
0x172e   :  { %v3198_v27 = vpop.permute.xlu0 %3197 }
0x172f   :  { %v7896_v28 = vadd.f32 %v3198_v27, %v3190_v12  ;;  %v9447_v12 = vld [vmem:[#allocation50_spill] sm:$0xff] }
0x1731   :  { %9437 = vst [vmem:[#allocation63_spill] sm:$0xff] %v7896_v28  ;;  %v5873_v55 = vmul.f32 -1.442695, %v7896_v28 }
0x1733   :  { %6271 = vpow2.f32 %v5873_v55 }
0x1740   :  { %v6272_v56 = vpop.eup %6271 }
0x1741   :  { %v3204_v18 = vadd.f32 1.0, %v6272_v56 }
0x1743   :  { %6273 = vrcp.f32 %v3204_v18 }
0x1750   :  { %v6274_v42 = vpop.eup %6273 }
0x1751   :  { %v3207_v34 = vmul.f32 %v6274_v42, %v7896_v28 }
0x1753   :  { %v3208_v31 = vsub.f32 %v7896_v28, %v3207_v34 }
0x1755   :  { %v7903_v61 = vsel %vm253_vm8, %v3207_v34, %v3208_v31 }
0x1756   :  { %9439 = vst [vmem:[#allocation67_spill] sm:$0xff] %v7903_v61  ;;  %6095 = vmatmul.mubr.msk.f32.vlgmr.msra.gmra.mxu0 %vm278_vm2, %v7903_v61  ;;  %v3629_v41 = vpack.c.bf16 %v7903_v61, %v7903_v61 }
0x1757   :  { %6106 = vmatpush3.msra.mxu0 %v7909_v22  ;;  %6113 = vmatprep.mubr.msk.f32.mxu0 %vm6496_vm0, %v9441_v62 }
0x1758   :  { %6102 = vmatmul.mubr.msk.bf16.vlgmr.msra.gmra.mxu1 %vm278_vm2, %v3629_v41  ;;  %6107 = vmatprep.subr.mxu0 %v9441_v62 }
0x1759   :  { %6108 = vmatpush3.msra.mxu0 %v7916_v40  ;;  %6117 = vmatpush3.bf16.msra.mxu1 %v9443_v23 }
0x175a   :  { %6109 = vmatprep.subr.mxu0 %v9441_v62  ;;  %6118 = vmatprep.subr.bf16.mxu1 %v9441_v62 }
0x175b   :  { %6110 = vmatpush3.msra.mxu0 %v7922_v21  ;;  %6120 = vmatprep.mubr.msk.bf16.mxu1 %vm6496_vm0, %v9441_v62 }
0x175c   :  { %6111 = vmatprep.subr.mxu0 %v9441_v62 }
0x175d   :  { %6112 = vmatpush3.msra.mxu0 %v7928_v63  ;;  %6119 = vmatpush3.bf16.msra.mxu1 %v9446_v30 }
0x175e   :  { %6124 = vmatprep.subr.mxu0 %v9441_v62  ;;  %6135 = vmatprep.subr.bf16.mxu1 %v9441_v62 }
0x1816   :  { %v3279_v19 = vpop.f32.mrf.mxu0 }
0x1817   :  { %v3280_v27 = vadd.f32 %v3279_v19, %v9447_v12  ;;  %v2675_v19 = vpop.permute.xlu0 %2674 }
0x1818   :  { %v6096_v55 = vpop.f32.mrf.mxu0  ;;  %v7935_v56 = vpop.f32.mrf.mxu1  ;;  %v2677_v57 = vmul.f32 %v9452_v24, %v2675_v19 }
0x1819   :  { %9448 = vst [vmem:[#allocation45_spill] sm:$0xff] %v7935_v56  ;;  %v3283_v18 = vsel %vm626_vm9, %v3280_v27, -inf  ;;  %v9451_v55 = vmov 3  }
0x181a   :  { %v6103_v42 = vpop.f32.mrf.mxu1  ;;  %3284 = vmax.xlane.f32.xlu1 %v3283_v18  ;;  %v9453_v18 = vmov 0  }
0x181c   :  { %v3670_v34 = vpop.f32.mrf.mxu1 }
0x181d   :  { %v9454_v34 = vld [vmem:[#allocation51_spill] sm:$0xff] }
0x181e   :  { %v6104_v31 = vpop.f32.mrf.mxu1 }
0x18a3   :  { %v3285_v41 = vpop.xlane.xlu1 %3284 }
0x18a4   :  { %vm3286_vm7 = vcmp.ge.f32.partialorder %v3280_v27, %v3285_v41  ;;  %v9455_v41 = vld [vmem:[#allocation26_spill] sm:$0xff] }
0x18a5   :  { %v3287_v14 = vsel %vm3286_vm7, %v3280_v27, 0.0  ;;  %v2822_v15 = vrot.slane %v9435_v60, %v9455_v41 }
0x18a6   :  { %3290 = vperm.xlu0 %6205, %v3287_v14  }
0x18aa   :  { %6206 = vset.pattern.permute.xlu0 %v9449_v5 }
0x18ab   :  { %3300 = vperm.xlu0 %6206, %v3287_v14  }
0x18af   :  { %6207 = vset.pattern.permute.xlu0 %v9450_v44 }
0x18b0   :  { %3310 = vperm.xlu0 %6207, %v3287_v14  }
0x18b4   :  { %6208 = vset.pattern.permute.xlu0 %v9451_v55 }
0x18b5   :  { %3320 = vperm.xlu0 %6208, %v3287_v14   ;;  %v7950_v14 = vsub.s32 7, %v9457_v37 }
0x18b7   :  { %9458 = vst [vmem:[#allocation46_spill] sm:$0xff] %v7950_v14 }
0x18b9   :  { %2679 = vrot.lane.b32.xlu0 %v2677_v57, %s6500_s20  ;;  %v2841_v57 = vrot.slane %v9435_v60, %v7950_v14 }
0x18ba   :  { %6209 = vset.pattern.permute.xlu0 %v9453_v18 }
0x1921   :  { %v3291_v42 = vpop.permute.xlu0 %3290 }
0x1922   :  { %v3293_v27 = vmul.f32 %v3291_v42, %v9454_v34 }
0x1924   :  { %3295 = vrot.lane.b32.xlu1 %v3293_v27, %s6504_s2  ;;  %v9460_v27 = vld [vmem:[#allocation49_spill] sm:$0xff] }
0x1925   :  { %v2671_v34 = vrot.slane %v9460_v27, 6 }
0x1926   :  { %v3301_v31 = vpop.permute.xlu0 %3300 }
0x1927   :  { %v3303_v47 = vmul.f32 %v3301_v31, %v9456_v2  ;;  %v2673_v37 = vmul.f32 %v9452_v24, %v2671_v34 }
0x1928   :  { %2828 = vbcast.lane.b32.xlu1 %v2822_v15, 264 }
0x1929   :  { %3305 = vrot.lane.b32.xlu0 %v3303_v47, %s6504_s2 }
0x192b   :  { %v3311_v19 = vpop.permute.xlu0 %3310 }
0x192c   :  { %v3313_v42 = vmul.f32 %v3311_v19, %v9459_v8  ;;  %2847 = vbcast.lane.b32.xlu1 %v2841_v57, 264 }
0x192e   :  { %3315 = vrot.lane.b32.xlu0 %v3313_v42, %s6504_s2 }
0x1930   :  { %v3321_v18 = vpop.permute.xlu0 %3320 }
0x1931   :  { %v3323_v31 = vmul.f32 %v3321_v18, %v9461_v13  ;;  %v2766_v18 = vrot.slane %v9452_v24, %v9455_v41 }
0x1933   :  { %3325 = vrot.lane.b32.xlu0 %v3323_v31, %s6504_s2  ;;  %v9463_v31 = vld [vmem:[#allocation27_spill] sm:$0xff] }
0x1934   :  { %v2680_v2 = vpop.permute.xlu0 %2679 }
0x1935   :  { %v7961_v47 = vadd.f32 %v2680_v2, %v2673_v37  ;;  %v2786_v2 = vrot.slane %v9452_v24, %v7950_v14 }
0x1937   :  { %9462 = vst [vmem:[#allocation57_spill] sm:$0xff] %v7961_v47  ;;  %2824 = vbcast.lane.b32.xlu0 %v2822_v15, 256  ;;  %v2901_v60 = vrot.slane %v7961_v47, %v9455_v41  ;;  %v2920_v19 = vrot.slane %v7961_v47, %v7950_v14 }
0x1939   :  { %2907 = vbcast.lane.b32.xlu1 %v2901_v60, 264 }
0x193b   :  { %2843 = vbcast.lane.b32.xlu0 %v2841_v57, 256 }
0x193d   :  { %2926 = vbcast.lane.b32.xlu1 %v2920_v19, 264 }
0x193f   :  { %2903 = vbcast.lane.b32.xlu0 %v2901_v60, 256 }
0x1941   :  { %2851 = vbcast.lane.b32.xlu1 %v2841_v57, 272 }
0x1943   :  { %2922 = vbcast.lane.b32.xlu0 %v2920_v19, 256 }
0x1945   :  { %2930 = vbcast.lane.b32.xlu1 %v2920_v19, 272 }
0x1947   :  { %2832 = vbcast.lane.b32.xlu0 %v2822_v15, 272 }
0x1949   :  { %2773 = vbcast.lane.b32.xlu1 %v2766_v18, 328 }
0x194b   :  { %2911 = vbcast.lane.b32.xlu0 %v2901_v60, 272 }
0x194d   :  { %2793 = vbcast.lane.b32.xlu1 %v2786_v2, 328 }
0x194f   :  { %2769 = vbcast.lane.b32.xlu0 %v2766_v18, 320 }
0x1951   :  { %2855 = vbcast.lane.b32.xlu1 %v2841_v57, 280  ;;  %v9464_v57 = vld [vmem:[#allocation28_spill] sm:$0xff] }
0x1953   :  { %2789 = vbcast.lane.b32.xlu0 %v2786_v2, 320 }
0x1955   :  { %2934 = vbcast.lane.b32.xlu1 %v2920_v19, 280 }
0x1957   :  { %2836 = vbcast.lane.b32.xlu0 %v2822_v15, 280 }
0x1959   :  { %2797 = vbcast.lane.b32.xlu1 %v2786_v2, 336 }
0x195b   :  { %2915 = vbcast.lane.b32.xlu0 %v2901_v60, 280 }
0x195d   :  { %2801 = vbcast.lane.b32.xlu1 %v2786_v2, 344 }
0x195f   :  { %2777 = vbcast.lane.b32.xlu0 %v2766_v18, 336 }
0x1963   :  { %2781 = vbcast.lane.b32.xlu0 %v2766_v18, 344 }
0x1996   :  { %v3296_v42 = vpop.permute.xlu1 %3295 }
0x1997   :  { %v3298_v37 = vadd.f32 %v3296_v42, %v9463_v31 }
0x199a   :  { %v2829_v19 = vpop.permute.xlu1 %2828 }
0x199b   :  { %v3306_v34 = vpop.permute.xlu0 %3305 }
0x199c   :  { %v3308_v13 = vadd.f32 %v3306_v34, %v3298_v37 }
0x199e   :  { %v2848_v2 = vpop.permute.xlu1 %2847 }
0x19a0   :  { %v3316_v41 = vpop.permute.xlu0 %3315 }
0x19a1   :  { %v3318_v47 = vadd.f32 %v3316_v41, %v3308_v13 }
0x19a5   :  { %v3326_v8 = vpop.permute.xlu0 %3325 }
0x19a6   :  { %v3328_v24 = vadd.f32 %v3326_v8, %v3318_v47 }
0x19a8   :  { %v3353_v14 = vrot.slane %v3328_v24, %v6627_v17  ;;  %v3373_v15 = vrot.slane %v3328_v24, %v9464_v57 }
0x19a9   :  { %v2825_v60 = vpop.permute.xlu0 %2824 }
0x19aa   :  { %3360 = vbcast.lane.b32.xlu1 %v3353_v14, 300  ;;  %3356 = vbcast.lane.b32.xlu0 %v3353_v14, 292 }
0x19ab   :  { %v2908_v34 = vpop.permute.xlu1 %2907 }
0x19ad   :  { %v2844_v18 = vpop.permute.xlu0 %2843 }
0x19ae   :  { %3380 = vbcast.lane.b32.xlu1 %v3373_v15, 300  ;;  %3376 = vbcast.lane.b32.xlu0 %v3373_v15, 292 }
0x19af   :  { %v2927_v41 = vpop.permute.xlu1 %2926 }
0x19b0   :  { %v2941_v52 = vmul.f32 %v2927_v41, %v9471_v4 }
0x19b1   :  { %v2904_v13 = vpop.permute.xlu0 %2903 }
0x19b2   :  { %3384 = vbcast.lane.b32.xlu1 %v3373_v15, 308  ;;  %3364 = vbcast.lane.b32.xlu0 %v3353_v14, 308  ;;  %v2936_v26 = vmul.f32 %v2904_v13, %v9466_v50 }
0x19b3   :  { %v2852_v47 = vpop.permute.xlu1 %2851 }
0x19b5   :  { %v2923_v8 = vpop.permute.xlu0 %2922 }
0x19b6   :  { %3388 = vbcast.lane.b32.xlu1 %v3373_v15, 316  ;;  %3368 = vbcast.lane.b32.xlu0 %v3353_v14, 316  ;;  %v2857_v14 = vcombine.high %v9460_v27, %v9460_v27  ;;  %v9465_v15 = vld [vmem:[#allocation23_spill] sm:$0xff]  ;;  %v2940_v32 = vmul.f32 %v2923_v8, %v9471_v4 }
0x19b7   :  { %v2931_v37 = vpop.permute.xlu1 %2930  ;;  %v3707_v40 = vrot.slane %v7903_v61, %v9465_v15 }
0x19b8   :  { %v2864_v5 = vrot.slane %v2857_v14, %v9465_v15  ;;  %v2937_v14 = vmul.f32 %v2908_v34, %v9466_v50 }
0x19b9   :  { %v2833_v42 = vpop.permute.xlu0 %2832  ;;  %v3708_v0 = vcombine.high %v3707_v40, %v3707_v40 }
0x19ba   :  { %v2865_v63 = vcombine.high %v2864_v5, %v2864_v5  ;;  %v2872_v62 = vrot.slane %v2864_v5, %v9465_v15  ;;  %v9469_v5 = vclamps-f32 %v7755_v48, 5.0  ;;  %v2942_v48 = vmul.f32 %v2931_v37, %v9471_v4 }
0x19bb   :  { %v2774_v55 = vpop.permute.xlu1 %2773  ;;  %v8004_v46 = vrot.slane %v3708_v0, %v9465_v15 }
0x19bc   :  { %v2879_v22 = vrot.slane %v2865_v63, %v9465_v15  ;;  %v2883_v28 = vrot.slane %v2872_v62, %v6627_v17  ;;  %v3342_v61 = vmul.f32 %v9469_v5, %v9404_v54  ;;  %v3715_v63 = vrot.slane %v3707_v40, %v9465_v15 }
0x19bd   :  { %v2912_v31 = vpop.permute.xlu0 %2911  ;;  %v2804_v38 = vsub.f32 1.0, %v2774_v55  ;;  %v9472_v40 = vclamps-f32 %v7772_v1, 5.0 }
0x19be   :  { %v2887_v27 = vrot.slane %v2879_v22, %v6627_v17  ;;  %v9470_v22 = vclamps-f32 %v7770_v59, 5.0  ;;  %v2891_v13 = vmul.f32 %v2883_v28, %v2829_v19  ;;  %v2890_v10 = vmul.f32 %v2883_v28, %v2825_v60 }
0x19bf   :  { %v2794_v57 = vpop.permute.xlu1 %2793  ;;  %v3346_v56 = vmul.f32 %v9472_v40, %v9404_v54  ;;  %v2812_v60 = vmul.f32 %v2804_v38, %v7740_v35  ;;  %v8014_v0 = vrot.slane %v3715_v63, %v6627_v17  ;;  %v2938_v9 = vmul.f32 %v2912_v31, %v9466_v50 }
0x19c0   :  { %v7999_v34 = vmul.f32 %v9470_v22, %v9467_v39  ;;  %v2808_v5 = vsub.f32 1.0, %v2794_v57  ;;  %v2895_v25 = vmul.f32 %v2887_v27, %v2848_v2  ;;  %v2945_v59 = vsub.f32 %v2891_v13, %v2937_v14 }
0x19c1   :  { %v2770_v24 = vpop.permute.xlu0 %2769  ;;  %v2894_v22 = vmul.f32 %v2887_v27, %v2844_v18  ;;  %v2944_v39 = vsub.f32 %v2890_v10, %v2936_v26  ;;  %v2896_v19 = vmul.f32 %v2887_v27, %v2852_v47  ;;  %9473 = vst [vmem:[#allocation48_spill] sm:$0xff] %v8014_v0  ;;  %v2892_v18 = vmul.f32 %v2883_v28, %v2833_v42 }
0x19c2   :  { %v2803_v62 = vsub.f32 1.0, %v2770_v24  ;;  %v2949_v37 = vsub.f32 %v2895_v25, %v2941_v52  ;;  %v2953_v14 = vmul.f32 %v2945_v59, %v2774_v55  ;;  %v2816_v10 = vmul.f32 %v2808_v5, %v7748_v53 }
0x19c3   :  { %v2856_v12 = vpop.permute.xlu1 %2855  ;;  %v2948_v15 = vsub.f32 %v2894_v22, %v2940_v32  ;;  %v2950_v2 = vsub.f32 %v2896_v19, %v2942_v48  ;;  %v2952_v26 = vmul.f32 %v2944_v39, %v2770_v24  ;;  %v2946_v52 = vsub.f32 %v2892_v18, %v2938_v9 }
0x19c4   :  { %v2811_v41 = vmul.f32 %v2803_v62, %v7742_v58  ;;  %v2957_v35 = vmul.f32 %v2949_v37, %v2794_v57  ;;  %v8020_v62 = vadd.f32 %v2953_v14, %v2812_v60  ;;  %v2897_v31 = vmul.f32 %v2887_v27, %v2856_v12 }
0x19c5   :  { %v7974_v44 = vpop.permute.xlu0 %2789  ;;  %v9475_v37 = vclamps-f32 %v7802_v43, 5.0 }
0x19c6   :  { %v2807_v8 = vsub.f32 1.0, %v7974_v44  ;;  %v8022_v25 = vadd.f32 %v2952_v26, %v2811_v41  ;;  %v2956_v39 = vmul.f32 %v2948_v15, %v7974_v44 }
0x19c7   :  { %v2935_v21 = vpop.permute.xlu1 %2934 }
0x19c8   :  { %v2815_v47 = vmul.f32 %v2807_v8, %v7757_v7  ;;  %v2943_v63 = vmul.f32 %v2935_v21, %v9471_v4  ;;  %v8028_v7 = vadd.f32 %v2957_v35, %v2816_v10 }
0x19c9   :  { %v7979_v30 = vpop.permute.xlu0 %2836 }
0x19ca   :  { %v2893_v4 = vmul.f32 %v2883_v28, %v7979_v30  ;;  %v2951_v24 = vsub.f32 %v2897_v31, %v2943_v63  ;;  %v8037_v27 = vadd.f32 %v2956_v39, %v2815_v47  ;;  %v9477_v63 = vclamps-f32 %v7823_v29, 5.0 }
0x19cb   :  { %v2798_v33 = vpop.permute.xlu1 %2797 }
0x19cc   :  { %v2809_v38 = vsub.f32 1.0, %v2798_v33  ;;  %v2958_v44 = vmul.f32 %v2950_v2, %v2798_v33 }
0x19cd   :  { %v2916_v23 = vpop.permute.xlu0 %2915 }
0x19ce   :  { %v2939_v13 = vmul.f32 %v2916_v23, %v9466_v50  ;;  %v2817_v21 = vmul.f32 %v2809_v38, %v7765_v49 }
0x19cf   :  { %v2802_v1 = vpop.permute.xlu1 %2801 }
0x19d0   :  { %v2810_v55 = vsub.f32 1.0, %v2802_v1  ;;  %v2947_v15 = vsub.f32 %v2893_v4, %v2939_v13  ;;  %v2959_v30 = vmul.f32 %v2951_v24, %v2802_v1  ;;  %v8045_v19 = vadd.f32 %v2958_v44, %v2817_v21 }
0x19d1   :  { %v2778_v6 = vpop.permute.xlu0 %2777 }
0x19d2   :  { %v2805_v58 = vsub.f32 1.0, %v2778_v6  ;;  %v2818_v48 = vmul.f32 %v2810_v55, %v7795_v16  ;;  %v2954_v5 = vmul.f32 %v2946_v52, %v2778_v6  ;;  %v3349_v52 = vmul.f32 %v9477_v63, %v9295_v20 }
0x19d4   :  { %v2813_v9 = vmul.f32 %v2805_v58, %v7767_v36  ;;  %v8073_v35 = vadd.f32 %v2959_v30, %v2818_v48 }
0x19d5   :  { %v2782_v40 = vpop.permute.xlu0 %2781 }
0x19d6   :  { %v2806_v12 = vsub.f32 1.0, %v2782_v40  ;;  %v8047_v33 = vadd.f32 %v2954_v5, %v2813_v9  ;;  %v2955_v8 = vmul.f32 %v2947_v15, %v2782_v40 }
0x1a1c   :  { %v3361_v32 = vpop.permute.xlu1 %3360  ;;  %v3357_v53 = vpop.permute.xlu0 %3356 }
0x1a1d   :  { %v3391_v57 = vmul.f32 %v3361_v32, %v8020_v62  ;;  %v3390_v42 = vmul.f32 %v3357_v53, %v8022_v25  ;;  %v9478_v53 = vld [vmem:[#allocation69_spill] sm:$0xff] }
0x1a1e   :  { %v9479_v39 = vclamps-f32 %v9478_v53, 5.0 }
0x1a1f   :  { %v8033_v50 = vadd.f32 %v3391_v57, %v3343_v51  ;;  %v8035_v23 = vadd.f32 %v3390_v42, %v3342_v61  ;;  %v2814_v61 = vmul.f32 %v2806_v12, %v7800_v11  ;;  %v8062_v11 = vrot.slane %v8004_v46, %v6627_v17 }
0x1a20   :  { %v3381_v59 = vpop.permute.xlu1 %3380  ;;  %v3377_v22 = vpop.permute.xlu0 %3376  ;;  %v3345_v57 = vmul.f32 %v9479_v39, %v9295_v20 }
0x1a21   :  { %v9165_v28 = vclamps-f32 %v8033_v50, 5.0  ;;  %v9164_v49 = vclamps-f32 %v8035_v23, 5.0  ;;  %v3395_v36 = vmul.f32 %v3381_v59, %v8028_v7  ;;  %v3394_v51 = vmul.f32 %v3377_v22, %v8037_v27  ;;  %9474 = vst [vmem:[#allocation71_spill] sm:$0xff] %v8062_v11 }
0x1a22   :  { %v8078_v38 = vadd.f32 %v2955_v8, %v2814_v61 }
0x1a23   :  { %v8050_v16 = vadd.f32 %v3395_v36, %v7999_v34  ;;  %v8052_v6 = vadd.f32 %v3394_v51, %v3346_v56  ;;  %v3734_v60 = vmul.f32 %v9165_v28, %v8014_v0  ;;  %v3733_v41 = vmul.f32 %v9164_v49, %v8014_v0  ;;  %v9481_v36 = vld [vmem:[#allocation30_spill] sm:$0xff]  ;;  %v9482_v51 = vld [vmem:[#allocation45_spill] sm:$0xff] }
0x1a24   :  { %v3348_v34 = vmul.f32 %v9475_v37, %v6930_v3  ;;  %v3385_v1 = vpop.permute.xlu1 %3384  ;;  %v9476_v56 = vclamps-f32 %v7804_v45, 5.0  ;;  %v3365_v14 = vpop.permute.xlu0 %3364  ;;  %v3668_v30 = vadd.f32 %v9482_v51, %v9481_v36 }
0x1a25   :  { %v9162_v10 = vclamps-f32 %v8052_v6, 5.0  ;;  %v3396_v26 = vmul.f32 %v3385_v1, %v8045_v19  ;;  %v3392_v18 = vmul.f32 %v3365_v14, %v8047_v33  ;;  %v9163_v46 = vclamps-f32 %v8050_v16, 5.0  ;;  %v9483_v14 = vld [vmem:[#allocation31_spill] sm:$0xff] }
0x1a26   :  { %v3344_v2 = vmul.f32 %v9476_v56, %v6930_v3  ;;  %v3744_v40 = vsel %vm278_vm2, %v3734_v60, 0.0  ;;  %v3741_v43 = vsel %vm278_vm2, %v3733_v41, 0.0  ;;  %v3673_v8 = vsel %vm322_vm3, %v3668_v30, 0.0 }
0x1a27   :  { %v8080_v58 = vadd.f32 %v3396_v26, %v3348_v34  ;;  %3745 = vadd.xlane.f32.xlu1 %v3744_v40  ;;  %3742 = vadd.xlane.f32.xlu0 %v3741_v43  ;;  %v3737_v47 = vmul.f32 %v9162_v10, %v8062_v11  ;;  %v3738_v29 = vmul.f32 %v9163_v46, %v8062_v11  ;;  %v9519_v10 = vld [vmem:[#allocation54_spill] sm:$0xff] }
0x1a28   :  { %v8082_v45 = vadd.f32 %v3392_v18, %v3344_v2  ;;  %v3389_v31 = vpop.permute.xlu1 %3388  ;;  %v3369_v13 = vpop.permute.xlu0 %3368  ;;  %v3677_v34 = vmul.f32 %v3668_v30, %v3668_v30  ;;  %v9484_v18 = vld [vmem:[#allocation32_spill] sm:$0xff] }
0x1a29   :  { %v3397_v32 = vmul.f32 %v3389_v31, %v8073_v35  ;;  %v3393_v42 = vmul.f32 %v3369_v13, %v8078_v38  ;;  %v9161_v4 = vclamps-f32 %v8080_v58, 5.0  ;;  %v3753_v21 = vsel %vm278_vm2, %v3737_v47, 0.0  ;;  %v9485_v13 = vld [vmem:[#allocation33_spill] sm:$0xff] }
0x1a2a   :  { %v9160_v55 = vclamps-f32 %v8082_v45, 5.0  ;;  %v3756_v5 = vsel %vm278_vm2, %v3738_v29, 0.0  ;;  %v3678_v1 = vsel %vm322_vm3, %v3677_v34, 0.0 }
0x1a2b   :  { %v8101_v9 = vadd.f32 %v3397_v32, %v3349_v52  ;;  %v8103_v12 = vadd.f32 %v3393_v42, %v3345_v57  ;;  %3754 = vadd.xlane.f32.xlu0 %v3753_v21  ;;  %v3739_v59 = vmul.f32 %v9161_v4, %v8062_v11  ;;  %v9486_v42 = vld [vmem:[#allocation34_spill] sm:$0xff] }
0x1a2c   :  { %v3735_v24 = vmul.f32 %v9160_v55, %v8014_v0 }
0x1a2d   :  { %9480 = vst [vmem:[#allocation22_spill] sm:$0xff] %v8103_v12  ;;  %v9158_v44 = vclamps-f32 %v8103_v12, 5.0  ;;  %v9159_v48 = vclamps-f32 %v8101_v9, 5.0  ;;  %v3759_v60 = vsel %vm278_vm2, %v3739_v59, 0.0 }
0x1a2e   :  { %v3747_v15 = vsel %vm278_vm2, %v3735_v24, 0.0 }
0x1a2f   :  { %3748 = vadd.xlane.f32.xlu1 %v3747_v15  ;;  %3757 = vadd.xlane.f32.xlu0 %v3756_v5  ;;  %v3736_v22 = vmul.f32 %v9158_v44, %v8014_v0  ;;  %v3740_v41 = vmul.f32 %v9159_v48, %v8062_v11  ;;  %v9517_v48 = vld [vmem:[#allocation53_spill] sm:$0xff] }
0x1a31   :  { %v3750_v61 = vsel %vm278_vm2, %v3736_v22, 0.0  ;;  %v3762_v37 = vsel %vm278_vm2, %v3740_v41, 0.0 }
0x1a33   :  { %3751 = vadd.xlane.f32.xlu1 %v3750_v61  ;;  %3760 = vadd.xlane.f32.xlu0 %v3759_v60 }
0x1a37   :  { %3674 = vadd.xlane.f32.xlu1 %v3673_v8  ;;  %3763 = vadd.xlane.f32.xlu0 %v3762_v37 }
0x1a3b   :  { %3679 = vadd.xlane.f32.xlu0 %v3678_v1 }
0x1ab0   :  { %v3746_v56 = vpop.xlane.xlu1 %3745  ;;  %v3743_v2 = vpop.xlane.xlu0 %3742 }
0x1ab1   :  { %v3766_v26 = vmul.f32 %v3746_v56, %v9483_v14  ;;  %v3765_v40 = vmul.f32 %v3743_v2, %v9484_v18 }
0x1ab3   :  { %3785 = vperm.xlu0 %6209, %v3766_v26   ;;  %3782 = vperm.xlu1 %6197, %v3765_v40   ;;  %v9487_v40 = vld [vmem:[#allocation42_spill] sm:$0xff] }
0x1ab4   :  { %v3755_v43 = vpop.xlane.xlu0 %3754 }
0x1ab5   :  { %v3769_v47 = vmul.f32 %v3755_v43, %v9484_v18 }
0x1ab7   :  { %3794 = vperm.xlu1 %6197, %v3769_v47  }
0x1ab8   :  { %v3758_v63 = vpop.xlane.xlu0 %3757  ;;  %v3749_v31 = vpop.xlane.xlu1 %3748 }
0x1ab9   :  { %v3770_v52 = vmul.f32 %v3758_v63, %v9483_v14  ;;  %v3767_v32 = vmul.f32 %v3749_v31, %v9485_v13 }
0x1abb   :  { %3797 = vperm.xlu1 %6197, %v3770_v52   ;;  %v9488_v52 = vld [vmem:[#allocation47_spill] sm:$0xff] }
0x1abc   :  { %v3761_v53 = vpop.xlane.xlu0 %3760  ;;  %v3752_v57 = vpop.xlane.xlu1 %3751 }
0x1abd   :  { %v3771_v39 = vmul.f32 %v3761_v53, %v9485_v13  ;;  %v3768_v21 = vmul.f32 %v3752_v57, %v9486_v42  ;;  %v9489_v53 = vld [vmem:[#allocation41_spill] sm:$0xff]  ;;  %v9490_v57 = vld [vmem:[#allocation40_spill] sm:$0xff] }
0x1abe   :  { %v9528_v13 = vld [vmem:[#allocation68_spill] sm:$0xff] }
0x1abf   :  { %3788 = vperm.xlu1 %6197, %v3767_v32  }
0x1ac0   :  { %v3764_v29 = vpop.xlane.xlu0 %3763  ;;  %v3675_v15 = vpop.xlane.xlu1 %3674 }
0x1ac1   :  { %v3772_v24 = vmul.f32 %v3764_v29, %v9486_v42  ;;  %v3676_v59 = vmul.f32 0.0078125, %v3675_v15 }
0x1ac3   :  { %3800 = vperm.xlu1 %6197, %v3771_v39   ;;  %v3682_v51 = vmul.f32 %v3676_v59, %v3676_v59  ;;  %v3685_v56 = vsub.f32 %v3668_v30, %v3676_v59  ;;  %v9492_v59 = vld [vmem:[#allocation44_spill] sm:$0xff] }
0x1ac4   :  { %v3680_v5 = vpop.xlane.xlu0 %3679 }
0x1ac5   :  { %v3681_v22 = vmul.f32 0.0078125, %v3680_v5 }
0x1ac7   :  { %3791 = vperm.xlu1 %6197, %v3768_v21   ;;  %v3683_v61 = vsub.f32 %v3681_v22, %v3682_v51 }
0x1ac9   :  { %v3684_v60 = vmax.f32 %v3683_v61, 0.0 }
0x1acb   :  { %3803 = vperm.xlu1 %6197, %v3772_v24   ;;  %v3686_v41 = vadd.f32 1e-05, %v3684_v60  ;;  %v9491_v24 = vld [vmem:[#allocation43_spill] sm:$0xff] }
0x1acd   :  { %6275 = vrsqrt.f32 %v3686_v41 }
0x1ada   :  { %v6276_v34 = vpop.eup %6275 }
0x1adb   :  { %v3688_v2 = vmul.f32 %v6276_v34, %v3685_v56 }
0x1add   :  { %v3689_v43 = vmul.f32 %v3688_v2, %v9487_v40  ;;  %v9525_v40 = vclamps-f32 %v8033_v50, 5.0 }
0x1adf   :  { %v3690_v31 = vadd.f32 %v3689_v43, %v9488_v52  ;;  %v9524_v52 = vld [vmem:[#allocation55_spill] sm:$0xff] }
0x1ae1   :  { %v3692_v51 = vrot.slane %v3690_v31, 6 }
0x1b2e   :  { %v3783_v8 = vpop.permute.xlu1 %3782  ;;  %v3786_v63 = vpop.permute.xlu0 %3785 }
0x1b2f   :  { %v3808_v39 = vrot.slane %v3783_v8, %v9489_v53  ;;  %v3812_v21 = vrot.slane %v3786_v63, %v9490_v57 }
0x1b31   :  { %v3813_v60 = vsel %vm491_vm4, %v3812_v21, %v3808_v39 }
0x1b32   :  { %v3795_v37 = vpop.permute.xlu1 %3794 }
0x1b33   :  { %v3827_v30 = vrot.slane %v3795_v37, %v9489_v53 }
0x1b36   :  { %v3798_v1 = vpop.permute.xlu1 %3797 }
0x1b37   :  { %v3831_v29 = vrot.slane %v3798_v1, %v9490_v57  ;;  %v9523_v57 = vld [vmem:[#allocation64_spill] sm:$0xff] }
0x1b39   :  { %v3832_v41 = vsel %vm491_vm4, %v3831_v29, %v3827_v30 }
0x1b3a   :  { %v3789_v26 = vpop.permute.xlu1 %3788 }
0x1b3b   :  { %v3817_v15 = vrot.slane %v3789_v26, %v9491_v24  ;;  %v9493_v26 = vld [vmem:[#allocation70_spill] sm:$0xff] }
0x1b3c   :  { %v3694_v37 = vadd.f32 %v3692_v51, %v9493_v26 }
0x1b3d   :  { %v3818_v34 = vsel %vm498_vm5, %v3817_v15, %v3813_v60  ;;  %v9495_v15 = vld [vmem:[#allocation67_spill] sm:$0xff] }
0x1b3e   :  { %v3801_v47 = vpop.permute.xlu1 %3800  ;;  %v5884_v63 = vmul.f32 -1.442695, %v3694_v37 }
0x1b3f   :  { %v3836_v5 = vrot.slane %v3801_v47, %v9491_v24 }
0x1b40   :  { %6277 = vpow2.f32 %v5884_v63 }
0x1b41   :  { %v3837_v1 = vsel %vm498_vm5, %v3836_v5, %v3832_v41  ;;  %v9496_v5 = vld [vmem:[#allocation63_spill] sm:$0xff] }
0x1b42   :  { %v3792_v32 = vpop.permute.xlu1 %3791  ;;  %v3847_v30 = vrot.slane %v9496_v5, 6  ;;  %v9504_v5 = vld [vmem:[#allocation65_spill] sm:$0xff] }
0x1b43   :  { %v3822_v22 = vrot.slane %v3792_v32, %v9492_v59 }
0x1b45   :  { %v3823_v56 = vsel %vm505_vm6, %v3822_v22, %v3818_v34 }
0x1b46   :  { %v3804_v61 = vpop.permute.xlu1 %3803 }
0x1b47   :  { %v3841_v8 = vrot.slane %v3804_v61, %v9492_v59 }
0x1b49   :  { %v3842_v2 = vsel %vm505_vm6, %v3841_v8, %v3837_v1 }
0x1b4a   :  { %v3843_v43 = vsel %vm1198_vm11, %v3842_v2, %v3823_v56 }
0x1b4b   :  { %v3845_v47 = vadd.f32 %v3843_v43, %v3694_v37 }
0x1b4d   :  { %3851 = vrot.lane.b32.xlu1 %v3845_v47, %s6499_s7  ;;  %v6278_v31 = vpop.eup %6277 }
0x1b4e   :  { %v3698_v32 = vadd.f32 1.0, %v6278_v31  ;;  %v9500_v31 = vld [vmem:[#allocation58_spill] sm:$0xff] }
0x1b50   :  { %6279 = vrcp.f32 %v3698_v32  ;;  %v9501_v32 = vmov 0.0  }
0x1b5d   :  { %v8155_v39 = vpop.eup %6279 }
0x1b5e   :  { %9494 = vst [vmem:[#allocation49_spill] sm:$0xff] %v8155_v39  ;;  %v3849_v22 = vmul.f32 %v8155_v39, %v3847_v30  ;;  %v9505_v30 = vld [vmem:[#allocation29_spill] sm:$0xff] }
0x1bbf   :  { %v3852_v21 = vpop.permute.xlu1 %3851 }
0x1bc0   :  { %v3854_v29 = vmul.f32 %v8155_v39, %v3852_v21  ;;  %v9502_v21 = vld [vmem:[#allocation62_spill] sm:$0xff] }
0x1bc2   :  { %3856 = vrot.lane.b32.xlu0 %v3854_v29, %s6500_s20  ;;  %v9503_v29 = vld [vmem:[#allocation24_spill] sm:$0xff] }
0x1bc6   :  { %3333 = vrot.lane.b32.xlu0 %v9495_v15, %s6505_s23 }
0x1c34   :  { %v3857_v51 = vpop.permute.xlu0 %3856 }
0x1c35   :  { %v8163_v61 = vadd.f32 %v3857_v51, %v3849_v22  ;;  %v9506_v22 = vld [vmem:[#allocation25_spill] sm:$0xff] }
0x1c37   :  { %9497 = vst [vmem:[#allocation66_spill] sm:$0xff] %v8163_v61  ;;  %v5885_v60 = vmul.f32 -1.442695, %v8163_v61 }
0x1c39   :  { %6281 = vpow2.f32 %v5885_v60  ;;  %v9507_v60 = vld [vmem:[#allocation50_spill] sm:$0xff] }
0x1c46   :  { %v6282_v41 = vpop.eup %6281 }
0x1c47   :  { %v3863_v8 = vadd.f32 1.0, %v6282_v41 }
0x1c49   :  { %6283 = vrcp.f32 %v3863_v8 }
0x1c56   :  { %v6284_v34 = vpop.eup %6283 }
0x1c57   :  { %v3866_v1 = vmul.f32 %v6284_v34, %v8163_v61 }
0x1c59   :  { %v3867_v56 = vsub.f32 %v8163_v61, %v3866_v1 }
0x1c5b   :  { %v8170_v37 = vsel %vm253_vm8, %v3866_v1, %v3867_v56 }
0x1c5c   :  { %9499 = vst [vmem:[#allocation59_spill] sm:$0xff] %v8170_v37  ;;  %v3870_v43 = vrot.slane %v8170_v37, 2  ;;  %v4286_v47 = vpack.c.bf16 %v8170_v37, %v8170_v37 }
0x1c5e   :  { %6114 = vmatmul.mubr.msk.f32.vlgmr.msra.gmra.mxu0 %vm278_vm2, %v3870_v43  ;;  %v4288_v63 = vrot.slane %v4286_v47, 1 }
0x1c5f   :  { %6125 = vmatpush3.msra.mxu0 %v9500_v31  ;;  %6132 = vmatprep.mubr.msk.f32.mxu0 %vm6496_vm0, %v9501_v32 }
0x1c60   :  { %6121 = vmatmul.mubr.msk.bf16.vlgmr.msra.gmra.mxu1 %vm278_vm2, %v4288_v63  ;;  %6126 = vmatprep.subr.mxu0 %v9501_v32 }
0x1c61   :  { %6127 = vmatpush3.msra.mxu0 %v9502_v21  ;;  %6136 = vmatpush3.bf16.msra.mxu1 %v9503_v29  ;;  %v9509_v21 = vmov 1   ;;  %v9510_v29 = vmov 2  }
0x1c62   :  { %6128 = vmatprep.subr.mxu0 %v9501_v32  ;;  %6137 = vmatprep.subr.bf16.mxu1 %v9501_v32 }
0x1c63   :  { %6129 = vmatpush3.msra.mxu0 %v9504_v5  ;;  %6139 = vmatprep.mubr.msk.bf16.mxu1 %vm6496_vm0, %v9501_v32  ;;  %v3334_v5 = vpop.permute.xlu0 %3333 }
0x1c64   :  { %6130 = vmatprep.subr.mxu0 %v9501_v32 }
0x1c65   :  { %6131 = vmatpush3.msra.mxu0 %v9505_v30  ;;  %6138 = vmatpush3.bf16.msra.mxu1 %v9506_v22  ;;  %v9511_v30 = vmov 3   ;;  %v9512_v22 = vld [vmem:[#allocation61_spill] sm:$0xff] }
0x1c66   :  { %6143 = vmatprep.subr.mxu0 %v9501_v32 }
0x1d1e   :  { %v3939_v51 = vpop.f32.mrf.mxu0 }
0x1d1f   :  { %v3940_v41 = vadd.f32 %v3939_v51, %v9507_v60  ;;  %v3336_v51 = vmul.f32 %v9512_v22, %v3334_v5 }
0x1d20   :  { %v6115_v8 = vpop.f32.mrf.mxu0  ;;  %v8193_v34 = vpop.f32.mrf.mxu1 }
0x1d21   :  { %9508 = vst [vmem:[#allocation69_spill] sm:$0xff] %v8193_v34  ;;  %v3943_v1 = vsel %vm626_vm9, %v3940_v41, -inf  ;;  %v9513_v8 = vmov 0  }
0x1d22   :  { %v6122_v56 = vpop.f32.mrf.mxu1  ;;  %3944 = vmax.xlane.f32.xlu1 %v3943_v1 }
0x1d23   :  { %v9514_v56 = vld [vmem:[#allocation51_spill] sm:$0xff] }
0x1d24   :  { %v4329_v43 = vpop.f32.mrf.mxu1 }
0x1d26   :  { %v6123_v47 = vpop.f32.mrf.mxu1 }
0x1d27   :  { %v3481_v47 = vrot.slane %v9495_v15, %v6627_v17 }
0x1dab   :  { %v3945_v63 = vpop.xlane.xlu1 %3944 }
0x1dac   :  { %vm3946_vm11 = vcmp.ge.f32.partialorder %v3940_v41, %v3945_v63  ;;  %v9515_v63 = vld [vmem:[#allocation52_spill] sm:$0xff] }
0x1dad   :  { %v3947_v31 = vsel %vm3946_vm11, %v3940_v41, 0.0 }
0x1dae   :  { %3950 = vperm.xlu0 %6209, %v3947_v31  }
0x1db2   :  { %6210 = vset.pattern.permute.xlu0 %v9509_v21 }
0x1db3   :  { %3960 = vperm.xlu0 %6210, %v3947_v31  }
0x1db7   :  { %6211 = vset.pattern.permute.xlu0 %v9510_v29 }
0x1db8   :  { %3970 = vperm.xlu0 %6211, %v3947_v31  }
0x1dbc   :  { %6212 = vset.pattern.permute.xlu0 %v9511_v30 }
0x1dbd   :  { %3980 = vperm.xlu0 %6212, %v3947_v31   ;;  %v9516_v31 = vld [vmem:[#allocation28_spill] sm:$0xff] }
0x1dbe   :  { %v3500_v5 = vrot.slane %v9495_v15, %v9516_v31 }
0x1dc1   :  { %3338 = vrot.lane.b32.xlu0 %v3336_v51, %s6500_s20 }
0x1dc2   :  { %6213 = vset.pattern.permute.xlu0 %v9513_v8 }
0x1e29   :  { %v3951_v1 = vpop.permute.xlu0 %3950 }
0x1e2a   :  { %v3953_v41 = vmul.f32 %v3951_v1, %v9514_v56  ;;  %v9518_v1 = vld [vmem:[#allocation57_spill] sm:$0xff] }
0x1e2c   :  { %3955 = vrot.lane.b32.xlu1 %v3953_v41, %s6504_s2  ;;  %v3330_v41 = vrot.slane %v9518_v1, 6 }
0x1e2e   :  { %v3961_v43 = vpop.permute.xlu0 %3960 }
0x1e2f   :  { %v3963_v44 = vmul.f32 %v3961_v43, %v9515_v63  ;;  %v3332_v43 = vmul.f32 %v9512_v22, %v3330_v41  ;;  %v9521_v41 = vld [vmem:[#allocation27_spill] sm:$0xff] }
0x1e30   :  { %3487 = vbcast.lane.b32.xlu1 %v3481_v47, 264 }
0x1e31   :  { %3965 = vrot.lane.b32.xlu0 %v3963_v44, %s6504_s2 }
0x1e33   :  { %v3971_v51 = vpop.permute.xlu0 %3970 }
0x1e34   :  { %v3973_v55 = vmul.f32 %v3971_v51, %v9517_v48  ;;  %3506 = vbcast.lane.b32.xlu1 %v3500_v5, 264 }
0x1e36   :  { %3975 = vrot.lane.b32.xlu0 %v3973_v55, %s6504_s2 }
0x1e38   :  { %v3981_v4 = vpop.permute.xlu0 %3980 }
0x1e39   :  { %v3983_v46 = vmul.f32 %v3981_v4, %v9519_v10 }
0x1e3b   :  { %3985 = vrot.lane.b32.xlu0 %v3983_v46, %s6504_s2  ;;  %v3425_v46 = vrot.slane %v9512_v22, %v6627_v17 }
0x1e3c   :  { %v3339_v49 = vpop.permute.xlu0 %3338 }
0x1e3d   :  { %v8216_v44 = vadd.f32 %v3339_v49, %v3332_v43  ;;  %v3445_v49 = vrot.slane %v9512_v22, %v9516_v31 }
0x1e3f   :  { %9520 = vst [vmem:[#allocation45_spill] sm:$0xff] %v8216_v44  ;;  %3483 = vbcast.lane.b32.xlu0 %v3481_v47, 256  ;;  %v3562_v28 = vrot.slane %v8216_v44, %v6627_v17  ;;  %v3581_v55 = vrot.slane %v8216_v44, %v9516_v31 }
0x1e41   :  { %3568 = vbcast.lane.b32.xlu1 %v3562_v28, 264 }
0x1e43   :  { %3502 = vbcast.lane.b32.xlu0 %v3500_v5, 256 }
0x1e45   :  { %3587 = vbcast.lane.b32.xlu1 %v3581_v55, 264 }
0x1e47   :  { %3564 = vbcast.lane.b32.xlu0 %v3562_v28, 256 }
0x1e49   :  { %3510 = vbcast.lane.b32.xlu1 %v3500_v5, 272 }
0x1e4b   :  { %3583 = vbcast.lane.b32.xlu0 %v3581_v55, 256 }
0x1e4d   :  { %3591 = vbcast.lane.b32.xlu1 %v3581_v55, 272 }
0x1e4f   :  { %3491 = vbcast.lane.b32.xlu0 %v3481_v47, 272 }
0x1e51   :  { %3432 = vbcast.lane.b32.xlu1 %v3425_v46, 328 }
0x1e53   :  { %3572 = vbcast.lane.b32.xlu0 %v3562_v28, 272 }
0x1e55   :  { %3452 = vbcast.lane.b32.xlu1 %v3445_v49, 328 }
0x1e57   :  { %3428 = vbcast.lane.b32.xlu0 %v3425_v46, 320 }
0x1e59   :  { %3514 = vbcast.lane.b32.xlu1 %v3500_v5, 280 }
0x1e5b   :  { %3448 = vbcast.lane.b32.xlu0 %v3445_v49, 320 }
0x1e5d   :  { %3595 = vbcast.lane.b32.xlu1 %v3581_v55, 280 }
0x1e5f   :  { %3495 = vbcast.lane.b32.xlu0 %v3481_v47, 280 }
0x1e61   :  { %3456 = vbcast.lane.b32.xlu1 %v3445_v49, 336 }
0x1e63   :  { %3576 = vbcast.lane.b32.xlu0 %v3562_v28, 280 }
0x1e65   :  { %3460 = vbcast.lane.b32.xlu1 %v3445_v49, 344 }
0x1e67   :  { %3436 = vbcast.lane.b32.xlu0 %v3425_v46, 336 }
0x1e6b   :  { %3440 = vbcast.lane.b32.xlu0 %v3425_v46, 344 }
0x1e9e   :  { %v3956_v51 = vpop.permute.xlu1 %3955 }
0x1e9f   :  { %v3958_v43 = vadd.f32 %v3956_v51, %v9521_v41 }
0x1ea2   :  { %v3488_v5 = vpop.permute.xlu1 %3487 }
0x1ea3   :  { %v3966_v4 = vpop.permute.xlu0 %3965 }
0x1ea4   :  { %v3968_v11 = vadd.f32 %v3966_v4, %v3958_v43 }
0x1ea6   :  { %v3507_v46 = vpop.permute.xlu1 %3506 }
0x1ea8   :  { %v3976_v15 = vpop.permute.xlu0 %3975 }
0x1ea9   :  { %v3978_v0 = vadd.f32 %v3976_v15, %v3968_v11 }
0x1ead   :  { %v3986_v10 = vpop.permute.xlu0 %3985 }
0x1eae   :  { %v3988_v22 = vadd.f32 %v3986_v10, %v3978_v0 }
0x1eb0   :  { %v4013_v44 = vrot.slane %v3988_v22, %v6627_v17  ;;  %v4033_v47 = vrot.slane %v3988_v22, %v9516_v31  ;;  %v3516_v31 = vcombine.high %v9518_v1, %v9518_v1 }
0x1eb1   :  { %v3484_v28 = vpop.permute.xlu0 %3483 }
0x1eb2   :  { %4020 = vbcast.lane.b32.xlu1 %v4013_v44, 300  ;;  %4016 = vbcast.lane.b32.xlu0 %v4013_v44, 292 }
0x1eb3   :  { %v3569_v49 = vpop.permute.xlu1 %3568 }
0x1eb5   :  { %v3503_v55 = vpop.permute.xlu0 %3502 }
0x1eb6   :  { %4040 = vbcast.lane.b32.xlu1 %v4033_v47, 300  ;;  %4036 = vbcast.lane.b32.xlu0 %v4033_v47, 292 }
0x1eb7   :  { %v3588_v15 = vpop.permute.xlu1 %3587 }
0x1eb8   :  { %v3602_v18 = vmul.f32 %v3588_v15, %v9528_v13 }
0x1eb9   :  { %v3565_v11 = vpop.permute.xlu0 %3564 }
0x1eba   :  { %4044 = vbcast.lane.b32.xlu1 %v4033_v47, 308  ;;  %4024 = vbcast.lane.b32.xlu0 %v4013_v44, 308 }
0x1ebb   :  { %v3511_v10 = vpop.permute.xlu1 %3510 }
0x1ebd   :  { %v3584_v0 = vpop.permute.xlu0 %3583 }
0x1ebe   :  { %4048 = vbcast.lane.b32.xlu1 %v4033_v47, 316  ;;  %4028 = vbcast.lane.b32.xlu0 %v4013_v44, 316  ;;  %v9522_v44 = vld [vmem:[#allocation23_spill] sm:$0xff]  ;;  %v3601_v14 = vmul.f32 %v3584_v0, %v9528_v13 }
0x1ebf   :  { %v3592_v51 = vpop.permute.xlu1 %3591  ;;  %v3523_v63 = vrot.slane %v3516_v31, %v9522_v44  ;;  %v4366_v30 = vrot.slane %v8170_v37, %v9522_v44  ;;  %v3598_v37 = vmul.f32 %v3569_v49, %v9523_v57 }
0x1ec1   :  { %v3492_v4 = vpop.permute.xlu0 %3491  ;;  %v3524_v56 = vcombine.high %v3523_v63, %v3523_v63  ;;  %v3531_v29 = vrot.slane %v3523_v63, %v9522_v44  ;;  %v4367_v2 = vcombine.high %v4366_v30, %v4366_v30  ;;  %v4374_v26 = vrot.slane %v4366_v30, %v9522_v44 }
0x1ec2   :  { %v3597_v63 = vmul.f32 %v3565_v11, %v9523_v57 }
0x1ec3   :  { %v3433_v41 = vpop.permute.xlu1 %3432  ;;  %v3538_v21 = vrot.slane %v3524_v56, %v9522_v44  ;;  %v3539_v1 = vcombine.high %v3531_v29, %v3531_v29  ;;  %v8242_v31 = vrot.slane %v4367_v2, %v9522_v44  ;;  %v4003_v29 = vmul.f32 %v9525_v40, %v9524_v52 }
0x1ec4   :  { %v4382_v2 = vcombine.high %v4374_v26, %v4374_v26  ;;  %v3463_v44 = vsub.f32 1.0, %v3433_v41  ;;  %v9529_v26 = vclamps-f32 %v8052_v6, 5.0 }
0x1ec5   :  { %v3573_v43 = vpop.permute.xlu0 %3572  ;;  %v3540_v61 = vcombine.high %v3538_v21, %v3538_v21  ;;  %v3544_v59 = vrot.slane %v3539_v1, %v6627_v17  ;;  %v9526_v21 = vclamps-f32 %v8035_v23, 5.0  ;;  %v3603_v23 = vmul.f32 %v3592_v51, %v9528_v13 }
0x1ec6   :  { %v8271_v50 = vrot.slane %v4382_v2, %v6627_v17  ;;  %v3599_v12 = vmul.f32 %v3573_v43, %v9523_v57 }
0x1ec7   :  { %v3453_v48 = vpop.permute.xlu1 %3452  ;;  %v3548_v24 = vrot.slane %v3540_v61, %v6627_v17  ;;  %v4002_v30 = vmul.f32 %v9526_v21, %v9404_v54  ;;  %v9527_v61 = vclamps-f32 %v8050_v16, 5.0  ;;  %v3552_v49 = vmul.f32 %v3544_v59, %v3488_v5 }
0x1ec8   :  { %v3551_v11 = vmul.f32 %v3544_v59, %v3484_v28  ;;  %v3467_v40 = vsub.f32 1.0, %v3453_v48  ;;  %v4006_v21 = vmul.f32 %v9529_v26, %v9404_v54  ;;  %v3471_v28 = vmul.f32 %v3463_v44, %v8020_v62  ;;  %9530 = vst [vmem:[#allocation63_spill] sm:$0xff] %v8271_v50 }
0x1ec9   :  { %v3429_v22 = vpop.permute.xlu0 %3428  ;;  %v8257_v1 = vmul.f32 %v9527_v61, %v9524_v52  ;;  %v3556_v34 = vmul.f32 %v3548_v24, %v3507_v46  ;;  %v3606_v16 = vsub.f32 %v3552_v49, %v3598_v37  ;;  %v3555_v61 = vmul.f32 %v3548_v24, %v3503_v55 }
0x1eca   :  { %v3462_v42 = vsub.f32 1.0, %v3429_v22  ;;  %v3605_v52 = vsub.f32 %v3551_v11, %v3597_v63  ;;  %v3557_v5 = vmul.f32 %v3548_v24, %v3511_v10  ;;  %v3475_v55 = vmul.f32 %v3467_v40, %v8028_v7 }
0x1ecb   :  { %v3515_v8 = vpop.permute.xlu1 %3514  ;;  %v3610_v51 = vsub.f32 %v3556_v34, %v3602_v18  ;;  %v3609_v36 = vsub.f32 %v3555_v61, %v3601_v14  ;;  %v3614_v37 = vmul.f32 %v3606_v16, %v3433_v41  ;;  %v3553_v63 = vmul.f32 %v3544_v59, %v3492_v4 }
0x1ecc   :  { %v3470_v15 = vmul.f32 %v3462_v42, %v8022_v25  ;;  %v3611_v46 = vsub.f32 %v3557_v5, %v3603_v23  ;;  %v3613_v10 = vmul.f32 %v3605_v52, %v3429_v22  ;;  %v3558_v34 = vmul.f32 %v3548_v24, %v3515_v8 }
0x1ecd   :  { %v8231_v47 = vpop.permute.xlu0 %3448  ;;  %v3618_v62 = vmul.f32 %v3610_v51, %v3453_v48  ;;  %v8277_v49 = vadd.f32 %v3614_v37, %v3471_v28  ;;  %v3607_v18 = vsub.f32 %v3553_v63, %v3599_v12 }
0x1ece   :  { %v3466_v0 = vsub.f32 1.0, %v8231_v47  ;;  %v8279_v14 = vadd.f32 %v3613_v10, %v3470_v15  ;;  %v3617_v52 = vmul.f32 %v3609_v36, %v8231_v47 }
0x1ecf   :  { %v3596_v60 = vpop.permute.xlu1 %3595 }
0x1ed0   :  { %v3474_v42 = vmul.f32 %v3466_v0, %v8037_v27  ;;  %v3604_v2 = vmul.f32 %v3596_v60, %v9528_v13  ;;  %v8285_v27 = vadd.f32 %v3618_v62, %v3475_v55 }
0x1ed1   :  { %v8234_v39 = vpop.permute.xlu0 %3495 }
0x1ed2   :  { %v3554_v13 = vmul.f32 %v3544_v59, %v8234_v39  ;;  %v3612_v8 = vsub.f32 %v3558_v34, %v3604_v2  ;;  %v8294_v22 = vadd.f32 %v3617_v52, %v3474_v42  ;;  %v9536_v52 = vld [vmem:[#allocation22_spill] sm:$0xff] }
0x1ed3   :  { %v3457_v53 = vpop.permute.xlu1 %3456 }
0x1ed4   :  { %v3468_v44 = vsub.f32 1.0, %v3457_v53  ;;  %v3619_v36 = vmul.f32 %v3611_v46, %v3457_v53  ;;  %v9534_v46 = vclamps-f32 %v8082_v45, 5.0 }
0x1ed5   :  { %v3577_v32 = vpop.permute.xlu0 %3576 }
0x1ed6   :  { %v3600_v43 = vmul.f32 %v3577_v32, %v9523_v57  ;;  %v3476_v60 = vmul.f32 %v3468_v44, %v8045_v19  ;;  %v4004_v37 = vmul.f32 %v9534_v46, %v6930_v3 }
0x1ed7   :  { %v3461_v6 = vpop.permute.xlu1 %3460 }
0x1ed8   :  { %v3469_v41 = vsub.f32 1.0, %v3461_v6  ;;  %v3608_v47 = vsub.f32 %v3554_v13, %v3600_v43  ;;  %v8302_v5 = vadd.f32 %v3619_v36, %v3476_v60 }
0x1ed9   :  { %v3437_v56 = vpop.permute.xlu0 %3436 }
0x1eda   :  { %v3464_v25 = vsub.f32 1.0, %v3437_v56  ;;  %v3477_v23 = vmul.f32 %v3469_v41, %v8073_v35  ;;  %v3615_v40 = vmul.f32 %v3607_v18, %v3437_v56  ;;  %v9535_v18 = vclamps-f32 %v8101_v9, 5.0 }
0x1edc   :  { %v3472_v12 = vmul.f32 %v3464_v25, %v8047_v33  ;;  %v4009_v34 = vmul.f32 %v9535_v18, %v9295_v20 }
0x1edd   :  { %v3441_v26 = vpop.permute.xlu0 %3440 }
0x1ede   :  { %v3465_v24 = vsub.f32 1.0, %v3441_v26  ;;  %v8304_v53 = vadd.f32 %v3615_v40, %v3472_v12  ;;  %v3616_v51 = vmul.f32 %v3608_v47, %v3441_v26 }
0x1f24   :  { %v4021_v11 = vpop.permute.xlu1 %4020  ;;  %v4017_v7 = vpop.permute.xlu0 %4016 }
0x1f25   :  { %v4051_v48 = vmul.f32 %v4021_v11, %v8277_v49  ;;  %v4050_v4 = vmul.f32 %v4017_v7, %v8279_v14 }
0x1f27   :  { %v8290_v57 = vadd.f32 %v4051_v48, %v4003_v29  ;;  %v8292_v32 = vadd.f32 %v4050_v4, %v4002_v30  ;;  %v3620_v29 = vmul.f32 %v3612_v8, %v3461_v6  ;;  %v3473_v30 = vmul.f32 %v3465_v24, %v8078_v38 }
0x1f28   :  { %v4041_v16 = vpop.permute.xlu1 %4040  ;;  %v4037_v61 = vpop.permute.xlu0 %4036  ;;  %v9531_v38 = vcombine.high %v8242_v31, %v8242_v31  ;;  %v9537_v48 = vclamps-f32 %v9536_v52, 5.0 }
0x1f29   :  { %v9197_v59 = vclamps-f32 %v8290_v57, 5.0  ;;  %v9198_v19 = vclamps-f32 %v8292_v32, 5.0  ;;  %v4055_v33 = vmul.f32 %v4041_v16, %v8285_v27  ;;  %v4054_v39 = vmul.f32 %v4037_v61, %v8294_v22 }
0x1f2a   :  { %v8321_v0 = vrot.slane %v9531_v38, %v6627_v17  ;;  %v8332_v31 = vadd.f32 %v3620_v29, %v3477_v23  ;;  %v8337_v25 = vadd.f32 %v3616_v51, %v3473_v30  ;;  %v4005_v4 = vmul.f32 %v9537_v48, %v9295_v20  ;;  %v9540_v29 = vld [vmem:[#allocation69_spill] sm:$0xff] }
0x1f2b   :  { %v8307_v35 = vadd.f32 %v4055_v33, %v8257_v1  ;;  %v8309_v56 = vadd.f32 %v4054_v39, %v4006_v21  ;;  %v4395_v28 = vmul.f32 %v9197_v59, %v8271_v50  ;;  %v4394_v15 = vmul.f32 %v9198_v19, %v8271_v50  ;;  %v9539_v39 = vld [vmem:[#allocation30_spill] sm:$0xff] }
0x1f2c   :  { %9532 = vst [vmem:[#allocation58_spill] sm:$0xff] %v8321_v0  ;;  %v9533_v1 = vclamps-f32 %v8080_v58, 5.0  ;;  %v4045_v6 = vpop.permute.xlu1 %4044  ;;  %v4025_v55 = vpop.permute.xlu0 %4024  ;;  %v4327_v30 = vadd.f32 %v9540_v29, %v9539_v39  ;;  %v9576_v59 = vld [vmem:[#allocation54_spill] sm:$0xff] }
0x1f2d   :  { %v9196_v10 = vclamps-f32 %v8309_v56, 5.0  ;;  %v4056_v63 = vmul.f32 %v4045_v6, %v8302_v5  ;;  %v4052_v62 = vmul.f32 %v4025_v55, %v8304_v53  ;;  %v9195_v26 = vclamps-f32 %v8307_v35, 5.0  ;;  %v9541_v55 = vld [vmem:[#allocation31_spill] sm:$0xff] }
0x1f2e   :  { %v4008_v21 = vmul.f32 %v9533_v1, %v6930_v3  ;;  %v4405_v44 = vsel %vm278_vm2, %v4395_v28, 0.0  ;;  %v4402_v58 = vsel %vm278_vm2, %v4394_v15, 0.0  ;;  %v4332_v51 = vsel %vm322_vm3, %v4327_v30, 0.0 }
0x1f2f   :  { %v8341_v45 = vadd.f32 %v4052_v62, %v4004_v37  ;;  %4406 = vadd.xlane.f32.xlu1 %v4405_v44  ;;  %4403 = vadd.xlane.f32.xlu0 %v4402_v58  ;;  %v4398_v2 = vmul.f32 %v9196_v10, %v8321_v0  ;;  %v4399_v9 = vmul.f32 %v9195_v26, %v8321_v0  ;;  %v9542_v62 = vld [vmem:[#allocation32_spill] sm:$0xff]  ;;  %v9575_v10 = vld [vmem:[#allocation45_spill] sm:$0xff] }
0x1f30   :  { %v8339_v42 = vadd.f32 %v4056_v63, %v4008_v21  ;;  %v4049_v43 = vpop.permute.xlu1 %4048  ;;  %v4029_v41 = vpop.permute.xlu0 %4028  ;;  %v4336_v21 = vmul.f32 %v4327_v30, %v4327_v30 }
0x1f31   :  { %v9194_v11 = vclamps-f32 %v8341_v45, 5.0  ;;  %v4057_v7 = vmul.f32 %v4049_v43, %v8332_v31  ;;  %v4053_v13 = vmul.f32 %v4029_v41, %v8337_v25  ;;  %v4414_v12 = vsel %vm278_vm2, %v4398_v2, 0.0  ;;  %v9543_v41 = vld [vmem:[#allocation33_spill] sm:$0xff] }
0x1f32   :  { %v9193_v60 = vclamps-f32 %v8339_v42, 5.0  ;;  %v4417_v16 = vsel %vm278_vm2, %v4399_v9, 0.0  ;;  %v4337_v6 = vsel %vm322_vm3, %v4336_v21, 0.0 }
0x1f33   :  { %v8360_v24 = vadd.f32 %v4057_v7, %v4009_v34  ;;  %v8362_v8 = vadd.f32 %v4053_v13, %v4005_v4  ;;  %4415 = vadd.xlane.f32.xlu0 %v4414_v12  ;;  %v4396_v36 = vmul.f32 %v9194_v11, %v8271_v50  ;;  %v9544_v13 = vld [vmem:[#allocation34_spill] sm:$0xff]  ;;  %v9573_v11 = vld [vmem:[#allocation52_spill] sm:$0xff] }
0x1f34   :  { %v4400_v61 = vmul.f32 %v9193_v60, %v8321_v0 }
0x1f35   :  { %9538 = vst [vmem:[#allocation62_spill] sm:$0xff] %v8360_v24  ;;  %v9192_v47 = vclamps-f32 %v8362_v8, 5.0  ;;  %v4408_v23 = vsel %vm278_vm2, %v4396_v36, 0.0  ;;  %v9191_v40 = vclamps-f32 %v8360_v24, 5.0 }
0x1f36   :  { %4409 = vadd.xlane.f32.xlu1 %v4408_v23  ;;  %v4420_v15 = vsel %vm278_vm2, %v4400_v61, 0.0 }
0x1f37   :  { %4418 = vadd.xlane.f32.xlu0 %v4417_v16  ;;  %v4397_v33 = vmul.f32 %v9192_v47, %v8271_v50  ;;  %v4401_v38 = vmul.f32 %v9191_v40, %v8321_v0  ;;  %v9569_v40 = vld [vmem:[#allocation49_spill] sm:$0xff]  ;;  %v9578_v50 = vld [vmem:[#allocation38_spill] sm:$0xff] }
0x1f39   :  { %v4411_v28 = vsel %vm278_vm2, %v4397_v33, 0.0  ;;  %v4423_v1 = vsel %vm278_vm2, %v4401_v38, 0.0 }
0x1f3a   :  { %4412 = vadd.xlane.f32.xlu1 %v4411_v28 }
0x1f3b   :  { %4421 = vadd.xlane.f32.xlu0 %v4420_v15 }
0x1f3e   :  { %4333 = vadd.xlane.f32.xlu1 %v4332_v51 }
0x1f3f   :  { %4424 = vadd.xlane.f32.xlu0 %v4423_v1 }
0x1f43   :  { %4338 = vadd.xlane.f32.xlu0 %v4337_v6 }
0x1fb8   :  { %v4407_v46 = vpop.xlane.xlu1 %4406  ;;  %v4404_v37 = vpop.xlane.xlu0 %4403 }
0x1fb9   :  { %v4427_v63 = vmul.f32 %v4407_v46, %v9541_v55  ;;  %v4426_v44 = vmul.f32 %v4404_v37, %v9542_v62 }
0x1fbb   :  { %4446 = vperm.xlu0 %6213, %v4427_v63   ;;  %4443 = vperm.xlu1 %6197, %v4426_v44   ;;  %v9545_v44 = vld [vmem:[#allocation42_spill] sm:$0xff] }
0x1fbc   :  { %v4416_v58 = vpop.xlane.xlu0 %4415 }
0x1fbd   :  { %v4430_v2 = vmul.f32 %v4416_v58, %v9542_v62 }
0x1fbf   :  { %4455 = vperm.xlu1 %6197, %v4430_v2   ;;  %v4410_v43 = vpop.xlane.xlu1 %4409 }
0x1fc0   :  { %v4419_v18 = vpop.xlane.xlu0 %4418  ;;  %v4428_v7 = vmul.f32 %v4410_v43, %v9543_v41 }
0x1fc1   :  { %v4431_v34 = vmul.f32 %v4419_v18, %v9541_v55 }
0x1fc3   :  { %4458 = vperm.xlu1 %6197, %v4431_v34   ;;  %v4413_v4 = vpop.xlane.xlu1 %4412  ;;  %v9546_v34 = vld [vmem:[#allocation47_spill] sm:$0xff] }
0x1fc4   :  { %v4422_v52 = vpop.xlane.xlu0 %4421  ;;  %v4429_v12 = vmul.f32 %v4413_v4, %v9544_v13  ;;  %v9548_v4 = vld [vmem:[#allocation40_spill] sm:$0xff] }
0x1fc5   :  { %v4432_v48 = vmul.f32 %v4422_v52, %v9543_v41  ;;  %v9547_v52 = vld [vmem:[#allocation41_spill] sm:$0xff]  ;;  %v9585_v41 = vld [vmem:[#allocation55_spill] sm:$0xff] }
0x1fc7   :  { %4449 = vperm.xlu1 %6197, %v4428_v7   ;;  %v4334_v23 = vpop.xlane.xlu1 %4333 }
0x1fc8   :  { %v4425_v9 = vpop.xlane.xlu0 %4424  ;;  %v4335_v61 = vmul.f32 0.0078125, %v4334_v23 }
0x1fc9   :  { %v4433_v36 = vmul.f32 %v4425_v9, %v9544_v13 }
0x1fca   :  { %v4341_v29 = vmul.f32 %v4335_v61, %v4335_v61  ;;  %v4344_v46 = vsub.f32 %v4327_v30, %v4335_v61  ;;  %v9550_v61 = vld [vmem:[#allocation44_spill] sm:$0xff] }
0x1fcb   :  { %4461 = vperm.xlu1 %6197, %v4432_v48  }
0x1fcc   :  { %v4339_v16 = vpop.xlane.xlu0 %4338 }
0x1fcd   :  { %v4340_v33 = vmul.f32 0.0078125, %v4339_v16 }
0x1fcf   :  { %4452 = vperm.xlu1 %6197, %v4429_v12   ;;  %v4342_v28 = vsub.f32 %v4340_v33, %v4341_v29 }
0x1fd1   :  { %v4343_v15 = vmax.f32 %v4342_v28, 0.0 }
0x1fd3   :  { %4464 = vperm.xlu1 %6197, %v4433_v36   ;;  %v4345_v38 = vadd.f32 1e-05, %v4343_v15  ;;  %v9549_v36 = vld [vmem:[#allocation43_spill] sm:$0xff] }
0x1fd5   :  { %6285 = vrsqrt.f32 %v4345_v38 }
0x1fe2   :  { %v6286_v21 = vpop.eup %6285 }
0x1fe3   :  { %v4347_v37 = vmul.f32 %v6286_v21, %v4344_v46 }
0x1fe5   :  { %v4348_v58 = vmul.f32 %v4347_v37, %v9545_v44 }
0x1fe7   :  { %v4349_v43 = vadd.f32 %v4348_v58, %v9546_v34 }
0x1fe9   :  { %v4351_v29 = vrot.slane %v4349_v43, 4 }
0x2036   :  { %v4444_v51 = vpop.permute.xlu1 %4443  ;;  %v4447_v18 = vpop.permute.xlu0 %4446 }
0x2037   :  { %v4469_v48 = vrot.slane %v4444_v51, %v9547_v52  ;;  %v4473_v12 = vrot.slane %v4447_v18, %v9548_v4 }
0x2039   :  { %v4474_v15 = vsel %vm491_vm4, %v4473_v12, %v4469_v48 }
0x203a   :  { %v4456_v1 = vpop.permute.xlu1 %4455 }
0x203b   :  { %v4488_v30 = vrot.slane %v4456_v1, %v9547_v52 }
0x203e   :  { %v4459_v6 = vpop.permute.xlu1 %4458 }
0x203f   :  { %v4492_v9 = vrot.slane %v4459_v6, %v9548_v4  ;;  %v9583_v4 = vld [vmem:[#allocation71_spill] sm:$0xff] }
0x2041   :  { %v4493_v38 = vsel %vm491_vm4, %v4492_v9, %v4488_v30 }
0x2042   :  { %v4450_v63 = vpop.permute.xlu1 %4449 }
0x2043   :  { %v4478_v23 = vrot.slane %v4450_v63, %v9549_v36  ;;  %v9551_v63 = vld [vmem:[#allocation70_spill] sm:$0xff] }
0x2044   :  { %v4353_v1 = vadd.f32 %v4351_v29, %v9551_v63 }
0x2045   :  { %v4479_v21 = vsel %vm498_vm5, %v4478_v23, %v4474_v15  ;;  %v9553_v23 = vld [vmem:[#allocation59_spill] sm:$0xff] }
0x2046   :  { %v4462_v2 = vpop.permute.xlu1 %4461  ;;  %v5896_v18 = vmul.f32 -1.442695, %v4353_v1 }
0x2047   :  { %v4497_v16 = vrot.slane %v4462_v2, %v9549_v36  ;;  %v9582_v36 = vld [vmem:[#allocation48_spill] sm:$0xff] }
0x2048   :  { %6287 = vpow2.f32 %v5896_v18 }
0x2049   :  { %v4498_v6 = vsel %vm498_vm5, %v4497_v16, %v4493_v38  ;;  %v9554_v16 = vld [vmem:[#allocation66_spill] sm:$0xff] }
0x204a   :  { %v4453_v7 = vpop.permute.xlu1 %4452  ;;  %v4508_v30 = vrot.slane %v9554_v16, 6  ;;  %v8448_v16 = vld [vmem:[#allocation8 + $0x38] sm:$0xff] }
0x204b   :  { %v4483_v33 = vrot.slane %v4453_v7, %v9550_v61  ;;  %9562 = vst [vmem:[#allocation57_spill] sm:$0xff] %v8448_v16 }
0x204d   :  { %v4484_v46 = vsel %vm505_vm6, %v4483_v33, %v4479_v21 }
0x204e   :  { %v4465_v28 = vpop.permute.xlu1 %4464 }
0x204f   :  { %v4502_v51 = vrot.slane %v4465_v28, %v9550_v61 }
0x2051   :  { %v4503_v37 = vsel %vm505_vm6, %v4502_v51, %v4498_v6 }
0x2052   :  { %v4504_v58 = vsel %vm1860_vm13, %v4503_v37, %v4484_v46 }
0x2053   :  { %v4506_v2 = vadd.f32 %v4504_v58, %v4353_v1 }
0x2055   :  { %4512 = vrot.lane.b32.xlu1 %v4506_v2, %s6499_s7  ;;  %v6288_v43 = vpop.eup %6287 }
0x2056   :  { %v4357_v7 = vadd.f32 1.0, %v6288_v43  ;;  %v8435_v43 = vld [vmem:[#allocation8 + $0x48] sm:$0xff] }
0x2057   :  { %9558 = vst [vmem:[#allocation25_spill] sm:$0xff] %v8435_v43 }
0x2058   :  { %6289 = vrcp.f32 %v4357_v7  ;;  %v9559_v7 = vmov 0.0  }
0x2065   :  { %v8414_v48 = vpop.eup %6289 }
0x2066   :  { %9552 = vst [vmem:[#allocation24_spill] sm:$0xff] %v8414_v48  ;;  %v4510_v33 = vmul.f32 %v8414_v48, %v4508_v30  ;;  %v8452_v30 = vld [vmem:[#allocation8 + $0x30] sm:$0xff] }
0x2067   :  { %9563 = vst [vmem:[#allocation64_spill] sm:$0xff] %v8452_v30 }
0x20c7   :  { %v4513_v12 = vpop.permute.xlu1 %4512 }
0x20c8   :  { %v4515_v9 = vmul.f32 %v8414_v48, %v4513_v12  ;;  %v9560_v12 = vld [vmem:[#allocation60_spill] sm:$0xff] }
0x20ca   :  { %4517 = vrot.lane.b32.xlu1 %v4515_v9, %s6500_s20  ;;  %v8444_v9 = vld [vmem:[#allocation8 + $0x40] sm:$0xff] }
0x20cb   :  { %9561 = vst [vmem:[#allocation61_spill] sm:$0xff] %v8444_v9 }
0x20ce   :  { %3993 = vrot.lane.b32.xlu1 %v9553_v23, %s6505_s23 }
0x213c   :  { %v4518_v29 = vpop.permute.xlu1 %4517 }
0x213d   :  { %v8422_v28 = vadd.f32 %v4518_v29, %v4510_v33  ;;  %v9564_v29 = vld [vmem:[#allocation50_spill] sm:$0xff] }
0x213f   :  { %9555 = vst [vmem:[#allocation65_spill] sm:$0xff] %v8422_v28  ;;  %v5897_v15 = vmul.f32 -1.442695, %v8422_v28 }
0x2141   :  { %6291 = vpow2.f32 %v5897_v15 }
0x214e   :  { %v6292_v38 = vpop.eup %6291 }
0x214f   :  { %v4524_v51 = vadd.f32 1.0, %v6292_v38 }
0x2151   :  { %6293 = vrcp.f32 %v4524_v51 }
0x215e   :  { %v6294_v21 = vpop.eup %6293 }
0x215f   :  { %v4527_v6 = vmul.f32 %v6294_v21, %v8422_v28 }
0x2161   :  { %v4528_v46 = vsub.f32 %v8422_v28, %v4527_v6 }
0x2163   :  { %v8429_v1 = vsel %vm253_vm8, %v4527_v6, %v4528_v46 }
0x2164   :  { %9557 = vst [vmem:[#allocation29_spill] sm:$0xff] %v8429_v1  ;;  %v4531_v58 = vrot.slane %v8429_v1, 4  ;;  %v4949_v2 = vpack.c.bf16 %v8429_v1, %v8429_v1  ;;  %v5023_v37 = vcombine.high %v8429_v1, %v8429_v1 }
0x2166   :  { %6133 = vmatmul.mubr.msk.f32.vlgmr.msra.gmra.mxu0 %vm278_vm2, %v4531_v58  ;;  %v4951_v18 = vrot.slane %v4949_v2, 2 }
0x2167   :  { %6144 = vmatpush3.msra.mxu0 %v8435_v43  ;;  %6151 = vmatprep.mubr.msk.f32.mxu0 %vm6496_vm0, %v9559_v7 }
0x2168   :  { %6140 = vmatmul.mubr.msk.bf16.vlgmr.msra.gmra.mxu1 %vm278_vm2, %v4951_v18  ;;  %6145 = vmatprep.subr.mxu0 %v9559_v7 }
0x2169   :  { %6162 = vmatprep.mubr.msk.f32.mxu1 %vm278_vm2, %v9560_v12  ;;  %6146 = vmatpush3.msra.mxu0 %v8444_v9  ;;  %v9567_v12 = vmov 2  }
0x216a   :  { %6147 = vmatprep.subr.mxu0 %v9559_v7 }
0x216b   :  { %6148 = vmatpush3.msra.mxu0 %v8448_v16 }
0x216c   :  { %6149 = vmatprep.subr.mxu0 %v9559_v7  ;;  %v9566_v7 = vmov 1  }
0x216d   :  { %6150 = vmatpush3.msra.mxu0 %v8452_v30 }
0x2226   :  { %v4600_v33 = vpop.f32.mrf.mxu0 }
0x2227   :  { %v4601_v15 = vadd.f32 %v4600_v33, %v9564_v29  ;;  %v3994_v33 = vpop.permute.xlu1 %3993 }
0x2228   :  { %v6134_v38 = vpop.f32.mrf.mxu0  ;;  %v8456_v51 = vpop.f32.mrf.mxu1  ;;  %v3996_v47 = vmul.f32 %v9569_v40, %v3994_v33  ;;  %v9574_v33 = vld [vmem:[#allocation53_spill] sm:$0xff] }
0x2229   :  { %9565 = vst [vmem:[#allocation68_spill] sm:$0xff] %v8456_v51  ;;  %v4604_v21 = vsel %vm626_vm9, %v4601_v15, -inf  ;;  %v9568_v38 = vmov 3  }
0x222a   :  { %v6141_v6 = vpop.f32.mrf.mxu1  ;;  %4605 = vmax.xlane.f32.xlu0 %v4604_v21  ;;  %v9570_v21 = vmov 0  }
0x222c   :  { %v4992_v46 = vpop.f32.mrf.mxu1 }
0x222d   :  { %v9571_v46 = vld [vmem:[#allocation51_spill] sm:$0xff] }
0x222e   :  { %v6142_v58 = vpop.f32.mrf.mxu1 }
0x22b3   :  { %v4606_v2 = vpop.xlane.xlu0 %4605 }
0x22b4   :  { %vm4607_vm0 = vcmp.ge.f32.partialorder %v4601_v15, %v4606_v2  ;;  %v9572_v2 = vld [vmem:[#allocation37_spill] sm:$0xff] }
0x22b5   :  { %v4608_v18 = vsel %vm4607_vm0, %v4601_v15, 0.0  ;;  %v4141_v60 = vrot.slane %v9553_v23, %v9572_v2 }
0x22b6   :  { %4611 = vperm.xlu1 %6197, %v4608_v18  }
0x22ba   :  { %6214 = vset.pattern.permute.xlu1 %v9566_v7 }
0x22bb   :  { %4621 = vperm.xlu1 %6214, %v4608_v18  }
0x22bf   :  { %6215 = vset.pattern.permute.xlu1 %v9567_v12 }
0x22c0   :  { %4631 = vperm.xlu1 %6215, %v4608_v18  }
0x22c4   :  { %6216 = vset.pattern.permute.xlu1 %v9568_v38 }
0x22c5   :  { %4641 = vperm.xlu1 %6216, %v4608_v18  }
0x22c9   :  { %3998 = vrot.lane.b32.xlu1 %v3996_v47, %s6500_s20 }
0x22ca   :  { %6217 = vset.pattern.permute.xlu1 %v9570_v21  ;;  %v3990_v21 = vrot.slane %v9575_v10, 6 }
0x22cc   :  { %v3992_v19 = vmul.f32 %v9569_v40, %v3990_v21 }
0x2331   :  { %v4612_v6 = vpop.permute.xlu1 %4611 }
0x2332   :  { %v4614_v15 = vmul.f32 %v4612_v6, %v9571_v46 }
0x2334   :  { %4616 = vrot.lane.b32.xlu1 %v4614_v15, %s6504_s2 }
0x2336   :  { %v4622_v58 = vpop.permute.xlu1 %4621 }
0x2337   :  { %v4624_v26 = vmul.f32 %v4622_v58, %v9573_v11 }
0x2338   :  { %4143 = vbcast.lane.b32.xlu1 %v4141_v60, 256 }
0x2339   :  { %4626 = vrot.lane.b32.xlu0 %v4624_v26, %s6504_s2  ;;  %v4160_v26 = vrot.slane %v9553_v23, %v9578_v50 }
0x233b   :  { %v4632_v18 = vpop.permute.xlu1 %4631 }
0x233c   :  { %4147 = vbcast.lane.b32.xlu1 %v4141_v60, 264  ;;  %v4634_v47 = vmul.f32 %v4632_v18, %v9574_v33 }
0x2340   :  { %4636 = vrot.lane.b32.xlu1 %v4634_v47, %s6504_s2  ;;  %v4642_v6 = vpop.permute.xlu1 %4641 }
0x2341   :  { %v4644_v15 = vmul.f32 %v4642_v6, %v9576_v59  ;;  %v9579_v59 = vld [vmem:[#allocation27_spill] sm:$0xff] }
0x2344   :  { %4646 = vrot.lane.b32.xlu1 %v4644_v15, %s6504_s2  ;;  %v3999_v0 = vpop.permute.xlu1 %3998 }
0x2345   :  { %v8477_v58 = vadd.f32 %v3999_v0, %v3992_v19  ;;  %v4085_v19 = vrot.slane %v9569_v40, %v9572_v2  ;;  %v4105_v0 = vrot.slane %v9569_v40, %v9578_v50 }
0x2347   :  { %9577 = vst [vmem:[#allocation22_spill] sm:$0xff] %v8477_v58  ;;  %v4219_v18 = vrot.slane %v8477_v58, %v9572_v2  ;;  %v4238_v47 = vrot.slane %v8477_v58, %v9578_v50 }
0x2348   :  { %4162 = vbcast.lane.b32.xlu1 %v4160_v26, 256 }
0x2349   :  { %4221 = vbcast.lane.b32.xlu0 %v4219_v18, 256 }
0x234c   :  { %4166 = vbcast.lane.b32.xlu1 %v4160_v26, 264 }
0x234d   :  { %4240 = vbcast.lane.b32.xlu0 %v4238_v47, 256 }
0x2350   :  { %4225 = vbcast.lane.b32.xlu1 %v4219_v18, 264 }
0x2351   :  { %4151 = vbcast.lane.b32.xlu0 %v4141_v60, 272 }
0x2354   :  { %4244 = vbcast.lane.b32.xlu1 %v4238_v47, 264 }
0x2355   :  { %4229 = vbcast.lane.b32.xlu0 %v4219_v18, 272 }
0x2358   :  { %4170 = vbcast.lane.b32.xlu1 %v4160_v26, 272 }
0x2359   :  { %4088 = vbcast.lane.b32.xlu0 %v4085_v19, 320 }
0x235c   :  { %4248 = vbcast.lane.b32.xlu1 %v4238_v47, 272 }
0x235d   :  { %4108 = vbcast.lane.b32.xlu0 %v4105_v0, 320 }
0x2360   :  { %4092 = vbcast.lane.b32.xlu1 %v4085_v19, 328 }
0x2361   :  { %4155 = vbcast.lane.b32.xlu0 %v4141_v60, 280 }
0x2364   :  { %4112 = vbcast.lane.b32.xlu1 %v4105_v0, 328 }
0x2365   :  { %4233 = vbcast.lane.b32.xlu0 %v4219_v18, 280 }
0x2368   :  { %4174 = vbcast.lane.b32.xlu1 %v4160_v26, 280  ;;  %v9580_v26 = vld [vmem:[#allocation28_spill] sm:$0xff] }
0x2369   :  { %4096 = vbcast.lane.b32.xlu0 %v4085_v19, 336 }
0x236c   :  { %4252 = vbcast.lane.b32.xlu1 %v4238_v47, 280 }
0x236d   :  { %4100 = vbcast.lane.b32.xlu0 %v4085_v19, 344 }
0x2370   :  { %4116 = vbcast.lane.b32.xlu1 %v4105_v0, 336 }
0x2374   :  { %4120 = vbcast.lane.b32.xlu1 %v4105_v0, 344 }
0x23a6   :  { %v4617_v21 = vpop.permute.xlu1 %4616 }
0x23a7   :  { %v4619_v33 = vadd.f32 %v4617_v21, %v9579_v59 }
0x23aa   :  { %v4144_v6 = vpop.permute.xlu1 %4143 }
0x23ab   :  { %v4627_v15 = vpop.permute.xlu0 %4626 }
0x23ac   :  { %v4629_v50 = vadd.f32 %v4627_v15, %v4619_v33 }
0x23ae   :  { %v4148_v2 = vpop.permute.xlu1 %4147 }
0x23b2   :  { %v4637_v11 = vpop.permute.xlu1 %4636 }
0x23b3   :  { %v4639_v40 = vadd.f32 %v4637_v11, %v4629_v50 }
0x23b6   :  { %v4647_v46 = vpop.permute.xlu1 %4646 }
0x23b7   :  { %v4649_v58 = vadd.f32 %v4647_v46, %v4639_v40 }
0x23b9   :  { %v4674_v60 = vrot.slane %v4649_v58, %v6627_v17  ;;  %v4694_v18 = vrot.slane %v4649_v58, %v9580_v26  ;;  %v9581_v26 = vld [vmem:[#allocation23_spill] sm:$0xff] }
0x23ba   :  { %v4163_v47 = vpop.permute.xlu1 %4162  ;;  %v4182_v48 = vrot.slane %v9575_v10, %v9581_v26  ;;  %v5030_v30 = vrot.slane %v5023_v37, %v9581_v26  ;;  %v9584_v37 = vclamps-f32 %v8292_v32, 5.0 }
0x23bb   :  { %4681 = vbcast.lane.b32.xlu1 %v4674_v60, 300  ;;  %4677 = vbcast.lane.b32.xlu0 %v4674_v60, 292  ;;  %v4222_v0 = vpop.permute.xlu0 %4221 }
0x23bc   :  { %v4183_v29 = vcombine.high %v4182_v48, %v4182_v48  ;;  %v4190_v16 = vrot.slane %v4182_v48, %v9581_v26  ;;  %v5031_v43 = vcombine.high %v5030_v30, %v5030_v30  ;;  %v5038_v61 = vrot.slane %v5030_v30, %v9581_v26 }
0x23bd   :  { %v4254_v52 = vmul.f32 %v4222_v0, %v9582_v36  ;;  %v4663_v38 = vmul.f32 %v9584_v37, %v9404_v54  ;;  %v9587_v0 = vclamps-f32 %v8309_v56, 5.0  ;;  %v9588_v37 = vclamps-f32 %v8307_v35, 5.0 }
0x23be   :  { %v4167_v19 = vpop.permute.xlu1 %4166  ;;  %v4197_v9 = vrot.slane %v4183_v29, %v9581_v26  ;;  %v4201_v63 = vrot.slane %v4190_v16, %v6627_v17  ;;  %v9586_v16 = vclamps-f32 %v8290_v57, 5.0  ;;  %v8521_v51 = vrot.slane %v5031_v43, %v9581_v26 }
0x23bf   :  { %4701 = vbcast.lane.b32.xlu1 %v4694_v18, 300  ;;  %4697 = vbcast.lane.b32.xlu0 %v4694_v18, 292  ;;  %v4241_v33 = vpop.permute.xlu0 %4240  ;;  %v4668_v39 = vmul.f32 %v9588_v37, %v9585_v41  ;;  %v8528_v57 = vrot.slane %v5038_v61, %v6627_v17 }
0x23c0   :  { %v4205_v10 = vrot.slane %v4197_v9, %v6627_v17  ;;  %v4258_v34 = vmul.f32 %v4241_v33, %v9583_v4  ;;  %v4664_v9 = vmul.f32 %v9586_v16, %v9585_v41  ;;  %v4208_v55 = vmul.f32 %v4201_v63, %v4144_v6 }
0x23c1   :  { %v8518_v33 = vmul.f32 %v9587_v0, %v9404_v54  ;;  %v4209_v32 = vmul.f32 %v4201_v63, %v4148_v2 }
0x23c2   :  { %v4226_v21 = vpop.permute.xlu1 %4225  ;;  %v4212_v30 = vmul.f32 %v4205_v10, %v4163_v47  ;;  %v4213_v6 = vmul.f32 %v4205_v10, %v4167_v19  ;;  %v4262_v47 = vsub.f32 %v4208_v55, %v4254_v52 }
0x23c3   :  { %4705 = vbcast.lane.b32.xlu1 %v4694_v18, 308  ;;  %4685 = vbcast.lane.b32.xlu0 %v4674_v60, 308  ;;  %v4152_v15 = vpop.permute.xlu0 %4151  ;;  %v4255_v48 = vmul.f32 %v4226_v21, %v9582_v36 }
0x23c4   :  { %v4266_v16 = vsub.f32 %v4212_v30, %v4258_v34  ;;  %v4210_v2 = vmul.f32 %v4201_v63, %v4152_v15 }
0x23c5   :  { %v4263_v24 = vsub.f32 %v4209_v32, %v4255_v48 }
0x23c6   :  { %v4245_v11 = vpop.permute.xlu1 %4244 }
0x23c7   :  { %4709 = vbcast.lane.b32.xlu1 %v4694_v18, 316  ;;  %4689 = vbcast.lane.b32.xlu0 %v4674_v60, 316  ;;  %v4230_v50 = vpop.permute.xlu0 %4229  ;;  %v4259_v21 = vmul.f32 %v4245_v11, %v9583_v4 }
0x23c8   :  { %v4256_v11 = vmul.f32 %v4230_v50, %v9582_v36 }
0x23c9   :  { %v4267_v41 = vsub.f32 %v4213_v6, %v4259_v21 }
0x23ca   :  { %v4171_v46 = vpop.permute.xlu1 %4170 }
0x23cb   :  { %v4089_v59 = vpop.permute.xlu0 %4088  ;;  %v4214_v52 = vmul.f32 %v4205_v10, %v4171_v46 }
0x23cc   :  { %v4122_v29 = vsub.f32 1.0, %v4089_v59  ;;  %v4270_v19 = vmul.f32 %v4262_v47, %v4089_v59 }
0x23ce   :  { %v4249_v40 = vpop.permute.xlu1 %4248  ;;  %v4130_v56 = vmul.f32 %v4122_v29, %v8279_v14 }
0x23cf   :  { %v4109_v7 = vpop.permute.xlu0 %4108  ;;  %v4260_v54 = vmul.f32 %v4249_v40, %v9583_v4 }
0x23d0   :  { %v4126_v62 = vsub.f32 1.0, %v4109_v7  ;;  %v4274_v14 = vmul.f32 %v4266_v16, %v4109_v7  ;;  %v8538_v29 = vadd.f32 %v4270_v19, %v4130_v56 }
0x23d1   :  { %v4268_v40 = vsub.f32 %v4214_v52, %v4260_v54 }
0x23d2   :  { %v4093_v12 = vpop.permute.xlu1 %4092  ;;  %v4134_v35 = vmul.f32 %v4126_v62, %v8294_v22  ;;  %v4264_v22 = vsub.f32 %v4210_v2, %v4256_v11  ;;  %v9589_v11 = vclamps-f32 %v8341_v45, 5.0 }
0x23d3   :  { %v4156_v18 = vpop.permute.xlu0 %4155  ;;  %v4123_v13 = vsub.f32 1.0, %v4093_v12  ;;  %v4271_v55 = vmul.f32 %v4263_v24, %v4093_v12 }
0x23d4   :  { %v8542_v59 = vadd.f32 %v4274_v14, %v4134_v35 }
0x23d5   :  { %v4131_v0 = vmul.f32 %v4123_v13, %v8277_v49  ;;  %v4211_v13 = vmul.f32 %v4201_v63, %v4156_v18 }
0x23d6   :  { %v8492_v58 = vpop.permute.xlu1 %4112 }
0x23d7   :  { %v4234_v23 = vpop.permute.xlu0 %4233  ;;  %v4127_v43 = vsub.f32 1.0, %v8492_v58  ;;  %v8540_v50 = vadd.f32 %v4271_v55, %v4131_v0  ;;  %v4275_v24 = vmul.f32 %v4267_v41, %v8492_v58 }
0x23d8   :  { %v4257_v34 = vmul.f32 %v4234_v23, %v9582_v36 }
0x23d9   :  { %v4135_v15 = vmul.f32 %v4127_v43, %v8285_v27 }
0x23da   :  { %v8496_v60 = vpop.permute.xlu1 %4174  ;;  %v4265_v36 = vsub.f32 %v4211_v13, %v4257_v34 }
0x23db   :  { %v4097_v1 = vpop.permute.xlu0 %4096  ;;  %v4215_v46 = vmul.f32 %v4205_v10, %v8496_v60  ;;  %v8555_v6 = vadd.f32 %v4275_v24, %v4135_v15  ;;  %v9591_v15 = vclamps-f32 %v8362_v8, 5.0  ;;  %v9592_v24 = vld [vmem:[#allocation62_spill] sm:$0xff] }
0x23dc   :  { %v4124_v48 = vsub.f32 1.0, %v4097_v1  ;;  %v4272_v41 = vmul.f32 %v4264_v22, %v4097_v1 }
0x23de   :  { %v4253_v28 = vpop.permute.xlu1 %4252  ;;  %v4132_v27 = vmul.f32 %v4124_v48, %v8304_v53 }
0x23df   :  { %v4101_v37 = vpop.permute.xlu0 %4100  ;;  %v4261_v7 = vmul.f32 %v4253_v28, %v9583_v4 }
0x23e0   :  { %v4125_v62 = vsub.f32 1.0, %v4101_v37  ;;  %v4273_v47 = vmul.f32 %v4265_v36, %v4101_v37  ;;  %v9593_v36 = vclamps-f32 %v9592_v24, 5.0 }
0x23e1   :  { %v4269_v60 = vsub.f32 %v4215_v46, %v4261_v7 }
0x23e2   :  { %v4117_v44 = vpop.permute.xlu1 %4116  ;;  %v4133_v58 = vmul.f32 %v4125_v62, %v8337_v25 }
0x23e3   :  { %v4128_v49 = vsub.f32 1.0, %v4117_v44  ;;  %v4276_v16 = vmul.f32 %v4268_v40, %v4117_v44  ;;  %v4666_v40 = vmul.f32 %v9591_v15, %v9295_v20 }
0x23e4   :  { %v8591_v14 = vadd.f32 %v4273_v47, %v4133_v58 }
0x23e5   :  { %v4136_v12 = vmul.f32 %v4128_v49, %v8302_v5 }
0x23e6   :  { %v4121_v61 = vpop.permute.xlu1 %4120 }
0x23e7   :  { %v4129_v54 = vsub.f32 1.0, %v4121_v61  ;;  %v8565_v1 = vadd.f32 %v4276_v16, %v4136_v12  ;;  %v4277_v2 = vmul.f32 %v4269_v60, %v4121_v61 }
0x23e9   :  { %v4137_v10 = vmul.f32 %v4129_v54, %v8332_v31  ;;  %v8580_v31 = vrot.slane %v8521_v51, %v6627_v17 }
0x23eb   :  { %v8596_v48 = vadd.f32 %v4277_v2, %v4137_v10 }
0x242d   :  { %v4678_v30 = vpop.permute.xlu0 %4677  ;;  %v4682_v32 = vpop.permute.xlu1 %4681 }
0x242e   :  { %v4711_v23 = vmul.f32 %v4678_v30, %v8538_v29  ;;  %v4712_v63 = vmul.f32 %v4682_v32, %v8540_v50 }
0x2430   :  { %v8551_v18 = vadd.f32 %v4711_v23, %v4663_v38  ;;  %v8553_v21 = vadd.f32 %v4712_v63, %v4664_v9  ;;  %v8563_v9 = vadd.f32 %v4272_v41, %v4132_v27  ;;  %v4670_v23 = vmul.f32 %v9593_v36, %v9295_v20 }
0x2431   :  { %v4698_v56 = vpop.permute.xlu0 %4697  ;;  %v4702_v53 = vpop.permute.xlu1 %4701 }
0x2432   :  { %v5899_v4 = vclamps-f32 %v8551_v18, 5.0  ;;  %v5900_v5 = vclamps-f32 %v8553_v21, 5.0  ;;  %v4715_v28 = vmul.f32 %v4698_v56, %v8542_v59  ;;  %v4716_v38 = vmul.f32 %v4702_v53, %v8555_v6 }
0x2434   :  { %v8568_v25 = vadd.f32 %v4715_v28, %v8518_v33  ;;  %v8570_v44 = vadd.f32 %v4716_v38, %v4668_v39  ;;  %v5056_v0 = vmul.f32 %v5899_v4, %v8528_v57  ;;  %v5057_v43 = vmul.f32 %v5900_v5, %v8528_v57  ;;  %v9594_v28 = vld [vmem:[#allocation30_spill] sm:$0xff]  ;;  %v9595_v38 = vld [vmem:[#allocation68_spill] sm:$0xff] }
0x2435   :  { %v4665_v33 = vmul.f32 %v9589_v11, %v6930_v3  ;;  %v4686_v35 = vpop.permute.xlu0 %4685  ;;  %v9590_v39 = vclamps-f32 %v8339_v42, 5.0  ;;  %v4706_v19 = vpop.permute.xlu1 %4705  ;;  %v4990_v60 = vadd.f32 %v9595_v38, %v9594_v28 }
0x2436   :  { %v9229_v55 = vclamps-f32 %v8568_v25, 5.0  ;;  %v4713_v34 = vmul.f32 %v4686_v35, %v8563_v9  ;;  %v4717_v52 = vmul.f32 %v4706_v19, %v8565_v1  ;;  %v9228_v51 = vclamps-f32 %v8570_v44, 5.0  ;;  %v9596_v19 = vld [vmem:[#allocation32_spill] sm:$0xff] }
0x2437   :  { %v4669_v37 = vmul.f32 %v9590_v39, %v6930_v3  ;;  %v5064_v61 = vsel %vm278_vm2, %v5056_v0, 0.0  ;;  %v5067_v45 = vsel %vm278_vm2, %v5057_v43, 0.0  ;;  %v4995_v2 = vsel %vm322_vm3, %v4990_v60, 0.0 }
0x2438   :  { %v8598_v49 = vadd.f32 %v4713_v34, %v4665_v33  ;;  %5065 = vadd.xlane.f32.xlu0 %v5064_v61  ;;  %5068 = vadd.xlane.f32.xlu1 %v5067_v45  ;;  %v5060_v13 = vmul.f32 %v9229_v55, %v8580_v31  ;;  %v5061_v8 = vmul.f32 %v9228_v51, %v8580_v31 }
0x2439   :  { %v8600_v42 = vadd.f32 %v4717_v52, %v4669_v37  ;;  %v4690_v22 = vpop.permute.xlu0 %4689  ;;  %v4710_v62 = vpop.permute.xlu1 %4709  ;;  %v4999_v33 = vmul.f32 %v4990_v60, %v4990_v60  ;;  %v9597_v52 = vld [vmem:[#allocation31_spill] sm:$0xff] }
0x243a   :  { %v9231_v30 = vclamps-f32 %v8598_v49, 5.0  ;;  %v4714_v32 = vmul.f32 %v4690_v22, %v8591_v14  ;;  %v4718_v63 = vmul.f32 %v4710_v62, %v8596_v48  ;;  %v5076_v7 = vsel %vm278_vm2, %v5060_v13, 0.0  ;;  %v9598_v22 = vld [vmem:[#allocation33_spill] sm:$0xff] }
0x243b   :  { %v9227_v27 = vclamps-f32 %v8600_v42, 5.0  ;;  %v5079_v16 = vsel %vm278_vm2, %v5061_v8, 0.0  ;;  %v5000_v35 = vsel %vm322_vm3, %v4999_v33, 0.0 }
0x243c   :  { %v8619_v12 = vadd.f32 %v4714_v32, %v4666_v40  ;;  %v8621_v54 = vadd.f32 %v4718_v63, %v4670_v23  ;;  %5077 = vadd.xlane.f32.xlu0 %v5076_v7  ;;  %v5058_v46 = vmul.f32 %v9231_v30, %v8528_v57  ;;  %v9599_v23 = vld [vmem:[#allocation34_spill] sm:$0xff] }
0x243d   :  { %v5062_v56 = vmul.f32 %v9227_v27, %v8580_v31 }
0x243e   :  { %v9230_v41 = vclamps-f32 %v8619_v12, 5.0  ;;  %v5070_v58 = vsel %vm278_vm2, %v5058_v46, 0.0  ;;  %v9226_v47 = vclamps-f32 %v8621_v54, 5.0 }
0x243f   :  { %5071 = vadd.xlane.f32.xlu1 %v5070_v58  ;;  %v5082_v0 = vsel %vm278_vm2, %v5062_v56, 0.0  ;;  %v9600_v58 = vmov 3  }
0x2440   :  { %5080 = vadd.xlane.f32.xlu0 %v5079_v16  ;;  %v5059_v53 = vmul.f32 %v9230_v41, %v8528_v57  ;;  %v5063_v43 = vmul.f32 %v9226_v47, %v8580_v31 }
0x2442   :  { %v5073_v10 = vsel %vm278_vm2, %v5059_v53, 0.0  ;;  %v5085_v11 = vsel %vm278_vm2, %v5063_v43, 0.0 }
0x2443   :  { %5074 = vadd.xlane.f32.xlu1 %v5073_v10 }
0x2444   :  { %5083 = vadd.xlane.f32.xlu0 %v5082_v0 }
0x2447   :  { %4996 = vadd.xlane.f32.xlu1 %v4995_v2 }
0x2448   :  { %5086 = vadd.xlane.f32.xlu0 %v5085_v11 }
0x244c   :  { %5001 = vadd.xlane.f32.xlu0 %v5000_v35 }
0x24c1   :  { %v5066_v39 = vpop.xlane.xlu0 %5065  ;;  %v5069_v37 = vpop.xlane.xlu1 %5068 }
0x24c2   :  { %v5088_v34 = vmul.f32 %v5066_v39, %v9596_v19  ;;  %v5089_v61 = vmul.f32 %v5069_v37, %v9597_v52 }
0x24c4   :  { %5105 = vperm.xlu1 %6217, %v5088_v34   ;;  %5108 = vperm.xlu0 %6213, %v5089_v61   ;;  %v9601_v34 = vld [vmem:[#allocation42_spill] sm:$0xff] }
0x24c5   :  { %v5078_v45 = vpop.xlane.xlu0 %5077 }
0x24c6   :  { %v5092_v13 = vmul.f32 %v5078_v45, %v9596_v19  ;;  %v9602_v45 = vld [vmem:[#allocation47_spill] sm:$0xff] }
0x24c8   :  { %5117 = vperm.xlu1 %6217, %v5092_v13   ;;  %v5072_v15 = vpop.xlane.xlu1 %5071 }
0x24c9   :  { %v5081_v40 = vpop.xlane.xlu0 %5080  ;;  %v5090_v62 = vmul.f32 %v5072_v15, %v9598_v22 }
0x24ca   :  { %v5093_v32 = vmul.f32 %v5081_v40, %v9597_v52 }
0x24cb   :  { %5111 = vperm.xlu0 %6213, %v5090_v62  }
0x24cc   :  { %5120 = vperm.xlu1 %6217, %v5093_v32   ;;  %v5075_v24 = vpop.xlane.xlu1 %5074  ;;  %v9604_v32 = vld [vmem:[#allocation41_spill] sm:$0xff] }
0x24cd   :  { %v5084_v36 = vpop.xlane.xlu0 %5083  ;;  %v5091_v63 = vmul.f32 %v5075_v24, %v9599_v23 }
0x24ce   :  { %v5094_v7 = vmul.f32 %v5084_v36, %v9598_v22  ;;  %v9603_v22 = vld [vmem:[#allocation40_spill] sm:$0xff] }
0x24cf   :  { %5114 = vperm.xlu0 %6213, %v5091_v63  }
0x24d0   :  { %5123 = vperm.xlu1 %6217, %v5094_v7   ;;  %v4997_v16 = vpop.xlane.xlu1 %4996 }
0x24d1   :  { %v5087_v8 = vpop.xlane.xlu0 %5086  ;;  %v4998_v53 = vmul.f32 0.0078125, %v4997_v16 }
0x24d2   :  { %v5095_v46 = vmul.f32 %v5087_v8, %v9599_v23  ;;  %v9605_v23 = vld [vmem:[#allocation43_spill] sm:$0xff]  ;;  %v9606_v8 = vld [vmem:[#allocation44_spill] sm:$0xff] }
0x24d3   :  { %6220 = vset.pattern.permute.xlu0 %v9600_v58  ;;  %v5004_v38 = vmul.f32 %v4998_v53, %v4998_v53  ;;  %v5007_v33 = vsub.f32 %v4990_v60, %v4998_v53 }
0x24d4   :  { %5126 = vperm.xlu1 %6217, %v5095_v46  }
0x24d5   :  { %v5002_v56 = vpop.xlane.xlu0 %5001 }
0x24d6   :  { %v5003_v28 = vmul.f32 0.0078125, %v5002_v56 }
0x24d8   :  { %v5005_v10 = vsub.f32 %v5003_v28, %v5004_v38 }
0x24da   :  { %v5006_v0 = vmax.f32 %v5005_v10, 0.0 }
0x24dc   :  { %v5008_v43 = vadd.f32 1e-05, %v5006_v0 }
0x24de   :  { %6295 = vrsqrt.f32 %v5008_v43 }
0x24eb   :  { %v6296_v2 = vpop.eup %6295 }
0x24ec   :  { %v5010_v39 = vmul.f32 %v6296_v2, %v5007_v33  ;;  %v9607_v2 = vld [vmem:[#allocation70_spill] sm:$0xff] }
0x24ee   :  { %v5011_v52 = vmul.f32 %v5010_v39, %v9601_v34 }
0x24f0   :  { %v5012_v13 = vadd.f32 %v5011_v52, %v9602_v45  ;;  %v9608_v45 = vld [vmem:[#allocation25_spill] sm:$0xff] }
0x24f2   :  { %v5014_v58 = vrot.slane %v5012_v13, 2  ;;  %v9609_v13 = vld [vmem:[#allocation61_spill] sm:$0xff] }
0x253f   :  { %v5106_v11 = vpop.permute.xlu1 %5105  ;;  %v5109_v35 = vpop.permute.xlu0 %5108 }
0x2540   :  { %v5135_v62 = vrot.slane %v5109_v35, %v9603_v22  ;;  %v5131_v24 = vrot.slane %v5106_v11, %v9604_v32  ;;  %v5016_v11 = vadd.f32 %v5014_v58, %v9607_v2 }
0x2542   :  { %v5136_v56 = vsel %vm491_vm4, %v5135_v62, %v5131_v24  ;;  %v5908_v39 = vmul.f32 -1.442695, %v5016_v11  ;;  %v9613_v62 = vld [vmem:[#allocation65_spill] sm:$0xff] }
0x2543   :  { %v5118_v37 = vpop.permute.xlu1 %5117 }
0x2544   :  { %v5150_v7 = vrot.slane %v5118_v37, %v9604_v32  ;;  %6297 = vpow2.f32 %v5908_v39  ;;  %v5170_v32 = vrot.slane %v9613_v62, 6 }
0x2546   :  { %v5112_v19 = vpop.permute.xlu0 %5111 }
0x2547   :  { %v5121_v61 = vpop.permute.xlu1 %5120  ;;  %v5140_v63 = vrot.slane %v5112_v19, %v9605_v23 }
0x2548   :  { %v5154_v36 = vrot.slane %v5121_v61, %v9603_v22  ;;  %v9612_v22 = vld [vmem:[#allocation29_spill] sm:$0xff] }
0x2549   :  { %v5141_v38 = vsel %vm498_vm5, %v5140_v63, %v5136_v56 }
0x254a   :  { %v5115_v15 = vpop.permute.xlu0 %5114  ;;  %v5155_v53 = vsel %vm491_vm4, %v5154_v36, %v5150_v7  ;;  %vm5610_vm4 = vcmask 261126  }
0x254b   :  { %v5124_v40 = vpop.permute.xlu1 %5123  ;;  %v5145_v46 = vrot.slane %v5115_v15, %v9606_v8  ;;  %v9610_v15 = vld [vmem:[#allocation57_spill] sm:$0xff] }
0x254c   :  { %v5159_v60 = vrot.slane %v5124_v40, %v9605_v23  ;;  %v9611_v40 = vld [vmem:[#allocation64_spill] sm:$0xff] }
0x254d   :  { %v5146_v0 = vsel %vm505_vm6, %v5145_v46, %v5141_v38  ;;  %v9614_v38 = vld [vmem:[#allocation59_spill] sm:$0xff] }
0x254e   :  { %v5160_v10 = vsel %vm498_vm5, %v5159_v60, %v5155_v53 }
0x254f   :  { %v5127_v16 = vpop.permute.xlu1 %5126 }
0x2550   :  { %v5164_v28 = vrot.slane %v5127_v16, %v9606_v8 }
0x2551   :  { %v6298_v37 = vpop.eup %6297 }
0x2552   :  { %v5165_v43 = vsel %vm505_vm6, %v5164_v28, %v5160_v10  ;;  %v5020_v19 = vadd.f32 1.0, %v6298_v37  ;;  %v9615_v10 = vld [vmem:[#allocation67_spill] sm:$0xff]  ;;  %v9617_v37 = vld [vmem:[#allocation50_spill] sm:$0xff] }
0x2553   :  { %v5166_v33 = vsel %vm2523_vm15, %v5165_v43, %v5146_v0  ;;  %v5635_v0 = vsel %vm322_vm3, %v9615_v10, %v9614_v38 }
0x2554   :  { %v5168_v35 = vadd.f32 %v5166_v33, %v5016_v11  ;;  %6299 = vrcp.f32 %v5020_v19  ;;  %v5636_v11 = vsel %vm5631_vm1, %v5635_v0, %v9612_v22 }
0x2556   :  { %5174 = vrot.lane.b32.xlu0 %v5168_v35, %s6499_s7 }
0x2561   :  { %v8674_v34 = vpop.eup %6299 }
0x2562   :  { %v5172_v24 = vmul.f32 %v8674_v34, %v5170_v32  ;;  %v9620_v32 = vmov 1  }
0x25c8   :  { %v5175_v52 = vpop.permute.xlu0 %5174 }
0x25c9   :  { %v5177_v61 = vmul.f32 %v8674_v34, %v5175_v52 }
0x25cb   :  { %5179 = vrot.lane.b32.xlu1 %v5177_v61, %s6500_s20 }
0x25cf   :  { %5650 = vrot.lane.b32.xlu1 %v9608_v45, %s6506_s4 }
0x25d3   :  { %5648 = vrot.lane.b32.xlu1 %v9609_v13, %s6506_s4 }
0x25d7   :  { %5646 = vrot.lane.b32.xlu1 %v9610_v15, %s6506_s4  ;;  %v9618_v15 = vld [vmem:[#allocation39_spill] sm:$0xff] }
0x25db   :  { %5644 = vrot.lane.b32.xlu1 %v9611_v40, %s6506_s4  ;;  %v9619_v40 = vld [vmem:[#allocation24_spill] sm:$0xff] }
0x25dc   :  { %v4766_v62 = vrot.slane %v9619_v40, %v9618_v15 }
0x25df   :  { %4654 = vrot.lane.b32.xlu1 %v9612_v22, %s6505_s23 }
0x263d   :  { %v5180_v36 = vpop.permute.xlu1 %5179 }
0x263e   :  { %v5182_v23 = vadd.f32 %v5180_v36, %v5172_v24  ;;  %v9621_v24 = vmov 2   ;;  %v9622_v36 = vld [vmem:[#allocation36_spill] sm:$0xff] }
0x2640   :  { %v5909_v63 = vmul.f32 -1.442695, %v5182_v23  ;;  %5612 = vst.msk [vmem:[%s8942_s11 - $0x6] sm:$0xc0] %vm5610_vm4, %v5182_v23 }
0x2641   :  { %v5651_v60 = vpop.permute.xlu1 %5650 }
0x2642   :  { %6301 = vpow2.f32 %v5909_v63  ;;  %6154 = vmatprep.subr.mxu1 %v5651_v60 }
0x2643   :  { %6155 = vmatpush3.msra.mxu1 %v5651_v60 }
0x2645   :  { %v5649_v7 = vpop.permute.xlu1 %5648 }
0x2646   :  { %6156 = vmatprep.subr.mxu1 %v5649_v7 }
0x2647   :  { %6157 = vmatpush3.msra.mxu1 %v5649_v7  ;;  %v4821_v7 = vrot.slane %v9612_v22, %v9618_v15 }
0x2649   :  { %v5647_v8 = vpop.permute.xlu1 %5646 }
0x264a   :  { %6158 = vmatprep.subr.mxu1 %v5647_v8 }
0x264b   :  { %6159 = vmatpush3.msra.mxu1 %v5647_v8 }
0x264d   :  { %v5645_v46 = vpop.permute.xlu1 %5644 }
0x264e   :  { %6160 = vmatprep.subr.mxu1 %v5645_v46 }
0x264f   :  { %v6302_v58 = vpop.eup %6301  ;;  %6161 = vmatpush3.msra.mxu1 %v5645_v46 }
0x2650   :  { %v5186_v16 = vadd.f32 1.0, %v6302_v58 }
0x2651   :  { %v4655_v63 = vpop.permute.xlu1 %4654 }
0x2652   :  { %6303 = vrcp.f32 %v5186_v16  ;;  %v4657_v60 = vmul.f32 %v9619_v40, %v4655_v63  ;;  %v9623_v16 = vld [vmem:[#allocation22_spill] sm:$0xff] }
0x2653   :  { %v4843_v63 = vrot.slane %v9623_v16, %v9581_v26 }
0x265f   :  { %v6304_v56 = vpop.eup %6303 }
0x2660   :  { %v5189_v53 = vmul.f32 %v6304_v56, %v5182_v23  ;;  %v4651_v56 = vrot.slane %v9623_v16, 6 }
0x2662   :  { %v5190_v28 = vsub.f32 %v5182_v23, %v5189_v53  ;;  %v4802_v23 = vrot.slane %v9612_v22, %v9622_v36  ;;  %v4653_v38 = vmul.f32 %v9619_v40, %v4651_v56  ;;  %v4746_v22 = vrot.slane %v9619_v40, %v9622_v36  ;;  %v9629_v40 = vld [vmem:[#allocation54_spill] sm:$0xff] }
0x2664   :  { %v5191_v2 = vsel %vm253_vm8, %v5189_v53, %v5190_v28 }
0x2665   :  { %5611 = vst.msk [vmem:[%s8941_s10 - $0x6] sm:$0xc0] %vm5610_vm4, %v5191_v2  ;;  %v5637_v33 = vsel %vm5633_vm10, %v5636_v11, %v5191_v2  ;;  %v5193_v35 = vrot.slane %v5191_v2, 6 }
0x2666   :  { %6163 = vmatmul.mubr.msk.f32.vlgmr.msra.gmra.mxu1 %vm278_vm2, %v5637_v33  ;;  %5639 = vst.msk [vmem:[#allocation10 + $0x8] sm:$0xff] %vm278_vm2, %v5637_v33  ;;  %v9624_v33 = vld [vmem:[#allocation26_spill] sm:$0xff] }
0x2667   :  { %6152 = vmatmul.mubr.msk.f32.vlgmr.msra.gmra.mxu0 %vm278_vm2, %v5193_v35  ;;  %v5464_v35 = vrot.slane %v5191_v2, %v9624_v33 }
0x2727   :  { %v5262_v39 = vpop.f32.mrf.mxu0 }
0x2728   :  { %v5263_v19 = vadd.f32 %v5262_v39, %v9617_v37  ;;  %v9625_v39 = vld [vmem:[#allocation46_spill] sm:$0xff] }
0x2729   :  { %v6153_v52 = vpop.f32.mrf.mxu0  ;;  %v5483_v37 = vrot.slane %v5191_v2, %v9625_v39 }
0x272a   :  { %v5266_v61 = vsel %vm626_vm9, %v5263_v19, -inf }
0x272b   :  { %5267 = vmax.xlane.f32.xlu0 %v5266_v61  ;;  %v9627_v61 = vld [vmem:[#allocation52_spill] sm:$0xff] }
0x27b4   :  { %v5268_v45 = vpop.xlane.xlu0 %5267 }
0x27b5   :  { %vm5269_vm3 = vcmp.ge.f32.partialorder %v5263_v19, %v5268_v45 }
0x27b6   :  { %v5270_v13 = vsel %vm5269_vm3, %v5263_v19, 0.0  ;;  %v9626_v19 = vld [vmem:[#allocation51_spill] sm:$0xff] }
0x27b7   :  { %5303 = vperm.xlu0 %6220, %v5270_v13   ;;  %5273 = vperm.xlu1 %6217, %v5270_v13  }
0x27bb   :  { %4769 = vbcast.lane.b32.xlu0 %v4766_v62, 320  ;;  %6218 = vset.pattern.permute.xlu1 %v9620_v32 }
0x27bc   :  { %5283 = vperm.xlu1 %6218, %v5270_v13  }
0x27bf   :  { %4777 = vbcast.lane.b32.xlu0 %v4766_v62, 336 }
0x27c0   :  { %6219 = vset.pattern.permute.xlu1 %v9621_v24 }
0x27c1   :  { %5293 = vperm.xlu1 %6219, %v5270_v13   ;;  %v9628_v13 = vld [vmem:[#allocation53_spill] sm:$0xff] }
0x27c3   :  { %4804 = vbcast.lane.b32.xlu0 %v4802_v23, 256 }
0x27c5   :  { %5316 = vrot.lane.b32.xlu1 %v5191_v2, %s6505_s23 }
0x27c7   :  { %4812 = vbcast.lane.b32.xlu0 %v4802_v23, 272 }
0x27c9   :  { %4659 = vrot.lane.b32.xlu1 %v4657_v60, %s6500_s20 }
0x27cb   :  { %4823 = vbcast.lane.b32.xlu0 %v4821_v7, 256 }
0x27cf   :  { %4831 = vbcast.lane.b32.xlu0 %v4821_v7, 272 }
0x2832   :  { %v5274_v8 = vpop.permute.xlu1 %5273  ;;  %v5304_v2 = vpop.permute.xlu0 %5303 }
0x2833   :  { %v5276_v52 = vmul.f32 %v5274_v8, %v9626_v19  ;;  %v4851_v8 = vrot.slane %v4843_v63, %v9581_v26 }
0x2835   :  { %v4859_v56 = vcombine.high %v4851_v8, %v4851_v8 }
0x2836   :  { %v8740_v32 = vpop.permute.xlu0 %4769 }
0x2837   :  { %v5284_v46 = vpop.permute.xlu1 %5283 }
0x2838   :  { %v5286_v45 = vmul.f32 %v5284_v46, %v9627_v61 }
0x283a   :  { %v8742_v24 = vpop.permute.xlu0 %4777 }
0x283c   :  { %v5294_v58 = vpop.permute.xlu1 %5293 }
0x2840   :  { %v5317_v53 = vpop.permute.xlu1 %5316 }
0x2841   :  { %v5319_v28 = vmul.f32 %v8674_v34, %v5317_v53 }
0x2843   :  { %5321 = vrot.lane.b32.xlu1 %v5319_v28, %s6500_s20 }
0x2844   :  { %v4660_v10 = vpop.permute.xlu1 %4659 }
0x2845   :  { %v8722_v0 = vadd.f32 %v4660_v10, %v4653_v38  ;;  %v4864_v10 = vrot.slane %v4859_v56, %v6627_v17 }
0x2847   :  { %4749 = vbcast.lane.b32.xlu1 %v4746_v22, 320  ;;  %v4882_v43 = vrot.slane %v8722_v0, %v9622_v36  ;;  %v4901_v11 = vrot.slane %v8722_v0, %v9618_v15  ;;  %v5296_v15 = vmul.f32 %v5294_v58, %v9628_v13  ;;  %v4805_v36 = vpop.permute.xlu0 %4804  ;;  %v5313_v60 = vrot.slane %v8722_v0, 6 }
0x2849   :  { %4884 = vbcast.lane.b32.xlu0 %v4882_v43, 256  ;;  %v5315_v46 = vmul.f32 %v8674_v34, %v5313_v60 }
0x284b   :  { %4753 = vbcast.lane.b32.xlu1 %v4746_v22, 328 }
0x284d   :  { %4892 = vbcast.lane.b32.xlu0 %v4882_v43, 272 }
0x284f   :  { %4757 = vbcast.lane.b32.xlu1 %v4746_v22, 336 }
0x2851   :  { %4903 = vbcast.lane.b32.xlu0 %v4901_v11, 256 }
0x2853   :  { %4761 = vbcast.lane.b32.xlu1 %v4746_v22, 344 }
0x2855   :  { %4911 = vbcast.lane.b32.xlu0 %v4901_v11, 272 }
0x2857   :  { %4773 = vbcast.lane.b32.xlu1 %v4766_v62, 328 }
0x2859   :  { %5466 = vbcast.lane.b32.xlu0 %v5464_v35, 256 }
0x285b   :  { %4781 = vbcast.lane.b32.xlu1 %v4766_v62, 344  ;;  %v5306_v62 = vmul.f32 %v5304_v2, %v9629_v40 }
0x285d   :  { %5474 = vbcast.lane.b32.xlu0 %v5464_v35, 272 }
0x285f   :  { %4808 = vbcast.lane.b32.xlu1 %v4802_v23, 264 }
0x2861   :  { %5485 = vbcast.lane.b32.xlu0 %v5483_v37, 256 }
0x2863   :  { %4816 = vbcast.lane.b32.xlu1 %v4802_v23, 280  ;;  %v4813_v23 = vpop.permute.xlu0 %4812 }
0x2864   :  { %v4873_v61 = vmul.f32 %v4864_v10, %v4813_v23 }
0x2865   :  { %5493 = vbcast.lane.b32.xlu0 %v5483_v37, 272 }
0x2867   :  { %4827 = vbcast.lane.b32.xlu1 %v4821_v7, 264 }
0x286b   :  { %4835 = vbcast.lane.b32.xlu1 %v4821_v7, 280  ;;  %v8747_v7 = vpop.permute.xlu0 %4823 }
0x286f   :  { %4888 = vbcast.lane.b32.xlu1 %v4882_v43, 264  ;;  %v8751_v28 = vpop.permute.xlu0 %4831 }
0x2873   :  { %4896 = vbcast.lane.b32.xlu1 %v4882_v43, 280  ;;  %v4871_v43 = vmul.f32 %v4864_v10, %v4805_v36 }
0x2877   :  { %4907 = vbcast.lane.b32.xlu1 %v4901_v11, 264 }
0x287b   :  { %4915 = vbcast.lane.b32.xlu1 %v4901_v11, 280 }
0x287f   :  { %5278 = vrot.lane.b32.xlu1 %v5276_v52, %s6504_s2 }
0x2883   :  { %5288 = vrot.lane.b32.xlu1 %v5286_v45, %s6504_s2 }
0x2887   :  { %5298 = vrot.lane.b32.xlu1 %v5296_v15, %s6504_s2 }
0x288b   :  { %5308 = vrot.lane.b32.xlu1 %v5306_v62, %s6504_s2 }
0x288f   :  { %5470 = vbcast.lane.b32.xlu1 %v5464_v35, 264 }
0x2893   :  { %5478 = vbcast.lane.b32.xlu1 %v5464_v35, 280  ;;  %v9630_v35 = vld [vmem:[#allocation63_spill] sm:$0xff] }
0x2897   :  { %5489 = vbcast.lane.b32.xlu1 %v5483_v37, 264 }
0x289b   :  { %5497 = vbcast.lane.b32.xlu1 %v5483_v37, 280 }
0x28b5   :  { %v5322_v58 = vpop.permute.xlu1 %5321 }
0x28b6   :  { %v5324_v53 = vadd.f32 %v5322_v58, %v5315_v46 }
0x28b8   :  { %v5543_v38 = vrot.slane %v5324_v53, %v9624_v33  ;;  %5621 = vst.msk [vmem:[%s8944_s13 - $0x6] sm:$0xc0] %vm5610_vm4, %v5324_v53  ;;  %v5562_v13 = vrot.slane %v5324_v53, %v9625_v39  ;;  %s6507_s13 = smov [#allocation10]  }
0x28b9   :  { %v4750_v16 = vpop.permute.xlu1 %4749  ;;  %s5748_s29 = sshll.u32 %s6507_s13, 4  ;;  %s5749_s29 = int_to_ptr.vmem [resolvable:$true] %s5748_s29 }
0x28ba   :  { %5549 = vbcast.lane.b32.xlu1 %v5543_v38, 264  ;;  %5545 = vbcast.lane.b32.xlu0 %v5543_v38, 256  ;;  %v4783_v11 = vsub.f32 1.0, %v4750_v16  ;;  %s6397_s30 = scalar_lea.vmem %s5749_s29, 256  ;;  %p6402_p7 = scmp.lt.s32.totalorder %s5749_s29, %s5749_s29 }
0x28bb   :  { %v4885_v22 = vpop.permute.xlu0 %4884  ;;  %p6398_p6 = scmp.ne.s32.totalorder %s5749_s29, %s6397_s30  ;;  %p6403_p8 = scmp.lt.s32.totalorder %s6397_s30, %s6397_s30 }
0x28bc   :  { %v4917_v37 = vmul.f32 %v4885_v22, %v9630_v35  ;;  %v4791_v15 = vmul.f32 %v4783_v11, %v8538_v29  ;;  %v5408_v29 = vrot.slane %v8674_v34, %v9624_v33 }
0x28bd   :  { %v4754_v19 = vpop.permute.xlu1 %4753  ;;  %p6404_p9 = por %p6403_p8, %p6402_p7 }
0x28be   :  { %v4925_v52 = vsub.f32 %v4871_v43, %v4917_v37  ;;  %5557 = vbcast.lane.b32.xlu1 %v5543_v38, 280  ;;  %5553 = vbcast.lane.b32.xlu0 %v5543_v38, 272  ;;  %v4844_v38 = vcombine.high %v4843_v63, %v4843_v63 }
0x28bf   :  { %v4893_v45 = vpop.permute.xlu0 %4892  ;;  %p6405_p10 = pnand %p6404_p9, %p6398_p6 }
0x28c0   :  { %v4919_v2 = vmul.f32 %v4893_v45, %v9630_v35  ;;  %v4933_v40 = vmul.f32 %v4925_v52, %v4750_v16  ;;  %v4858_v22 = vrot.slane %v4844_v38, %v9581_v26 }
0x28c1   :  { %v4758_v62 = vpop.permute.xlu1 %4757 }
0x28c2   :  { %v4927_v60 = vsub.f32 %v4873_v61, %v4919_v2  ;;  %v4785_v8 = vsub.f32 1.0, %v4758_v62  ;;  %5568 = vbcast.lane.b32.xlu1 %v5562_v13, 264  ;;  %5564 = vbcast.lane.b32.xlu0 %v5562_v13, 256  ;;  %v8763_v36 = vadd.f32 %v4933_v40, %v4791_v15  ;;  %v4860_v33 = vcombine.high %v4858_v22, %v4858_v22 }
0x28c3   :  { %v4784_v15 = vsub.f32 1.0, %v4754_v19 }
0x28c4   :  { %v4793_v46 = vmul.f32 %v4785_v8, %v8563_v9  ;;  %v4935_v58 = vmul.f32 %v4927_v60, %v4758_v62  ;;  %v8773_v9 = vrot.slane %v8674_v34, %v9625_v39  ;;  %v8779_v63 = vrot.slane %v4860_v33, %v6627_v17  ;;  %v9631_v33 = vld [vmem:[#allocation58_spill] sm:$0xff] }
0x28c5   :  { %v4762_v56 = vpop.permute.xlu1 %4761  ;;  %v4792_v60 = vmul.f32 %v4784_v15, %v8540_v50 }
0x28c6   :  { %5576 = vbcast.lane.b32.xlu1 %v5562_v13, 280  ;;  %5572 = vbcast.lane.b32.xlu0 %v5562_v13, 272  ;;  %v8766_v23 = vadd.f32 %v4935_v58, %v4793_v46 }
0x28c9   :  { %v4774_v53 = vpop.permute.xlu1 %4773 }
0x28ca   :  { %5415 = vbcast.lane.b32.xlu1 %v5408_v29, 328  ;;  %5411 = vbcast.lane.b32.xlu0 %v5408_v29, 320 }
0x28cd   :  { %v4782_v16 = vpop.permute.xlu1 %4781 }
0x28ce   :  { %5423 = vbcast.lane.b32.xlu1 %v5408_v29, 344  ;;  %5419 = vbcast.lane.b32.xlu0 %v5408_v29, 336  ;;  %v4790_v15 = vsub.f32 1.0, %v4782_v16 }
0x28d1   :  { %v4809_v43 = vpop.permute.xlu1 %4808 }
0x28d2   :  { %v4872_v11 = vmul.f32 %v4864_v10, %v4809_v43  ;;  %5435 = vbcast.lane.b32.xlu1 %v8773_v9, 328  ;;  %5431 = vbcast.lane.b32.xlu0 %v8773_v9, 320  ;;  %v4788_v43 = vsub.f32 1.0, %v4774_v53 }
0x28d4   :  { %v4796_v50 = vmul.f32 %v4788_v43, %v8555_v6  ;;  %v5499_v6 = vcombine.high %v8722_v0, %v8722_v0 }
0x28d5   :  { %v4817_v37 = vpop.permute.xlu1 %4816 }
0x28d6   :  { %v4874_v52 = vmul.f32 %v4864_v10, %v4817_v37  ;;  %5439 = vbcast.lane.b32.xlu0 %v8773_v9, 336  ;;  %v4786_v10 = vsub.f32 1.0, %v4762_v56 }
0x28d8   :  { %v4794_v22 = vmul.f32 %v4786_v10, %v8591_v14  ;;  %v4798_v14 = vmul.f32 %v4790_v15, %v8596_v48 }
0x28d9   :  { %v4828_v61 = vpop.permute.xlu1 %4827 }
0x28da   :  { %v4876_v45 = vmul.f32 %v8779_v63, %v4828_v61 }
0x28dd   :  { %v4836_v13 = vpop.permute.xlu1 %4835 }
0x28de   :  { %v4878_v34 = vmul.f32 %v8779_v63, %v4836_v13 }
0x28e1   :  { %v4889_v39 = vpop.permute.xlu1 %4888 }
0x28e2   :  { %v4918_v2 = vmul.f32 %v4889_v39, %v9630_v35 }
0x28e4   :  { %v4926_v40 = vsub.f32 %v4872_v11, %v4918_v2 }
0x28e5   :  { %v4897_v62 = vpop.permute.xlu1 %4896 }
0x28e6   :  { %v4920_v8 = vmul.f32 %v4897_v62, %v9630_v35  ;;  %v4934_v46 = vmul.f32 %v4926_v40, %v4754_v19 }
0x28e8   :  { %v4928_v58 = vsub.f32 %v4874_v52, %v4920_v8  ;;  %v8786_v29 = vadd.f32 %v4934_v46, %v4792_v60 }
0x28e9   :  { %v4908_v38 = vpop.permute.xlu1 %4907 }
0x28ea   :  { %v4922_v37 = vmul.f32 %v4908_v38, %v9631_v33  ;;  %v4936_v61 = vmul.f32 %v4928_v58, %v4762_v56 }
0x28ec   :  { %v4930_v13 = vsub.f32 %v4876_v45, %v4922_v37  ;;  %v8790_v39 = vadd.f32 %v4936_v61, %v4794_v22  ;;  %v9632_v45 = vld [vmem:[#allocation27_spill] sm:$0xff]  ;;  %v9633_v61 = vld [vmem:[#allocation28_spill] sm:$0xff] }
0x28ed   :  { %v4916_v11 = vpop.permute.xlu1 %4915 }
0x28ee   :  { %v4924_v35 = vmul.f32 %v4916_v11, %v9631_v33  ;;  %v4938_v19 = vmul.f32 %v4930_v13, %v4774_v53  ;;  %v4904_v11 = vpop.permute.xlu0 %4903 }
0x28f0   :  { %v4932_v52 = vsub.f32 %v4878_v34, %v4924_v35  ;;  %v8794_v2 = vadd.f32 %v4938_v19, %v4796_v50  ;;  %v5506_v34 = vrot.slane %v5499_v6, %v9581_v26 }
0x28f1   :  { %v5279_v40 = vpop.permute.xlu1 %5278 }
0x28f2   :  { %v4940_v62 = vmul.f32 %v4932_v52, %v4782_v16  ;;  %v5281_v10 = vadd.f32 %v5279_v40, %v9632_v45  ;;  %v5507_v48 = vcombine.high %v5506_v34, %v5506_v34 }
0x28f4   :  { %v8797_v60 = vadd.f32 %v4940_v62, %v4798_v14  ;;  %v5521_v37 = vrot.slane %v5507_v48, %v9581_v26 }
0x28f5   :  { %v5289_v56 = vpop.permute.xlu1 %5288 }
0x28f6   :  { %v5291_v46 = vadd.f32 %v5289_v56, %v5281_v10  ;;  %v8811_v50 = vrot.slane %v5521_v37, %v6627_v17 }
0x28f9   :  { %v5299_v8 = vpop.permute.xlu1 %5298 }
0x28fa   :  { %v5301_v58 = vadd.f32 %v5299_v8, %v5291_v46 }
0x28fd   :  { %v5309_v38 = vpop.permute.xlu1 %5308 }
0x28fe   :  { %v5311_v53 = vadd.f32 %v5309_v38, %v5301_v58 }
0x2900   :  { %v5336_v22 = vrot.slane %v5311_v53, %v6627_v17  ;;  %v5356_v13 = vrot.slane %v5311_v53, %v9633_v61 }
0x2901   :  { %v5471_v43 = vpop.permute.xlu1 %5470 }
0x2902   :  { %5343 = vbcast.lane.b32.xlu1 %v5336_v22, 300  ;;  %5339 = vbcast.lane.b32.xlu0 %v5336_v22, 292 }
0x2905   :  { %v8804_v16 = vpop.permute.xlu1 %5478 }
0x2906   :  { %5351 = vbcast.lane.b32.xlu1 %v5336_v22, 316  ;;  %5347 = vbcast.lane.b32.xlu0 %v5336_v22, 308 }
0x2909   :  { %v8808_v0 = vpop.permute.xlu1 %5489 }
0x290a   :  { %5363 = vbcast.lane.b32.xlu1 %v5356_v13, 300  ;;  %5359 = vbcast.lane.b32.xlu0 %v5356_v13, 292 }
0x290d   :  { %v5498_v15 = vpop.permute.xlu1 %5497 }
0x290e   :  { %6408 = shalt.err (!%p6405_p10)
}
0x290f   :  { %5754 = dma.vmem_to_hbm [thread:$0]  %s5749_s29, 256, %s8939_s8, [#allocation4], %s6491_s18, %s6491_s18, %s6492_s19   ;;  %v8820_v35 = vmul.f32 %v8811_v50, %v5498_v15  ;;  %5371 = vbcast.lane.b32.xlu1 %v5356_v13, 316  ;;  %5367 = vbcast.lane.b32.xlu0 %v5356_v13, 308  ;;  %v4912_v19 = vpop.permute.xlu0 %4911  ;;  %v4921_v38 = vmul.f32 %v4904_v11, %v9631_v33  ;;  %v5514_v53 = vrot.slane %v5506_v34, %v9581_v26  ;;  %v4789_v34 = vsub.f32 1.0, %v8742_v24 }
0x2910   :  { %s6508_s16 = smov 28   ;;  %v4923_v11 = vmul.f32 %v4912_v19, %v9631_v33  ;;  %s6509_s8 = smov [#allocation11]   ;;  %vm5740_vm5 = vcmask 64512  }
0x2911   :  { %v5525_v13 = vrot.slane %v5514_v53, %v6627_v17  ;;  %v4877_v17 = vmul.f32 %v8779_v63, %v8751_v28  ;;  %s5760_s5 = sshll.u32 %s6509_s8, 4  ;;  %s6510_s6 = smov [#allocation13]   ;;  %s5761_s5 = int_to_ptr.vmem [resolvable:$true] %s5760_s5 }
0x2912   :  { %s5776_s1 = sshll.u32 %s6510_s6, 4  ;;  %s6511_s17 = smov [#allocation14]   ;;  %s5777_s1 = int_to_ptr.vmem [resolvable:$true] %s5776_s1 }
0x2913   :  { %5443 = vbcast.lane.b32.xlu1 %v8773_v9, 344  ;;  %5656 = vrot.lane.b32.xlu0 %v9632_v45, %s6508_s16  ;;  %v5467_v52 = vpop.permute.xlu0 %5466  ;;  %v4875_v9 = vmul.f32 %v8779_v63, %v8747_v7  ;;  %v4787_v45 = vsub.f32 1.0, %v8740_v32  ;;  %v5535_v55 = vmul.f32 %v5525_v13, %v8804_v16  ;;  %s5790_s7 = sshll.u32 %s6511_s17, 4  ;;  %s6417_s20 = scalar_lea.vmem %s5761_s5, 256  ;;  %s5791_s7 = int_to_ptr.vmem [resolvable:$true] %s5790_s7 }
0x2914   :  { %v5532_v27 = vmul.f32 %v5525_v13, %v5467_v52  ;;  %p6418_p11 = scmp.ne.s32.totalorder %s5761_s5, %s6417_s20  ;;  %p6422_p12 = scmp.lt.s32.totalorder %s5761_s5, %s5761_s5 }
0x2915   :  { %v4929_v37 = vsub.f32 %v4875_v9, %v4921_v38  ;;  %v4795_v7 = vmul.f32 %v4787_v45, %v8542_v59  ;;  %v5533_v38 = vmul.f32 %v5525_v13, %v5471_v43  ;;  %v4931_v59 = vsub.f32 %v4877_v17, %v4923_v11  ;;  %p6423_p13 = scmp.lt.s32.totalorder %s6417_s20, %s6417_s20 }
0x2916   :  { %v5537_v11 = vmul.f32 %v8811_v50, %v8808_v0  ;;  %v4797_v17 = vmul.f32 %v4789_v34, %v8565_v1 }
0x2917   :  { %v5475_v40 = vpop.permute.xlu0 %5474  ;;  %p6424_p0 = por %p6423_p13, %p6422_p12 }
0x2918   :  { %v5534_v45 = vmul.f32 %v5525_v13, %v5475_v40 }
0x2919   :  { %p6425_p1 = pnand %p6424_p0, %p6418_p11 }
0x291b   :  { %v5486_v14 = vpop.permute.xlu0 %5485 }
0x291f   :  { %v8824_v62 = vpop.permute.xlu0 %5493 }
0x292c   :  { %v5546_v56 = vpop.permute.xlu0 %5545  ;;  %v5550_v10 = vpop.permute.xlu1 %5549 }
0x292d   :  { %v5578_v15 = vmul.f32 %v5546_v56, %v8528_v57  ;;  %v5579_v47 = vmul.f32 %v5550_v10, %v8528_v57  ;;  %v4937_v10 = vmul.f32 %v4929_v37, %v8740_v32 }
0x292f   :  { %v5586_v51 = vsub.f32 %v5532_v27, %v5578_v15  ;;  %v5587_v33 = vsub.f32 %v5533_v38, %v5579_v47  ;;  %v5536_v27 = vmul.f32 %v8811_v50, %v5486_v14 }
0x2930   :  { %v5554_v8 = vpop.permute.xlu0 %5553  ;;  %v5558_v46 = vpop.permute.xlu1 %5557 }
0x2931   :  { %v5580_v19 = vmul.f32 %v5554_v8, %v8528_v57  ;;  %v5581_v26 = vmul.f32 %v5558_v46, %v8528_v57 }
0x2933   :  { %v5588_v46 = vsub.f32 %v5534_v45, %v5580_v19  ;;  %v5589_v40 = vsub.f32 %v5535_v55, %v5581_v26  ;;  %v4939_v55 = vmul.f32 %v4931_v59, %v8742_v24 }
0x2934   :  { %v5565_v6 = vpop.permute.xlu0 %5564  ;;  %v5569_v58 = vpop.permute.xlu1 %5568 }
0x2935   :  { %v5582_v28 = vmul.f32 %v5565_v6, %v8580_v31  ;;  %v5583_v47 = vmul.f32 %v5569_v58, %v8580_v31  ;;  %v4945_v6 = vadd.f32 %v4937_v10, %v4795_v7  ;;  %v5538_v7 = vmul.f32 %v8811_v50, %v8824_v62 }
0x2937   :  { %v5590_v13 = vsub.f32 %v5536_v27, %v5582_v28  ;;  %v9634_v28 = vld [vmem:[#allocation56_spill] sm:$0xff]  ;;  %v9635_v27 = vld [vmem:[#allocation55_spill] sm:$0xff] }
0x2938   :  { %v5573_v22 = vpop.permute.xlu0 %5572  ;;  %v5577_v48 = vpop.permute.xlu1 %5576 }
0x2939   :  { %v8832_v61 = vmul.f32 %v5577_v48, %v8580_v31  ;;  %v5584_v58 = vmul.f32 %v5573_v22, %v8580_v31  ;;  %v4947_v31 = vadd.f32 %v4939_v55, %v4797_v17 }
0x293b   :  { %v5592_v24 = vsub.f32 %v5538_v7, %v5584_v58 }
0x293c   :  { %v5412_v9 = vpop.permute.xlu0 %5411  ;;  %v5416_v48 = vpop.permute.xlu1 %5415 }
0x293d   :  { %v5445_v53 = vsub.f32 1.0, %v5412_v9  ;;  %v5446_v56 = vsub.f32 1.0, %v5416_v48  ;;  %v5594_v63 = vmul.f32 %v5586_v51, %v5412_v9  ;;  %v5595_v41 = vmul.f32 %v5587_v33, %v5416_v48 }
0x293f   :  { %v5453_v52 = vmul.f32 %v5445_v53, %v8763_v36  ;;  %v5454_v43 = vmul.f32 %v5446_v56, %v8786_v29 }
0x2940   :  { %v5420_v30 = vpop.permute.xlu0 %5419  ;;  %v5424_v32 = vpop.permute.xlu1 %5423 }
0x2941   :  { %v5447_v8 = vsub.f32 1.0, %v5420_v30  ;;  %v5448_v57 = vsub.f32 1.0, %v5424_v32  ;;  %v5602_v37 = vadd.f32 %v5594_v63, %v5453_v52  ;;  %v5603_v15 = vadd.f32 %v5595_v41, %v5454_v43 }
0x2942   :  { %v5596_v38 = vmul.f32 %v5588_v46, %v5420_v30  ;;  %v5597_v9 = vmul.f32 %v5589_v40, %v5424_v32  ;;  %v5591_v41 = vsub.f32 %v5537_v11, %v5583_v47  ;;  %v5325_v63 = vmul.f32 %v5899_v4, %v9634_v28 }
0x2943   :  { %v5455_v16 = vmul.f32 %v5447_v8, %v8766_v23  ;;  %v5456_v51 = vmul.f32 %v5448_v57, %v8790_v39  ;;  %5622 = vst.msk [vmem:[#allocation14] sm:$0xff] %vm278_vm2, %v5602_v37  ;;  %5623 = vst.msk [vmem:[#allocation14 + $0x8] sm:$0xff] %vm278_vm2, %v5603_v15  ;;  %v5326_v47 = vmul.f32 %v5900_v5, %v9635_v27  ;;  %v9636_v40 = vclamps-f32 %v8598_v49, 5.0 }
0x2944   :  { %v5432_v14 = vpop.permute.xlu0 %5431  ;;  %v5436_v48 = vpop.permute.xlu1 %5435  ;;  %v9637_v11 = vclamps-f32 %v8619_v12, 5.0  ;;  %v9638_v49 = vclamps-f32 %v8568_v25, 5.0  ;;  %v9639_v12 = vclamps-f32 %v8570_v44, 5.0  ;;  %v9640_v25 = vclamps-f32 %v8600_v42, 5.0 }
0x2945   :  { %v5449_v0 = vsub.f32 1.0, %v5432_v14  ;;  %v5450_v26 = vsub.f32 1.0, %v5436_v48  ;;  %v5604_v30 = vadd.f32 %v5596_v38, %v5455_v16  ;;  %v5605_v53 = vadd.f32 %v5597_v9, %v5456_v51 }
0x2946   :  { %v5598_v56 = vmul.f32 %v5590_v13, %v5432_v14  ;;  %v5599_v10 = vmul.f32 %v5591_v41, %v5436_v48  ;;  %v5327_v37 = vmul.f32 %v9636_v40, %v6930_v3  ;;  %v5328_v18 = vmul.f32 %v9637_v11, %v9295_v20  ;;  %v6164_v41 = vpop.f32.mrf.mxu1 }
0x2947   :  { %v5457_v33 = vmul.f32 %v5449_v0, %v4945_v6  ;;  %v5458_v19 = vmul.f32 %v5450_v26, %v8794_v2  ;;  %5624 = vst.msk [vmem:[#allocation14 + $0x10] sm:$0xff] %vm278_vm2, %v5604_v30  ;;  %5625 = vst.msk [vmem:[#allocation14 + $0x18] sm:$0xff] %vm278_vm2, %v5605_v53  ;;  %v5329_v13 = vmul.f32 %v9638_v49, %v9634_v28  ;;  %v9641_v44 = vclamps-f32 %v8621_v54, 5.0 }
0x2948   :  { %v5440_v45 = vpop.permute.xlu0 %5439  ;;  %v5330_v9 = vmul.f32 %v9639_v12, %v9635_v27  ;;  %v5331_v26 = vmul.f32 %v9640_v25, %v6930_v3 }
0x2949   :  { %v5451_v22 = vsub.f32 1.0, %v5440_v45  ;;  %v5606_v59 = vadd.f32 %v5598_v56, %v5457_v33  ;;  %v5607_v1 = vadd.f32 %v5599_v10, %v5458_v19  ;;  %v5600_v34 = vmul.f32 %v5592_v24, %v5440_v45  ;;  %v5731_v10 = vpop.f32.mrf.mxu1 }
0x294a   :  { %v5332_v7 = vmul.f32 %v9641_v44, %v9295_v20 }
0x294b   :  { %5626 = vst.msk [vmem:[#allocation14 + $0x20] sm:$0xff] %vm278_vm2, %v5606_v59  ;;  %5627 = vst.msk [vmem:[#allocation14 + $0x28] sm:$0xff] %vm278_vm2, %v5607_v1  ;;  %v5459_v50 = vmul.f32 %v5451_v22, %v4947_v31  ;;  %v9642_v59 = vsub.f32 %v8820_v35, %v8832_v61 }
0x294d   :  { %v5608_v62 = vadd.f32 %v5600_v34, %v5459_v50 }
0x294f   :  { %5628 = vst.msk [vmem:[#allocation14 + $0x30] sm:$0xff] %vm278_vm2, %v5608_v62 }
0x2974   :  { %v5340_v52 = vpop.permute.xlu0 %5339  ;;  %v5344_v43 = vpop.permute.xlu1 %5343 }
0x2975   :  { %v5373_v32 = vmul.f32 %v5340_v52, %v8763_v36  ;;  %v5374_v8 = vmul.f32 %v5344_v43, %v8786_v29 }
0x2977   :  { %v5381_v57 = vadd.f32 %v5373_v32, %v5325_v63  ;;  %v5382_v46 = vadd.f32 %v5374_v8, %v5326_v47 }
0x2978   :  { %v5348_v15 = vpop.permute.xlu0 %5347  ;;  %v5352_v4 = vpop.permute.xlu1 %5351 }
0x2979   :  { %v5911_v16 = vclamps-f32 %v5381_v57, 5.0  ;;  %v5912_v36 = vclamps-f32 %v5382_v46, 5.0  ;;  %v5375_v51 = vmul.f32 %v5348_v15, %v8766_v23  ;;  %v5376_v21 = vmul.f32 %v5352_v4, %v8790_v39 }
0x297b   :  { %5613 = vst.msk [vmem:[#allocation13] sm:$0xff] %vm278_vm2, %v5911_v16  ;;  %5614 = vst.msk [vmem:[#allocation13 + $0x8] sm:$0xff] %vm278_vm2, %v5912_v36  ;;  %v5383_v5 = vadd.f32 %v5375_v51, %v5327_v37  ;;  %v5384_v29 = vadd.f32 %v5376_v21, %v5328_v18 }
0x297c   :  { %v5360_v38 = vpop.permute.xlu0 %5359  ;;  %v5364_v14 = vpop.permute.xlu1 %5363 }
0x297d   :  { %v5913_v48 = vclamps-f32 %v5383_v5, 5.0  ;;  %v5914_v23 = vclamps-f32 %v5384_v29, 5.0  ;;  %v5377_v55 = vmul.f32 %v5360_v38, %v4945_v6  ;;  %v5378_v39 = vmul.f32 %v5364_v14, %v8794_v2 }
0x297f   :  { %5615 = vst.msk [vmem:[#allocation13 + $0x10] sm:$0xff] %vm278_vm2, %v5913_v48  ;;  %5616 = vst.msk [vmem:[#allocation13 + $0x18] sm:$0xff] %vm278_vm2, %v5914_v23  ;;  %v5385_v58 = vadd.f32 %v5377_v55, %v5329_v13  ;;  %v5386_v0 = vadd.f32 %v5378_v39, %v5330_v9 }
0x2981   :  { %v5368_v17 = vpop.permute.xlu0 %5367  ;;  %v5372_v30 = vpop.permute.xlu1 %5371  ;;  %v5915_v6 = vclamps-f32 %v5385_v58, 5.0  ;;  %v5916_v53 = vclamps-f32 %v5386_v0, 5.0 }
0x2982   :  { %v5379_v2 = vmul.f32 %v5368_v17, %v4947_v31  ;;  %v5380_v56 = vmul.f32 %v5372_v30, %v8797_v60 }
0x2983   :  { %5617 = vst.msk [vmem:[#allocation13 + $0x20] sm:$0xff] %vm278_vm2, %v5915_v6  ;;  %5618 = vst.msk [vmem:[#allocation13 + $0x28] sm:$0xff] %vm278_vm2, %v5916_v53 }
0x2984   :  { %v5387_v42 = vadd.f32 %v5379_v2, %v5331_v26  ;;  %v5388_v3 = vadd.f32 %v5380_v56, %v5332_v7 }
0x2985   :  { %v5657_v33 = vpop.permute.xlu0 %5656  ;;  %v5444_v54 = vpop.permute.xlu1 %5443 }
0x2986   :  { %v5917_v20 = vclamps-f32 %v5387_v42, 5.0  ;;  %v5918_v19 = vclamps-f32 %v5388_v3, 5.0  ;;  %v5732_v45 = vadd.f32 %v5731_v10, %v5657_v33  ;;  %v5737_v31 = vadd.f32 %v6164_v41, %v5657_v33 }
0x2987   :  { %v5452_v24 = vsub.f32 1.0, %v5444_v54  ;;  %v5601_v1 = vmul.f32 %v9642_v59, %v5444_v54 }
0x2988   :  { %5619 = vst.msk [vmem:[#allocation13 + $0x30] sm:$0xff] %vm278_vm2, %v5917_v20  ;;  %5620 = vst.msk [vmem:[#allocation13 + $0x38] sm:$0xff] %vm278_vm2, %v5918_v19 }
0x2989   :  { %5741 = vst.msk [vmem:[#allocation11] sm:$0xff] %vm5740_vm5, %v5732_v45  ;;  %5742 = vst.msk [vmem:[#allocation11 + $0x8] sm:$0xff] %vm5740_vm5, %v5737_v31  ;;  %v5460_v22 = vmul.f32 %v5452_v24, %v8797_v60 }
0x298a   :  { %6428 = shalt.err (!%p6425_p1)
}
0x298b   :  { %5766 = dma.vmem_to_hbm [thread:$0]  %s5761_s5, 256, %s8940_s9, [#allocation12], %s6491_s18, %s6491_s18, %s6492_s19  }
0x298c   :  { %s6437_s2 = scalar_lea.vmem %s5777_s1, 1024  ;;  %p6442_p3 = scmp.lt.s32.totalorder %s5777_s1, %s5777_s1 }
0x298d   :  { %p6438_p2 = scmp.ne.s32.totalorder %s5777_s1, %s6437_s2  ;;  %p6443_p4 = scmp.lt.s32.totalorder %s6437_s2, %s6437_s2 }
0x298f   :  { %p6444_p5 = por %p6443_p4, %p6442_p3 }
0x2991   :  { %p6445_p6 = pnand %p6444_p5, %p6438_p2 }
0x2993   :  { %6448 = shalt.err (!%p6445_p6)
}
0x2994   :  { %5782 = dma.vmem_to_hbm [thread:$0]  %s5777_s1, 1024, %s8943_s12, [#allocation12], %s6491_s18, %s6491_s18, %s6492_s19   ;;  %v5609_v60 = vadd.f32 %v5601_v1, %v5460_v22 }
0x2995   :  { %s6457_s25 = scalar_lea.vmem %s5791_s7, 1024  ;;  %p6462_p8 = scmp.lt.s32.totalorder %s5791_s7, %s5791_s7 }
0x2996   :  { %5629 = vst.msk [vmem:[#allocation14 + $0x38] sm:$0xff] %vm278_vm2, %v5609_v60  ;;  %p6458_p7 = scmp.ne.s32.totalorder %s5791_s7, %s6457_s25  ;;  %p6463_p9 = scmp.lt.s32.totalorder %s6457_s25, %s6457_s25 }
0x2998   :  { %p6464_p10 = por %p6463_p9, %p6462_p8 }
0x299a   :  { %p6465_p11 = pnand %p6464_p10, %p6458_p7 }
0x299c   :  { %6468 = shalt.err (!%p6465_p11)
}
0x299d   :  { %5796 = dma.vmem_to_hbm [thread:$0]  %s5791_s7, 1024, %s8945_s14, [#allocation15], %s6491_s18, %s6491_s18, %s6492_s19  }
0x299e   :  { %6483 = dma.done.wait [#allocation4], 256  }
0x299f   :  { %6484 = vsyncadd [#allocation4], 4294967040 }
0x29a0   :  { %6485 = dma.done.wait [#allocation12], 1280  }
0x29a1   :  { %6486 = vsyncadd [#allocation12], 4294966016 }
0x29a2   :  { %6487 = dma.done.wait [#allocation15], 1024  }
0x29a3   :  { %6488 = vsyncadd [#allocation15], 4294966272 }
0x29a4   :  { %5815 = vsyncpa [#allocation3], 1 }
0x29a5   :  { %5816 = vsyncpa [#allocation6], 1 }
0x29a6   :  { %5817 = vsyncpa [#allocation9], 1 }
0x29a7   :  { %5818 = vsyncpa [#allocation4], 1 }
0x29a8   :  { %5819 = vsyncpa [#allocation12], 1 }
0x29a9   :  { %5820 = vsyncpa [#allocation15], 1 }

</bundles_post_ra>
